<compile_context>
chip_gen: v6e
topology: v6e:2x2x1
jax: 0.10.0
libtpu: 0.0.40
codegen_flags: <defaults>
</compile_context>

<pallas_src>
import functools

import jax
import jax.numpy as jnp
from jax.experimental import pallas as pl
from jax.experimental.pallas import tpu as pltpu


# ------------------------------- kernels ------------------------------------


def _conv_w_stats_kernel(x_ref, w_ref, y_ref, stat_ref):
    """1x7 conv along W (7 accumulating MXU matmuls) + BN1 sufficient stats.

    x_ref   : (TM, W, Cin)    compute dtype; TM rows are (n, h) pairs.
    w_ref   : (KW, Cin, Cout) tap-major weights, resident (constant index map).
    y_ref   : (TM, W, Cout)   pre-BN conv1 output (compute dtype).
    stat_ref: (1, 2, Cout)    f32 per-grid-step slot: [sum(y1); sum(y1*y1)].
    """
    tm, w, cin = x_ref.shape
    kw, _, cout = w_ref.shape
    pad = (kw - 1) // 2
    # Zero border rounded to the native sublane tile (8 rows f32 / 16 bf16) so
    # the sublane-axis concatenate stays tile-aligned.
    sub = 8 * max(1, 4 // jnp.dtype(x_ref.dtype).itemsize)
    side = ((pad + sub - 1) // sub) * sub

    x = x_ref[...]
    zeros = jnp.zeros((tm, side, cin), x.dtype)
    xp = jnp.concatenate([zeros, x, zeros], axis=1)        # (TM, W + 2*side, Cin)

    # NOTE: the 7 tap slices start at sublane-unaligned offsets and each one
    # materializes a shifted copy in VMEM; that cost overlaps with the MXU /
    # DMA pipeline and avoiding it would add an HBM pass (see header).
    acc = jnp.zeros((tm * w, cout), jnp.float32)
    for k in range(kw):                                    # static unroll
        start = side - pad + k
        xs = xp[:, start:start + w, :].reshape(tm * w, cin)
        acc = acc + jnp.dot(xs, w_ref[k], preferred_element_type=jnp.float32)

    y_ref[...] = acc.reshape(tm, w, cout).astype(y_ref.dtype)
    # Per-tile partial statistics (f32), reduced across tiles in the wrapper.
    stat_ref[0, 0:1, :] = jnp.sum(acc, axis=0, keepdims=True)
    stat_ref[0, 1:2, :] = jnp.sum(acc * acc, axis=0, keepdims=True)


def _bn_relu_conv_h_stats_kernel(y1_ref, w_ref, sc_ref, sh_ref, y2_ref, stat_ref):
    """Folded BN1 + ReLU + 7x1 conv along H + BN2 sufficient stats.

    y1_ref  : (1, H, TW, Cout)  pre-BN conv1 output (compute dtype).
    w_ref   : (KH, Cout, Cout)  tap-major weights, resident.
    sc_ref  : (1, Cout) f32     BN1 scale = gamma1 * rsqrt(var1 + eps).
    sh_ref  : (1, Cout) f32     BN1 shift = beta1 - mean1 * scale1.
    y2_ref  : (1, H, TW, Cout)  pre-BN conv2 output (compute dtype).
    stat_ref: (1, 1, 2, Cout)   f32 per-grid-step slot: [sum(y2); sum(y2*y2)].
    """
    _, h, tw, cout = y1_ref.shape
    kh = w_ref.shape[0]
    pad = (kh - 1) // 2

    # BN1 fold + ReLU in f32 (v5e's VPU has no bf16 path), cast for the MXU.
    z = jnp.maximum(y1_ref[0].astype(jnp.float32) * sc_ref[...] + sh_ref[...], 0.0)
    z = z.astype(y1_ref.dtype)

    # Zero-pad along H *after* BN+ReLU (matches Conv2d zero padding).  H is the
    # leading (non-tiled) axis, so the concat and the tap slices below are free
    # vreg-set selections -- no sublane relayout, no copies.
    zeros = jnp.zeros((pad, tw, cout), z.dtype)
    zp = jnp.concatenate([zeros, z, zeros], axis=0)        # (H + 2*pad, TW, Cout)

    acc = jnp.zeros((h * tw, cout), jnp.float32)
    for k in range(kh):                                    # static unroll
        acc = acc + jnp.dot(zp[k:k + h].reshape(h * tw, cout), w_ref[k],
                            preferred_element_type=jnp.float32)

    y2_ref[0] = acc.reshape(h, tw, cout).astype(y2_ref.dtype)
    stat_ref[0, 0, 0:1, :] = jnp.sum(acc, axis=0, keepdims=True)
    stat_ref[0, 0, 1:2, :] = jnp.sum(acc * acc, axis=0, keepdims=True)


# ------------------------------- helpers ------------------------------------


def _default_vmem_budget():
    """Per-generation scoped-VMEM budget: ~half of physical capacity."""
    cap = 128 * 1024 * 1024
    try:
        info = pltpu.get_tpu_info()
        cap = int(getattr(info, "vmem_capacity_bytes", cap))
    except Exception:
        pass
    # 64 MiB on v5e/v6e (128 MiB physical), 32 MiB on v7x (64 MiB physical).
    return max(16 * 1024 * 1024, min(cap // 2, 64 * 1024 * 1024))


def _pick_row_tile(m, per_row_bytes, budget, cap=2048):
    """Row tile for pass 1.  Returns (tile, padded_m)."""
    limit = int(max(1, min(cap, m, budget // max(per_row_bytes, 1))))
    div = 1
    for t in range(limit, 0, -1):
        if m % t == 0:
            div = t
            break
    # A divisor within 8x of the budget-limited tile keeps per-step overhead
    # low and avoids padding (so the (N, H, W, C) reshape afterwards is free).
    if div * 8 >= limit:
        return div, m
    # Awkward m (e.g. prime): zero-pad rows to a multiple of a budget-sized
    # tile.  Zero rows contribute 0 to both sum and sum-of-squares, so the
    # BN1 statistics stay exact (count uses the true N*H*W).
    tile = limit
    return tile, ((m + tile - 1) // tile) * tile


def _pick_w_tile(w_dim, per_col_bytes, budget):
    """W tile for pass 2: full W or a multiple-of-8 divisor (layout-legal)."""
    cands = [w_dim] + [t for t in range(8, w_dim, 8) if w_dim % t == 0]
    fitting = [t for t in cands if t * per_col_bytes <= budget]
    if fitting:
        return max(fitting)
    return min(cands)   # nothing fits the budget; smallest legal tile


def _fold_bn(stats, count, gamma, beta, eps):
    """Training-mode (biased) BN folded into per-channel (1, C) scale/shift.

    One-pass E[x^2]-E[x]^2 on f32 per-tile partial sums; fine at these
    activation scales.  # TODO(synk): compensated two-pass stats for huge N*H*W.
    """
    total = stats[0]
    total_sq = stats[1]
    mean = total / count
    var = jnp.maximum(total_sq / count - mean * mean, 0.0)
    scale = gamma.astype(jnp.float32) * jax.lax.rsqrt(var + eps)
    shift = beta.astype(jnp.float32) - mean * scale
    return scale[None, :], shift[None, :]


# ------------------------------- wrapper ------------------------------------


def conv1771_forward(x_nchw, w1_t, gamma1, beta1, w2_t, gamma2, beta2, *,
                     compute_dtype=jnp.bfloat16, eps=1e-5,
                     vmem_budget_bytes=None):
    """Forward of Conv1771Op.

    x_nchw: (N, Cin, H, W) f32.
    w1_t  : (KW, Cin, Cout)  tap-major (1,7) conv weights.
    w2_t  : (KH, Cout, Cout) tap-major (7,1) conv weights.
    gamma*/beta*: (Cout,) BatchNorm affine parameters.
    Returns (N, Cout, H, W) f32.
    """
    N, Cin, H, W = x_nchw.shape
    KW, _, Cout = w1_t.shape
    KH = w2_t.shape[0]
    cd = jnp.dtype(compute_dtype)
    ib = cd.itemsize

    budget = int(vmem_budget_bytes or _default_vmem_budget())
    tile_budget = budget // 2          # headroom for Mosaic-internal scratch

    # Layout glue: NCHW -> (N*H, W, C) channels-last rows, compute dtype.
    x = jnp.transpose(x_nchw, (0, 2, 3, 1)).reshape(N * H, W, Cin).astype(cd)

    # ---------------- pass 1: 1x7 conv over W + BN1 stats --------------------
    M1 = N * H
    side = 2 * 8 * max(1, 4 // ib)
    per_row1 = (2 * W * (Cin + Cout) * ib          # double-buffered in/out blocks
                + (W + side) * Cin * ib            # zero-padded slab
                + 2 * W * Cin * ib                 # transient shifted tap copies
                + W * Cout * (4 + ib))             # f32 accumulator + cast temp
    tm1, m1p = _pick_row_tile(M1, per_row1, tile_budget)
    if m1p != M1:
        x = jnp.pad(x, ((0, m1p - M1), (0, 0), (0, 0)))
    g1 = m1p // tm1

    y1, st1 = pl.pallas_call(
        _conv_w_stats_kernel,
        out_shape=(jax.ShapeDtypeStruct((m1p, W, Cout), cd),
                   jax.ShapeDtypeStruct((g1, 2, Cout), jnp.float32)),
        grid=(g1,),
        in_specs=[pl.BlockSpec((tm1, W, Cin), lambda i: (i, 0, 0)),
                  pl.BlockSpec((KW, Cin, Cout), lambda i: (0, 0, 0))],
        out_specs=(pl.BlockSpec((tm1, W, Cout), lambda i: (i, 0, 0)),
                   pl.BlockSpec((1, 2, Cout), lambda i: (i, 0, 0))),
        compiler_params=pltpu.CompilerParams(
            dimension_semantics=("parallel",),
            vmem_limit_bytes=budget),
    )(x, w1_t.astype(cd))

    sc1, sh1 = _fold_bn(jnp.sum(st1, axis=0), N * H * W, gamma1, beta1, eps)

    # ---------------- pass 2: BN1 + ReLU + 7x1 conv over H + BN2 stats -------
    if m1p != M1:
        y1 = y1[:M1]
    y1_4d = y1.reshape(N, H, W, Cout)              # free metadata reshape

    per_col2 = (4 * H * Cout * ib                  # double-buffered in/out blocks
                + H * Cout * 4                     # f32 BN1+ReLU temp
                + (H + KH - 1) * Cout * ib         # zero-padded slab
                + H * Cout * (4 + ib))             # f32 accumulator + cast temp
    tw = _pick_w_tile(W, per_col2, tile_budget)
    wt = W // tw

    y2, st2 = pl.pallas_call(
        _bn_relu_conv_h_stats_kernel,
        out_shape=(jax.ShapeDtypeStruct((N, H, W, Cout), cd),
                   jax.ShapeDtypeStruct((N, wt, 2, Cout), jnp.float32)),
        grid=(N, wt),
        in_specs=[pl.BlockSpec((1, H, tw, Cout), lambda n, j: (n, 0, j, 0)),
                  pl.BlockSpec((KH, Cout, Cout), lambda n, j: (0, 0, 0)),
                  pl.BlockSpec((1, Cout), lambda n, j: (0, 0)),
                  pl.BlockSpec((1, Cout), lambda n, j: (0, 0))],
        out_specs=(pl.BlockSpec((1, H, tw, Cout), lambda n, j: (n, 0, j, 0)),
                   pl.BlockSpec((1, 1, 2, Cout), lambda n, j: (n, j, 0, 0))),
        compiler_params=pltpu.CompilerParams(
            dimension_semantics=("parallel", "parallel"),
            vmem_limit_bytes=budget),
    )(y1_4d, w2_t.astype(cd), sc1, sh1)

    sc2, sh2 = _fold_bn(jnp.sum(st2, axis=(0, 1)), N * H * W, gamma2, beta2, eps)

    # BN2 affine folded into the final NHWC -> NCHW transpose (fused by XLA);
    # replaces the previous version's third pallas pass (full HBM round trip).
    out = y2.astype(jnp.float32) * sc2 + sh2
    return jnp.transpose(out, (0, 3, 1, 2))


# ------------------------------ reference -----------------------------------


def _reference(x_nchw, w1_t, gamma1, beta1, w2_t, gamma2, beta2, eps=1e-5):
    """Pure-JAX reference of Conv1771Op's forward (HIGHEST precision, f32)."""
    n, cin, h, w = x_nchw.shape
    kw, kh = w1_t.shape[0], w2_t.shape[0]
    xh = jnp.transpose(x_nchw, (0, 2, 3, 1))
    xp = jnp.pad(xh, ((0, 0), (0, 0), (kw // 2, kw // 2), (0, 0)))
    y1 = sum(jnp.einsum('nhwc,cd->nhwd', xp[:, :, k:k + w, :], w1_t[k],
                        precision=jax.lax.Precision.HIGHEST) for k in range(kw))

    def bn(y, g, b):
        mean = y.mean(axis=(0, 1, 2))
        var = y.var(axis=(0, 1, 2))
        return (y - mean) * jax.lax.rsqrt(var + eps) * g + b

    z = jnp.maximum(bn(y1, gamma1, beta1), 0.0)
    zp = jnp.pad(z, ((0, 0), (kh // 2, kh // 2), (0, 0), (0, 0)))
    y2 = sum(jnp.einsum('nhwc,cd->nhwd', zp[:, k:k + h, :, :], w2_t[k],
                        precision=jax.lax.Precision.HIGHEST) for k in range(kh))
    return jnp.transpose(bn(y2, gamma2, beta2), (0, 3, 1, 2))


# --------------------------------- main -------------------------------------


if __name__ == "__main__":
    key = jax.random.PRNGKey(0)
    N, Cin, H, W, Cout = 2, 4, 16, 16, 8
    KW = KH = 7

    kx, kw1, kw2 = jax.random.split(key, 3)
    x = jax.random.normal(kx, (N, Cin, H, W), dtype=jnp.float32)

    # Conv weights in tap-major layout: conv1 (Cout,Cin,1,7) -> (KW,Cin,Cout),
    # conv2 (Cout,Cout,7,1) -> (KH,Cout,Cout).  Biases are omitted on purpose:
    # they cancel exactly under the following training-mode BatchNorm.
    bound1 = 1.0 / (Cin * KW) ** 0.5
    w1_t = jax.random.uniform(kw1, (KW, Cin, Cout), jnp.float32, -bound1, bound1)
    bound2 = 1.0 / (Cout * KH) ** 0.5
    w2_t = jax.random.uniform(kw2, (KH, Cout, Cout), jnp.float32, -bound2, bound2)

    # BatchNorm2d affine parameters at init (gamma=1, beta=0).
    gamma1 = jnp.ones((Cout,), jnp.float32)
    beta1 = jnp.zeros((Cout,), jnp.float32)
    gamma2 = jnp.ones((Cout,), jnp.float32)
    beta2 = jnp.zeros((Cout,), jnp.float32)

    ref = _reference(x, w1_t, gamma1, beta1, w2_t, gamma2, beta2)

    # f32 compute path: tight numerical check of the kernel math.
    fwd32 = jax.jit(functools.partial(conv1771_forward, compute_dtype=jnp.float32))
    out32 = jax.block_until_ready(fwd32(x, w1_t, gamma1, beta1, w2_t, gamma2, beta2))
    assert out32.shape == (N, Cout, H, W), out32.shape
    err32 = float(jnp.max(jnp.abs(out32 - ref)))
    assert err32 < 5e-2, f"f32 path max abs error vs reference: {err32}"

    # bf16 compute path (production config): BN renormalization keeps the
    # rounding error benign; loose sanity tolerance.
    fwd16 = jax.jit(functools.partial(conv1771_forward, compute_dtype=jnp.bfloat16))
    out16 = jax.block_until_ready(fwd16(x, w1_t, gamma1, beta1, w2_t, gamma2, beta2))
    assert out16.shape == (N, Cout, H, W), out16.shape
    err16 = float(jnp.max(jnp.abs(out16 - ref)))
    assert err16 < 3e-1, f"bf16 path max abs error vs reference: {err16}"

    print("KERNEL_OK")
</pallas_src>

<mosaic_0001>
module attributes {stable_mosaic.version = 11 : i64} {
  func.func @_bn_relu_conv_h_stats_kernel(%arg0: i32, %arg1: i32, %arg2: memref<1x16x16x8xf32, #tpu.memory_space<vmem>>, %arg3: memref<7x8x8xf32, #tpu.memory_space<vmem>>, %arg4: memref<1x8xf32, #tpu.memory_space<vmem>>, %arg5: memref<1x8xf32, #tpu.memory_space<vmem>>, %arg6: memref<1x16x16x8xf32, #tpu.memory_space<vmem>>, %arg7: memref<1x1x2x8xf32, #tpu.memory_space<vmem>>) attributes {dimension_semantics = [#tpu.dimension_semantics<parallel>, #tpu.dimension_semantics<parallel>], iteration_bounds = array<i64: 2, 1>, scalar_prefetch = 0 : i64, scratch_operands = 0 : i64, tpu.core_type = #tpu.core_type<tc>, window_params = [{transform_indices = @transform_0, window_bounds = array<i64: 1, 16, 16, 8>}, {pipeline_mode = #tpu.pipeline_mode<synchronous>, transform_indices = @transform_1, window_bounds = array<i64: 7, 8, 8>}, {pipeline_mode = #tpu.pipeline_mode<synchronous>, transform_indices = @transform_2, window_bounds = array<i64: 1, 8>}, {pipeline_mode = #tpu.pipeline_mode<synchronous>, transform_indices = @transform_3, window_bounds = array<i64: 1, 8>}, {transform_indices = @transform_4, window_bounds = array<i64: 1, 16, 16, 8>}, {transform_indices = @transform_5, window_bounds = array<i64: 1, 1, 2, 8>}]} {
    %c0 = arith.constant 0 : index
    %c0_0 = arith.constant 0 : index
    %c0_1 = arith.constant 0 : index
    %c0_2 = arith.constant 0 : index
    %0 = vector.load %arg2[%c0, %c0_0, %c0_1, %c0_2] : memref<1x16x16x8xf32, #tpu.memory_space<vmem>>, vector<1x16x16x8xf32>
    %1 = vector.shape_cast %0 : vector<1x16x16x8xf32> to vector<16x16x8xf32>
    %c0_3 = arith.constant 0 : index
    %c0_4 = arith.constant 0 : index
    %2 = vector.load %arg4[%c0_3, %c0_4] : memref<1x8xf32, #tpu.memory_space<vmem>>, vector<1x8xf32>
    %3 = vector.shape_cast %2 : vector<1x8xf32> to vector<1x1x8xf32>
    %4 = vector.broadcast %3 : vector<1x1x8xf32> to vector<16x16x8xf32>
    %5 = arith.mulf %1, %4 : vector<16x16x8xf32>
    %c0_5 = arith.constant 0 : index
    %c0_6 = arith.constant 0 : index
    %6 = vector.load %arg5[%c0_5, %c0_6] : memref<1x8xf32, #tpu.memory_space<vmem>>, vector<1x8xf32>
    %7 = vector.shape_cast %6 : vector<1x8xf32> to vector<1x1x8xf32>
    %8 = vector.broadcast %7 : vector<1x1x8xf32> to vector<16x16x8xf32>
    %9 = arith.addf %5, %8 : vector<16x16x8xf32>
    %cst = arith.constant 0.000000e+00 : f32
    %10 = vector.broadcast %cst : f32 to vector<16x16x8xf32>
    %11 = arith.maximumf %9, %10 : vector<16x16x8xf32>
    %cst_7 = arith.constant 0.000000e+00 : f32
    %12 = vector.broadcast %cst_7 : f32 to vector<3x16x8xf32>
    %13 = tpu.concatenate %12, %11, %12 in 0 : vector<3x16x8xf32>, vector<16x16x8xf32>, vector<3x16x8xf32> -> vector<22x16x8xf32>
    %cst_8 = arith.constant 0.000000e+00 : f32
    %14 = vector.broadcast %cst_8 : f32 to vector<256x8xf32>
    %15 = vector.extract_strided_slice %13 {offsets = [0, 0, 0], sizes = [16, 16, 8], strides = [1, 1, 1]} : vector<22x16x8xf32> to vector<16x16x8xf32>
    %16 = vector.shape_cast %15 : vector<16x16x8xf32> to vector<256x8xf32>
    %c0_9 = arith.constant 0 : index
    %c0_10 = arith.constant 0 : index
    %c0_11 = arith.constant 0 : index
    %17 = vector.load %arg3[%c0_9, %c0_10, %c0_11] : memref<7x8x8xf32, #tpu.memory_space<vmem>>, vector<1x8x8xf32>
    %18 = vector.shape_cast %17 : vector<1x8x8xf32> to vector<8x8xf32>
    %cst_12 = arith.constant dense<0.000000e+00> : vector<256x8xf32>
    %19 = tpu.matmul %16, %18, %cst_12 {dimension_numbers = #tpu.dot_dimension_numbers<[1], [0], [0], [1], [0, 0, 1, 1], [], []>} : vector<256x8xf32>, vector<8x8xf32>, vector<256x8xf32> -> vector<256x8xf32>
    %20 = arith.addf %14, %19 : vector<256x8xf32>
    %21 = vector.extract_strided_slice %13 {offsets = [1, 0, 0], sizes = [16, 16, 8], strides = [1, 1, 1]} : vector<22x16x8xf32> to vector<16x16x8xf32>
    %22 = vector.shape_cast %21 : vector<16x16x8xf32> to vector<256x8xf32>
    %c1 = arith.constant 1 : index
    %c0_13 = arith.constant 0 : index
    %c0_14 = arith.constant 0 : index
    %23 = vector.load %arg3[%c1, %c0_13, %c0_14] : memref<7x8x8xf32, #tpu.memory_space<vmem>>, vector<1x8x8xf32>
    %24 = vector.shape_cast %23 : vector<1x8x8xf32> to vector<8x8xf32>
    %cst_15 = arith.constant dense<0.000000e+00> : vector<256x8xf32>
    %25 = tpu.matmul %22, %24, %cst_15 {dimension_numbers = #tpu.dot_dimension_numbers<[1], [0], [0], [1], [0, 0, 1, 1], [], []>} : vector<256x8xf32>, vector<8x8xf32>, vector<256x8xf32> -> vector<256x8xf32>
    %26 = arith.addf %20, %25 : vector<256x8xf32>
    %27 = vector.extract_strided_slice %13 {offsets = [2, 0, 0], sizes = [16, 16, 8], strides = [1, 1, 1]} : vector<22x16x8xf32> to vector<16x16x8xf32>
    %28 = vector.shape_cast %27 : vector<16x16x8xf32> to vector<256x8xf32>
    %c2 = arith.constant 2 : index
    %c0_16 = arith.constant 0 : index
    %c0_17 = arith.constant 0 : index
    %29 = vector.load %arg3[%c2, %c0_16, %c0_17] : memref<7x8x8xf32, #tpu.memory_space<vmem>>, vector<1x8x8xf32>
    %30 = vector.shape_cast %29 : vector<1x8x8xf32> to vector<8x8xf32>
    %cst_18 = arith.constant dense<0.000000e+00> : vector<256x8xf32>
    %31 = tpu.matmul %28, %30, %cst_18 {dimension_numbers = #tpu.dot_dimension_numbers<[1], [0], [0], [1], [0, 0, 1, 1], [], []>} : vector<256x8xf32>, vector<8x8xf32>, vector<256x8xf32> -> vector<256x8xf32>
    %32 = arith.addf %26, %31 : vector<256x8xf32>
    %33 = vector.extract_strided_slice %13 {offsets = [3, 0, 0], sizes = [16, 16, 8], strides = [1, 1, 1]} : vector<22x16x8xf32> to vector<16x16x8xf32>
    %34 = vector.shape_cast %33 : vector<16x16x8xf32> to vector<256x8xf32>
    %c3 = arith.constant 3 : index
    %c0_19 = arith.constant 0 : index
    %c0_20 = arith.constant 0 : index
    %35 = vector.load %arg3[%c3, %c0_19, %c0_20] : memref<7x8x8xf32, #tpu.memory_space<vmem>>, vector<1x8x8xf32>
    %36 = vector.shape_cast %35 : vector<1x8x8xf32> to vector<8x8xf32>
    %cst_21 = arith.constant dense<0.000000e+00> : vector<256x8xf32>
    %37 = tpu.matmul %34, %36, %cst_21 {dimension_numbers = #tpu.dot_dimension_numbers<[1], [0], [0], [1], [0, 0, 1, 1], [], []>} : vector<256x8xf32>, vector<8x8xf32>, vector<256x8xf32> -> vector<256x8xf32>
    %38 = arith.addf %32, %37 : vector<256x8xf32>
    %39 = vector.extract_strided_slice %13 {offsets = [4, 0, 0], sizes = [16, 16, 8], strides = [1, 1, 1]} : vector<22x16x8xf32> to vector<16x16x8xf32>
    %40 = vector.shape_cast %39 : vector<16x16x8xf32> to vector<256x8xf32>
    %c4 = arith.constant 4 : index
    %c0_22 = arith.constant 0 : index
    %c0_23 = arith.constant 0 : index
    %41 = vector.load %arg3[%c4, %c0_22, %c0_23] : memref<7x8x8xf32, #tpu.memory_space<vmem>>, vector<1x8x8xf32>
    %42 = vector.shape_cast %41 : vector<1x8x8xf32> to vector<8x8xf32>
    %cst_24 = arith.constant dense<0.000000e+00> : vector<256x8xf32>
    %43 = tpu.matmul %40, %42, %cst_24 {dimension_numbers = #tpu.dot_dimension_numbers<[1], [0], [0], [1], [0, 0, 1, 1], [], []>} : vector<256x8xf32>, vector<8x8xf32>, vector<256x8xf32> -> vector<256x8xf32>
    %44 = arith.addf %38, %43 : vector<256x8xf32>
    %45 = vector.extract_strided_slice %13 {offsets = [5, 0, 0], sizes = [16, 16, 8], strides = [1, 1, 1]} : vector<22x16x8xf32> to vector<16x16x8xf32>
    %46 = vector.shape_cast %45 : vector<16x16x8xf32> to vector<256x8xf32>
    %c5 = arith.constant 5 : index
    %c0_25 = arith.constant 0 : index
    %c0_26 = arith.constant 0 : index
    %47 = vector.load %arg3[%c5, %c0_25, %c0_26] : memref<7x8x8xf32, #tpu.memory_space<vmem>>, vector<1x8x8xf32>
    %48 = vector.shape_cast %47 : vector<1x8x8xf32> to vector<8x8xf32>
    %cst_27 = arith.constant dense<0.000000e+00> : vector<256x8xf32>
    %49 = tpu.matmul %46, %48, %cst_27 {dimension_numbers = #tpu.dot_dimension_numbers<[1], [0], [0], [1], [0, 0, 1, 1], [], []>} : vector<256x8xf32>, vector<8x8xf32>, vector<256x8xf32> -> vector<256x8xf32>
    %50 = arith.addf %44, %49 : vector<256x8xf32>
    %51 = vector.extract_strided_slice %13 {offsets = [6, 0, 0], sizes = [16, 16, 8], strides = [1, 1, 1]} : vector<22x16x8xf32> to vector<16x16x8xf32>
    %52 = vector.shape_cast %51 : vector<16x16x8xf32> to vector<256x8xf32>
    %c6 = arith.constant 6 : index
    %c0_28 = arith.constant 0 : index
    %c0_29 = arith.constant 0 : index
    %53 = vector.load %arg3[%c6, %c0_28, %c0_29] : memref<7x8x8xf32, #tpu.memory_space<vmem>>, vector<1x8x8xf32>
    %54 = vector.shape_cast %53 : vector<1x8x8xf32> to vector<8x8xf32>
    %cst_30 = arith.constant dense<0.000000e+00> : vector<256x8xf32>
    %55 = tpu.matmul %52, %54, %cst_30 {dimension_numbers = #tpu.dot_dimension_numbers<[1], [0], [0], [1], [0, 0, 1, 1], [], []>} : vector<256x8xf32>, vector<8x8xf32>, vector<256x8xf32> -> vector<256x8xf32>
    %56 = arith.addf %50, %55 : vector<256x8xf32>
    %57 = vector.shape_cast %56 : vector<256x8xf32> to vector<16x16x8xf32>
    %c0_31 = arith.constant 0 : index
    %c0_32 = arith.constant 0 : index
    %c0_33 = arith.constant 0 : index
    %c0_34 = arith.constant 0 : index
    %58 = vector.load %arg6[%c0_31, %c0_32, %c0_33, %c0_34] : memref<1x16x16x8xf32, #tpu.memory_space<vmem>>, vector<1x16x16x8xf32>
    %59 = vector.shape_cast %58 : vector<1x16x16x8xf32> to vector<16x16x8xf32>
    %60 = vector.shape_cast %57 : vector<16x16x8xf32> to vector<1x16x16x8xf32>
    tpu.vector_store %arg6[%c0_31, %c0_32, %c0_33, %c0_34], %60 {strides = array<i32>} : memref<1x16x16x8xf32, #tpu.memory_space<vmem>>, vector<1x16x16x8xf32>,
    %cst_35 = arith.constant dense<0.000000e+00> : vector<8xf32>
    %61 = vector.multi_reduction <add>, %56, %cst_35 [0] : vector<256x8xf32> to vector<8xf32>
    %62 = vector.shape_cast %61 : vector<8xf32> to vector<1x8xf32>
    %c0_36 = arith.constant 0 : index
    %c0_37 = arith.constant 0 : index
    %c0_38 = arith.constant 0 : index
    %c0_39 = arith.constant 0 : index
    %63 = vector.load %arg7[%c0_36, %c0_37, %c0_38, %c0_39] : memref<1x1x2x8xf32, #tpu.memory_space<vmem>>, vector<1x1x1x8xf32>
    %64 = vector.shape_cast %63 : vector<1x1x1x8xf32> to vector<1x8xf32>
    %65 = vector.shape_cast %62 : vector<1x8xf32> to vector<1x1x1x8xf32>
    tpu.vector_store %arg7[%c0_36, %c0_37, %c0_38, %c0_39], %65 {strides = array<i32>} : memref<1x1x2x8xf32, #tpu.memory_space<vmem>>, vector<1x1x1x8xf32>,
    %66 = arith.mulf %56, %56 : vector<256x8xf32>
    %cst_40 = arith.constant dense<0.000000e+00> : vector<8xf32>
    %67 = vector.multi_reduction <add>, %66, %cst_40 [0] : vector<256x8xf32> to vector<8xf32>
    %68 = vector.shape_cast %67 : vector<8xf32> to vector<1x8xf32>
    %c0_41 = arith.constant 0 : index
    %c0_42 = arith.constant 0 : index
    %c1_43 = arith.constant 1 : index
    %c0_44 = arith.constant 0 : index
    %69 = vector.load %arg7[%c0_41, %c0_42, %c1_43, %c0_44] : memref<1x1x2x8xf32, #tpu.memory_space<vmem>>, vector<1x1x1x8xf32>
    %70 = vector.shape_cast %69 : vector<1x1x1x8xf32> to vector<1x8xf32>
    %71 = vector.shape_cast %68 : vector<1x8xf32> to vector<1x1x1x8xf32>
    tpu.vector_store %arg7[%c0_41, %c0_42, %c1_43, %c0_44], %71 {strides = array<i32>} : memref<1x1x2x8xf32, #tpu.memory_space<vmem>>, vector<1x1x1x8xf32>,
    return
  }
  func.func @transform_0(%arg0: i32, %arg1: i32) -> (i32, i32, i32, i32) {
    %c0_i32 = arith.constant 0 : i32
    %c0_i32_0 = arith.constant 0 : i32
    %c0_i32_1 = arith.constant 0 : i32
    return %arg0, %c0_i32, %arg1, %c0_i32_0 : i32, i32, i32, i32
  }
  func.func @transform_1(%arg0: i32, %arg1: i32) -> (i32, i32, i32) {
    %c0_i32 = arith.constant 0 : i32
    %c0_i32_0 = arith.constant 0 : i32
    %c0_i32_1 = arith.constant 0 : i32
    %c0_i32_2 = arith.constant 0 : i32
    return %c0_i32, %c0_i32_0, %c0_i32_1 : i32, i32, i32
  }
  func.func @transform_2(%arg0: i32, %arg1: i32) -> (i32, i32) {
    %c0_i32 = arith.constant 0 : i32
    %c0_i32_0 = arith.constant 0 : i32
    %c0_i32_1 = arith.constant 0 : i32
    return %c0_i32, %c0_i32_0 : i32, i32
  }
  func.func @transform_3(%arg0: i32, %arg1: i32) -> (i32, i32) {
    %c0_i32 = arith.constant 0 : i32
    %c0_i32_0 = arith.constant 0 : i32
    %c0_i32_1 = arith.constant 0 : i32
    return %c0_i32, %c0_i32_0 : i32, i32
  }
  func.func @transform_4(%arg0: i32, %arg1: i32) -> (i32, i32, i32, i32) {
    %c0_i32 = arith.constant 0 : i32
    %c0_i32_0 = arith.constant 0 : i32
    %c0_i32_1 = arith.constant 0 : i32
    return %arg0, %c0_i32, %arg1, %c0_i32_0 : i32, i32, i32, i32
  }
  func.func @transform_5(%arg0: i32, %arg1: i32) -> (i32, i32, i32, i32) {
    %c0_i32 = arith.constant 0 : i32
    %c0_i32_0 = arith.constant 0 : i32
    %c0_i32_1 = arith.constant 0 : i32
    return %arg0, %arg1, %c0_i32, %c0_i32_0 : i32, i32, i32, i32
  }
}

module attributes {stable_mosaic.version = 11 : i64} {
  func.func @_conv_w_stats_kernel(%arg0: i32, %arg1: memref<32x16x4xf32, #tpu.memory_space<vmem>>, %arg2: memref<7x4x8xf32, #tpu.memory_space<vmem>>, %arg3: memref<32x16x8xf32, #tpu.memory_space<vmem>>, %arg4: memref<1x2x8xf32, #tpu.memory_space<vmem>>) attributes {dimension_semantics = [#tpu.dimension_semantics<parallel>], iteration_bounds = array<i64: 1>, scalar_prefetch = 0 : i64, scratch_operands = 0 : i64, tpu.core_type = #tpu.core_type<tc>, window_params = [{transform_indices = @transform_0, window_bounds = array<i64: 32, 16, 4>}, {pipeline_mode = #tpu.pipeline_mode<synchronous>, transform_indices = @transform_1, window_bounds = array<i64: 7, 4, 8>}, {transform_indices = @transform_2, window_bounds = array<i64: 32, 16, 8>}, {transform_indices = @transform_3, window_bounds = array<i64: 1, 2, 8>}]} {
    %c0 = arith.constant 0 : index
    %c0_0 = arith.constant 0 : index
    %c0_1 = arith.constant 0 : index
    %0 = vector.load %arg1[%c0, %c0_0, %c0_1] : memref<32x16x4xf32, #tpu.memory_space<vmem>>, vector<32x16x4xf32>
    %cst = arith.constant 0.000000e+00 : f32
    %1 = vector.broadcast %cst : f32 to vector<32x8x4xf32>
    %2 = tpu.concatenate %1, %0, %1 in 1 : vector<32x8x4xf32>, vector<32x16x4xf32>, vector<32x8x4xf32> -> vector<32x32x4xf32>
    %cst_2 = arith.constant 0.000000e+00 : f32
    %3 = vector.broadcast %cst_2 : f32 to vector<512x8xf32>
    %4 = vector.extract_strided_slice %2 {offsets = [0, 5, 0], sizes = [32, 16, 4], strides = [1, 1, 1]} : vector<32x32x4xf32> to vector<32x16x4xf32>
    %5 = vector.shape_cast %4 : vector<32x16x4xf32> to vector<512x4xf32>
    %c0_3 = arith.constant 0 : index
    %c0_4 = arith.constant 0 : index
    %c0_5 = arith.constant 0 : index
    %6 = vector.load %arg2[%c0_3, %c0_4, %c0_5] : memref<7x4x8xf32, #tpu.memory_space<vmem>>, vector<1x4x8xf32>
    %7 = vector.shape_cast %6 : vector<1x4x8xf32> to vector<4x8xf32>
    %cst_6 = arith.constant dense<0.000000e+00> : vector<512x8xf32>
    %8 = tpu.matmul %5, %7, %cst_6 {dimension_numbers = #tpu.dot_dimension_numbers<[1], [0], [0], [1], [0, 0, 1, 1], [], []>} : vector<512x4xf32>, vector<4x8xf32>, vector<512x8xf32> -> vector<512x8xf32>
    %9 = arith.addf %3, %8 : vector<512x8xf32>
    %10 = vector.extract_strided_slice %2 {offsets = [0, 6, 0], sizes = [32, 16, 4], strides = [1, 1, 1]} : vector<32x32x4xf32> to vector<32x16x4xf32>
    %11 = vector.shape_cast %10 : vector<32x16x4xf32> to vector<512x4xf32>
    %c1 = arith.constant 1 : index
    %c0_7 = arith.constant 0 : index
    %c0_8 = arith.constant 0 : index
    %12 = vector.load %arg2[%c1, %c0_7, %c0_8] : memref<7x4x8xf32, #tpu.memory_space<vmem>>, vector<1x4x8xf32>
    %13 = vector.shape_cast %12 : vector<1x4x8xf32> to vector<4x8xf32>
    %cst_9 = arith.constant dense<0.000000e+00> : vector<512x8xf32>
    %14 = tpu.matmul %11, %13, %cst_9 {dimension_numbers = #tpu.dot_dimension_numbers<[1], [0], [0], [1], [0, 0, 1, 1], [], []>} : vector<512x4xf32>, vector<4x8xf32>, vector<512x8xf32> -> vector<512x8xf32>
    %15 = arith.addf %9, %14 : vector<512x8xf32>
    %16 = vector.extract_strided_slice %2 {offsets = [0, 7, 0], sizes = [32, 16, 4], strides = [1, 1, 1]} : vector<32x32x4xf32> to vector<32x16x4xf32>
    %17 = vector.shape_cast %16 : vector<32x16x4xf32> to vector<512x4xf32>
    %c2 = arith.constant 2 : index
    %c0_10 = arith.constant 0 : index
    %c0_11 = arith.constant 0 : index
    %18 = vector.load %arg2[%c2, %c0_10, %c0_11] : memref<7x4x8xf32, #tpu.memory_space<vmem>>, vector<1x4x8xf32>
    %19 = vector.shape_cast %18 : vector<1x4x8xf32> to vector<4x8xf32>
    %cst_12 = arith.constant dense<0.000000e+00> : vector<512x8xf32>
    %20 = tpu.matmul %17, %19, %cst_12 {dimension_numbers = #tpu.dot_dimension_numbers<[1], [0], [0], [1], [0, 0, 1, 1], [], []>} : vector<512x4xf32>, vector<4x8xf32>, vector<512x8xf32> -> vector<512x8xf32>
    %21 = arith.addf %15, %20 : vector<512x8xf32>
    %22 = vector.extract_strided_slice %2 {offsets = [0, 8, 0], sizes = [32, 16, 4], strides = [1, 1, 1]} : vector<32x32x4xf32> to vector<32x16x4xf32>
    %23 = vector.shape_cast %22 : vector<32x16x4xf32> to vector<512x4xf32>
    %c3 = arith.constant 3 : index
    %c0_13 = arith.constant 0 : index
    %c0_14 = arith.constant 0 : index
    %24 = vector.load %arg2[%c3, %c0_13, %c0_14] : memref<7x4x8xf32, #tpu.memory_space<vmem>>, vector<1x4x8xf32>
    %25 = vector.shape_cast %24 : vector<1x4x8xf32> to vector<4x8xf32>
    %cst_15 = arith.constant dense<0.000000e+00> : vector<512x8xf32>
    %26 = tpu.matmul %23, %25, %cst_15 {dimension_numbers = #tpu.dot_dimension_numbers<[1], [0], [0], [1], [0, 0, 1, 1], [], []>} : vector<512x4xf32>, vector<4x8xf32>, vector<512x8xf32> -> vector<512x8xf32>
    %27 = arith.addf %21, %26 : vector<512x8xf32>
    %28 = vector.extract_strided_slice %2 {offsets = [0, 9, 0], sizes = [32, 16, 4], strides = [1, 1, 1]} : vector<32x32x4xf32> to vector<32x16x4xf32>
    %29 = vector.shape_cast %28 : vector<32x16x4xf32> to vector<512x4xf32>
    %c4 = arith.constant 4 : index
    %c0_16 = arith.constant 0 : index
    %c0_17 = arith.constant 0 : index
    %30 = vector.load %arg2[%c4, %c0_16, %c0_17] : memref<7x4x8xf32, #tpu.memory_space<vmem>>, vector<1x4x8xf32>
    %31 = vector.shape_cast %30 : vector<1x4x8xf32> to vector<4x8xf32>
    %cst_18 = arith.constant dense<0.000000e+00> : vector<512x8xf32>
    %32 = tpu.matmul %29, %31, %cst_18 {dimension_numbers = #tpu.dot_dimension_numbers<[1], [0], [0], [1], [0, 0, 1, 1], [], []>} : vector<512x4xf32>, vector<4x8xf32>, vector<512x8xf32> -> vector<512x8xf32>
    %33 = arith.addf %27, %32 : vector<512x8xf32>
    %34 = vector.extract_strided_slice %2 {offsets = [0, 10, 0], sizes = [32, 16, 4], strides = [1, 1, 1]} : vector<32x32x4xf32> to vector<32x16x4xf32>
    %35 = vector.shape_cast %34 : vector<32x16x4xf32> to vector<512x4xf32>
    %c5 = arith.constant 5 : index
    %c0_19 = arith.constant 0 : index
    %c0_20 = arith.constant 0 : index
    %36 = vector.load %arg2[%c5, %c0_19, %c0_20] : memref<7x4x8xf32, #tpu.memory_space<vmem>>, vector<1x4x8xf32>
    %37 = vector.shape_cast %36 : vector<1x4x8xf32> to vector<4x8xf32>
    %cst_21 = arith.constant dense<0.000000e+00> : vector<512x8xf32>
    %38 = tpu.matmul %35, %37, %cst_21 {dimension_numbers = #tpu.dot_dimension_numbers<[1], [0], [0], [1], [0, 0, 1, 1], [], []>} : vector<512x4xf32>, vector<4x8xf32>, vector<512x8xf32> -> vector<512x8xf32>
    %39 = arith.addf %33, %38 : vector<512x8xf32>
    %40 = vector.extract_strided_slice %2 {offsets = [0, 11, 0], sizes = [32, 16, 4], strides = [1, 1, 1]} : vector<32x32x4xf32> to vector<32x16x4xf32>
    %41 = vector.shape_cast %40 : vector<32x16x4xf32> to vector<512x4xf32>
    %c6 = arith.constant 6 : index
    %c0_22 = arith.constant 0 : index
    %c0_23 = arith.constant 0 : index
    %42 = vector.load %arg2[%c6, %c0_22, %c0_23] : memref<7x4x8xf32, #tpu.memory_space<vmem>>, vector<1x4x8xf32>
    %43 = vector.shape_cast %42 : vector<1x4x8xf32> to vector<4x8xf32>
    %cst_24 = arith.constant dense<0.000000e+00> : vector<512x8xf32>
    %44 = tpu.matmul %41, %43, %cst_24 {dimension_numbers = #tpu.dot_dimension_numbers<[1], [0], [0], [1], [0, 0, 1, 1], [], []>} : vector<512x4xf32>, vector<4x8xf32>, vector<512x8xf32> -> vector<512x8xf32>
    %45 = arith.addf %39, %44 : vector<512x8xf32>
    %46 = vector.shape_cast %45 : vector<512x8xf32> to vector<32x16x8xf32>
    %c0_25 = arith.constant 0 : index
    %c0_26 = arith.constant 0 : index
    %c0_27 = arith.constant 0 : index
    %47 = vector.load %arg3[%c0_25, %c0_26, %c0_27] : memref<32x16x8xf32, #tpu.memory_space<vmem>>, vector<32x16x8xf32>
    tpu.vector_store %arg3[%c0_25, %c0_26, %c0_27], %46 {strides = array<i32>} : memref<32x16x8xf32, #tpu.memory_space<vmem>>, vector<32x16x8xf32>,
    %cst_28 = arith.constant dense<0.000000e+00> : vector<8xf32>
    %48 = vector.multi_reduction <add>, %45, %cst_28 [0] : vector<512x8xf32> to vector<8xf32>
    %49 = vector.shape_cast %48 : vector<8xf32> to vector<1x8xf32>
    %c0_29 = arith.constant 0 : index
    %c0_30 = arith.constant 0 : index
    %c0_31 = arith.constant 0 : index
    %50 = vector.load %arg4[%c0_29, %c0_30, %c0_31] : memref<1x2x8xf32, #tpu.memory_space<vmem>>, vector<1x1x8xf32>
    %51 = vector.shape_cast %50 : vector<1x1x8xf32> to vector<1x8xf32>
    %52 = vector.shape_cast %49 : vector<1x8xf32> to vector<1x1x8xf32>
    tpu.vector_store %arg4[%c0_29, %c0_30, %c0_31], %52 {strides = array<i32>} : memref<1x2x8xf32, #tpu.memory_space<vmem>>, vector<1x1x8xf32>,
    %53 = arith.mulf %45, %45 : vector<512x8xf32>
    %cst_32 = arith.constant dense<0.000000e+00> : vector<8xf32>
    %54 = vector.multi_reduction <add>, %53, %cst_32 [0] : vector<512x8xf32> to vector<8xf32>
    %55 = vector.shape_cast %54 : vector<8xf32> to vector<1x8xf32>
    %c0_33 = arith.constant 0 : index
    %c1_34 = arith.constant 1 : index
    %c0_35 = arith.constant 0 : index
    %56 = vector.load %arg4[%c0_33, %c1_34, %c0_35] : memref<1x2x8xf32, #tpu.memory_space<vmem>>, vector<1x1x8xf32>
    %57 = vector.shape_cast %56 : vector<1x1x8xf32> to vector<1x8xf32>
    %58 = vector.shape_cast %55 : vector<1x8xf32> to vector<1x1x8xf32>
    tpu.vector_store %arg4[%c0_33, %c1_34, %c0_35], %58 {strides = array<i32>} : memref<1x2x8xf32, #tpu.memory_space<vmem>>, vector<1x1x8xf32>,
    return
  }
  func.func @transform_0(%arg0: i32) -> (i32, i32, i32) {
    %c0_i32 = arith.constant 0 : i32
    %c0_i32_0 = arith.constant 0 : i32
    %c0_i32_1 = arith.constant 0 : i32
    return %arg0, %c0_i32, %c0_i32_0 : i32, i32, i32
  }
  func.func @transform_1(%arg0: i32) -> (i32, i32, i32) {
    %c0_i32 = arith.constant 0 : i32
    %c0_i32_0 = arith.constant 0 : i32
    %c0_i32_1 = arith.constant 0 : i32
    %c0_i32_2 = arith.constant 0 : i32
    return %c0_i32, %c0_i32_0, %c0_i32_1 : i32, i32, i32
  }
  func.func @transform_2(%arg0: i32) -> (i32, i32, i32) {
    %c0_i32 = arith.constant 0 : i32
    %c0_i32_0 = arith.constant 0 : i32
    %c0_i32_1 = arith.constant 0 : i32
    return %arg0, %c0_i32, %c0_i32_0 : i32, i32, i32
  }
  func.func @transform_3(%arg0: i32) -> (i32, i32, i32) {
    %c0_i32 = arith.constant 0 : i32
    %c0_i32_0 = arith.constant 0 : i32
    %c0_i32_1 = arith.constant 0 : i32
    return %arg0, %c0_i32, %c0_i32_0 : i32, i32, i32
  }
}

</mosaic_0001>

<bundles_post_ra>
// kernel: conv1771_forward.3
= control target key start
LH: loop header
LB: loop body
LE: loop exit
PB: predicated region body
PF: predicated region fallthrough
CT: control target
= control target key end

     0   :  { %s3491_s18 = smov 0   ;;  %s3493_s19 = smov 0   ;;  %s4713_s0 = inlined_call_operand.vmem [shape: f32[2,16,16,8], index: 0, kind: input, shape index: {}]   ;;  %s4714_s1 = inlined_call_operand.vmem [shape: f32[7,8,8], index: 1, kind: input, shape index: {}]   ;;  %s4715_s2 = inlined_call_operand.vmem [shape: f32[1,8], index: 2, kind: input, shape index: {}]   ;;  %s4716_s3 = inlined_call_operand.vmem [shape: f32[1,8], index: 3, kind: input, shape index: {}]   ;;  %s4717_s4 = inlined_call_operand.vmem [shape: f32[2,16,16,8], index: 4, kind: output, shape index: {0}]   ;;  %s4718_s5 = inlined_call_operand.vmem [shape: f32[2,1,2,8], index: 5, kind: output, shape index: {1}]  }
   0x1   :  { %s3495_s20 = smov 0  }
   0x2 LB: > { %s28_s21 = sadd.s32 1, %s3454_s19  ;;  %p2610_p0 = scmp.ge.s32.totalorder %s3458_s20, 1  ;;  %s3458_s20 = sphi %s3495_s20, %s16_s20   ;;  %s3454_s19 = sphi %s3493_s19, %s4804_s19   ;;  %s3450_s18 = sphi %s3491_s18, %s4803_s18  }
   0x3   : > { %p30_p1 = scmp.ge.s32.totalorder %s28_s21, 2  ;;  %p213_p2 = scmp.lt.s32.totalorder %s3458_s20, 3 }
   0x5   : > { %s4806_s21 = smov (%p30_p1, %s28_s21), 0  ;;  %p214_p3 = pnand %p2610_p0, %p213_p2 }
   0x7   : > { %217 = sbr.rel (%p214_p3) target bundleno = 464 (0x1d0), region = 36 }
   0xc   : > { %v2618_v0 = vld [vmem:[%s4714_s1 + $0x8] sm:$0xff]  ;;  %p257_p4 = scmp.lt.s32.totalorder %s3450_s18, 1  ;;  %v3515_v1 = vld [vmem:[%s4714_s1] sm:$0xff]  ;;  %v2673_v2 = vld [vmem:[%s4714_s1 + $0x10] sm:$0xff]  ;;  %v3460_v3 = vmov 0.0   ;;  %vm428_vm0 = vcmask 64512  }
   0xd   : > { %3409 = vmatprep.subr.mxu1 %v2618_v0  ;;  %3059 = vmatprep.subr.mxu0 %v2618_v0  ;;  %v3527_v4 = vld [vmem:[%s4714_s1 + $0x20] sm:$0xff]  ;;  %v3610_v51 = vld [vmem:[%s4714_s1 + $0x18] sm:$0xff]  ;;  %vm2374_vm1 = vcmask 57344  }
   0xe   : > { %3410 = vmatpush3.msra.mxu1 %v2618_v0  ;;  %3060 = vmatpush3.msra.mxu0 %v2618_v0  ;;  %s4808_s18 = smov (!%p257_p4, %s3450_s18), 1  ;;  %v3533_v5 = vld [vmem:[%s4715_s2] ss:$0 sm:$0xff] }
   0xf   : > { %3061 = vmatprep.mubr.f32.mxu0 %v3460_v3  ;;  %3109 = vmatprep.subr.mxu1 %v3515_v1  ;;  %s2826_s30 = sshll.u32 %s4808_s18, 8  ;;  %v3546_v6 = vld [vmem:[%s4716_s3] ss:$0 sm:$0xff]  ;;  %s2615_s26 = sshll.u32 %s4808_s18, 1 }
  0x10   : > { %3062 = vmatmul.mubr.f32.vlgmr.msra.gmra.mxu0 %v3460_v3  ;;  %3159 = vmatprep.subr.mxu0 %v2673_v2  ;;  %s3541_s10 = scalar_lea.vmem %s4713_s0, %s2826_s30  ;;  %s4452_s25 = scalar_lea.vmem %s4717_s4, %s2826_s30 }
  0x11   : > { %3160 = vmatpush3.msra.mxu0 %v2673_v2  ;;  %3064 = vmatprep.mubr.f32.mxu0 %v3460_v3  ;;  %v295_v7 = vld [vmem:[%s3541_s10 + $0x60] sm:$0xff]  ;;  %v296_v8 = vld [vmem:[%s3541_s10 + $0x68] sm:$0xff]  ;;  %v297_v9 = vld [vmem:[%s3541_s10 + $0x70] sm:$0xff]  ;;  %s282_s29 = scalar_lea.vmem %s4718_s5, %s2615_s26 }
  0x12   : > { %3259 = vmatprep.subr.mxu0 %v3527_v4  ;;  %v334_v10 = vmul.f32 %v3533_v5, %v295_v7  ;;  %v335_v11 = vmul.f32 %v3533_v5, %v296_v8  ;;  %v336_v12 = vmul.f32 %v3533_v5, %v297_v9  ;;  %v298_v13 = vld [vmem:[%s3541_s10 + $0x78] sm:$0xff]  ;;  %v283_v14 = vld [vmem:[%s3541_s10] sm:$0xff]  ;;  %v284_v19 = vld [vmem:[%s3541_s10 + $0x8] sm:$0xff] }
  0x13   : > { %v299_v15 = vld [vmem:[%s3541_s10 + $0x80] sm:$0xff]  ;;  %v337_v16 = vmul.f32 %v3533_v5, %v298_v13  ;;  %v322_v17 = vmul.f32 %v3533_v5, %v283_v14  ;;  %v300_v20 = vld [vmem:[%s3541_s10 + $0x88] sm:$0xff]  ;;  %v323_v24 = vmul.f32 %v3533_v5, %v284_v19  ;;  %v285_v29 = vld [vmem:[%s3541_s10 + $0x10] sm:$0xff] }
  0x14   : > { %3065 = vmatmul.mubr.f32.gmra.mxu0 %v3460_v3  ;;  %v338_v18 = vmul.f32 %v3533_v5, %v299_v15  ;;  %v373_v21 = vadd.f32 %v3546_v6, %v334_v10  ;;  %v374_v22 = vadd.f32 %v3546_v6, %v335_v11  ;;  %v375_v23 = vadd.f32 %v3546_v6, %v336_v12  ;;  %v301_v30 = vld [vmem:[%s3541_s10 + $0x90] sm:$0xff]  ;;  %v286_v31 = vld [vmem:[%s3541_s10 + $0x18] sm:$0xff]  ;;  %v287_v37 = vld [vmem:[%s3541_s10 + $0x20] sm:$0xff] }
  0x15   : > { %v376_v25 = vadd.f32 %v3546_v6, %v337_v16  ;;  %v361_v26 = vadd.f32 %v3546_v6, %v322_v17  ;;  %v339_v28 = vmul.f32 %v3533_v5, %v300_v20  ;;  %v362_v35 = vadd.f32 %v3546_v6, %v323_v24  ;;  %v302_v36 = vld [vmem:[%s3541_s10 + $0x98] sm:$0xff]  ;;  %v303_v38 = vld [vmem:[%s3541_s10 + $0xa0] sm:$0xff]  ;;  %v288_v45 = vld [vmem:[%s3541_s10 + $0x28] sm:$0xff] }
  0x16   : > { %v377_v27 = vadd.f32 %v3546_v6, %v338_v18  ;;  %v3576_v32 = vmax.f32 %v373_v21, 0.0  ;;  %v3578_v33 = vmax.f32 %v374_v22, 0.0  ;;  %v3580_v34 = vmax.f32 %v375_v23, 0.0  ;;  %v304_v50 = vld [vmem:[%s3541_s10 + $0xa8] sm:$0xff]  ;;  %v289_v58 = vld [vmem:[%s3541_s10 + $0x30] sm:$0xff]  ;;  %v290_v0 = vld [vmem:[%s3541_s10 + $0x38] sm:$0xff] }
  0x17   : > { %v3586_v39 = vmax.f32 %v361_v26, 0.0  ;;  %v378_v40 = vadd.f32 %v3546_v6, %v339_v28  ;;  %v3591_v41 = vmax.f32 %v362_v35, 0.0  ;;  %v324_v42 = vmul.f32 %v3533_v5, %v285_v29  ;;  %v305_v59 = vld [vmem:[%s3541_s10 + $0xb0] sm:$0xff]  ;;  %v306_v9 = vld [vmem:[%s3541_s10 + $0xb8] sm:$0xff]  ;;  %v292_v14 = vld [vmem:[%s3541_s10 + $0x48] sm:$0xff] }
  0x18   : > { %3085 = vmatprep.mubr.msk.f32.mxu1 %vm428_vm0, %v3576_v32  ;;  %v340_v43 = vmul.f32 %v3533_v5, %v301_v30  ;;  %v325_v44 = vmul.f32 %v3533_v5, %v286_v31  ;;  %v3599_v46 = vmax.f32 %v376_v25, 0.0  ;;  %v341_v47 = vmul.f32 %v3533_v5, %v302_v36  ;;  %v307_v18 = vld [vmem:[%s3541_s10 + $0xc0] sm:$0xff]  ;;  %v308_v31 = vld [vmem:[%s3541_s10 + $0xc8] sm:$0xff]  ;;  %v294_v35 = vld [vmem:[%s3541_s10 + $0x58] sm:$0xff] }
  0x19   : > { %3086 = vmatmul.mubr.msk.f32.vlgmr.msra.gmra.mxu1 %vm428_vm0, %v3578_v33  ;;  %3067 = vmatprep.mubr.msk.f32.mxu0 %vm428_vm0, %v3586_v39  ;;  %v326_v48 = vmul.f32 %v3533_v5, %v287_v37  ;;  %v342_v49 = vmul.f32 %v3533_v5, %v303_v38  ;;  %v3615_v52 = vmax.f32 %v377_v27, 0.0  ;;  %v363_v53 = vadd.f32 %v3546_v6, %v324_v42  ;;  %v293_v27 = vld [vmem:[%s3541_s10 + $0x50] sm:$0xff]  ;;  %v311_v36 = vld [vmem:[%s3541_s10 + $0xe0] sm:$0xff]  ;;  %v312_v42 = vld [vmem:[%s3541_s10 + $0xe8] sm:$0xff] }
  0x1a   : > { %3110 = vmatpush3.msra.mxu1 %v3515_v1  ;;  %3088 = vmatprep.mubr.msk.f32.mxu1 %vm428_vm0, %v3580_v34  ;;  %v379_v54 = vadd.f32 %v3546_v6, %v340_v43  ;;  %v364_v55 = vadd.f32 %v3546_v6, %v325_v44  ;;  %v327_v57 = vmul.f32 %v3533_v5, %v288_v45  ;;  %v291_v1 = vld [vmem:[%s3541_s10 + $0x40] sm:$0xff]  ;;  %v3637_v2 = vmax.f32 %v378_v40, 0.0  ;;  %v309_v40 = vld [vmem:[%s3541_s10 + $0xd0] sm:$0xff] }
  0x1b   : > { %3068 = vmatmul.mubr.msk.f32.gmra.mxu0 %vm428_vm0, %v3591_v41  ;;  %v365_v56 = vadd.f32 %v3546_v6, %v326_v48  ;;  %v3626_v60 = vmax.f32 %v363_v53, 0.0  ;;  %v380_v62 = vadd.f32 %v3546_v6, %v341_v47  ;;  %v343_v63 = vmul.f32 %v3533_v5, %v304_v50  ;;  %3209 = vmatprep.subr.mxu1 %v3610_v51 }
  0x1c   : > { %v3628_v61 = vmax.f32 %v364_v55, 0.0  ;;  %v366_v8 = vadd.f32 %v3546_v6, %v327_v57  ;;  %v3647_v10 = vmax.f32 %v379_v54, 0.0  ;;  %v381_v11 = vadd.f32 %v3546_v6, %v342_v49  ;;  %v310_v57 = vld [vmem:[%s3541_s10 + $0xd8] sm:$0xff] }
  0x1d   : > { %3089 = vmatmul.mubr.msk.f32.gmra.mxu1 %vm428_vm0, %v3599_v46  ;;  %v3639_v7 = vmax.f32 %v365_v56, 0.0  ;;  %3070 = vmatprep.mubr.msk.f32.mxu0 %vm428_vm0, %v3626_v60  ;;  %v328_v12 = vmul.f32 %v3533_v5, %v289_v58  ;;  %v344_v13 = vmul.f32 %v3533_v5, %v305_v59  ;;  %v329_v16 = vmul.f32 %v3533_v5, %v290_v0 }
  0x1e   : > { %3091 = vmatprep.mubr.msk.f32.mxu1 %vm428_vm0, %v3615_v52  ;;  %v3655_v15 = vmax.f32 %v366_v8, 0.0  ;;  %v330_v17 = vmul.f32 %v3533_v5, %v291_v1  ;;  %v3660_v19 = vmax.f32 %v380_v62, 0.0  ;;  %v382_v20 = vadd.f32 %v3546_v6, %v343_v63 }
  0x1f   : > { %3071 = vmatmul.mubr.msk.f32.gmra.mxu0 %vm428_vm0, %v3628_v61  ;;  %v367_v21 = vadd.f32 %v3546_v6, %v328_v12  ;;  %v345_v22 = vmul.f32 %v3533_v5, %v306_v9  ;;  %v383_v23 = vadd.f32 %v3546_v6, %v344_v13  ;;  %v368_v24 = vadd.f32 %v3546_v6, %v329_v16  ;;  %v313_v12 = vld [vmem:[%s3541_s10 + $0xf0] sm:$0xff] }
  0x20   : > { %3073 = vmatprep.mubr.msk.f32.mxu0 %vm428_vm0, %v3639_v7  ;;  %v369_v25 = vadd.f32 %v3546_v6, %v330_v17  ;;  %v331_v26 = vmul.f32 %v3533_v5, %v292_v14  ;;  %v3676_v28 = vmax.f32 %v381_v11, 0.0  ;;  %v346_v30 = vmul.f32 %v3533_v5, %v307_v18  ;;  %v314_v17 = vld [vmem:[%s3541_s10 + $0xf8] sm:$0xff] }
  0x21   : > { %3092 = vmatmul.mubr.msk.f32.gmra.mxu1 %vm428_vm0, %v3637_v2  ;;  %v3678_v29 = vmax.f32 %v367_v21, 0.0  ;;  %v3686_v37 = vmax.f32 %v368_v24, 0.0  ;;  %v3691_v43 = vmax.f32 %v382_v20, 0.0  ;;  %v384_v44 = vadd.f32 %v3546_v6, %v345_v22 }
  0x22   : > { %3094 = vmatprep.mubr.msk.f32.mxu1 %vm428_vm0, %v3647_v10  ;;  %v370_v38 = vadd.f32 %v3546_v6, %v331_v26  ;;  %v3696_v45 = vmax.f32 %v369_v25, 0.0  ;;  %v332_v47 = vmul.f32 %v3533_v5, %v293_v27  ;;  %v3701_v48 = vmax.f32 %v383_v23, 0.0 }
  0x23   : > { %3074 = vmatmul.mubr.msk.f32.gmra.mxu0 %vm428_vm0, %v3655_v15  ;;  %v347_v49 = vmul.f32 %v3533_v5, %v308_v31  ;;  %v333_v50 = vmul.f32 %v3533_v5, %v294_v35  ;;  %v350_v53 = vmul.f32 %v3533_v5, %v311_v36  ;;  %v385_v54 = vadd.f32 %v3546_v6, %v346_v30 }
  0x24   : > { %3076 = vmatprep.mubr.msk.f32.mxu0 %vm428_vm0, %v3678_v29  ;;  %v371_v55 = vadd.f32 %v3546_v6, %v332_v47  ;;  %v348_v56 = vmul.f32 %v3533_v5, %v309_v40  ;;  %v351_v58 = vmul.f32 %v3533_v5, %v312_v42  ;;  %v3715_v59 = vmax.f32 %v370_v38, 0.0 }
  0x25   : > { %3095 = vmatmul.mubr.msk.f32.gmra.mxu1 %vm428_vm0, %v3660_v19  ;;  %v372_v62 = vadd.f32 %v3546_v6, %v333_v50  ;;  %v3719_v63 = vadd.f32 %v3546_v6, %v350_v53  ;;  %v3730_v8 = vmax.f32 %v384_v44, 0.0  ;;  %v386_v9 = vadd.f32 %v3546_v6, %v347_v49 }
  0x26   : > { %3097 = vmatprep.mubr.msk.f32.mxu1 %vm428_vm0, %v3676_v28  ;;  %v3723_v0 = vmax.f32 %v371_v55, 0.0  ;;  %v3726_v1 = vadd.f32 %v3546_v6, %v351_v58  ;;  %v349_v11 = vmul.f32 %v3533_v5, %v310_v57  ;;  %v3737_v13 = vmax.f32 %v385_v54, 0.0 }
  0x27   : > { %3077 = vmatmul.mubr.msk.f32.gmra.mxu0 %vm428_vm0, %v3686_v37  ;;  %v387_v14 = vadd.f32 %v3546_v6, %v348_v56  ;;  %v352_v16 = vmul.f32 %v3533_v5, %v313_v12  ;;  %v3744_v18 = vmax.f32 %v372_v62, 0.0  ;;  %v353_v20 = vmul.f32 %v3533_v5, %v314_v17 }
  0x28   : > { %3079 = vmatprep.mubr.msk.f32.mxu0 %vm428_vm0, %v3696_v45  ;;  %v3754_v22 = vmax.f32 %v386_v9, 0.0  ;;  %v388_v23 = vadd.f32 %v3546_v6, %v349_v11  ;;  %v3898_v26 = vmax.f32 %v3726_v1, 0.0 }
  0x29   : > { %3098 = vmatmul.mubr.msk.f32.gmra.mxu1 %vm428_vm0, %v3691_v43  ;;  %v3750_v21 = vadd.f32 %v3546_v6, %v352_v16  ;;  %v3758_v24 = vadd.f32 %v3546_v6, %v353_v20  ;;  %v3762_v5 = vmax.f32 %v387_v14, 0.0  ;;  %v3776_v6 = vld [vmem:[%s4714_s1 + $0x30] sm:$0xff] }
  0x2a   : > { %3100 = vmatprep.mubr.msk.f32.mxu1 %vm428_vm0, %v3701_v48  ;;  %v3769_v25 = vmax.f32 %v388_v23, 0.0 }
  0x2b   : > { %3080 = vmatmul.mubr.msk.f32.gmra.mxu0 %vm428_vm0, %v3715_v59 }
  0x2c   : > { %3082 = vmatprep.mubr.msk.f32.mxu0 %vm428_vm0, %v3723_v0 }
  0x2d   : > { %3101 = vmatmul.mubr.msk.f32.gmra.mxu1 %vm428_vm0, %v3730_v8 }
  0x2e   : > { %3103 = vmatprep.mubr.msk.f32.mxu1 %vm428_vm0, %v3737_v13 }
  0x2f   : > { %3083 = vmatmul.mubr.msk.f32.gmra.mxu0 %vm428_vm0, %v3744_v18 }
  0x30   : > { %3161 = vmatprep.mubr.f32.mxu0 %v3460_v3 }
  0x31   : > { %3104 = vmatmul.mubr.msk.f32.gmra.mxu1 %vm428_vm0, %v3754_v22 }
  0x32   : > { %3106 = vmatprep.mubr.msk.f32.mxu1 %vm428_vm0, %v3762_v5 }
  0x33   : > { %3162 = vmatmul.mubr.f32.vlgmr.msra.gmra.mxu0 %v3460_v3 }
  0x34   : > { %3260 = vmatpush3.msra.mxu0 %v3527_v4  ;;  %3164 = vmatprep.mubr.msk.f32.mxu0 %vm428_vm0, %v3586_v39  ;;  %v3793_v4 = vld [vmem:[%s4714_s1 + $0x28] sm:$0xff] }
  0x35   : > { %3107 = vmatmul.mubr.msk.f32.gmra.mxu1 %vm428_vm0, %v3769_v25  ;;  %3359 = vmatprep.subr.mxu0 %v3776_v6 }
  0x36   : > { %3111 = vmatprep.mubr.f32.mxu1 %v3460_v3 }
  0x37   : > { %3165 = vmatmul.mubr.msk.f32.gmra.mxu0 %vm428_vm0, %v3591_v41 }
  0x38   : > { %3167 = vmatprep.mubr.msk.f32.mxu0 %vm428_vm0, %v3626_v60 }
  0x39   : > { %3112 = vmatmul.mubr.f32.vlgmr.msra.gmra.mxu1 %v3460_v3 }
  0x3a   : > { %3210 = vmatpush3.msra.mxu1 %v3610_v51  ;;  %3114 = vmatprep.mubr.f32.mxu1 %v3460_v3  ;;  %v3889_v51 = vmax.f32 %v3719_v63, 0.0 }
  0x3b   : > { %3168 = vmatmul.mubr.msk.f32.gmra.mxu0 %vm428_vm0, %v3628_v61  ;;  %3309 = vmatprep.subr.mxu1 %v3793_v4 }
  0x3c   : > { %3170 = vmatprep.mubr.msk.f32.mxu0 %vm428_vm0, %v3639_v7 }
  0x3d   : > { %3115 = vmatmul.mubr.f32.gmra.mxu1 %v3460_v3 }
  0x3e   : > { %3117 = vmatprep.mubr.f32.mxu1 %v3460_v3 }
  0x3f   : > { %3171 = vmatmul.mubr.msk.f32.gmra.mxu0 %vm428_vm0, %v3655_v15 }
  0x40   : > { %3173 = vmatprep.mubr.msk.f32.mxu0 %vm428_vm0, %v3678_v29 }
  0x41   : > { %3118 = vmatmul.mubr.f32.gmra.mxu1 %v3460_v3 }
  0x42   : > { %3120 = vmatprep.mubr.msk.f32.mxu1 %vm428_vm0, %v3586_v39 }
  0x43   : > { %3174 = vmatmul.mubr.msk.f32.gmra.mxu0 %vm428_vm0, %v3686_v37 }
  0x44   : > { %3176 = vmatprep.mubr.msk.f32.mxu0 %vm428_vm0, %v3696_v45 }
  0x45   : > { %3121 = vmatmul.mubr.msk.f32.gmra.mxu1 %vm428_vm0, %v3591_v41 }
  0x46   : > { %3123 = vmatprep.mubr.msk.f32.mxu1 %vm428_vm0, %v3626_v60 }
  0x47   : > { %3177 = vmatmul.mubr.msk.f32.gmra.mxu0 %vm428_vm0, %v3715_v59 }
  0x48   : > { %3179 = vmatprep.mubr.msk.f32.mxu0 %vm428_vm0, %v3723_v0 }
  0x49   : > { %3124 = vmatmul.mubr.msk.f32.gmra.mxu1 %vm428_vm0, %v3628_v61 }
  0x4a   : > { %3126 = vmatprep.mubr.msk.f32.mxu1 %vm428_vm0, %v3639_v7 }
  0x4b   : > { %3180 = vmatmul.mubr.msk.f32.gmra.mxu0 %vm428_vm0, %v3744_v18 }
  0x4c   : > { %3182 = vmatprep.mubr.msk.f32.mxu0 %vm428_vm0, %v3576_v32 }
  0x4d   : > { %3127 = vmatmul.mubr.msk.f32.gmra.mxu1 %vm428_vm0, %v3655_v15 }
  0x4e   : > { %3129 = vmatprep.mubr.msk.f32.mxu1 %vm428_vm0, %v3678_v29 }
  0x4f   : > { %3183 = vmatmul.mubr.msk.f32.gmra.mxu0 %vm428_vm0, %v3578_v33 }
  0x50   : > { %3185 = vmatprep.mubr.msk.f32.mxu0 %vm428_vm0, %v3580_v34 }
  0x51   : > { %3130 = vmatmul.mubr.msk.f32.gmra.mxu1 %vm428_vm0, %v3686_v37 }
  0x52   : > { %3132 = vmatprep.mubr.msk.f32.mxu1 %vm428_vm0, %v3696_v45 }
  0x53   : > { %3186 = vmatmul.mubr.msk.f32.gmra.mxu0 %vm428_vm0, %v3599_v46 }
  0x54   : > { %3188 = vmatprep.mubr.msk.f32.mxu0 %vm428_vm0, %v3615_v52 }
  0x55   : > { %3133 = vmatmul.mubr.msk.f32.gmra.mxu1 %vm428_vm0, %v3715_v59 }
  0x56   : > { %3135 = vmatprep.mubr.msk.f32.mxu1 %vm428_vm0, %v3723_v0 }
  0x57   : > { %3189 = vmatmul.mubr.msk.f32.gmra.mxu0 %vm428_vm0, %v3637_v2 }
  0x58   : > { %3191 = vmatprep.mubr.msk.f32.mxu0 %vm428_vm0, %v3647_v10 }
  0x59   : > { %3136 = vmatmul.mubr.msk.f32.gmra.mxu1 %vm428_vm0, %v3744_v18 }
  0x5a   : > { %3138 = vmatprep.mubr.msk.f32.mxu1 %vm428_vm0, %v3576_v32 }
  0x5b   : > { %3192 = vmatmul.mubr.msk.f32.gmra.mxu0 %vm428_vm0, %v3660_v19 }
  0x5c   : > { %3194 = vmatprep.mubr.msk.f32.mxu0 %vm428_vm0, %v3676_v28 }
  0x5d   : > { %3139 = vmatmul.mubr.msk.f32.gmra.mxu1 %vm428_vm0, %v3578_v33 }
  0x5e   : > { %3141 = vmatprep.mubr.msk.f32.mxu1 %vm428_vm0, %v3580_v34 }
  0x5f   : > { %3195 = vmatmul.mubr.msk.f32.gmra.mxu0 %vm428_vm0, %v3691_v43 }
  0x60   : > { %3197 = vmatprep.mubr.msk.f32.mxu0 %vm428_vm0, %v3701_v48 }
  0x61   : > { %3142 = vmatmul.mubr.msk.f32.gmra.mxu1 %vm428_vm0, %v3599_v46 }
  0x62   : > { %3144 = vmatprep.mubr.msk.f32.mxu1 %vm428_vm0, %v3615_v52 }
  0x63   : > { %3198 = vmatmul.mubr.msk.f32.gmra.mxu0 %vm428_vm0, %v3730_v8 }
  0x64   : > { %3200 = vmatprep.mubr.msk.f32.mxu0 %vm428_vm0, %v3737_v13 }
  0x65   : > { %3145 = vmatmul.mubr.msk.f32.gmra.mxu1 %vm428_vm0, %v3637_v2 }
  0x66   : > { %3147 = vmatprep.mubr.msk.f32.mxu1 %vm428_vm0, %v3647_v10 }
  0x67   : > { %3201 = vmatmul.mubr.msk.f32.gmra.mxu0 %vm428_vm0, %v3754_v22 }
  0x68   : > { %3203 = vmatprep.mubr.msk.f32.mxu0 %vm428_vm0, %v3762_v5 }
  0x69   : > { %3148 = vmatmul.mubr.msk.f32.gmra.mxu1 %vm428_vm0, %v3660_v19 }
  0x6a   : > { %3150 = vmatprep.mubr.msk.f32.mxu1 %vm428_vm0, %v3676_v28 }
  0x6b   : > { %3204 = vmatmul.mubr.msk.f32.gmra.mxu0 %vm428_vm0, %v3769_v25 }
  0x6c   : > { %3206 = vmatprep.mubr.msk.f32.mxu0 %vm428_vm0, %v3889_v51 }
  0x6d   : > { %3151 = vmatmul.mubr.msk.f32.gmra.mxu1 %vm428_vm0, %v3691_v43 }
  0x6e   : > { %3153 = vmatprep.mubr.msk.f32.mxu1 %vm428_vm0, %v3701_v48 }
  0x6f   : > { %3207 = vmatmul.mubr.msk.f32.gmra.mxu0 %vm428_vm0, %v3898_v26 }
  0x70   : > { %3261 = vmatprep.mubr.msk.f32.mxu0 %vm428_vm0, %v3626_v60 }
  0x71   : > { %3154 = vmatmul.mubr.msk.f32.gmra.mxu1 %vm428_vm0, %v3730_v8 }
  0x72   : > { %3156 = vmatprep.mubr.msk.f32.mxu1 %vm428_vm0, %v3737_v13 }
  0x73   : > { %3262 = vmatmul.mubr.msk.f32.vlgmr.msra.gmra.mxu0 %vm428_vm0, %v3628_v61 }
  0x74   : > { %3360 = vmatpush3.msra.mxu0 %v3776_v6  ;;  %3264 = vmatprep.mubr.msk.f32.mxu0 %vm428_vm0, %v3639_v7 }
  0x75   : > { %3157 = vmatmul.mubr.msk.f32.gmra.mxu1 %vm428_vm0, %v3754_v22 }
  0x76   : > { %3211 = vmatprep.mubr.msk.f32.mxu1 %vm428_vm0, %v3586_v39  ;;  %v4017_v39 = vmax.f32 %v3750_v21, 0.0 }
  0x77   : > { %3265 = vmatmul.mubr.msk.f32.gmra.mxu0 %vm428_vm0, %v3655_v15 }
  0x78   : > { %3267 = vmatprep.mubr.msk.f32.mxu0 %vm428_vm0, %v3678_v29 }
  0x79   : > { %3212 = vmatmul.mubr.msk.f32.vlgmr.msra.gmra.mxu1 %vm428_vm0, %v3591_v41  ;;  %v4026_v41 = vmax.f32 %v3758_v24, 0.0 }
  0x7a   : > { %3310 = vmatpush3.msra.mxu1 %v3793_v4  ;;  %3214 = vmatprep.mubr.msk.f32.mxu1 %vm428_vm0, %v3626_v60 }
  0x7b   : > { %3268 = vmatmul.mubr.msk.f32.gmra.mxu0 %vm428_vm0, %v3686_v37 }
  0x7c   : > { %3270 = vmatprep.mubr.msk.f32.mxu0 %vm428_vm0, %v3696_v45 }
  0x7d   : > { %3215 = vmatmul.mubr.msk.f32.gmra.mxu1 %vm428_vm0, %v3628_v61 }
  0x7e   : > { %3217 = vmatprep.mubr.msk.f32.mxu1 %vm428_vm0, %v3639_v7 }
  0x7f   : > { %3271 = vmatmul.mubr.msk.f32.gmra.mxu0 %vm428_vm0, %v3715_v59 }
  0x80   : > { %3273 = vmatprep.mubr.msk.f32.mxu0 %vm428_vm0, %v3723_v0 }
  0x81   : > { %3218 = vmatmul.mubr.msk.f32.gmra.mxu1 %vm428_vm0, %v3655_v15 }
  0x82   : > { %3220 = vmatprep.mubr.msk.f32.mxu1 %vm428_vm0, %v3678_v29 }
  0x83   : > { %3274 = vmatmul.mubr.msk.f32.gmra.mxu0 %vm428_vm0, %v3744_v18 }
  0x84   : > { %3276 = vmatprep.mubr.msk.f32.mxu0 %vm428_vm0, %v3576_v32 }
  0x85   : > { %3221 = vmatmul.mubr.msk.f32.gmra.mxu1 %vm428_vm0, %v3686_v37 }
  0x86   : > { %3223 = vmatprep.mubr.msk.f32.mxu1 %vm428_vm0, %v3696_v45 }
  0x87   : > { %3277 = vmatmul.mubr.msk.f32.gmra.mxu0 %vm428_vm0, %v3578_v33 }
  0x88   : > { %3279 = vmatprep.mubr.msk.f32.mxu0 %vm428_vm0, %v3580_v34 }
  0x89   : > { %3224 = vmatmul.mubr.msk.f32.gmra.mxu1 %vm428_vm0, %v3715_v59 }
  0x8a   : > { %3226 = vmatprep.mubr.msk.f32.mxu1 %vm428_vm0, %v3723_v0 }
  0x8b   : > { %3280 = vmatmul.mubr.msk.f32.gmra.mxu0 %vm428_vm0, %v3599_v46 }
  0x8c   : > { %3282 = vmatprep.mubr.msk.f32.mxu0 %vm428_vm0, %v3615_v52 }
  0x8d   : > { %3227 = vmatmul.mubr.msk.f32.gmra.mxu1 %vm428_vm0, %v3744_v18 }
  0x8e   : > { %3229 = vmatprep.mubr.msk.f32.mxu1 %vm428_vm0, %v3576_v32 }
  0x8f   : > { %3283 = vmatmul.mubr.msk.f32.gmra.mxu0 %vm428_vm0, %v3637_v2 }
  0x90   : > { %3285 = vmatprep.mubr.msk.f32.mxu0 %vm428_vm0, %v3647_v10 }
  0x91   : > { %3230 = vmatmul.mubr.msk.f32.gmra.mxu1 %vm428_vm0, %v3578_v33 }
  0x92   : > { %3232 = vmatprep.mubr.msk.f32.mxu1 %vm428_vm0, %v3580_v34 }
  0x93   : > { %3286 = vmatmul.mubr.msk.f32.gmra.mxu0 %vm428_vm0, %v3660_v19 }
  0x94   : > { %3288 = vmatprep.mubr.msk.f32.mxu0 %vm428_vm0, %v3676_v28 }
  0x95   : > { %3233 = vmatmul.mubr.msk.f32.gmra.mxu1 %vm428_vm0, %v3599_v46 }
  0x96   : > { %3235 = vmatprep.mubr.msk.f32.mxu1 %vm428_vm0, %v3615_v52 }
  0x97   : > { %3289 = vmatmul.mubr.msk.f32.gmra.mxu0 %vm428_vm0, %v3691_v43 }
  0x98   : > { %3291 = vmatprep.mubr.msk.f32.mxu0 %vm428_vm0, %v3701_v48 }
  0x99   : > { %3236 = vmatmul.mubr.msk.f32.gmra.mxu1 %vm428_vm0, %v3637_v2 }
  0x9a   : > { %3238 = vmatprep.mubr.msk.f32.mxu1 %vm428_vm0, %v3647_v10 }
  0x9b   : > { %3292 = vmatmul.mubr.msk.f32.gmra.mxu0 %vm428_vm0, %v3730_v8 }
  0x9c   : > { %3294 = vmatprep.mubr.msk.f32.mxu0 %vm428_vm0, %v3737_v13 }
  0x9d   : > { %3239 = vmatmul.mubr.msk.f32.gmra.mxu1 %vm428_vm0, %v3660_v19 }
  0x9e   : > { %3241 = vmatprep.mubr.msk.f32.mxu1 %vm428_vm0, %v3676_v28 }
  0x9f   : > { %3295 = vmatmul.mubr.msk.f32.gmra.mxu0 %vm428_vm0, %v3754_v22 }
  0xa0   : > { %3297 = vmatprep.mubr.msk.f32.mxu0 %vm428_vm0, %v3762_v5 }
  0xa1   : > { %3242 = vmatmul.mubr.msk.f32.gmra.mxu1 %vm428_vm0, %v3691_v43 }
  0xa2   : > { %3244 = vmatprep.mubr.msk.f32.mxu1 %vm428_vm0, %v3701_v48 }
  0xa3   : > { %3298 = vmatmul.mubr.msk.f32.gmra.mxu0 %vm428_vm0, %v3769_v25 }
  0xa4   : > { %3300 = vmatprep.mubr.msk.f32.mxu0 %vm428_vm0, %v3889_v51 }
  0xa5   : > { %3245 = vmatmul.mubr.msk.f32.gmra.mxu1 %vm428_vm0, %v3730_v8 }
  0xa6   : > { %3247 = vmatprep.mubr.msk.f32.mxu1 %vm428_vm0, %v3737_v13 }
  0xa7   : > { %3301 = vmatmul.mubr.msk.f32.gmra.mxu0 %vm428_vm0, %v3898_v26 }
  0xa8   : > { %3303 = vmatprep.mubr.msk.f32.mxu0 %vm428_vm0, %v4017_v39 }
  0xa9   : > { %3248 = vmatmul.mubr.msk.f32.gmra.mxu1 %vm428_vm0, %v3754_v22 }
  0xaa   : > { %3250 = vmatprep.mubr.msk.f32.mxu1 %vm428_vm0, %v3762_v5 }
  0xab   : > { %3304 = vmatmul.mubr.msk.f32.gmra.mxu0 %vm428_vm0, %v4026_v41 }
  0xac   : > { %3306 = vmatprep.mubr.f32.mxu0 %v3460_v3 }
  0xad   : > { %3251 = vmatmul.mubr.msk.f32.gmra.mxu1 %vm428_vm0, %v3769_v25 }
  0xae   : > { %3253 = vmatprep.mubr.msk.f32.mxu1 %vm428_vm0, %v3889_v51 }
  0xaf   : > { %3307 = vmatmul.mubr.f32.gmra.mxu0 %v3460_v3 }
  0xb0   : > { %3361 = vmatprep.mubr.msk.f32.mxu0 %vm428_vm0, %v3678_v29 }
  0xb1   : > { %3254 = vmatmul.mubr.msk.f32.gmra.mxu1 %vm428_vm0, %v3898_v26 }
  0xb2   : > { %3256 = vmatprep.mubr.msk.f32.mxu1 %vm428_vm0, %v4017_v39 }
  0xb3   : > { %3362 = vmatmul.mubr.msk.f32.vlgmr.msra.gmra.mxu0 %vm428_vm0, %v3686_v37 }
  0xb4   : > { %3364 = vmatprep.mubr.msk.f32.mxu0 %vm428_vm0, %v3696_v45 }
  0xb5   : > { %3257 = vmatmul.mubr.msk.f32.gmra.mxu1 %vm428_vm0, %v4026_v41 }
  0xb6   : > { %3311 = vmatprep.mubr.msk.f32.mxu1 %vm428_vm0, %v3639_v7 }
  0xb7   : > { %3365 = vmatmul.mubr.msk.f32.gmra.mxu0 %vm428_vm0, %v3715_v59 }
  0xb8   : > { %3367 = vmatprep.mubr.msk.f32.mxu0 %vm428_vm0, %v3723_v0 }
  0xb9   : > { %3312 = vmatmul.mubr.msk.f32.vlgmr.msra.gmra.mxu1 %vm428_vm0, %v3655_v15 }
  0xba   : > { %3314 = vmatprep.mubr.msk.f32.mxu1 %vm428_vm0, %v3678_v29 }
  0xbb   : > { %3368 = vmatmul.mubr.msk.f32.gmra.mxu0 %vm428_vm0, %v3744_v18 }
  0xbc   : > { %3370 = vmatprep.mubr.msk.f32.mxu0 %vm428_vm0, %v3576_v32 }
  0xbd   : > { %3315 = vmatmul.mubr.msk.f32.gmra.mxu1 %vm428_vm0, %v3686_v37 }
  0xbe   : > { %3317 = vmatprep.mubr.msk.f32.mxu1 %vm428_vm0, %v3696_v45 }
  0xbf   : > { %3371 = vmatmul.mubr.msk.f32.gmra.mxu0 %vm428_vm0, %v3578_v33 }
  0xc0   : > { %3373 = vmatprep.mubr.msk.f32.mxu0 %vm428_vm0, %v3580_v34 }
  0xc1   : > { %3318 = vmatmul.mubr.msk.f32.gmra.mxu1 %vm428_vm0, %v3715_v59 }
  0xc2   : > { %3320 = vmatprep.mubr.msk.f32.mxu1 %vm428_vm0, %v3723_v0 }
  0xc3   : > { %3374 = vmatmul.mubr.msk.f32.gmra.mxu0 %vm428_vm0, %v3599_v46 }
  0xc4   : > { %3376 = vmatprep.mubr.msk.f32.mxu0 %vm428_vm0, %v3615_v52 }
  0xc5   : > { %3321 = vmatmul.mubr.msk.f32.gmra.mxu1 %vm428_vm0, %v3744_v18 }
  0xc6   : > { %3323 = vmatprep.mubr.msk.f32.mxu1 %vm428_vm0, %v3576_v32 }
  0xc7   : > { %3377 = vmatmul.mubr.msk.f32.gmra.mxu0 %vm428_vm0, %v3637_v2 }
  0xc8   : > { %3379 = vmatprep.mubr.msk.f32.mxu0 %vm428_vm0, %v3647_v10 }
  0xc9   : > { %3324 = vmatmul.mubr.msk.f32.gmra.mxu1 %vm428_vm0, %v3578_v33 }
  0xca   : > { %3326 = vmatprep.mubr.msk.f32.mxu1 %vm428_vm0, %v3580_v34 }
  0xcb   : > { %3380 = vmatmul.mubr.msk.f32.gmra.mxu0 %vm428_vm0, %v3660_v19 }
  0xcc   : > { %3382 = vmatprep.mubr.msk.f32.mxu0 %vm428_vm0, %v3676_v28 }
  0xcd   : > { %3327 = vmatmul.mubr.msk.f32.gmra.mxu1 %vm428_vm0, %v3599_v46 }
  0xce   : > { %3329 = vmatprep.mubr.msk.f32.mxu1 %vm428_vm0, %v3615_v52 }
  0xcf   : > { %3383 = vmatmul.mubr.msk.f32.gmra.mxu0 %vm428_vm0, %v3691_v43 }
  0xd0   : > { %v4106_v32 = vpop.f32.mrf.mxu0  ;;  %3385 = vmatprep.mubr.msk.f32.mxu0 %vm428_vm0, %v3701_v48 }
  0xd1   : > { %3330 = vmatmul.mubr.msk.f32.gmra.mxu1 %vm428_vm0, %v3637_v2 }
  0xd2   : > { %v4112_v33 = vpop.f32.mrf.mxu0  ;;  %3332 = vmatprep.mubr.msk.f32.mxu1 %vm428_vm0, %v3647_v10 }
  0xd3   : > { %3386 = vmatmul.mubr.msk.f32.gmra.mxu0 %vm428_vm0, %v3730_v8 }
  0xd4   : > { %v4118_v34 = vpop.f32.mrf.mxu0  ;;  %3388 = vmatprep.mubr.msk.f32.mxu0 %vm428_vm0, %v3737_v13 }
  0xd5   : > { %3333 = vmatmul.mubr.msk.f32.gmra.mxu1 %vm428_vm0, %v3660_v19 }
  0xd6   : > { %3335 = vmatprep.mubr.msk.f32.mxu1 %vm428_vm0, %v3676_v28  ;;  %v4128_v46 = vpop.f32.mrf.mxu0 }
  0xd7   : > { %3389 = vmatmul.mubr.msk.f32.gmra.mxu0 %vm428_vm0, %v3754_v22 }
  0xd8   : > { %3391 = vmatprep.mubr.msk.f32.mxu0 %vm428_vm0, %v3762_v5 }
  0xd9   : > { %v4132_v52 = vpop.f32.mrf.mxu1  ;;  %3336 = vmatmul.mubr.msk.f32.gmra.mxu1 %vm428_vm0, %v3691_v43 }
  0xda   : > { %3338 = vmatprep.mubr.msk.f32.mxu1 %vm428_vm0, %v3701_v48 }
  0xdb   : > { %v4138_v60 = vpop.f32.mrf.mxu1  ;;  %v4140_v61 = vpop.f32.mrf.mxu0  ;;  %3392 = vmatmul.mubr.msk.f32.gmra.mxu0 %vm428_vm0, %v3769_v25 }
  0xdc   : > { %3394 = vmatprep.mubr.msk.f32.mxu0 %vm428_vm0, %v3889_v51 }
  0xdd   : > { %v4146_v2 = vpop.f32.mrf.mxu1  ;;  %3339 = vmatmul.mubr.msk.f32.gmra.mxu1 %vm428_vm0, %v3730_v8  ;;  %v4150_v7 = vpop.f32.mrf.mxu0 }
  0xde   : > { %3341 = vmatprep.mubr.msk.f32.mxu1 %vm428_vm0, %v3737_v13 }
  0xdf   : > { %v4154_v10 = vpop.f32.mrf.mxu1  ;;  %v4156_v15 = vpop.f32.mrf.mxu0  ;;  %3395 = vmatmul.mubr.msk.f32.gmra.mxu0 %vm428_vm0, %v3898_v26 }
  0xe0   : > { %3397 = vmatprep.mubr.msk.f32.mxu0 %vm428_vm0, %v4017_v39 }
  0xe1   : > { %v4162_v19 = vpop.f32.mrf.mxu1  ;;  %3342 = vmatmul.mubr.msk.f32.gmra.mxu1 %vm428_vm0, %v3754_v22  ;;  %v4166_v27 = vpop.f32.mrf.mxu0 }
  0xe2   : > { %3344 = vmatprep.mubr.msk.f32.mxu1 %vm428_vm0, %v3762_v5 }
  0xe3   : > { %v4170_v28 = vpop.f32.mrf.mxu1  ;;  %v4172_v29 = vpop.f32.mrf.mxu0  ;;  %3398 = vmatmul.mubr.msk.f32.gmra.mxu0 %vm428_vm0, %v4026_v41 }
  0xe4   : > { %3400 = vmatprep.mubr.f32.mxu0 %v3460_v3 }
  0xe5   : > { %v4177_v30 = vpop.f32.mrf.mxu1  ;;  %3345 = vmatmul.mubr.msk.f32.gmra.mxu1 %vm428_vm0, %v3769_v25  ;;  %v4181_v31 = vpop.f32.mrf.mxu0 }
  0xe6   : > { %3347 = vmatprep.mubr.msk.f32.mxu1 %vm428_vm0, %v3889_v51 }
  0xe7   : > { %v4185_v35 = vpop.f32.mrf.mxu1  ;;  %v4187_v36 = vpop.f32.mrf.mxu0  ;;  %3401 = vmatmul.mubr.f32.gmra.mxu0 %v3460_v3 }
  0xe8   : > { %3403 = vmatprep.mubr.f32.mxu0 %v3460_v3 }
  0xe9   : > { %v4191_v37 = vpop.f32.mrf.mxu1  ;;  %3348 = vmatmul.mubr.msk.f32.gmra.mxu1 %vm428_vm0, %v3898_v26  ;;  %v4195_v38 = vpop.f32.mrf.mxu0 }
  0xea   : > { %3350 = vmatprep.mubr.msk.f32.mxu1 %vm428_vm0, %v4017_v39 }
  0xeb   : > { %v4199_v40 = vpop.f32.mrf.mxu1  ;;  %v4201_v42 = vpop.f32.mrf.mxu0  ;;  %3404 = vmatmul.mubr.f32.gmra.mxu0 %v3460_v3 }
  0xec   : > { %3406 = vmatprep.mubr.f32.mxu0 %v3460_v3 }
  0xed   : > { %v4205_v43 = vpop.f32.mrf.mxu1  ;;  %3351 = vmatmul.mubr.msk.f32.gmra.mxu1 %vm428_vm0, %v4026_v41  ;;  %v4209_v44 = vpop.f32.mrf.mxu0 }
  0xee   : > { %3353 = vmatprep.mubr.f32.mxu1 %v3460_v3 }
  0xef   : > { %v4212_v45 = vpop.f32.mrf.mxu1  ;;  %v4214_v47 = vpop.f32.mrf.mxu0  ;;  %3407 = vmatmul.mubr.f32.gmra.mxu0 %v3460_v3 }
  0xf1   : > { %v4217_v48 = vpop.f32.mrf.mxu1  ;;  %3354 = vmatmul.mubr.f32.gmra.mxu1 %v3460_v3  ;;  %v4220_v49 = vpop.f32.mrf.mxu0 }
  0xf2   : > { %3356 = vmatprep.mubr.f32.mxu1 %v3460_v3 }
  0xf3   : > { %v4223_v50 = vpop.f32.mrf.mxu1  ;;  %v3163_v53 = vpop.f32.mrf.mxu0 }
  0xf5   : > { %v4225_v54 = vpop.f32.mrf.mxu1  ;;  %3357 = vmatmul.mubr.f32.gmra.mxu1 %v3460_v3  ;;  %v1040_v55 = vpop.f32.mrf.mxu0 }
  0xf7   : > { %v4228_v56 = vpop.f32.mrf.mxu1  ;;  %v3166_v57 = vpop.f32.mrf.mxu0 }
  0xf9   : > { %v3113_v58 = vpop.f32.mrf.mxu1  ;;  %v1050_v59 = vpop.f32.mrf.mxu0 }
  0xfa   : > { %v813_v62 = vadd.f32 %v3113_v58, %v4106_v32 }
  0xfb   : > { %v807_v63 = vpop.f32.mrf.mxu1  ;;  %v3169_v0 = vpop.f32.mrf.mxu0 }
  0xfc   : > { %v4231_v1 = vadd.f32 %v3163_v53, %v813_v62  ;;  %v808_v8 = vadd.f32 %v807_v63, %v4112_v33 }
  0xfd   : > { %v3116_v9 = vpop.f32.mrf.mxu1  ;;  %v1060_v11 = vpop.f32.mrf.mxu0 }
  0xfe   : > { %v4234_v12 = vadd.f32 %v1040_v55, %v808_v8  ;;  %v823_v3 = vadd.f32 %v3116_v9, %v4118_v34 }
  0xff   : > { %v817_v13 = vpop.f32.mrf.mxu1  ;;  %v3172_v14 = vpop.f32.mrf.mxu0 }
 0x100   : > { %v4237_v16 = vadd.f32 %v3166_v57, %v823_v3  ;;  %v818_v17 = vadd.f32 %v817_v13, %v4128_v46 }
 0x101   : > { %v3119_v18 = vpop.f32.mrf.mxu1  ;;  %v1070_v20 = vpop.f32.mrf.mxu0 }
 0x102   : > { %v4240_v21 = vadd.f32 %v1050_v59, %v818_v17  ;;  %v833_v22 = vadd.f32 %v3119_v18, %v4140_v61 }
 0x103   : > { %v827_v23 = vpop.f32.mrf.mxu1  ;;  %v3175_v24 = vpop.f32.mrf.mxu0 }
 0x104   : > { %v4243_v5 = vadd.f32 %v3169_v0, %v833_v22  ;;  %v828_v25 = vadd.f32 %v827_v23, %v4150_v7 }
 0x105   : > { %v3122_v6 = vpop.f32.mrf.mxu1  ;;  %v1080_v4 = vpop.f32.mrf.mxu0 }
 0x106   : > { %v4246_v51 = vadd.f32 %v1060_v11, %v828_v25  ;;  %v843_v26 = vadd.f32 %v3122_v6, %v4156_v15 }
 0x107   : > { %v837_v39 = vpop.f32.mrf.mxu1  ;;  %v3178_v41 = vpop.f32.mrf.mxu0 }
 0x108   : > { %v4249_v32 = vadd.f32 %v3172_v14, %v843_v26  ;;  %v838_v33 = vadd.f32 %v837_v39, %v4166_v27 }
 0x109   : > { %v3125_v34 = vpop.f32.mrf.mxu1  ;;  %v1090_v46 = vpop.f32.mrf.mxu0 }
 0x10a   : > { %v4252_v61 = vadd.f32 %v1070_v20, %v838_v33  ;;  %v853_v53 = vadd.f32 %v3125_v34, %v4172_v29 }
 0x10b   : > { %v847_v55 = vpop.f32.mrf.mxu1  ;;  %v3181_v7 = vpop.f32.mrf.mxu0 }
 0x10c   : > { %v4255_v57 = vadd.f32 %v3175_v24, %v853_v53  ;;  %v848_v58 = vadd.f32 %v847_v55, %v4181_v31 }
 0x10d   : > { %v3128_v59 = vpop.f32.mrf.mxu1  ;;  %v1100_v15 = vpop.f32.mrf.mxu0 }
 0x10e   : > { %v4258_v62 = vadd.f32 %v1080_v4, %v848_v58  ;;  %v863_v63 = vadd.f32 %v3128_v59, %v4187_v36 }
 0x10f   : > { %v857_v0 = vpop.f32.mrf.mxu1  ;;  %v3184_v27 = vpop.f32.mrf.mxu0 }
 0x110   : > { %v4261_v8 = vadd.f32 %v3178_v41, %v863_v63  ;;  %v858_v9 = vadd.f32 %v857_v0, %v4195_v38 }
 0x111   : > { %v3131_v11 = vpop.f32.mrf.mxu1  ;;  %v1110_v29 = vpop.f32.mrf.mxu0 }
 0x112   : > { %v4264_v3 = vadd.f32 %v1090_v46, %v858_v9  ;;  %v873_v13 = vadd.f32 %v3131_v11, %v4201_v42 }
 0x113   : > { %v867_v14 = vpop.f32.mrf.mxu1  ;;  %v3187_v31 = vpop.f32.mrf.mxu0 }
 0x114   : > { %v4267_v17 = vadd.f32 %v3181_v7, %v873_v13  ;;  %v868_v18 = vadd.f32 %v867_v14, %v4209_v44 }
 0x115   : > { %v3134_v20 = vpop.f32.mrf.mxu1  ;;  %v1120_v36 = vpop.f32.mrf.mxu0 }
 0x116   : > { %v4270_v22 = vadd.f32 %v1100_v15, %v868_v18  ;;  %v883_v23 = vadd.f32 %v3134_v20, %v4214_v47 }
 0x117   : > { %v877_v24 = vpop.f32.mrf.mxu1  ;;  %v3190_v38 = vpop.f32.mrf.mxu0 }
 0x118   : > { %v4273_v25 = vadd.f32 %v3184_v27, %v883_v23  ;;  %v878_v6 = vadd.f32 %v877_v24, %v4220_v49 }
 0x119   : > { %v3137_v4 = vpop.f32.mrf.mxu1  ;;  %v1130_v42 = vpop.f32.mrf.mxu0 }
 0x11a   : > { %v4276_v26 = vadd.f32 %v1110_v29, %v878_v6  ;;  %v893_v39 = vadd.f32 %v3137_v4, %v4132_v52 }
 0x11b   : > { %v887_v41 = vpop.f32.mrf.mxu1  ;;  %v3193_v44 = vpop.f32.mrf.mxu0 }
 0x11c   : > { %v4279_v33 = vadd.f32 %v3187_v31, %v893_v39  ;;  %v888_v34 = vadd.f32 %v887_v41, %v4138_v60 }
 0x11d   : > { %v3140_v46 = vpop.f32.mrf.mxu1  ;;  %v1140_v47 = vpop.f32.mrf.mxu0 }
 0x11e   : > { %v4282_v53 = vadd.f32 %v1120_v36, %v888_v34  ;;  %v903_v55 = vadd.f32 %v3140_v46, %v4146_v2 }
 0x11f   : > { %v897_v7 = vpop.f32.mrf.mxu1  ;;  %v3196_v49 = vpop.f32.mrf.mxu0 }
 0x120   : > { %v4285_v58 = vadd.f32 %v3190_v38, %v903_v55  ;;  %v898_v59 = vadd.f32 %v897_v7, %v4154_v10 }
 0x121   : > { %v3143_v15 = vpop.f32.mrf.mxu1  ;;  %v1150_v52 = vpop.f32.mrf.mxu0 }
 0x122   : > { %v4288_v63 = vadd.f32 %v1130_v42, %v898_v59  ;;  %v913_v0 = vadd.f32 %v3143_v15, %v4162_v19 }
 0x123   : > { %v907_v27 = vpop.f32.mrf.mxu1  ;;  %v3199_v60 = vpop.f32.mrf.mxu0 }
 0x124   : > { %v4291_v9 = vadd.f32 %v3193_v44, %v913_v0  ;;  %v908_v11 = vadd.f32 %v907_v27, %v4170_v28 }
 0x125   : > { %v3146_v29 = vpop.f32.mrf.mxu1  ;;  %v1160_v2 = vpop.f32.mrf.mxu0 }
 0x126   : > { %4719 = vst [vmem:[#allocation2_spill] sm:$0xff] %v4291_v9  ;;  %v4294_v13 = vadd.f32 %v1140_v47, %v908_v11  ;;  %v923_v14 = vadd.f32 %v3146_v29, %v4177_v30 }
 0x127   : > { %v917_v31 = vpop.f32.mrf.mxu1  ;;  %v3202_v10 = vpop.f32.mrf.mxu0 }
 0x128   : > { %4720 = vst [vmem:[#allocation3_spill] sm:$0xff] %v4294_v13  ;;  %v4297_v18 = vadd.f32 %v3196_v49, %v923_v14  ;;  %v918_v20 = vadd.f32 %v917_v31, %v4185_v35 }
 0x129   : > { %v3149_v36 = vpop.f32.mrf.mxu1  ;;  %v1170_v19 = vpop.f32.mrf.mxu0 }
 0x12a   : > { %4721 = vst [vmem:[#allocation4_spill] sm:$0xff] %v4297_v18  ;;  %v4300_v23 = vadd.f32 %v1150_v52, %v918_v20  ;;  %v933_v24 = vadd.f32 %v3149_v36, %v4191_v37 }
 0x12b   : > { %v927_v38 = vpop.f32.mrf.mxu1  ;;  %v3205_v28 = vpop.f32.mrf.mxu0 }
 0x12c   : > { %4722 = vst [vmem:[#allocation5_spill] sm:$0xff] %v4300_v23  ;;  %v4303_v6 = vadd.f32 %v3199_v60, %v933_v24  ;;  %v928_v4 = vadd.f32 %v927_v38, %v4199_v40 }
 0x12d   : > { %v3152_v42 = vpop.f32.mrf.mxu1  ;;  %v1180_v30 = vpop.f32.mrf.mxu0 }
 0x12e   : > { %4723 = vst [vmem:[#allocation6_spill] sm:$0xff] %v4303_v6  ;;  %v4306_v39 = vadd.f32 %v1160_v2, %v928_v4  ;;  %v943_v41 = vadd.f32 %v3152_v42, %v4205_v43 }
 0x12f   : > { %v937_v44 = vpop.f32.mrf.mxu1  ;;  %v3208_v35 = vpop.f32.mrf.mxu0 }
 0x130   : > { %4724 = vst [vmem:[#allocation7_spill] sm:$0xff] %v4306_v39  ;;  %v4309_v34 = vadd.f32 %v3202_v10, %v943_v41  ;;  %v938_v46 = vadd.f32 %v937_v44, %v4212_v45 }
 0x131   : > { %v3155_v47 = vpop.f32.mrf.mxu1  ;;  %v1190_v37 = vpop.f32.mrf.mxu0 }
 0x132   : > { %4725 = vst [vmem:[#allocation8_spill] sm:$0xff] %v4309_v34  ;;  %v4312_v55 = vadd.f32 %v1170_v19, %v938_v46  ;;  %v953_v7 = vadd.f32 %v3155_v47, %v4217_v48 }
 0x133   : > { %v947_v49 = vpop.f32.mrf.mxu1  ;;  %v4315_v40 = vpop.f32.mrf.mxu0 }
 0x134   : > { %4726 = vst [vmem:[#allocation9_spill] sm:$0xff] %v4312_v55  ;;  %v4317_v59 = vadd.f32 %v3205_v28, %v953_v7  ;;  %v948_v15 = vadd.f32 %v947_v49, %v4223_v50 }
 0x135   : > { %v3158_v43 = vpop.f32.mrf.mxu1  ;;  %v4320_v52 = vpop.f32.mrf.mxu0 }
 0x136   : > { %4727 = vst [vmem:[#allocation10_spill] sm:$0xff] %v4317_v59  ;;  %v4322_v0 = vadd.f32 %v1180_v30, %v948_v15  ;;  %v963_v45 = vadd.f32 %v3158_v43, %v4225_v54 }
 0x137   : > { %v957_v27 = vpop.f32.mrf.mxu1  ;;  %v4325_v60 = vpop.f32.mrf.mxu0 }
 0x138   : > { %4728 = vst [vmem:[#allocation11_spill] sm:$0xff] %v4322_v0  ;;  %v4327_v11 = vadd.f32 %v3208_v35, %v963_v45  ;;  %v958_v48 = vadd.f32 %v957_v27, %v4228_v56 }
 0x139   : > { %v3213_v29 = vpop.f32.mrf.mxu1  ;;  %v4330_v2 = vpop.f32.mrf.mxu0 }
 0x13a   : > { %4729 = vst [vmem:[#allocation12_spill] sm:$0xff] %v4327_v11  ;;  %v4332_v14 = vadd.f32 %v1190_v37, %v958_v48 }
 0x13b   : > { %v1305_v50 = vpop.f32.mrf.mxu1  ;;  %v4334_v31 = vpop.f32.mrf.mxu0 }
 0x13c   : > { %4730 = vst [vmem:[#allocation13_spill] sm:$0xff] %v4332_v14 }
 0x13d   : > { %v3216_v10 = vpop.f32.mrf.mxu1  ;;  %v4336_v20 = vpop.f32.mrf.mxu0 }
 0x13f   : > { %v1315_v36 = vpop.f32.mrf.mxu1  ;;  %v4338_v54 = vpop.f32.mrf.mxu0 }
 0x141   : > { %v3219_v19 = vpop.f32.mrf.mxu1  ;;  %v4340_v24 = vpop.f32.mrf.mxu0 }
 0x143   : > { %v1325_v38 = vpop.f32.mrf.mxu1  ;;  %v4342_v28 = vpop.f32.mrf.mxu0 }
 0x145   : > { %v3222_v56 = vpop.f32.mrf.mxu1  ;;  %v4344_v4 = vpop.f32.mrf.mxu0 }
 0x147   : > { %v1335_v42 = vpop.f32.mrf.mxu1  ;;  %v4346_v30 = vpop.f32.mrf.mxu0 }
 0x149   : > { %v3225_v41 = vpop.f32.mrf.mxu1  ;;  %v4348_v44 = vpop.f32.mrf.mxu0 }
 0x14b   : > { %v1345_v35 = vpop.f32.mrf.mxu1  ;;  %v4350_v46 = vpop.f32.mrf.mxu0 }
 0x14d   : > { %v3228_v47 = vpop.f32.mrf.mxu1  ;;  %v4352_v37 = vpop.f32.mrf.mxu0 }
 0x14e   : > { %4731 = vst [vmem:[#allocation14_spill] sm:$0xff] %v4352_v37 }
 0x14f   : > { %v1355_v7 = vpop.f32.mrf.mxu1  ;;  %v4354_v49 = vpop.f32.mrf.mxu0 }
 0x150   : > { %4732 = vst [vmem:[#allocation15_spill] sm:$0xff] %v4354_v49 }
 0x151   : > { %v3231_v15 = vpop.f32.mrf.mxu1  ;;  %v4356_v43 = vpop.f32.mrf.mxu0 }
 0x152   : > { %4733 = vst [vmem:[#allocation16_spill] sm:$0xff] %v4356_v43 }
 0x153   : > { %v4358_v45 = vpop.f32.mrf.mxu1  ;;  %v4360_v27 = vpop.f32.mrf.mxu0 }
 0x154   : > { %4734 = vst [vmem:[#allocation17_spill] sm:$0xff] %v4360_v27 }
 0x155   : > { %v4362_v48 = vpop.f32.mrf.mxu1  ;;  %v4364_v14 = vpop.f32.mrf.mxu0 }
 0x156   : > { %4735 = vst [vmem:[#allocation18_spill] sm:$0xff] %v4364_v14 }
 0x157   : > { %v4366_v11 = vpop.f32.mrf.mxu1  ;;  %v4368_v0 = vpop.f32.mrf.mxu0 }
 0x158   : > { %4736 = vst [vmem:[#allocation19_spill] sm:$0xff] %v4368_v0 }
 0x159   : > { %v4370_v59 = vpop.f32.mrf.mxu1  ;;  %v4372_v55 = vpop.f32.mrf.mxu0 }
 0x15a   : > { %4737 = vst [vmem:[#allocation20_spill] sm:$0xff] %v4372_v55 }
 0x15b   : > { %v4374_v34 = vpop.f32.mrf.mxu1  ;;  %v4376_v39 = vpop.f32.mrf.mxu0 }
 0x15c   : > { %4738 = vst [vmem:[#allocation21_spill] sm:$0xff] %v4376_v39 }
 0x15d   : > { %v4378_v6 = vpop.f32.mrf.mxu1  ;;  %v4380_v23 = vpop.f32.mrf.mxu0 }
 0x15e   : > { %4739 = vst [vmem:[#allocation22_spill] sm:$0xff] %v4380_v23 }
 0x15f   : > { %v4382_v18 = vpop.f32.mrf.mxu1  ;;  %v4384_v13 = vpop.f32.mrf.mxu0 }
 0x160   : > { %4740 = vst [vmem:[#allocation23_spill] sm:$0xff] %v4382_v18  ;;  %4741 = vst [vmem:[#allocation24_spill] sm:$0xff] %v4384_v13 }
 0x161   : > { %v4386_v9 = vpop.f32.mrf.mxu1  ;;  %v4388_v14 = vpop.f32.mrf.mxu0 }
 0x162   : > { %4742 = vst [vmem:[#allocation25_spill] sm:$0xff] %v4386_v9  ;;  %4743 = vst [vmem:[#allocation26_spill] sm:$0xff] %v4388_v14 }
 0x163   : > { %v4390_v0 = vpop.f32.mrf.mxu1  ;;  %v4392_v27 = vpop.f32.mrf.mxu0 }
 0x164   : > { %4744 = vst [vmem:[#allocation27_spill] sm:$0xff] %v4390_v0  ;;  %4745 = vst [vmem:[#allocation28_spill] sm:$0xff] %v4392_v27 }
 0x165   : > { %v4394_v55 = vpop.f32.mrf.mxu1  ;;  %v4396_v43 = vpop.f32.mrf.mxu0 }
 0x166   : > { %4746 = vst [vmem:[#allocation29_spill] sm:$0xff] %v4394_v55  ;;  %4747 = vst [vmem:[#allocation30_spill] sm:$0xff] %v4396_v43 }
 0x167   : > { %v4398_v39 = vpop.f32.mrf.mxu1  ;;  %v4400_v49 = vpop.f32.mrf.mxu0 }
 0x168   : > { %4748 = vst [vmem:[#allocation31_spill] sm:$0xff] %v4398_v39  ;;  %4749 = vst [vmem:[#allocation32_spill] sm:$0xff] %v4400_v49 }
 0x169   : > { %v4402_v23 = vpop.f32.mrf.mxu1  ;;  %v4404_v37 = vpop.f32.mrf.mxu0 }
 0x16a   : > { %4750 = vst [vmem:[#allocation33_spill] sm:$0xff] %v4402_v23  ;;  %4751 = vst [vmem:[#allocation34_spill] sm:$0xff] %v4404_v37  ;;  %v1465_v37 = vadd.f32 %v3213_v29, %v4231_v1  ;;  %v1471_v1 = vadd.f32 %v3222_v56, %v4249_v32  ;;  %v1470_v29 = vadd.f32 %v1335_v42, %v4252_v61 }
 0x16b   : > { %v4406_v13 = vpop.f32.mrf.mxu1  ;;  %v4408_v9 = vpop.f32.mrf.mxu0  ;;  %v1479_v56 = vadd.f32 %v4362_v48, %v4273_v25  ;;  %v1481_v42 = vadd.f32 %v4370_v59, %v4279_v33  ;;  %v1480_v25 = vadd.f32 %v4374_v34, %v4282_v53  ;;  %v4763_v34 = vld [vmem:[#allocation15_spill] sm:$0xff] }
 0x16c   : > { %4752 = vst [vmem:[#allocation35_spill] sm:$0xff] %v4406_v13  ;;  %4753 = vst [vmem:[#allocation36_spill] sm:$0xff] %v4408_v9 }
 0x16d   : > { %v4410_v14 = vpop.f32.mrf.mxu1  ;;  %v4412_v0 = vpop.f32.mrf.mxu0 }
 0x16e   : > { %4754 = vst [vmem:[#allocation37_spill] sm:$0xff] %v4410_v14  ;;  %4755 = vst [vmem:[#allocation38_spill] sm:$0xff] %v4412_v0  ;;  %v1464_v14 = vadd.f32 %v1305_v50, %v4234_v12  ;;  %v1467_v0 = vadd.f32 %v3216_v10, %v4237_v16  ;;  %v1473_v12 = vadd.f32 %v3225_v41, %v4255_v57 }
 0x16f   : > { %v4414_v27 = vpop.f32.mrf.mxu1  ;;  %v4416_v55 = vpop.f32.mrf.mxu0  ;;  %v1472_v16 = vadd.f32 %v1345_v35, %v4258_v62 }
 0x170   : > { %4756 = vst [vmem:[#allocation39_spill] sm:$0xff] %v4414_v27  ;;  %4757 = vst [vmem:[#allocation40_spill] sm:$0xff] %v4416_v55  ;;  %v1466_v27 = vadd.f32 %v1315_v36, %v4240_v21  ;;  %v1469_v55 = vadd.f32 %v3219_v19, %v4243_v5  ;;  %v1475_v21 = vadd.f32 %v3228_v47, %v4261_v8  ;;  %v4761_v47 = vld [vmem:[#allocation23_spill] sm:$0xff] }
 0x171   : > { %v4418_v43 = vpop.f32.mrf.mxu1  ;;  %v4420_v39 = vpop.f32.mrf.mxu0  ;;  %v1474_v5 = vadd.f32 %v1355_v7, %v4264_v3  ;;  %v1723_v10 = vadd.f32 %v4320_v52, %v1464_v14  ;;  %v1477_v36 = vadd.f32 %v3231_v15, %v4267_v17  ;;  %v1726_v19 = vadd.f32 %v4325_v60, %v1467_v0  ;;  %v4762_v15 = vld [vmem:[#allocation14_spill] sm:$0xff] }
 0x172   : > { %4758 = vst [vmem:[#allocation41_spill] sm:$0xff] %v4418_v43  ;;  %4759 = vst [vmem:[#allocation42_spill] sm:$0xff] %v4420_v39  ;;  %v1468_v43 = vadd.f32 %v1325_v38, %v4246_v51  ;;  %v1725_v32 = vadd.f32 %v4330_v2, %v1466_v27  ;;  %v1728_v61 = vadd.f32 %v4334_v31, %v1469_v55 }
 0x173   : > { %v4422_v49 = vpop.f32.mrf.mxu1  ;;  %v3363_v23 = vpop.f32.mrf.mxu0  ;;  %v1730_v3 = vadd.f32 %v4338_v54, %v1471_v1  ;;  %v4456_v17 = vadd.f32 %v4340_v24, %v1470_v29  ;;  %v4459_v55 = vadd.f32 %v4342_v28, %v1473_v12  ;;  %v4462_v60 = vadd.f32 %v4344_v4, %v1472_v16  ;;  %v4765_v16 = vld [vmem:[#allocation17_spill] sm:$0xff] }
 0x174   : > { %4760 = vst [vmem:[#allocation43_spill] sm:$0xff] %v4422_v49  ;;  %v1724_v49 = vadd.f32 %v4315_v40, %v1465_v37  ;;  %v1727_v57 = vadd.f32 %v4336_v20, %v1468_v43  ;;  %v4465_v2 = vadd.f32 %v4346_v30, %v1475_v21  ;;  %v4468_v14 = vadd.f32 %v4348_v44, %v1474_v5  ;;  %v4766_v5 = vld [vmem:[#allocation18_spill] sm:$0xff] }
 0x175   : > { %v4425_v13 = vpop.f32.mrf.mxu1  ;;  %v2082_v9 = vpop.f32.mrf.mxu0  ;;  %v4471_v54 = vadd.f32 %v4350_v46, %v1477_v36  ;;  %v1476_v28 = vadd.f32 %v4358_v45, %v4270_v22  ;;  %v1478_v4 = vadd.f32 %v4366_v11, %v4276_v26  ;;  %v1483_v26 = vadd.f32 %v4378_v6, %v4285_v58 }
 0x176   : > { %v1482_v37 = vadd.f32 %v4761_v47, %v4288_v63  ;;  %v4501_v58 = vadd.f32 %v4763_v34, %v1479_v56  ;;  %v4764_v63 = vld [vmem:[#allocation16_spill] sm:$0xff]  ;;  %v4507_v21 = vadd.f32 %v4765_v16, %v1481_v42 }
 0x177   : > { %v4432_v18 = vpop.f32.mrf.mxu1  ;;  %v3366_v39 = vpop.f32.mrf.mxu0  ;;  %v4498_v53 = vadd.f32 %v4762_v15, %v1476_v28  ;;  %v4504_v48 = vadd.f32 %v4764_v63, %v1478_v4  ;;  %v4773_v63 = vld [vmem:[#allocation21_spill] sm:$0xff] }
 0x179   : > { %v3313_v50 = vpop.f32.mrf.mxu1  ;;  %v2092_v51 = vpop.f32.mrf.mxu0 }
 0x17a   : > { %v1983_v40 = vadd.f32 %v3313_v50, %v1724_v49  ;;  %v4510_v50 = vadd.f32 %v4766_v5, %v1480_v25  ;;  %v4774_v5 = vld [vmem:[#allocation22_spill] sm:$0xff] }
 0x17b   : > { %v1823_v62 = vpop.f32.mrf.mxu1  ;;  %v3369_v8 = vpop.f32.mrf.mxu0 }
 0x17c   : > { %v2242_v52 = vadd.f32 %v3363_v23, %v1983_v40  ;;  %v1982_v0 = vadd.f32 %v1823_v62, %v1723_v10 }
 0x17d   : > { %v3316_v31 = vpop.f32.mrf.mxu1  ;;  %v2102_v20 = vpop.f32.mrf.mxu0 }
 0x17e   : > { %2274 = vst.msk [vmem:[%s4452_s25 + $0x8] sm:$0xff] %vm428_vm0, %v2242_v52  ;;  %v2377_v23 = vmul.f32 %v2242_v52, %v2242_v52  ;;  %v2241_v24 = vadd.f32 %v2082_v9, %v1982_v0  ;;  %v1985_v38 = vadd.f32 %v3316_v31, %v1726_v19  ;;  %v2306_v44 = vsel %vm428_vm0, %v2242_v52, 0.0  ;;  %v4767_v19 = vld [vmem:[#allocation19_spill] sm:$0xff]  ;;  %v4769_v52 = vld [vmem:[#allocation2_spill] sm:$0xff]  ;;  %v4770_v0 = vld [vmem:[#allocation25_spill] sm:$0xff] }
 0x17f   : > { %v1833_v30 = vpop.f32.mrf.mxu1  ;;  %v3372_v41 = vpop.f32.mrf.mxu0  ;;  %v1485_v31 = vadd.f32 %v4770_v0, %v4769_v52 }
 0x180   : > { %2273 = vst.msk [vmem:[%s4452_s25] sm:$0xff] %vm428_vm0, %v2241_v24  ;;  %v2305_v9 = vsel %vm428_vm0, %v2241_v24, 0.0  ;;  %v2376_v35 = vmul.f32 %v2241_v24, %v2241_v24  ;;  %v2244_v22 = vadd.f32 %v3366_v39, %v1985_v38  ;;  %v1984_v46 = vadd.f32 %v1833_v30, %v1725_v32 }
 0x181   : > { %v2307_v11 = vadd.f32 %v2306_v44, %v2305_v9  ;;  %v3319_v33 = vpop.f32.mrf.mxu1  ;;  %v2112_v59 = vpop.f32.mrf.mxu0  ;;  %v2409_v7 = vsel %vm428_vm0, %v2377_v23, 0.0  ;;  %v4516_v32 = vadd.f32 %v4767_v19, %v1483_v26 }
 0x182   : > { %v2408_v49 = vsel %vm428_vm0, %v2376_v35, 0.0  ;;  %2276 = vst.msk [vmem:[%s4452_s25 + $0x18] sm:$0xff] %vm428_vm0, %v2244_v22  ;;  %v1987_v39 = vadd.f32 %v3319_v33, %v1728_v61  ;;  %v2243_v43 = vadd.f32 %v2092_v51, %v1984_v46  ;;  %v2379_v1 = vmul.f32 %v2244_v22, %v2244_v22  ;;  %v4768_v61 = vld [vmem:[#allocation20_spill] sm:$0xff] }
 0x183   : > { %v2410_v6 = vadd.f32 %v2409_v7, %v2408_v49  ;;  %v1843_v45 = vpop.f32.mrf.mxu1  ;;  %v3375_v27 = vpop.f32.mrf.mxu0  ;;  %v4519_v62 = vadd.f32 %v4768_v61, %v1482_v37  ;;  %v2310_v23 = vsel %vm428_vm0, %v2244_v22, 0.0 }
 0x184   : > { %v2246_v29 = vadd.f32 %v3369_v8, %v1987_v39  ;;  %v1986_v12 = vadd.f32 %v1843_v45, %v1727_v57  ;;  %2275 = vst.msk [vmem:[%s4452_s25 + $0x10] sm:$0xff] %vm428_vm0, %v2243_v43  ;;  %v2308_v10 = vsel %vm428_vm0, %v2243_v43, 0.0  ;;  %v2378_v51 = vmul.f32 %v2243_v43, %v2243_v43 }
 0x185   : > { %v3322_v36 = vpop.f32.mrf.mxu1  ;;  %v2122_v40 = vpop.f32.mrf.mxu0  ;;  %v2309_v57 = vadd.f32 %v2308_v10, %v2307_v11  ;;  %v2413_v4 = vsel %vm428_vm0, %v2379_v1, 0.0  ;;  %v4771_v11 = vld [vmem:[#allocation3_spill] sm:$0xff]  ;;  %v4541_v1 = vadd.f32 %v4773_v63, %v1485_v31 }
 0x186   : > { %2278 = vst.msk [vmem:[%s4452_s25 + $0x28] sm:$0xff] %vm428_vm0, %v2246_v29  ;;  %v2245_v8 = vadd.f32 %v2102_v20, %v1986_v12  ;;  %v2411_v24 = vsel %vm428_vm0, %v2378_v51, 0.0  ;;  %v1989_v38 = vadd.f32 %v3322_v36, %v1730_v3  ;;  %v2381_v20 = vmul.f32 %v2246_v29, %v2246_v29  ;;  %v4772_v3 = vld [vmem:[#allocation27_spill] sm:$0xff]  ;;  %v4775_v51 = vld [vmem:[#allocation4_spill] sm:$0xff]  ;;  %v4776_v36 = vld [vmem:[#allocation29_spill] sm:$0xff] }
 0x187   : > { %v1853_v28 = vpop.f32.mrf.mxu1  ;;  %v3378_v56 = vpop.f32.mrf.mxu0  ;;  %v2412_v42 = vadd.f32 %v2411_v24, %v2410_v6  ;;  %v2311_v30 = vadd.f32 %v2310_v23, %v2309_v57  ;;  %v1484_v46 = vadd.f32 %v4772_v3, %v4771_v11  ;;  %v2314_v7 = vsel %vm428_vm0, %v2246_v29, 0.0  ;;  %v4778_v11 = vld [vmem:[#allocation31_spill] sm:$0xff] }
 0x188   : > { %2277 = vst.msk [vmem:[%s4452_s25 + $0x20] sm:$0xff] %vm428_vm0, %v2245_v8  ;;  %v2312_v44 = vsel %vm428_vm0, %v2245_v8, 0.0  ;;  %v2380_v9 = vmul.f32 %v2245_v8, %v2245_v8  ;;  %v2248_v35 = vadd.f32 %v3372_v41, %v1989_v38  ;;  %v1988_v25 = vadd.f32 %v1853_v28, %v4456_v17 }
 0x189   : > { %v3325_v22 = vpop.f32.mrf.mxu1  ;;  %v2132_v26 = vpop.f32.mrf.mxu0  ;;  %v2313_v33 = vadd.f32 %v2312_v44, %v2311_v30  ;;  %v2414_v47 = vadd.f32 %v2413_v4, %v2412_v42  ;;  %v4548_v10 = vadd.f32 %v4774_v5, %v1484_v46  ;;  %v4780_v46 = vld [vmem:[#allocation33_spill] sm:$0xff] }
 0x18a   : > { %v1991_v37 = vadd.f32 %v3325_v22, %v4459_v55  ;;  %v2415_v49 = vsel %vm428_vm0, %v2380_v9, 0.0  ;;  %2280 = vst.msk [vmem:[%s4452_s25 + $0x38] sm:$0xff] %vm428_vm0, %v2248_v35  ;;  %v2383_v39 = vmul.f32 %v2248_v35, %v2248_v35  ;;  %v2247_v41 = vadd.f32 %v2112_v59, %v1988_v25  ;;  %v4777_v22 = vld [vmem:[#allocation5_spill] sm:$0xff] }
 0x18b   : > { %v1863_v15 = vpop.f32.mrf.mxu1  ;;  %v3381_v17 = vpop.f32.mrf.mxu0  ;;  %v2416_v34 = vadd.f32 %v2415_v49, %v2414_v47  ;;  %v2315_v6 = vadd.f32 %v2314_v7, %v2313_v33  ;;  %v2417_v55 = vsel %vm428_vm0, %v2381_v20, 0.0  ;;  %v2318_v61 = vsel %vm428_vm0, %v2248_v35, 0.0 }
 0x18c   : > { %v2250_v43 = vadd.f32 %v3375_v27, %v1991_v37  ;;  %v1990_v45 = vadd.f32 %v1863_v15, %v4462_v60  ;;  %2279 = vst.msk [vmem:[%s4452_s25 + $0x30] sm:$0xff] %vm428_vm0, %v2247_v41  ;;  %v2316_v29 = vsel %vm428_vm0, %v2247_v41, 0.0  ;;  %v2382_v12 = vmul.f32 %v2247_v41, %v2247_v41 }
 0x18d   : > { %v3328_v16 = vpop.f32.mrf.mxu1  ;;  %v2142_v59 = vpop.f32.mrf.mxu0  ;;  %v1487_v27 = vadd.f32 %v4776_v36, %v4775_v51  ;;  %v2317_v60 = vadd.f32 %v2316_v29, %v2315_v6  ;;  %v2418_v19 = vadd.f32 %v2417_v55, %v2416_v34  ;;  %v2421_v23 = vsel %vm428_vm0, %v2383_v39, 0.0 }
 0x18e   : > { %2282 = vst.msk [vmem:[%s4452_s25 + $0x48] sm:$0xff] %vm428_vm0, %v2250_v43  ;;  %v2419_v57 = vsel %vm428_vm0, %v2382_v12, 0.0  ;;  %v2249_v8 = vadd.f32 %v2122_v40, %v1990_v45  ;;  %v1993_v52 = vadd.f32 %v3328_v16, %v4465_v2  ;;  %v2385_v4 = vmul.f32 %v2250_v43, %v2250_v43  ;;  %v4781_v16 = vld [vmem:[#allocation24_spill] sm:$0xff] }
 0x18f   : > { %v1873_v0 = vpop.f32.mrf.mxu1  ;;  %v3384_v31 = vpop.f32.mrf.mxu0  ;;  %v2420_v24 = vadd.f32 %v2419_v57, %v2418_v19  ;;  %v2319_v38 = vadd.f32 %v2318_v61, %v2317_v60  ;;  %v1486_v3 = vadd.f32 %v4778_v11, %v4777_v22  ;;  %v2322_v47 = vsel %vm428_vm0, %v2250_v43, 0.0 }
 0x190   : > { %v1992_v28 = vadd.f32 %v1873_v0, %v4468_v14  ;;  %2281 = vst.msk [vmem:[%s4452_s25 + $0x40] sm:$0xff] %vm428_vm0, %v2249_v8  ;;  %v2320_v42 = vsel %vm428_vm0, %v2249_v8, 0.0  ;;  %v2384_v30 = vmul.f32 %v2249_v8, %v2249_v8  ;;  %v2252_v44 = vadd.f32 %v3378_v56, %v1993_v52  ;;  %v4779_v14 = vld [vmem:[#allocation6_spill] sm:$0xff] }
 0x191   : > { %v3331_v40 = vpop.f32.mrf.mxu1  ;;  %v2152_v20 = vpop.f32.mrf.mxu0  ;;  %v2321_v2 = vadd.f32 %v2320_v42, %v2319_v38  ;;  %v2422_v9 = vadd.f32 %v2421_v23, %v2420_v24  ;;  %v1489_v33 = vadd.f32 %v4780_v46, %v4779_v14  ;;  %v2425_v41 = vsel %vm428_vm0, %v2385_v4, 0.0  ;;  %v4782_v52 = vld [vmem:[#allocation26_spill] sm:$0xff]  ;;  %v4783_v38 = vld [vmem:[#allocation28_spill] sm:$0xff]  ;;  %v4784_v4 = vld [vmem:[#allocation7_spill] sm:$0xff] }
 0x192   : > { %v2251_v35 = vadd.f32 %v2132_v26, %v1992_v28  ;;  %v1995_v25 = vadd.f32 %v3331_v40, %v4471_v54  ;;  %v2423_v37 = vsel %vm428_vm0, %v2384_v30, 0.0  ;;  %2284 = vst.msk [vmem:[%s4452_s25 + $0x58] sm:$0xff] %vm428_vm0, %v2252_v44  ;;  %v2387_v15 = vmul.f32 %v2252_v44, %v2252_v44  ;;  %v4785_v42 = vld [vmem:[#allocation35_spill] sm:$0xff] }
 0x193   : > { %v1883_v56 = vpop.f32.mrf.mxu1  ;;  %v3387_v7 = vpop.f32.mrf.mxu0  ;;  %v2424_v49 = vadd.f32 %v2423_v37, %v2422_v9  ;;  %v2323_v26 = vadd.f32 %v2322_v47, %v2321_v2  ;;  %v4579_v5 = vadd.f32 %v4781_v16, %v1487_v27  ;;  %v2326_v51 = vsel %vm428_vm0, %v2252_v44, 0.0 }
 0x194   : > { %2283 = vst.msk [vmem:[%s4452_s25 + $0x50] sm:$0xff] %vm428_vm0, %v2251_v35  ;;  %v2324_v54 = vsel %vm428_vm0, %v2251_v35, 0.0  ;;  %v2386_v39 = vmul.f32 %v2251_v35, %v2251_v35  ;;  %v2254_v34 = vadd.f32 %v3381_v17, %v1995_v25  ;;  %v1994_v6 = vadd.f32 %v1883_v56, %v4498_v53 }
 0x195   : > { %v3334_v43 = vpop.f32.mrf.mxu1  ;;  %v2162_v45 = vpop.f32.mrf.mxu0  ;;  %v2325_v63 = vadd.f32 %v2324_v54, %v2323_v26  ;;  %v2426_v55 = vadd.f32 %v2425_v41, %v2424_v49  ;;  %v4586_v0 = vadd.f32 %v4782_v52, %v1486_v3  ;;  %v4593_v28 = vadd.f32 %v4783_v38, %v1489_v33  ;;  %v4787_v41 = vld [vmem:[#allocation37_spill] sm:$0xff] }
 0x196   : > { %v2427_v29 = vsel %vm428_vm0, %v2386_v39, 0.0  ;;  %v1997_v12 = vadd.f32 %v3334_v43, %v4501_v58  ;;  %2286 = vst.msk [vmem:[%s4452_s25 + $0x68] sm:$0xff] %vm428_vm0, %v2254_v34  ;;  %v2389_v36 = vmul.f32 %v2254_v34, %v2254_v34  ;;  %v2253_v17 = vadd.f32 %v2142_v59, %v1994_v6  ;;  %v4786_v39 = vld [vmem:[#allocation8_spill] sm:$0xff] }
 0x197   : > { %v1893_v60 = vpop.f32.mrf.mxu1  ;;  %v3390_v53 = vpop.f32.mrf.mxu0  ;;  %v2428_v19 = vadd.f32 %v2427_v29, %v2426_v55  ;;  %v2327_v61 = vadd.f32 %v2326_v51, %v2325_v63  ;;  %v2429_v58 = vsel %vm428_vm0, %v2387_v15, 0.0  ;;  %v2330_v44 = vsel %vm428_vm0, %v2254_v34, 0.0  ;;  %v4789_v34 = vld [vmem:[#allocation39_spill] sm:$0xff] }
 0x198   : > { %v2256_v57 = vadd.f32 %v3384_v31, %v1997_v12  ;;  %v1996_v8 = vadd.f32 %v1893_v60, %v4504_v48  ;;  %2285 = vst.msk [vmem:[%s4452_s25 + $0x60] sm:$0xff] %vm428_vm0, %v2253_v17  ;;  %v2328_v27 = vsel %vm428_vm0, %v2253_v17, 0.0  ;;  %v2388_v23 = vmul.f32 %v2253_v17, %v2253_v17 }
 0x199   : > { %v3337_v24 = vpop.f32.mrf.mxu1  ;;  %v2172_v59 = vpop.f32.mrf.mxu0  ;;  %v1488_v31 = vadd.f32 %v4785_v42, %v4784_v4  ;;  %v2329_v48 = vadd.f32 %v2328_v27, %v2327_v61  ;;  %v2430_v30 = vadd.f32 %v2429_v58, %v2428_v19  ;;  %v2433_v22 = vsel %vm428_vm0, %v2389_v36, 0.0  ;;  %v4790_v58 = vld [vmem:[#allocation30_spill] sm:$0xff] }
 0x19a   : > { %2288 = vst.msk [vmem:[%s4452_s25 + $0x78] sm:$0xff] %vm428_vm0, %v2256_v57  ;;  %v2431_v40 = vsel %vm428_vm0, %v2388_v23, 0.0  ;;  %v2255_v2 = vadd.f32 %v2152_v20, %v1996_v8  ;;  %v1999_v9 = vadd.f32 %v3337_v24, %v4507_v21  ;;  %v2391_v46 = vmul.f32 %v2256_v57, %v2256_v57 }
 0x19b   : > { %v1903_v35 = vpop.f32.mrf.mxu1  ;;  %v3393_v25 = vpop.f32.mrf.mxu0  ;;  %v2432_v11 = vadd.f32 %v2431_v40, %v2430_v30  ;;  %v2331_v3 = vadd.f32 %v2330_v44, %v2329_v48  ;;  %v1491_v15 = vadd.f32 %v4787_v41, %v4786_v39  ;;  %v2334_v43 = vsel %vm428_vm0, %v2256_v57, 0.0  ;;  %v4791_v44 = vld [vmem:[#allocation32_spill] sm:$0xff] }
 0x19c   : > { %v1998_v14 = vadd.f32 %v1903_v35, %v4510_v50  ;;  %2287 = vst.msk [vmem:[%s4452_s25 + $0x70] sm:$0xff] %vm428_vm0, %v2255_v2  ;;  %v2332_v33 = vsel %vm428_vm0, %v2255_v2, 0.0  ;;  %v2390_v47 = vmul.f32 %v2255_v2, %v2255_v2  ;;  %v2258_v37 = vadd.f32 %v3387_v7, %v1999_v9  ;;  %v4788_v50 = vld [vmem:[#allocation9_spill] sm:$0xff] }
 0x19d   : > { %v3340_v20 = vpop.f32.mrf.mxu1  ;;  %v2182_v56 = vpop.f32.mrf.mxu0  ;;  %v2333_v21 = vadd.f32 %v2332_v33, %v2331_v3  ;;  %v2434_v49 = vadd.f32 %v2433_v22, %v2432_v11  ;;  %v1490_v6 = vadd.f32 %v4789_v34, %v4788_v50  ;;  %v2437_v16 = vsel %vm428_vm0, %v2391_v46, 0.0  ;;  %v4793_v11 = vld [vmem:[#allocation10_spill] sm:$0xff]  ;;  %v4794_v3 = vld [vmem:[#allocation41_spill] sm:$0xff] }
 0x19e   : > { %v2257_v26 = vadd.f32 %v2162_v45, %v1998_v14  ;;  %v2001_v54 = vadd.f32 %v3340_v20, %v4516_v32  ;;  %v2435_v63 = vsel %vm428_vm0, %v2390_v47, 0.0  ;;  %2290 = vst.msk [vmem:[%s4452_s25 + $0x88] sm:$0xff] %vm428_vm0, %v2258_v37  ;;  %v2393_v51 = vmul.f32 %v2258_v37, %v2258_v37 }
 0x19f   : > { %v1913_v7 = vpop.f32.mrf.mxu1  ;;  %v3396_v55 = vpop.f32.mrf.mxu0  ;;  %v2436_v29 = vadd.f32 %v2435_v63, %v2434_v49  ;;  %v2335_v45 = vadd.f32 %v2334_v43, %v2333_v21  ;;  %v1747_v27 = vadd.f32 %v4790_v58, %v1488_v31  ;;  %v2338_v23 = vsel %vm428_vm0, %v2258_v37, 0.0 }
 0x1a0   : > { %2289 = vst.msk [vmem:[%s4452_s25 + $0x80] sm:$0xff] %vm428_vm0, %v2257_v26  ;;  %v2336_v32 = vsel %vm428_vm0, %v2257_v26, 0.0  ;;  %v2392_v12 = vmul.f32 %v2257_v26, %v2257_v26  ;;  %v2260_v36 = vadd.f32 %v3390_v53, %v2001_v54  ;;  %v2000_v17 = vadd.f32 %v1913_v7, %v4519_v62 }
 0x1a1   : > { %v3343_v60 = vpop.f32.mrf.mxu1  ;;  %v2192_v19 = vpop.f32.mrf.mxu0  ;;  %v2337_v61 = vadd.f32 %v2336_v32, %v2335_v45  ;;  %v2438_v57 = vadd.f32 %v2437_v16, %v2436_v29  ;;  %v1750_v40 = vadd.f32 %v4791_v44, %v1491_v15  ;;  %v1493_v14 = vadd.f32 %v4794_v3, %v4793_v11  ;;  %v4795_v29 = vld [vmem:[#allocation11_spill] sm:$0xff] }
 0x1a2   : > { %v2439_v8 = vsel %vm428_vm0, %v2392_v12, 0.0  ;;  %v2003_v52 = vadd.f32 %v3343_v60, %v4541_v1  ;;  %2292 = vst.msk [vmem:[%s4452_s25 + $0x98] sm:$0xff] %vm428_vm0, %v2260_v36  ;;  %v2395_v24 = vmul.f32 %v2260_v36, %v2260_v36  ;;  %v2259_v38 = vadd.f32 %v2172_v59, %v2000_v17  ;;  %v4792_v59 = vld [vmem:[#allocation34_spill] sm:$0xff]  ;;  %v4796_v45 = vld [vmem:[#allocation43_spill] sm:$0xff] }
 0x1a3   : > { %v1923_v53 = vpop.f32.mrf.mxu1  ;;  %v3399_v4 = vpop.f32.mrf.mxu0  ;;  %v2440_v62 = vadd.f32 %v2439_v8, %v2438_v57  ;;  %v2339_v42 = vadd.f32 %v2338_v23, %v2337_v61  ;;  %v2441_v1 = vsel %vm428_vm0, %v2393_v51, 0.0  ;;  %v1749_v22 = vadd.f32 %v4792_v59, %v1490_v6 }
 0x1a4   : > { %v2262_v48 = vadd.f32 %v3393_v25, %v2003_v52  ;;  %v2002_v30 = vadd.f32 %v1923_v53, %v4548_v10  ;;  %2291 = vst.msk [vmem:[%s4452_s25 + $0x90] sm:$0xff] %vm428_vm0, %v2259_v38  ;;  %v2340_v31 = vsel %vm428_vm0, %v2259_v38, 0.0  ;;  %v2394_v2 = vmul.f32 %v2259_v38, %v2259_v38  ;;  %v4798_v53 = vld [vmem:[#allocation36_spill] sm:$0xff] }
 0x1a5   : > { %v3346_v9 = vpop.f32.mrf.mxu1  ;;  %v2202_v35 = vpop.f32.mrf.mxu0  ;;  %v2341_v25 = vadd.f32 %v2340_v31, %v2339_v42  ;;  %v2442_v46 = vadd.f32 %v2441_v1, %v2440_v62  ;;  %v2342_v10 = vsel %vm428_vm0, %v2260_v36, 0.0  ;;  %v2445_v49 = vsel %vm428_vm0, %v2395_v24, 0.0 }
 0x1a6   : > { %2294 = vst.msk [vmem:[%s4452_s25 + $0xa8] sm:$0xff] %vm428_vm0, %v2262_v48  ;;  %v2443_v33 = vsel %vm428_vm0, %v2394_v2, 0.0  ;;  %v2261_v47 = vadd.f32 %v2182_v56, %v2002_v30  ;;  %v2005_v37 = vadd.f32 %v3346_v9, %v4579_v5  ;;  %v2397_v41 = vmul.f32 %v2262_v48, %v2262_v48  ;;  %v4799_v2 = vld [vmem:[#allocation38_spill] sm:$0xff] }
 0x1a7   : > { %v1933_v20 = vpop.f32.mrf.mxu1  ;;  %v3402_v21 = vpop.f32.mrf.mxu0  ;;  %v2444_v26 = vadd.f32 %v2443_v33, %v2442_v46  ;;  %v2343_v54 = vadd.f32 %v2342_v10, %v2341_v25  ;;  %v1492_v32 = vadd.f32 %v4796_v45, %v4795_v29  ;;  %v2346_v16 = vsel %vm428_vm0, %v2262_v48, 0.0  ;;  %v4801_v46 = vld [vmem:[#allocation13_spill] sm:$0xff]  ;;  %v4802_v29 = vld [vmem:[#allocation42_spill] sm:$0xff] }
 0x1a8   : > { %v2004_v39 = vadd.f32 %v1933_v20, %v4586_v0  ;;  %2293 = vst.msk [vmem:[%s4452_s25 + $0xa0] sm:$0xff] %vm428_vm0, %v2261_v47  ;;  %v2344_v15 = vsel %vm428_vm0, %v2261_v47, 0.0  ;;  %v2396_v50 = vmul.f32 %v2261_v47, %v2261_v47  ;;  %v2264_v34 = vadd.f32 %v3396_v55, %v2005_v37  ;;  %v4797_v0 = vld [vmem:[#allocation12_spill] sm:$0xff] }
 0x1a9   : > { %v3349_v56 = vpop.f32.mrf.mxu1  ;;  %v2345_v6 = vadd.f32 %v2344_v15, %v2343_v54  ;;  %v2446_v5 = vadd.f32 %v2445_v49, %v2444_v26  ;;  %v2212_v7 = vpop.f32.mrf.mxu0  ;;  %v1495_v12 = vadd.f32 %v4425_v13, %v4797_v0  ;;  %v1752_v62 = vadd.f32 %v4798_v53, %v1493_v14  ;;  %v4800_v14 = vld [vmem:[#allocation40_spill] sm:$0xff] }
 0x1aa   : > { %v2263_v43 = vadd.f32 %v2192_v19, %v2004_v39  ;;  %v2007_v63 = vadd.f32 %v3349_v56, %v4593_v28  ;;  %v2447_v51 = vsel %vm428_vm0, %v2396_v50, 0.0  ;;  %2296 = vst.msk [vmem:[%s4452_s25 + $0xb8] sm:$0xff] %vm428_vm0, %v2264_v34  ;;  %v2449_v19 = vsel %vm428_vm0, %v2397_v41, 0.0 }
 0x1ab   : > { %v1943_v55 = vpop.f32.mrf.mxu1  ;;  %v2448_v36 = vadd.f32 %v2447_v51, %v2446_v5  ;;  %v2347_v17 = vadd.f32 %v2346_v16, %v2345_v6  ;;  %v2399_v61 = vmul.f32 %v2264_v34, %v2264_v34  ;;  %v3405_v38 = vpop.f32.mrf.mxu0  ;;  %v2350_v42 = vsel %vm428_vm0, %v2264_v34, 0.0 }
 0x1ac   : > { %2295 = vst.msk [vmem:[%s4452_s25 + $0xb0] sm:$0xff] %vm428_vm0, %v2263_v43  ;;  %v2348_v28 = vsel %vm428_vm0, %v2263_v43, 0.0  ;;  %v2398_v60 = vmul.f32 %v2263_v43, %v2263_v43  ;;  %v2266_v57 = vadd.f32 %v3399_v4, %v2007_v63  ;;  %v2006_v13 = vadd.f32 %v1943_v55, %v1747_v27 }
 0x1ad   : > { %v3352_v8 = vpop.f32.mrf.mxu1  ;;  %v2349_v52 = vadd.f32 %v2348_v28, %v2347_v17  ;;  %v2450_v58 = vadd.f32 %v2449_v19, %v2448_v36  ;;  %v1751_v9 = vadd.f32 %v4799_v2, %v1492_v32  ;;  %v2453_v59 = vsel %vm428_vm0, %v2399_v61, 0.0 }
 0x1ae   : > { %v2451_v23 = vsel %vm428_vm0, %v2398_v60, 0.0  ;;  %v2009_v24 = vadd.f32 %v3352_v8, %v1750_v40  ;;  %2298 = vst.msk [vmem:[%s4452_s25 + $0xc8] sm:$0xff] %vm428_vm0, %v2266_v57  ;;  %v2401_v48 = vmul.f32 %v2266_v57, %v2266_v57  ;;  %v2265_v30 = vadd.f32 %v2202_v35, %v2006_v13 }
 0x1af   : > { %v1953_v44 = vpop.f32.mrf.mxu1  ;;  %v2452_v4 = vadd.f32 %v2451_v23, %v2450_v58  ;;  %v2351_v27 = vadd.f32 %v2350_v42, %v2349_v52  ;;  %v1754_v25 = vadd.f32 %v4800_v14, %v1495_v12  ;;  %v1494_v35 = vadd.f32 %v4432_v18, %v4801_v46 }
 0x1b0   : > { %v2268_v1 = vadd.f32 %v3402_v21, %v2009_v24  ;;  %v2008_v31 = vadd.f32 %v1953_v44, %v1749_v22  ;;  %2297 = vst.msk [vmem:[%s4452_s25 + $0xc0] sm:$0xff] %vm428_vm0, %v2265_v30  ;;  %v2352_v40 = vsel %vm428_vm0, %v2265_v30, 0.0  ;;  %v2400_v11 = vmul.f32 %v2265_v30, %v2265_v30  ;;  %v2222_v22 = vpop.f32.mrf.mxu0 }
 0x1b1   : > { %v3355_v3 = vpop.f32.mrf.mxu1  ;;  %v2353_v10 = vadd.f32 %v2352_v40, %v2351_v27  ;;  %v2454_v33 = vadd.f32 %v2453_v59, %v2452_v4  ;;  %v2354_v47 = vsel %vm428_vm0, %v2266_v57, 0.0  ;;  %v2457_v26 = vsel %vm428_vm0, %v2401_v48, 0.0 }
 0x1b2   : > { %2300 = vst.msk [vmem:[%s4452_s25 + $0xd8] sm:$0xff] %vm428_vm0, %v2268_v1  ;;  %v2455_v37 = vsel %vm428_vm0, %v2400_v11, 0.0  ;;  %v2267_v20 = vadd.f32 %v2212_v7, %v2008_v31  ;;  %v2011_v21 = vadd.f32 %v3355_v3, %v1752_v62  ;;  %v2403_v15 = vmul.f32 %v2268_v1, %v2268_v1  ;;  %v3408_v7 = vpop.f32.mrf.mxu0 }
 0x1b3   : > { %v1963_v49 = vpop.f32.mrf.mxu1  ;;  %v2456_v54 = vadd.f32 %v2455_v37, %v2454_v33  ;;  %v2355_v39 = vadd.f32 %v2354_v47, %v2353_v10  ;;  %v1753_v45 = vadd.f32 %v4802_v29, %v1494_v35  ;;  %v2358_v32 = vsel %vm428_vm0, %v2268_v1, 0.0 }
 0x1b4   : > { %v2010_v41 = vadd.f32 %v1963_v49, %v1751_v9  ;;  %2299 = vst.msk [vmem:[%s4452_s25 + $0xd0] sm:$0xff] %vm428_vm0, %v2267_v20  ;;  %v2356_v18 = vsel %vm428_vm0, %v2267_v20, 0.0  ;;  %v2402_v50 = vmul.f32 %v2267_v20, %v2267_v20  ;;  %v2270_v34 = vadd.f32 %v3405_v38, %v2011_v21  ;;  %v2232_v8 = vpop.f32.mrf.mxu0 }
 0x1b5   : > { %v3358_v56 = vpop.f32.mrf.mxu1  ;;  %v2357_v6 = vadd.f32 %v2356_v18, %v2355_v39  ;;  %v2458_v5 = vadd.f32 %v2457_v26, %v2456_v54  ;;  %v2461_v17 = vsel %vm428_vm0, %v2403_v15, 0.0 }
 0x1b6   : > { %v2269_v43 = vadd.f32 %v2222_v22, %v2010_v41  ;;  %v2013_v63 = vadd.f32 %v3358_v56, %v1754_v25  ;;  %v2459_v0 = vsel %vm428_vm0, %v2402_v50, 0.0  ;;  %2302 = vst.msk [vmem:[%s4452_s25 + $0xe8] sm:$0xff] %vm428_vm0, %v2270_v34  ;;  %v2405_v28 = vmul.f32 %v2270_v34, %v2270_v34 }
 0x1b7   : > { %v1973_v12 = vpop.f32.mrf.mxu1  ;;  %v2460_v16 = vadd.f32 %v2459_v0, %v2458_v5  ;;  %v2359_v51 = vadd.f32 %v2358_v32, %v2357_v6  ;;  %v2362_v52 = vsel %vm428_vm0, %v2270_v34, 0.0 }
 0x1b8   : > { %2301 = vst.msk [vmem:[%s4452_s25 + $0xe0] sm:$0xff] %vm428_vm0, %v2269_v43  ;;  %v2360_v55 = vsel %vm428_vm0, %v2269_v43, 0.0  ;;  %v2404_v36 = vmul.f32 %v2269_v43, %v2269_v43  ;;  %v2272_v60 = vadd.f32 %v3408_v7, %v2013_v63  ;;  %v2012_v19 = vadd.f32 %v1973_v12, %v1753_v45 }
 0x1b9   : > { %v2361_v61 = vadd.f32 %v2360_v55, %v2359_v51  ;;  %v2462_v57 = vadd.f32 %v2461_v17, %v2460_v16  ;;  %v2465_v38 = vsel %vm428_vm0, %v2405_v28, 0.0 }
 0x1ba   : > { %v2463_v13 = vsel %vm428_vm0, %v2404_v36, 0.0  ;;  %2304 = vst.msk [vmem:[%s4452_s25 + $0xf8] sm:$0xff] %vm428_vm0, %v2272_v60  ;;  %v2271_v58 = vadd.f32 %v2232_v8, %v2012_v19  ;;  %v2407_v53 = vmul.f32 %v2272_v60, %v2272_v60  ;;  %v2366_v44 = vsel %vm428_vm0, %v2272_v60, 0.0 }
 0x1bb   : > { %v2464_v23 = vadd.f32 %v2463_v13, %v2462_v57  ;;  %v2363_v24 = vadd.f32 %v2362_v52, %v2361_v61 }
 0x1bc   : > { %2303 = vst.msk [vmem:[%s4452_s25 + $0xf0] sm:$0xff] %vm428_vm0, %v2271_v58  ;;  %v2364_v62 = vsel %vm428_vm0, %v2271_v58, 0.0  ;;  %v2406_v42 = vmul.f32 %v2271_v58, %v2271_v58  ;;  %v2469_v31 = vsel %vm428_vm0, %v2407_v53, 0.0 }
 0x1bd   : > { %v2365_v48 = vadd.f32 %v2364_v62, %v2363_v24  ;;  %v2466_v30 = vadd.f32 %v2465_v38, %v2464_v23 }
 0x1be   : > { %v2467_v4 = vsel %vm428_vm0, %v2406_v42, 0.0 }
 0x1bf   : > { %v2367_v27 = vadd.f32 %v2366_v44, %v2365_v48  ;;  %v2468_v1 = vadd.f32 %v2467_v4, %v2466_v30 }
 0x1c1   : > { %v2368_v2 = vrot.slane %v2367_v27, 4  ;;  %v2470_v9 = vadd.f32 %v2469_v31, %v2468_v1 }
 0x1c3   : > { %v2369_v59 = vadd.f32 %v2368_v2, %v2367_v27  ;;  %v2471_v40 = vrot.slane %v2470_v9, 4 }
 0x1c5   : > { %v2370_v11 = vrot.slane %v2369_v59, 2  ;;  %v2472_v3 = vadd.f32 %v2471_v40, %v2470_v9 }
 0x1c7   : > { %v2371_v14 = vadd.f32 %v2370_v11, %v2369_v59  ;;  %v2473_v25 = vrot.slane %v2472_v3, 2 }
 0x1c9   : > { %v2372_v46 = vrot.slane %v2371_v14, 1  ;;  %v2474_v35 = vadd.f32 %v2473_v25, %v2472_v3 }
 0x1cb   : > { %v2373_v10 = vadd.f32 %v2372_v46, %v2371_v14  ;;  %v2475_v33 = vrot.slane %v2474_v35, 1 }
 0x1cd   : > { %2375 = vst.msk [vmem:[%s282_s29] sm:$0x1] %vm2374_vm1, %v2373_v10  ;;  %v2476_v22 = vadd.f32 %v2475_v33, %v2474_v35 }
 0x1cf   : > { %2477 = vst.msk [vmem:[%s282_s29 + $0x1] sm:$0x1] %vm2374_vm1, %v2476_v22 }
 0x1d0 PF: > { %s16_s20 = sadd.s32 1, %s3458_s20   ;;  %s4803_s18 = smov %s3454_s19 }
 0x1d1   : > { %p13_p5 = scmp.ge.s32.totalorder %s16_s20, 4   ;;  %s4804_s19 = smov %s4806_s21 }
 0x1d3   :  { %15 = sbr.rel (!%p13_p5) target bundleno = 2 (0x2), region = 84 }

// kernel: conv1771_forward.2
= control target key start
LH: loop header
LB: loop body
LE: loop exit
PB: predicated region body
PF: predicated region fallthrough
CT: control target
= control target key end

     0   :  { %vm534_vm0 = vcmask 1043456   ;;  %vm273_vm1 = vcmask 1041408   ;;  %v10253_v2 = vmov 0.0   ;;  %vm405_vm2 = vcmask 31744   ;;  %s10249_s1 = inlined_call_operand.vmem [shape: f32[7,4,8], index: 1, kind: input, shape index: {}]   ;;  %s10250_s0 = inlined_call_operand.vmem [shape: f32[32,16,4], index: 0, kind: input, shape index: {}]   ;;  %s10251_s2 = inlined_call_operand.vmem [shape: f32[32,16,8], index: 2, kind: output, shape index: {0}]   ;;  %s10252_s3 = inlined_call_operand.vmem [shape: f32[1,2,8], index: 3, kind: output, shape index: {1}]  }
   0x1   :  { %v5275_v0 = vld [vmem:[%s10249_s1 + $0x4] sm:$0xf]  ;;  %v7020_v3 = vrot.slane %v10253_v2, 6  ;;  %v272_v7 = vld [vmem:[%s10249_s1] sm:$0xf]  ;;  %v7037_v8 = vld [vmem:[%s10250_s0 + $0x8] sm:$0xff] }
   0x2   :  { %v7017_v1 = vld [vmem:[%s10250_s0] sm:$0xff]  ;;  %6877 = vmatprep.subr.msk.mxu1 %vm534_vm0, %v5275_v0  ;;  %6191 = vmatprep.subr.msk.mxu0 %vm534_vm0, %v5275_v0  ;;  %v46_v9 = vld [vmem:[%s10250_s0 + $0x108] sm:$0xff]  ;;  %v277_v10 = vrot.slane %v7037_v8, 6  ;;  %v7051_v13 = vld [vmem:[%s10250_s0 + $0x10] sm:$0xff]  ;;  %vm142_vm3 = vcmask 1042432   ;;  %vm1439_vm4 = vcmask 1040384  }
   0x3   :  { %v7025_v4 = vld [vmem:[%s10250_s0 + $0x100] sm:$0xff]  ;;  %v275_v5 = vrot.slane %v7017_v1, 6  ;;  %6878 = vmatpush3.msk.msra.mxu1 %vm534_vm0, %v5275_v0  ;;  %6192 = vmatpush3.msk.msra.mxu0 %vm534_vm0, %v5275_v0  ;;  %v341_v11 = vrot.slane %v46_v9, 6  ;;  %v5406_v12 = vld [vmem:[%s10249_s1 + $0x8] sm:$0xf]  ;;  %v7056_v14 = vld [vmem:[%s10250_s0 + $0x110] sm:$0xff] }
   0x4   :  { %v339_v6 = vrot.slane %v7025_v4, 6  ;;  %6289 = vmatprep.subr.msk.mxu1 %vm534_vm0, %v272_v7  ;;  %6387 = vmatprep.subr.msk.mxu0 %vm534_vm0, %v5406_v12  ;;  %v279_v17 = vrot.slane %v7051_v13, 6  ;;  %v343_v18 = vrot.slane %v7056_v14, 6  ;;  %v7069_v19 = vld [vmem:[%s10250_s0 + $0x18] sm:$0xff]  ;;  %v7077_v21 = vld [vmem:[%s10250_s0 + $0x20] sm:$0xff]  ;;  %v7092_v27 = vld [vmem:[%s10250_s0 + $0x28] sm:$0xff] }
   0x5   :  { %v276_v15 = vsel %vm273_vm1, %v7020_v3, %v275_v5  ;;  %v48_v20 = vld [vmem:[%s10250_s0 + $0x118] sm:$0xff]  ;;  %v278_v22 = vsel %vm273_vm1, %v275_v5, %v277_v10  ;;  %v281_v24 = vrot.slane %v7069_v19, 6  ;;  %v7087_v26 = vld [vmem:[%s10250_s0 + $0x120] sm:$0xff]  ;;  %v50_v28 = vld [vmem:[%s10250_s0 + $0x128] sm:$0xff]  ;;  %v283_v31 = vrot.slane %v7077_v21, 6 }
   0x6   :  { %v340_v16 = vsel %vm273_vm1, %v7020_v3, %v339_v6  ;;  %6193 = vmatprep.mubr.msk.f32.mxu0 %vm405_vm2, %v276_v15  ;;  %v342_v23 = vsel %vm273_vm1, %v339_v6, %v341_v11  ;;  %v345_v25 = vrot.slane %v48_v20, 6  ;;  %v280_v29 = vsel %vm273_vm1, %v7020_v3, %v279_v17  ;;  %v7108_v33 = vld [vmem:[%s10250_s0 + $0x30] sm:$0xff]  ;;  %v7131_v43 = vld [vmem:[%s10250_s0 + $0x38] sm:$0xff]  ;;  %v7141_v45 = vld [vmem:[%s10250_s0 + $0x40] sm:$0xff] }
   0x7   :  { %6241 = vmatprep.mubr.msk.f32.mxu1 %vm405_vm2, %v340_v16  ;;  %6194 = vmatmul.mubr.msk.f32.vlgmr.msra.gmra.mxu0 %vm405_vm2, %v278_v22  ;;  %v344_v30 = vsel %vm273_vm1, %v7020_v3, %v343_v18  ;;  %v347_v32 = vrot.slane %v7087_v26, 6  ;;  %v7113_v34 = vld [vmem:[%s10250_s0 + $0x130] sm:$0xff]  ;;  %v282_v35 = vsel %vm273_vm1, %v279_v17, %v281_v24  ;;  %v285_v37 = vrot.slane %v7092_v27, 6  ;;  %v7136_v44 = vld [vmem:[%s10250_s0 + $0x138] sm:$0xff]  ;;  %v7146_v46 = vld [vmem:[%s10250_s0 + $0x140] sm:$0xff] }
   0x8   :  { %6242 = vmatmul.mubr.msk.f32.vlgmr.msra.gmra.mxu1 %vm405_vm2, %v342_v23  ;;  %6388 = vmatpush3.msk.msra.mxu0 %vm534_vm0, %v5406_v12  ;;  %v346_v36 = vsel %vm273_vm1, %v343_v18, %v345_v25  ;;  %v349_v38 = vrot.slane %v50_v28, 6  ;;  %v284_v39 = vsel %vm273_vm1, %v7020_v3, %v283_v31  ;;  %v287_v41 = vrot.slane %v7108_v33, 6  ;;  %10349 = vst [vmem:[#allocation2_spill] sm:$0xff] %v7136_v44  ;;  %v7165_v55 = vld [vmem:[%s10250_s0 + $0x48] sm:$0xff]  ;;  %v7175_v57 = vld [vmem:[%s10250_s0 + $0x50] sm:$0xff]  ;;  %v7204_v9 = vld [vmem:[%s10250_s0 + $0x158] sm:$0xff] }
   0x9   :  { %6290 = vmatpush3.msk.msra.mxu1 %vm534_vm0, %v272_v7  ;;  %6196 = vmatprep.mubr.msk.f32.mxu0 %vm405_vm2, %v280_v29  ;;  %v348_v40 = vsel %vm273_vm1, %v7020_v3, %v347_v32  ;;  %v351_v42 = vrot.slane %v7113_v34, 6  ;;  %v286_v47 = vsel %vm273_vm1, %v283_v31, %v285_v37  ;;  %v289_v49 = vrot.slane %v7131_v43, 6  ;;  %v7170_v56 = vld [vmem:[%s10250_s0 + $0x148] sm:$0xff]  ;;  %v7180_v58 = vld [vmem:[%s10250_s0 + $0x150] sm:$0xff]  ;;  %v7199_v7 = vld [vmem:[%s10250_s0 + $0x58] sm:$0xff]  ;;  %10352 = vst [vmem:[#allocation5_spill] sm:$0xff] %v7204_v9 }
   0xa   :  { %6244 = vmatprep.mubr.msk.f32.mxu1 %vm405_vm2, %v344_v30  ;;  %v350_v48 = vsel %vm273_vm1, %v347_v32, %v349_v38  ;;  %v353_v50 = vrot.slane %v7136_v44, 6  ;;  %v288_v51 = vsel %vm273_vm1, %v7020_v3, %v287_v41  ;;  %v291_v53 = vrot.slane %v7141_v45, 6  ;;  %10350 = vst [vmem:[#allocation3_spill] sm:$0xff] %v7170_v56  ;;  %10351 = vst [vmem:[#allocation4_spill] sm:$0xff] %v7180_v58  ;;  %v7209_v10 = vld [vmem:[%s10250_s0 + $0x60] sm:$0xff]  ;;  %v7233_v24 = vld [vmem:[%s10250_s0 + $0x68] sm:$0xff] }
   0xb   :  { %6197 = vmatmul.mubr.msk.f32.gmra.mxu0 %vm405_vm2, %v282_v35  ;;  %v352_v52 = vsel %vm273_vm1, %v7020_v3, %v351_v42  ;;  %v355_v54 = vrot.slane %v7146_v46, 6  ;;  %v290_v59 = vsel %vm273_vm1, %v287_v41, %v289_v49  ;;  %v293_v61 = vrot.slane %v7165_v55, 6  ;;  %v7214_v11 = vld [vmem:[%s10250_s0 + $0x160] sm:$0xff]  ;;  %v7238_v25 = vld [vmem:[%s10250_s0 + $0x168] sm:$0xff]  ;;  %v7243_v28 = vld [vmem:[%s10250_s0 + $0x70] sm:$0xff] }
   0xc   :  { %6245 = vmatmul.mubr.msk.f32.gmra.mxu1 %vm405_vm2, %v346_v36  ;;  %6199 = vmatprep.mubr.msk.f32.mxu0 %vm405_vm2, %v284_v39  ;;  %v354_v60 = vsel %vm273_vm1, %v351_v42, %v353_v50  ;;  %v357_v62 = vrot.slane %v7170_v56, 6  ;;  %v292_v63 = vsel %vm273_vm1, %v7020_v3, %v291_v53  ;;  %v295_v5 = vrot.slane %v7175_v57, 6  ;;  %10353 = vst [vmem:[#allocation6_spill] sm:$0xff] %v7214_v11  ;;  %v7248_v29 = vld [vmem:[%s10250_s0 + $0x170] sm:$0xff]  ;;  %v7261_v36 = vld [vmem:[%s10249_s1 + $0xc] sm:$0xf] }
   0xd   :  { %6247 = vmatprep.mubr.msk.f32.mxu1 %vm405_vm2, %v348_v40  ;;  %v356_v0 = vsel %vm273_vm1, %v7020_v3, %v355_v54  ;;  %v359_v6 = vrot.slane %v7180_v58, 6  ;;  %v294_v12 = vsel %vm273_vm1, %v291_v53, %v293_v61  ;;  %v297_v16 = vrot.slane %v7199_v7, 6  ;;  %10354 = vst [vmem:[#allocation7_spill] sm:$0xff] %v7238_v25  ;;  %v7272_v41 = vld [vmem:[%s10250_s0 + $0x78] sm:$0xff]  ;;  %6485 = vmatprep.subr.msk.mxu1 %vm534_vm0, %v7261_v36  ;;  %v7294_v49 = vld [vmem:[%s10250_s0 + $0x180] sm:$0xff]  ;;  %v7513_v56 = vld [vmem:[%s10250_s0 + $0xe8] sm:$0xff] }
   0xe   :  { %v358_v15 = vsel %vm273_vm1, %v355_v54, %v357_v62  ;;  %v361_v17 = vrot.slane %v7204_v9, 6  ;;  %v296_v18 = vsel %vm273_vm1, %v7020_v3, %v295_v5  ;;  %v299_v22 = vrot.slane %v7209_v10, 6  ;;  %v7277_v42 = vld [vmem:[%s10250_s0 + $0x178] sm:$0xff]  ;;  %v7315_v62 = vld [vmem:[%s10250_s0 + $0x88] sm:$0xff] }
   0xf   :  { %6200 = vmatmul.mubr.msk.f32.gmra.mxu0 %vm405_vm2, %v286_v47  ;;  %v360_v20 = vsel %vm273_vm1, %v7020_v3, %v359_v6  ;;  %v363_v23 = vrot.slane %v7214_v11, 6  ;;  %v298_v30 = vsel %vm273_vm1, %v295_v5, %v297_v16  ;;  %v301_v32 = vrot.slane %v7233_v24, 6  ;;  %10355 = vst [vmem:[#allocation8_spill] sm:$0xff] %v7277_v42  ;;  %v7284_v47 = vld [vmem:[%s10249_s1 + $0x10] sm:$0xf] }
  0x10   :  { %6248 = vmatmul.mubr.msk.f32.gmra.mxu1 %vm405_vm2, %v350_v48  ;;  %6202 = vmatprep.mubr.msk.f32.mxu0 %vm405_vm2, %v288_v51  ;;  %v362_v31 = vsel %vm273_vm1, %v359_v6, %v361_v17  ;;  %v365_v35 = vrot.slane %v7238_v25, 6  ;;  %v300_v37 = vsel %vm273_vm1, %v7020_v3, %v299_v22  ;;  %v303_v39 = vrot.slane %v7243_v28, 6  ;;  %v7289_v48 = vld [vmem:[%s10250_s0 + $0x80] sm:$0xff]  ;;  %v7330_v5 = vld [vmem:[%s10250_s0 + $0x190] sm:$0xff] }
  0x11   :  { %6250 = vmatprep.mubr.msk.f32.mxu1 %vm405_vm2, %v352_v52  ;;  %v364_v38 = vsel %vm273_vm1, %v7020_v3, %v363_v23  ;;  %v367_v40 = vrot.slane %v7248_v29, 6  ;;  %6583 = vmatprep.subr.msk.mxu0 %vm534_vm0, %v7284_v47  ;;  %v302_v50 = vsel %vm273_vm1, %v299_v22, %v301_v32  ;;  %v305_v52 = vrot.slane %v7272_v41, 6  ;;  %10357 = vst [vmem:[#allocation10_spill] sm:$0xff] %v7330_v5  ;;  %v7364_v32 = vld [vmem:[%s10250_s0 + $0x1a0] sm:$0xff] }
  0x12   :  { %v366_v51 = vsel %vm273_vm1, %v363_v23, %v365_v35  ;;  %v369_v53 = vrot.slane %v7277_v42, 6  ;;  %v304_v54 = vsel %vm273_vm1, %v7020_v3, %v303_v39  ;;  %v371_v61 = vrot.slane %v7294_v49, 6  ;;  %v7349_v23 = vld [vmem:[%s10250_s0 + $0x98] sm:$0xff]  ;;  %10359 = vst [vmem:[#allocation12_spill] sm:$0xff] %v7364_v32 }
  0x13   :  { %6203 = vmatmul.mubr.msk.f32.gmra.mxu0 %vm405_vm2, %v290_v59  ;;  %v368_v59 = vsel %vm273_vm1, %v7020_v3, %v367_v40  ;;  %v306_v6 = vsel %vm273_vm1, %v303_v39, %v305_v52  ;;  %v375_v22 = vrot.slane %v7330_v5, 6  ;;  %v379_v52 = vrot.slane %v7364_v32, 6 }
  0x14   :  { %6251 = vmatmul.mubr.msk.f32.gmra.mxu1 %vm405_vm2, %v354_v60  ;;  %6205 = vmatprep.mubr.msk.f32.mxu0 %vm405_vm2, %v292_v63  ;;  %v307_v60 = vrot.slane %v7289_v48, 6  ;;  %v7320_v63 = vld [vmem:[%s10250_s0 + $0x188] sm:$0xff]  ;;  %vm2733_vm5 = vcmask 1046528   ;;  %vm3445_vm6 = vcmask 1045504   ;;  %vm4157_vm7 = vcmask 1044480  }
  0x15   :  { %6253 = vmatprep.mubr.msk.f32.mxu1 %vm405_vm2, %v356_v0  ;;  %10356 = vst [vmem:[#allocation9_spill] sm:$0xff] %v7320_v63  ;;  %v7325_v0 = vld [vmem:[%s10250_s0 + $0x90] sm:$0xff]  ;;  %v373_v16 = vrot.slane %v7320_v63, 6  ;;  %vm4869_vm8 = vcmask 64512   ;;  %vm5067_vm9 = vcmask 57344  }
  0x16   :  { %v308_v17 = vsel %vm273_vm1, %v7020_v3, %v307_v60 }
  0x17   :  { %6206 = vmatmul.mubr.msk.f32.gmra.mxu0 %vm405_vm2, %v294_v12  ;;  %v370_v12 = vsel %vm273_vm1, %v367_v40, %v369_v53  ;;  %v7383_v53 = vld [vmem:[%s10250_s0 + $0xa8] sm:$0xff] }
  0x18   :  { %6254 = vmatmul.mubr.msk.f32.gmra.mxu1 %vm405_vm2, %v358_v15  ;;  %6208 = vmatprep.mubr.msk.f32.mxu0 %vm405_vm2, %v296_v18  ;;  %v309_v15 = vrot.slane %v7315_v62, 6  ;;  %v372_v18 = vsel %vm273_vm1, %v7020_v3, %v371_v61 }
  0x19   :  { %6256 = vmatprep.mubr.msk.f32.mxu1 %vm405_vm2, %v360_v20  ;;  %v311_v20 = vrot.slane %v7325_v0, 6 }
  0x1a   :  { %v310_v35 = vsel %vm273_vm1, %v307_v60, %v309_v15  ;;  %v7398_v60 = vld [vmem:[%s10250_s0 + $0x1b0] sm:$0xff] }
  0x1b   :  { %6209 = vmatmul.mubr.msk.f32.gmra.mxu0 %vm405_vm2, %v298_v30  ;;  %v7354_v30 = vld [vmem:[%s10250_s0 + $0x198] sm:$0xff]  ;;  %v312_v40 = vsel %vm273_vm1, %v7020_v3, %v311_v20 }
  0x1c   :  { %6257 = vmatmul.mubr.msk.f32.gmra.mxu1 %vm405_vm2, %v362_v31  ;;  %6211 = vmatprep.mubr.msk.f32.mxu0 %vm405_vm2, %v300_v37  ;;  %10358 = vst [vmem:[#allocation11_spill] sm:$0xff] %v7354_v30  ;;  %v7359_v31 = vld [vmem:[%s10250_s0 + $0xa0] sm:$0xff]  ;;  %v374_v37 = vsel %vm273_vm1, %v371_v61, %v373_v16  ;;  %v377_v39 = vrot.slane %v7354_v30, 6 }
  0x1d   :  { %6259 = vmatprep.mubr.msk.f32.mxu1 %vm405_vm2, %v364_v38  ;;  %v313_v38 = vrot.slane %v7349_v23, 6 }
  0x1f   :  { %6212 = vmatmul.mubr.msk.f32.gmra.mxu0 %vm405_vm2, %v302_v50  ;;  %v376_v50 = vsel %vm273_vm1, %v7020_v3, %v375_v22  ;;  %v314_v61 = vsel %vm273_vm1, %v311_v20, %v313_v38  ;;  %v7417_v20 = vld [vmem:[%s10250_s0 + $0xb8] sm:$0xff]  ;;  %v7432_v38 = vld [vmem:[%s10250_s0 + $0x1c0] sm:$0xff] }
  0x20   :  { %6260 = vmatmul.mubr.msk.f32.gmra.mxu1 %vm405_vm2, %v366_v51  ;;  %6214 = vmatprep.mubr.msk.f32.mxu0 %vm405_vm2, %v304_v54  ;;  %v315_v51 = vrot.slane %v7359_v31, 6  ;;  %v7388_v54 = vld [vmem:[%s10250_s0 + $0x1a8] sm:$0xff] }
  0x21   :  { %6262 = vmatprep.mubr.msk.f32.mxu1 %vm405_vm2, %v368_v59  ;;  %10360 = vst [vmem:[#allocation13_spill] sm:$0xff] %v7388_v54  ;;  %v7393_v59 = vld [vmem:[%s10250_s0 + $0xb0] sm:$0xff]  ;;  %v381_v15 = vrot.slane %v7388_v54, 6 }
  0x22   :  { %v316_v16 = vsel %vm273_vm1, %v7020_v3, %v315_v51 }
  0x23   :  { %6215 = vmatmul.mubr.msk.f32.gmra.mxu0 %vm405_vm2, %v306_v6  ;;  %v378_v6 = vsel %vm273_vm1, %v375_v22, %v377_v39  ;;  %v7422_v22 = vld [vmem:[%s10250_s0 + $0x1b8] sm:$0xff] }
  0x24   :  { %6263 = vmatmul.mubr.msk.f32.gmra.mxu1 %vm405_vm2, %v370_v12  ;;  %6217 = vmatprep.mubr.msk.f32.mxu0 %vm405_vm2, %v308_v17  ;;  %v317_v12 = vrot.slane %v7383_v53, 6  ;;  %v380_v17 = vsel %vm273_vm1, %v7020_v3, %v379_v52  ;;  %10361 = vst [vmem:[#allocation14_spill] sm:$0xff] %v7422_v22  ;;  %v385_v2 = vrot.slane %v7422_v22, 6 }
  0x25   :  { %6265 = vmatprep.mubr.msk.f32.mxu1 %vm405_vm2, %v372_v18  ;;  %v319_v18 = vrot.slane %v7393_v59, 6 }
  0x26   :  { %v318_v39 = vsel %vm273_vm1, %v315_v51, %v317_v12  ;;  %v7451_v51 = vld [vmem:[%s10250_s0 + $0xc8] sm:$0xff]  ;;  %v7461_v12 = vld [vmem:[%s10250_s0 + $0xd0] sm:$0xff] }
  0x27   :  { %6218 = vmatmul.mubr.msk.f32.gmra.mxu0 %vm405_vm2, %v310_v35  ;;  %v383_v35 = vrot.slane %v7398_v60, 6  ;;  %v320_v54 = vsel %vm273_vm1, %v7020_v3, %v319_v18  ;;  %10363 = vst [vmem:[#allocation16_spill] sm:$0xff] %v7461_v12  ;;  %v325_v30 = vrot.slane %v7451_v51, 6 }
  0x28   :  { %6266 = vmatmul.mubr.msk.f32.gmra.mxu1 %vm405_vm2, %v374_v37  ;;  %6220 = vmatprep.mubr.msk.f32.mxu0 %vm405_vm2, %v312_v40  ;;  %v7427_v37 = vld [vmem:[%s10250_s0 + $0xc0] sm:$0xff]  ;;  %v382_v40 = vsel %vm273_vm1, %v379_v52, %v381_v15  ;;  %v7456_v52 = vld [vmem:[%s10250_s0 + $0x1c8] sm:$0xff]  ;;  %v7466_v15 = vld [vmem:[%s10250_s0 + $0x1d0] sm:$0xff] }
  0x29   :  { %6268 = vmatprep.mubr.msk.f32.mxu1 %vm405_vm2, %v376_v50  ;;  %v321_v50 = vrot.slane %v7417_v20, 6  ;;  %10362 = vst [vmem:[#allocation15_spill] sm:$0xff] %v7456_v52  ;;  %10364 = vst [vmem:[#allocation17_spill] sm:$0xff] %v7466_v15  ;;  %v386_v22 = vsel %vm273_vm1, %v383_v35, %v385_v2  ;;  %v389_v63 = vrot.slane %v7456_v52, 6  ;;  %v7490_v2 = vld [vmem:[%s10250_s0 + $0x1d8] sm:$0xff] }
  0x2a   :  { %10366 = vst [vmem:[#allocation19_spill] sm:$0xff] %v7490_v2  ;;  %v393_v9 = vrot.slane %v7490_v2, 6 }
  0x2b   :  { %6221 = vmatmul.mubr.msk.f32.gmra.mxu0 %vm405_vm2, %v314_v61  ;;  %v384_v61 = vsel %vm273_vm1, %v7020_v3, %v383_v35  ;;  %v7495_v35 = vld [vmem:[%s10250_s0 + $0xe0] sm:$0xff] }
  0x2c   :  { %6269 = vmatmul.mubr.msk.f32.gmra.mxu1 %vm405_vm2, %v378_v6  ;;  %6223 = vmatprep.mubr.msk.f32.mxu0 %vm405_vm2, %v316_v16  ;;  %v323_v6 = vrot.slane %v7427_v37, 6  ;;  %v387_v16 = vrot.slane %v7432_v38, 6  ;;  %10367 = vst [vmem:[#allocation20_spill] sm:$0xff] %v7495_v35 }
  0x2d   :  { %6271 = vmatprep.mubr.msk.f32.mxu1 %vm405_vm2, %v380_v17  ;;  %v322_v17 = vsel %vm273_vm1, %v319_v18, %v321_v50  ;;  %v7485_v18 = vld [vmem:[%s10250_s0 + $0xd8] sm:$0xff]  ;;  %v7500_v50 = vld [vmem:[%s10250_s0 + $0x1e0] sm:$0xff] }
  0x2e   :  { %v324_v42 = vsel %vm273_vm1, %v7020_v3, %v323_v6  ;;  %10365 = vst [vmem:[#allocation18_spill] sm:$0xff] %v7485_v18  ;;  %v390_v52 = vsel %vm273_vm1, %v387_v16, %v389_v63  ;;  %v329_v25 = vrot.slane %v7485_v18, 6 }
  0x2f   :  { %6224 = vmatmul.mubr.msk.f32.gmra.mxu0 %vm405_vm2, %v318_v39  ;;  %v388_v39 = vsel %vm273_vm1, %v7020_v3, %v387_v16  ;;  %v7529_v16 = vld [vmem:[%s10250_s0 + $0xf0] sm:$0xff] }
  0x30   :  { %6272 = vmatmul.mubr.msk.f32.gmra.mxu1 %vm405_vm2, %v382_v40  ;;  %6226 = vmatprep.mubr.msk.f32.mxu0 %vm405_vm2, %v320_v54  ;;  %v327_v40 = vrot.slane %v7461_v12, 6  ;;  %v391_v54 = vrot.slane %v7466_v15, 6  ;;  %10369 = vst [vmem:[#allocation22_spill] sm:$0xff] %v7529_v16  ;;  %v335_v18 = vrot.slane %v7529_v16, 6  ;;  %v10371_v16 = vmov 0.0  }
  0x31   :  { %6274 = vmatprep.mubr.msk.f32.mxu1 %vm405_vm2, %v384_v61  ;;  %v326_v61 = vsel %vm273_vm1, %v323_v6, %v325_v30  ;;  %v331_v30 = vrot.slane %v7495_v35, 6  ;;  %v395_v6 = vrot.slane %v7500_v50, 6 }
  0x32   :  { %v392_v63 = vsel %vm273_vm1, %v7020_v3, %v391_v54  ;;  %v330_v44 = vsel %vm273_vm1, %v327_v40, %v329_v25  ;;  %v394_v35 = vsel %vm273_vm1, %v391_v54, %v393_v9  ;;  %v7558_v25 = vld [vmem:[%s10250_s0 + $0x1f8] sm:$0xff]  ;;  %v336_v54 = vsel %vm273_vm1, %v7020_v3, %v335_v18 }
  0x33   :  { %6227 = vmatmul.mubr.msk.f32.gmra.mxu0 %vm405_vm2, %v322_v17  ;;  %v7534_v17 = vld [vmem:[%s10250_s0 + $0x1f0] sm:$0xff]  ;;  %10370 = vst [vmem:[#allocation23_spill] sm:$0xff] %v7558_v25 }
  0x34   :  { %6275 = vmatmul.mubr.msk.f32.gmra.mxu1 %vm405_vm2, %v386_v22  ;;  %6229 = vmatprep.mubr.msk.f32.mxu0 %vm405_vm2, %v324_v42  ;;  %v7518_v22 = vld [vmem:[%s10250_s0 + $0x1e8] sm:$0xff]  ;;  %v328_v42 = vsel %vm273_vm1, %v7020_v3, %v327_v40  ;;  %v399_v12 = vrot.slane %v7534_v17, 6 }
  0x35   :  { %6277 = vmatprep.mubr.msk.f32.mxu1 %vm405_vm2, %v388_v39  ;;  %10368 = vst [vmem:[#allocation21_spill] sm:$0xff] %v7518_v22  ;;  %v333_v39 = vrot.slane %v7513_v56, 6  ;;  %v397_v2 = vrot.slane %v7518_v22, 6 }
  0x37   :  { %6230 = vmatmul.mubr.msk.f32.gmra.mxu0 %vm405_vm2, %v326_v61  ;;  %v332_v61 = vsel %vm273_vm1, %v7020_v3, %v331_v30  ;;  %v334_v9 = vsel %vm273_vm1, %v331_v30, %v333_v39  ;;  %v398_v40 = vsel %vm273_vm1, %v395_v6, %v397_v2  ;;  %v144_v30 = vrot.slane %v7017_v1, 5 }
  0x38   :  { %6278 = vmatmul.mubr.msk.f32.gmra.mxu1 %vm405_vm2, %v390_v52  ;;  %6232 = vmatprep.mubr.msk.f32.mxu0 %vm405_vm2, %v328_v42  ;;  %v396_v52 = vsel %vm273_vm1, %v7020_v3, %v395_v6  ;;  %v7553_v42 = vld [vmem:[%s10250_s0 + $0xf8] sm:$0xff]  ;;  %v7577_v2 = vrot.slane %v10371_v16, 7  ;;  %v1441_v6 = vrot.slane %v7017_v1, 7 }
  0x39   :  { %6280 = vmatprep.mubr.msk.f32.mxu1 %vm405_vm2, %v392_v63  ;;  %v400_v63 = vsel %vm273_vm1, %v7020_v3, %v399_v12  ;;  %v337_v22 = vrot.slane %v7553_v42, 6 }
  0x3b   :  { %6233 = vmatmul.mubr.msk.f32.gmra.mxu0 %vm405_vm2, %v330_v44  ;;  %v401_v44 = vrot.slane %v7558_v25, 6  ;;  %v338_v3 = vsel %vm273_vm1, %v335_v18, %v337_v22  ;;  %v10290_v18 = vrot.slane %v7025_v4, 5  ;;  %v10309_v25 = vrot.slane %v7248_v29, 5 }
  0x3c   :  { %6281 = vmatmul.mubr.msk.f32.gmra.mxu1 %vm405_vm2, %v394_v35  ;;  %6235 = vmatprep.mubr.msk.f32.mxu0 %vm405_vm2, %v332_v61  ;;  %v7573_v35 = vrot.slane %v10371_v16, 5  ;;  %v146_v61 = vrot.slane %v7037_v8, 5 }
  0x3d   :  { %6283 = vmatprep.mubr.msk.f32.mxu1 %vm405_vm2, %v396_v52  ;;  %v402_v39 = vsel %vm273_vm1, %v399_v12, %v401_v44  ;;  %v1443_v52 = vrot.slane %v7037_v8, 7  ;;  %v1447_v12 = vrot.slane %v7069_v19, 7  ;;  %v152_v8 = vrot.slane %v7077_v21, 5 }
  0x3e   :  { %v145_v1 = vsel %vm142_vm3, %v7573_v35, %v144_v30  ;;  %v147_v22 = vsel %vm142_vm3, %v144_v30, %v146_v61  ;;  %v10287_v44 = vrot.slane %v7025_v4, 7  ;;  %v10288_v61 = vrot.slane %v7056_v14, 5 }
  0x3f   :  { %6236 = vmatmul.mubr.msk.f32.gmra.mxu0 %vm405_vm2, %v334_v9  ;;  %v1442_v9 = vsel %vm1439_vm4, %v7577_v2, %v1441_v6 }
  0x40   :  { %6284 = vmatmul.mubr.msk.f32.gmra.mxu1 %vm405_vm2, %v398_v40  ;;  %6238 = vmatprep.mubr.msk.f32.mxu0 %vm405_vm2, %v336_v54  ;;  %v148_v40 = vrot.slane %v7051_v13, 5  ;;  %v1445_v54 = vrot.slane %v7051_v13, 7  ;;  %v1444_v13 = vsel %vm1439_vm4, %v1441_v6, %v1443_v52  ;;  %v7621_v6 = vsel %vm1439_vm4, %v7577_v2, %v10287_v44  ;;  %v7635_v44 = vld [vmem:[%s10249_s1 + $0x14] sm:$0xf] }
  0x41   :  { %6286 = vmatprep.mubr.msk.f32.mxu1 %vm405_vm2, %v400_v63  ;;  %v150_v63 = vrot.slane %v7069_v19, 5  ;;  %v10289_v52 = vrot.slane %v7056_v14, 7  ;;  %10372 = vst [vmem:[#allocation24_spill] sm:$0xff] %v7635_v44 }
  0x42   :  { %v1446_v19 = vsel %vm1439_vm4, %v7577_v2, %v1445_v54 }
  0x43   :  { %6239 = vmatmul.mubr.msk.f32.gmra.mxu0 %vm405_vm2, %v338_v3  ;;  %v149_v3 = vsel %vm142_vm3, %v7573_v35, %v148_v40  ;;  %v151_v30 = vsel %vm142_vm3, %v148_v40, %v150_v63  ;;  %v154_v40 = vrot.slane %v7092_v27, 5  ;;  %v10292_v63 = vrot.slane %v7087_v26, 5 }
  0x44   :  { %6287 = vmatmul.mubr.msk.f32.gmra.mxu1 %vm405_vm2, %v402_v39  ;;  %6389 = vmatprep.mubr.msk.f32.mxu0 %vm405_vm2, %v1442_v9  ;;  %v1449_v39 = vrot.slane %v7077_v21, 7  ;;  %v1448_v21 = vsel %vm1439_vm4, %v1445_v54, %v1447_v12  ;;  %v153_v9 = vsel %vm142_vm3, %v7573_v35, %v152_v8  ;;  %v1451_v54 = vrot.slane %v7092_v27, 7 }
  0x45   :  { %6291 = vmatprep.mubr.msk.f32.mxu1 %vm405_vm2, %v145_v1  ;;  %v7614_v1 = vsel %vm142_vm3, %v7573_v35, %v10290_v18  ;;  %v7646_v12 = vsel %vm142_vm3, %v7573_v35, %v10288_v61  ;;  %v1453_v61 = vrot.slane %v7108_v33, 7  ;;  %v158_v18 = vrot.slane %v7131_v43, 5 }
  0x46   :  { %v1450_v27 = vsel %vm1439_vm4, %v7577_v2, %v1449_v39  ;;  %v1452_v16 = vsel %vm1439_vm4, %v1449_v39, %v1451_v54 }
  0x47   :  { %6390 = vmatmul.mubr.msk.f32.vlgmr.msra.gmra.mxu0 %vm405_vm2, %v1444_v13  ;;  %v10293_v13 = vrot.slane %v7087_v26, 7  ;;  %v1454_v39 = vsel %vm1439_vm4, %v7577_v2, %v1453_v61 }
  0x48   :  { %6292 = vmatmul.mubr.msk.f32.vlgmr.msra.gmra.mxu1 %vm405_vm2, %v147_v22  ;;  %6584 = vmatpush3.msk.msra.mxu0 %vm534_vm0, %v7284_v47  ;;  %v7652_v22 = vsel %vm1439_vm4, %v7577_v2, %v10289_v52  ;;  %v156_v47 = vrot.slane %v7108_v33, 5  ;;  %v7670_v52 = vsel %vm142_vm3, %v7573_v35, %v10292_v63  ;;  %v155_v33 = vsel %vm142_vm3, %v152_v8, %v154_v40 }
  0x49   :  { %6486 = vmatpush3.msk.msra.mxu1 %vm534_vm0, %v7261_v36  ;;  %v7658_v36 = vld [vmem:[%s10249_s1 + $0x18] sm:$0xf]  ;;  %6294 = vmatprep.mubr.msk.f32.mxu1 %vm405_vm2, %v149_v3  ;;  %v7677_v3 = vsel %vm1439_vm4, %v7577_v2, %v10293_v13  ;;  %v1455_v63 = vrot.slane %v7131_v43, 7  ;;  %v160_v13 = vrot.slane %v7141_v45, 5  ;;  %v10375_v8 = vrot.slane %v7113_v34, 7 }
  0x4a   :  { %10373 = vst [vmem:[#allocation25_spill] sm:$0xff] %v7658_v36  ;;  %6392 = vmatprep.mubr.msk.f32.mxu0 %vm405_vm2, %v1446_v19  ;;  %6681 = vmatprep.subr.msk.mxu1 %vm534_vm0, %v7635_v44  ;;  %v10296_v19 = vrot.slane %v7146_v46, 5  ;;  %v1457_v40 = vrot.slane %v7141_v45, 7  ;;  %v10299_v44 = vrot.slane %v7180_v58, 7 }
  0x4b   :  { %6779 = vmatprep.subr.msk.mxu0 %vm534_vm0, %v7658_v36  ;;  %6393 = vmatmul.mubr.msk.f32.gmra.mxu0 %vm405_vm2, %v1448_v21  ;;  %v10374_v36 = vrot.slane %v7113_v34, 5  ;;  %v7704_v43 = vsel %vm1439_vm4, %v7577_v2, %v10375_v8  ;;  %v10297_v21 = vrot.slane %v7146_v46, 7  ;;  %v10298_v8 = vrot.slane %v7180_v58, 5 }
  0x4c   :  { %6295 = vmatmul.mubr.msk.f32.gmra.mxu1 %vm405_vm2, %v151_v30  ;;  %6395 = vmatprep.mubr.msk.f32.mxu0 %vm405_vm2, %v1450_v27  ;;  %v7716_v54 = vsel %vm142_vm3, %v7573_v35, %v10296_v19  ;;  %v1456_v45 = vsel %vm1439_vm4, %v1453_v61, %v1455_v63  ;;  %v161_v19 = vsel %vm142_vm3, %v7573_v35, %v160_v13  ;;  %v10307_v63 = vrot.slane %v7214_v11, 7 }
  0x4d   :  { %6297 = vmatprep.mubr.msk.f32.mxu1 %vm405_vm2, %v153_v9  ;;  %v7698_v30 = vsel %vm142_vm3, %v7573_v35, %v10374_v36  ;;  %v157_v9 = vsel %vm142_vm3, %v7573_v35, %v156_v47  ;;  %v159_v36 = vsel %vm142_vm3, %v156_v47, %v158_v18  ;;  %v7723_v27 = vsel %vm1439_vm4, %v7577_v2, %v10297_v21 }
  0x4e   :  { %v162_v18 = vrot.slane %v7165_v55, 5  ;;  %v10304_v47 = vrot.slane %v7214_v11, 5  ;;  %v1459_v21 = vrot.slane %v7165_v55, 7  ;;  %v7747_v61 = vsel %vm1439_vm4, %v7577_v2, %v10299_v44 }
  0x4f   :  { %6396 = vmatmul.mubr.msk.f32.gmra.mxu0 %vm405_vm2, %v1452_v16  ;;  %v7741_v16 = vsel %vm142_vm3, %v7573_v35, %v10298_v8  ;;  %v1461_v55 = vrot.slane %v7175_v57, 7  ;;  %v166_v8 = vrot.slane %v7199_v7, 5  ;;  %v7765_v44 = vsel %vm1439_vm4, %v7577_v2, %v10307_v63 }
  0x50   :  { %6298 = vmatmul.mubr.msk.f32.gmra.mxu1 %vm405_vm2, %v155_v33  ;;  %6398 = vmatprep.mubr.msk.f32.mxu0 %vm405_vm2, %v1454_v39  ;;  %v1458_v33 = vsel %vm1439_vm4, %v7577_v2, %v1457_v40  ;;  %v7758_v39 = vsel %vm142_vm3, %v7573_v35, %v10304_v47  ;;  %v10308_v58 = vrot.slane %v7248_v29, 7  ;;  %v1463_v47 = vrot.slane %v7199_v7, 7 }
  0x51   :  { %6300 = vmatprep.mubr.msk.f32.mxu1 %vm405_vm2, %v157_v9  ;;  %v164_v9 = vrot.slane %v7175_v57, 5  ;;  %10376 = vst [vmem:[#allocation26_spill] sm:$0xff] %v7758_v39  ;;  %v163_v57 = vsel %vm142_vm3, %v160_v13, %v162_v18  ;;  %v168_v39 = vrot.slane %v7209_v10, 5  ;;  %v10310_v11 = vrot.slane %v7294_v49, 5 }
  0x52   :  { %v1460_v63 = vsel %vm1439_vm4, %v1457_v40, %v1459_v21  ;;  %v7788_v7 = vsel %vm1439_vm4, %v7577_v2, %v10308_v58  ;;  %v10311_v13 = vrot.slane %v7294_v49, 7  ;;  %v1462_v21 = vsel %vm1439_vm4, %v7577_v2, %v1461_v55 }
  0x53   :  { %6399 = vmatmul.mubr.msk.f32.gmra.mxu0 %vm405_vm2, %v1456_v45  ;;  %v1465_v40 = vrot.slane %v7209_v10, 7  ;;  %v7800_v45 = vsel %vm142_vm3, %v7573_v35, %v10310_v11  ;;  %v167_v18 = vsel %vm142_vm3, %v164_v9, %v166_v8  ;;  %v10312_v58 = vrot.slane %v7330_v5, 5 }
  0x54   :  { %6301 = vmatmul.mubr.msk.f32.gmra.mxu1 %vm405_vm2, %v159_v36  ;;  %6401 = vmatprep.mubr.msk.f32.mxu0 %vm405_vm2, %v1458_v33  ;;  %v7782_v36 = vsel %vm142_vm3, %v7573_v35, %v10309_v25  ;;  %v7807_v33 = vsel %vm1439_vm4, %v7577_v2, %v10311_v13  ;;  %v10313_v25 = vrot.slane %v7330_v5, 7  ;;  %v1464_v10 = vsel %vm1439_vm4, %v1461_v55, %v1463_v47 }
  0x55   :  { %6303 = vmatprep.mubr.msk.f32.mxu1 %vm405_vm2, %v161_v19  ;;  %v165_v19 = vsel %vm142_vm3, %v7573_v35, %v164_v9  ;;  %v169_v11 = vsel %vm142_vm3, %v7573_v35, %v168_v39  ;;  %v170_v8 = vrot.slane %v7233_v24, 5  ;;  %v10316_v9 = vrot.slane %v7364_v32, 5 }
  0x56   :  { %v1467_v13 = vrot.slane %v7233_v24, 7  ;;  %v7831_v47 = vsel %vm1439_vm4, %v7577_v2, %v10313_v25  ;;  %v10319_v55 = vrot.slane %v7364_v32, 7  ;;  %v1469_v24 = vrot.slane %v7243_v28, 7 }
  0x57   :  { %6402 = vmatmul.mubr.msk.f32.gmra.mxu0 %vm405_vm2, %v1460_v63  ;;  %v7825_v63 = vsel %vm142_vm3, %v7573_v35, %v10312_v58  ;;  %10377 = vst [vmem:[#allocation27_spill] sm:$0xff] %v7831_v47  ;;  %v174_v58 = vrot.slane %v7272_v41, 5  ;;  %v10321_v5 = vrot.slane %v7398_v60, 5  ;;  %v10320_v47 = vrot.slane %v7398_v60, 7 }
  0x58   :  { %6304 = vmatmul.mubr.msk.f32.gmra.mxu1 %vm405_vm2, %v163_v57  ;;  %6404 = vmatprep.mubr.msk.f32.mxu0 %vm405_vm2, %v1462_v21  ;;  %v1466_v57 = vsel %vm1439_vm4, %v7577_v2, %v1465_v40  ;;  %v7842_v21 = vsel %vm142_vm3, %v7573_v35, %v10316_v9  ;;  %v7849_v25 = vsel %vm1439_vm4, %v7577_v2, %v10319_v55  ;;  %v1471_v9 = vrot.slane %v7272_v41, 7 }
  0x59   :  { %6306 = vmatprep.mubr.msk.f32.mxu1 %vm405_vm2, %v165_v19  ;;  %v172_v19 = vrot.slane %v7243_v28, 5  ;;  %10378 = vst [vmem:[#allocation28_spill] sm:$0xff] %v7842_v21  ;;  %v171_v28 = vsel %vm142_vm3, %v168_v39, %v170_v8  ;;  %v176_v21 = vrot.slane %v7289_v48, 5  ;;  %v10322_v32 = vrot.slane %v7432_v38, 5 }
  0x5a   :  { %v1468_v55 = vsel %vm1439_vm4, %v1465_v40, %v1467_v13  ;;  %v7872_v41 = vsel %vm1439_vm4, %v7577_v2, %v10320_v47  ;;  %v10323_v39 = vrot.slane %v7432_v38, 7  ;;  %v1470_v13 = vsel %vm1439_vm4, %v7577_v2, %v1469_v24 }
  0x5b   :  { %6405 = vmatmul.mubr.msk.f32.gmra.mxu0 %vm405_vm2, %v1464_v10  ;;  %v1473_v40 = vrot.slane %v7289_v48, 7  ;;  %v7884_v10 = vsel %vm142_vm3, %v7573_v35, %v10322_v32  ;;  %v175_v8 = vsel %vm142_vm3, %v172_v19, %v174_v58  ;;  %v10325_v47 = vrot.slane %v7466_v15, 5 }
  0x5c   :  { %6307 = vmatmul.mubr.msk.f32.gmra.mxu1 %vm405_vm2, %v167_v18  ;;  %6407 = vmatprep.mubr.msk.f32.mxu0 %vm405_vm2, %v1466_v57  ;;  %v7866_v18 = vsel %vm142_vm3, %v7573_v35, %v10321_v5  ;;  %v7891_v57 = vsel %vm1439_vm4, %v7577_v2, %v10323_v39  ;;  %v10324_v5 = vrot.slane %v7466_v15, 7  ;;  %v1472_v48 = vsel %vm1439_vm4, %v1469_v24, %v1471_v9 }
  0x5d   :  { %6309 = vmatprep.mubr.msk.f32.mxu1 %vm405_vm2, %v169_v11  ;;  %v173_v11 = vsel %vm142_vm3, %v7573_v35, %v172_v19  ;;  %v177_v32 = vsel %vm142_vm3, %v7573_v35, %v176_v21  ;;  %v178_v58 = vrot.slane %v7315_v62, 5  ;;  %v10328_v19 = vrot.slane %v7500_v50, 5 }
  0x5e   :  { %v1475_v39 = vrot.slane %v7315_v62, 7  ;;  %v7915_v9 = vsel %vm1439_vm4, %v7577_v2, %v10324_v5  ;;  %v10329_v24 = vrot.slane %v7500_v50, 7  ;;  %v1477_v62 = vrot.slane %v7325_v0, 7 }
  0x5f   :  { %6408 = vmatmul.mubr.msk.f32.gmra.mxu0 %vm405_vm2, %v1468_v55  ;;  %v7909_v55 = vsel %vm142_vm3, %v7573_v35, %v10325_v47  ;;  %10379 = vst [vmem:[#allocation29_spill] sm:$0xff] %v7915_v9  ;;  %v10330_v47 = vrot.slane %v7534_v17, 5  ;;  %v182_v9 = vrot.slane %v7349_v23, 5 }
  0x60   :  { %6310 = vmatmul.mubr.msk.f32.gmra.mxu1 %vm405_vm2, %v171_v28  ;;  %6410 = vmatprep.mubr.msk.f32.mxu0 %vm405_vm2, %v1470_v13  ;;  %v1474_v28 = vsel %vm1439_vm4, %v7577_v2, %v1473_v40  ;;  %v7926_v13 = vsel %vm142_vm3, %v7573_v35, %v10328_v19  ;;  %v7932_v5 = vsel %vm1439_vm4, %v7577_v2, %v10329_v24  ;;  %v1479_v24 = vrot.slane %v7349_v23, 7 }
  0x61   :  { %6312 = vmatprep.mubr.msk.f32.mxu1 %vm405_vm2, %v173_v11  ;;  %v180_v11 = vrot.slane %v7325_v0, 5  ;;  %v179_v0 = vsel %vm142_vm3, %v176_v21, %v178_v58  ;;  %v1476_v19 = vsel %vm1439_vm4, %v1473_v40, %v1475_v39  ;;  %v7948_v15 = vsel %vm142_vm3, %v7573_v35, %v10330_v47 }
  0x62   :  { %v1478_v39 = vsel %vm1439_vm4, %v7577_v2, %v1477_v62  ;;  %v184_v23 = vrot.slane %v7359_v31, 5  ;;  %v1481_v40 = vrot.slane %v7359_v31, 7  ;;  %v1480_v58 = vsel %vm1439_vm4, %v1477_v62, %v1479_v24 }
  0x63   :  { %6411 = vmatmul.mubr.msk.f32.gmra.mxu0 %vm405_vm2, %v1472_v48  ;;  %v183_v48 = vsel %vm142_vm3, %v180_v11, %v182_v9  ;;  %v190_v24 = vrot.slane %v7417_v20, 5 }
  0x64   :  { %6313 = vmatmul.mubr.msk.f32.gmra.mxu1 %vm405_vm2, %v175_v8  ;;  %6413 = vmatprep.mubr.msk.f32.mxu0 %vm405_vm2, %v1474_v28  ;;  %v10380_v8 = vrot.slane %v7534_v17, 7  ;;  %v186_v28 = vrot.slane %v7383_v53, 5  ;;  %v185_v47 = vsel %vm142_vm3, %v7573_v35, %v184_v23  ;;  %v1482_v31 = vsel %vm1439_vm4, %v7577_v2, %v1481_v40 }
  0x65   :  { %6315 = vmatprep.mubr.msk.f32.mxu1 %vm405_vm2, %v177_v32  ;;  %v181_v32 = vsel %vm142_vm3, %v7573_v35, %v180_v11  ;;  %v1487_v11 = vrot.slane %v7417_v20, 7 }
  0x66   :  { %v7954_v21 = vsel %vm1439_vm4, %v7577_v2, %v10380_v8  ;;  %v1483_v8 = vrot.slane %v7383_v53, 7  ;;  %v187_v53 = vsel %vm142_vm3, %v184_v23, %v186_v28  ;;  %v194_v23 = vrot.slane %v7451_v51, 5 }
  0x67   :  { %6414 = vmatmul.mubr.msk.f32.gmra.mxu0 %vm405_vm2, %v1476_v19  ;;  %v188_v19 = vrot.slane %v7393_v59, 5 }
  0x68   :  { %6316 = vmatmul.mubr.msk.f32.gmra.mxu1 %vm405_vm2, %v179_v0  ;;  %6416 = vmatprep.mubr.msk.f32.mxu0 %vm405_vm2, %v1478_v39  ;;  %v1485_v0 = vrot.slane %v7393_v59, 7  ;;  %v1484_v9 = vsel %vm1439_vm4, %v1481_v40, %v1483_v8  ;;  %v1491_v40 = vrot.slane %v7451_v51, 7 }
  0x69   :  { %6318 = vmatprep.mubr.msk.f32.mxu1 %vm405_vm2, %v181_v32  ;;  %v189_v62 = vsel %vm142_vm3, %v7573_v35, %v188_v19  ;;  %v192_v32 = vrot.slane %v7427_v37, 5  ;;  %v191_v20 = vsel %vm142_vm3, %v188_v19, %v190_v24  ;;  %v10382_v19 = vld [vmem:[#allocation18_spill] sm:$0xff] }
  0x6a   :  { %v1486_v59 = vsel %vm1439_vm4, %v7577_v2, %v1485_v0  ;;  %v1488_v39 = vsel %vm1439_vm4, %v1485_v0, %v1487_v11  ;;  %v198_v0 = vrot.slane %v10382_v19, 5  ;;  %v10383_v11 = vld [vmem:[#allocation20_spill] sm:$0xff] }
  0x6b   :  { %6417 = vmatmul.mubr.msk.f32.gmra.mxu0 %vm405_vm2, %v1480_v58  ;;  %v10381_v58 = vld [vmem:[#allocation16_spill] sm:$0xff]  ;;  %v195_v51 = vsel %vm142_vm3, %v192_v32, %v194_v23 }
  0x6c   :  { %6319 = vmatmul.mubr.msk.f32.gmra.mxu1 %vm405_vm2, %v183_v48  ;;  %6419 = vmatprep.mubr.msk.f32.mxu0 %vm405_vm2, %v1482_v31  ;;  %v193_v48 = vsel %vm142_vm3, %v7573_v35, %v192_v32  ;;  %v196_v28 = vrot.slane %v10381_v58, 5  ;;  %v1493_v8 = vrot.slane %v10381_v58, 7 }
  0x6d   :  { %6321 = vmatprep.mubr.msk.f32.mxu1 %vm405_vm2, %v185_v47  ;;  %v1489_v47 = vrot.slane %v7427_v37, 7 }
  0x6e   :  { %v1494_v24 = vsel %vm1439_vm4, %v7577_v2, %v1493_v8  ;;  %v199_v32 = vsel %vm142_vm3, %v196_v28, %v198_v0 }
  0x6f   :  { %6420 = vmatmul.mubr.msk.f32.gmra.mxu0 %vm405_vm2, %v1484_v9  ;;  %v1490_v37 = vsel %vm1439_vm4, %v7577_v2, %v1489_v47  ;;  %v1492_v31 = vsel %vm1439_vm4, %v1489_v47, %v1491_v40  ;;  %v197_v9 = vsel %vm142_vm3, %v7573_v35, %v196_v28 }
  0x70   :  { %6322 = vmatmul.mubr.msk.f32.gmra.mxu1 %vm405_vm2, %v187_v53  ;;  %6422 = vmatprep.mubr.msk.f32.mxu0 %vm405_vm2, %v1486_v59  ;;  %v1495_v53 = vrot.slane %v10382_v19, 7  ;;  %v1497_v59 = vrot.slane %v10383_v11, 7 }
  0x71   :  { %6324 = vmatprep.mubr.msk.f32.mxu1 %vm405_vm2, %v189_v62  ;;  %v200_v62 = vrot.slane %v10383_v11, 5  ;;  %v10386_v11 = vrot.slane %v7025_v4, 7 }
  0x72   :  { %v1496_v47 = vsel %vm1439_vm4, %v1493_v8, %v1495_v53  ;;  %v1498_v40 = vsel %vm1439_vm4, %v7577_v2, %v1497_v59  ;;  %v206_v8 = vrot.slane %v7553_v42, 5 }
  0x73   :  { %6423 = vmatmul.mubr.msk.f32.gmra.mxu0 %vm405_vm2, %v1488_v39  ;;  %v1499_v39 = vrot.slane %v7513_v56, 7  ;;  %v201_v23 = vsel %vm142_vm3, %v7573_v35, %v200_v62 }
  0x74   :  { %6325 = vmatmul.mubr.msk.f32.gmra.mxu1 %vm405_vm2, %v191_v20  ;;  %6425 = vmatprep.mubr.msk.f32.mxu0 %vm405_vm2, %v1490_v37  ;;  %v202_v20 = vrot.slane %v7513_v56, 5 }
  0x75   :  { %6327 = vmatprep.mubr.msk.f32.mxu1 %vm405_vm2, %v193_v48  ;;  %v10384_v48 = vld [vmem:[#allocation22_spill] sm:$0xff]  ;;  %v1500_v28 = vsel %vm1439_vm4, %v1497_v59, %v1499_v39  ;;  %v8072_v59 = vld [vmem:[%s10250_s0 + $0x118] sm:$0xff]  ;;  %v8091_v39 = vld [vmem:[%s10250_s0 + $0x128] sm:$0xff] }
  0x76   :  { %v204_v37 = vrot.slane %v10384_v48, 5  ;;  %v1501_v58 = vrot.slane %v10384_v48, 7  ;;  %v203_v56 = vsel %vm142_vm3, %v200_v62, %v202_v20 }
  0x77   :  { %6426 = vmatmul.mubr.msk.f32.gmra.mxu0 %vm405_vm2, %v1492_v31 }
  0x78   :  { %6328 = vmatmul.mubr.msk.f32.gmra.mxu1 %vm405_vm2, %v195_v51  ;;  %6428 = vmatprep.mubr.msk.f32.mxu0 %vm405_vm2, %v1494_v24  ;;  %v1503_v51 = vrot.slane %v7553_v42, 7  ;;  %v205_v31 = vsel %vm142_vm3, %v7573_v35, %v204_v37  ;;  %v1502_v19 = vsel %vm1439_vm4, %v7577_v2, %v1501_v58  ;;  %v207_v0 = vsel %vm142_vm3, %v204_v37, %v206_v8  ;;  %v8053_v42 = vld [vmem:[%s10250_s0 + $0x108] sm:$0xff]  ;;  %v10391_v37 = vld [vmem:[#allocation2_spill] sm:$0xff] }
  0x79   :  { %6330 = vmatprep.mubr.msk.f32.mxu1 %vm405_vm2, %v197_v9  ;;  %v210_v35 = vrot.slane %v8053_v42, 5  ;;  %v1507_v2 = vrot.slane %v8053_v42, 7  ;;  %v10385_v9 = vrot.slane %v7025_v4, 5  ;;  %v10387_v4 = vrot.slane %v7056_v14, 5  ;;  %v10394_v8 = vld [vmem:[#allocation3_spill] sm:$0xff] }
  0x7a   :  { %v1504_v53 = vsel %vm1439_vm4, %v1501_v58, %v1503_v51  ;;  %v222_v58 = vrot.slane %v10391_v37, 5  ;;  %v226_v51 = vrot.slane %v10394_v8, 5 }
  0x7b   :  { %6429 = vmatmul.mubr.msk.f32.gmra.mxu0 %vm405_vm2, %v1496_v47  ;;  %v211_v24 = vsel %vm142_vm3, %v10385_v9, %v210_v35  ;;  %v1508_v62 = vsel %vm1439_vm4, %v10386_v11, %v1507_v2  ;;  %v10388_v47 = vrot.slane %v7056_v14, 7  ;;  %v10389_v14 = vrot.slane %v7087_v26, 5 }
  0x7c   :  { %6331 = vmatmul.mubr.msk.f32.gmra.mxu1 %vm405_vm2, %v199_v32  ;;  %6431 = vmatprep.mubr.msk.f32.mxu0 %vm405_vm2, %v1498_v40  ;;  %v214_v32 = vrot.slane %v8072_v59, 5  ;;  %v10390_v40 = vrot.slane %v7087_v26, 7 }
  0x7d   :  { %6333 = vmatprep.mubr.msk.f32.mxu1 %vm405_vm2, %v201_v23  ;;  %v218_v23 = vrot.slane %v8091_v39, 5 }
  0x7f   :  { %6432 = vmatmul.mubr.msk.f32.gmra.mxu0 %vm405_vm2, %v1500_v28 }
  0x80   :  { %6334 = vmatmul.mubr.msk.f32.gmra.mxu1 %vm405_vm2, %v203_v56  ;;  %6434 = vmatprep.mubr.msk.f32.mxu0 %vm405_vm2, %v1502_v19  ;;  %v1519_v56 = vrot.slane %v10391_v37, 7 }
  0x81   :  { %6336 = vmatprep.mubr.msk.f32.mxu1 %vm405_vm2, %v205_v31  ;;  %v1523_v31 = vrot.slane %v10394_v8, 7 }
  0x83   :  { %6435 = vmatmul.mubr.msk.f32.gmra.mxu0 %vm405_vm2, %v1504_v53 }
  0x84   :  { %6337 = vmatmul.mubr.msk.f32.gmra.mxu1 %vm405_vm2, %v207_v0  ;;  %6437 = vmatprep.mubr.msk.f32.mxu0 %vm405_vm2, %v7621_v6  ;;  %v215_v6 = vsel %vm142_vm3, %v10387_v4, %v214_v32  ;;  %v10397_v0 = vld [vmem:[#allocation5_spill] sm:$0xff] }
  0x85   :  { %6339 = vmatprep.mubr.msk.f32.mxu1 %vm405_vm2, %v7614_v1  ;;  %v1511_v1 = vrot.slane %v8072_v59, 7  ;;  %v230_v53 = vrot.slane %v10397_v0, 5  ;;  %v1527_v35 = vrot.slane %v10397_v0, 7 }
  0x87   :  { %6438 = vmatmul.mubr.msk.f32.gmra.mxu0 %vm405_vm2, %v1508_v62  ;;  %v1512_v20 = vsel %vm1439_vm4, %v10388_v47, %v1511_v1  ;;  %v10406_v47 = vld [vmem:[#allocation8_spill] sm:$0xff] }
  0x88   :  { %6340 = vmatmul.mubr.msk.f32.gmra.mxu1 %vm405_vm2, %v211_v24  ;;  %6440 = vmatprep.mubr.msk.f32.mxu0 %vm405_vm2, %v7652_v22  ;;  %v219_v22 = vsel %vm142_vm3, %v10389_v14, %v218_v23  ;;  %v10401_v24 = vld [vmem:[#allocation7_spill] sm:$0xff]  ;;  %v1535_v23 = vrot.slane %v10406_v47, 7  ;;  %v10408_v14 = vrot.slane %v7248_v29, 7 }
  0x89   :  { %6342 = vmatprep.mubr.msk.f32.mxu1 %vm405_vm2, %v7646_v12  ;;  %v1515_v12 = vrot.slane %v8091_v39, 7  ;;  %v234_v11 = vrot.slane %v10401_v24, 5  ;;  %v1531_v62 = vrot.slane %v10401_v24, 7  ;;  %v10425_v24 = vld [vmem:[#allocation15_spill] sm:$0xff] }
  0x8b   :  { %6441 = vmatmul.mubr.msk.f32.gmra.mxu0 %vm405_vm2, %v1512_v20  ;;  %v1516_v48 = vsel %vm1439_vm4, %v10390_v40, %v1515_v12  ;;  %v238_v20 = vrot.slane %v10406_v47, 5  ;;  %v10409_v40 = vld [vmem:[#allocation9_spill] sm:$0xff] }
  0x8c   :  { %6343 = vmatmul.mubr.msk.f32.gmra.mxu1 %vm405_vm2, %v215_v6  ;;  %6443 = vmatprep.mubr.msk.f32.mxu0 %vm405_vm2, %v7677_v3  ;;  %v10393_v3 = vrot.slane %v7113_v34, 7  ;;  %v1539_v37 = vrot.slane %v10409_v40, 7 }
  0x8d   :  { %6345 = vmatprep.mubr.msk.f32.mxu1 %vm405_vm2, %v7670_v52  ;;  %v10392_v52 = vrot.slane %v7113_v34, 5 }
  0x8e   :  { %v1520_v28 = vsel %vm1439_vm4, %v10393_v3, %v1519_v56  ;;  %v10412_v56 = vld [vmem:[#allocation11_spill] sm:$0xff] }
  0x8f   :  { %6444 = vmatmul.mubr.msk.f32.gmra.mxu0 %vm405_vm2, %v1516_v48  ;;  %v223_v26 = vsel %vm142_vm3, %v10392_v52, %v222_v58  ;;  %v242_v48 = vrot.slane %v10409_v40, 5  ;;  %v246_v52 = vrot.slane %v10412_v56, 5  ;;  %v10436_v40 = vld [vmem:[#allocation23_spill] sm:$0xff] }
  0x90   :  { %6346 = vmatmul.mubr.msk.f32.gmra.mxu1 %vm405_vm2, %v219_v22  ;;  %6446 = vmatprep.mubr.msk.f32.mxu0 %vm405_vm2, %v7704_v43  ;;  %v10396_v43 = vrot.slane %v7146_v46, 7  ;;  %v1536_v22 = vsel %vm1439_vm4, %v10408_v14, %v1535_v23  ;;  %v10435_v14 = vrot.slane %v7500_v50, 7 }
  0x91   :  { %6348 = vmatprep.mubr.msk.f32.mxu1 %vm405_vm2, %v7698_v30  ;;  %v10395_v30 = vrot.slane %v7146_v46, 5 }
  0x92   :  { %v1524_v19 = vsel %vm1439_vm4, %v10396_v43, %v1523_v31 }
  0x93   :  { %6447 = vmatmul.mubr.msk.f32.gmra.mxu0 %vm405_vm2, %v1520_v28  ;;  %v227_v34 = vsel %vm142_vm3, %v10395_v30, %v226_v51  ;;  %v10417_v51 = vld [vmem:[#allocation13_spill] sm:$0xff] }
  0x94   :  { %6349 = vmatmul.mubr.msk.f32.gmra.mxu1 %vm405_vm2, %v223_v26  ;;  %6449 = vmatprep.mubr.msk.f32.mxu0 %vm405_vm2, %v7723_v27  ;;  %v1543_v26 = vrot.slane %v10412_v56, 7  ;;  %v250_v31 = vrot.slane %v10417_v51, 5  ;;  %v1547_v30 = vrot.slane %v10417_v51, 7 }
  0x95   :  { %6351 = vmatprep.mubr.msk.f32.mxu1 %vm405_vm2, %v7716_v54  ;;  %v10398_v54 = vld [vmem:[#allocation4_spill] sm:$0xff] }
  0x96   :  { %v10399_v27 = vrot.slane %v10398_v54, 5  ;;  %v10400_v2 = vrot.slane %v10398_v54, 7 }
  0x97   :  { %6450 = vmatmul.mubr.msk.f32.gmra.mxu0 %vm405_vm2, %v1524_v19 }
  0x98   :  { %6352 = vmatmul.mubr.msk.f32.gmra.mxu1 %vm405_vm2, %v227_v34  ;;  %6452 = vmatprep.mubr.msk.f32.mxu0 %vm405_vm2, %v7747_v61  ;;  %v231_v46 = vsel %vm142_vm3, %v10399_v27, %v230_v53  ;;  %v1528_v9 = vsel %vm1439_vm4, %v10400_v2, %v1527_v35  ;;  %v10403_v61 = vld [vmem:[#allocation6_spill] sm:$0xff]  ;;  %v10419_v34 = vld [vmem:[#allocation12_spill] sm:$0xff]  ;;  %v10424_v2 = vrot.slane %v7398_v60, 7 }
  0x99   :  { %6354 = vmatprep.mubr.msk.f32.mxu1 %vm405_vm2, %v7741_v16  ;;  %v10402_v16 = vld [vmem:[#allocation26_spill] sm:$0xff]  ;;  %v10404_v32 = vrot.slane %v10403_v61, 5  ;;  %v10405_v4 = vrot.slane %v10403_v61, 7  ;;  %v10420_v43 = vrot.slane %v10419_v34, 5  ;;  %v10421_v0 = vrot.slane %v10419_v34, 7  ;;  %v10428_v61 = vld [vmem:[#allocation19_spill] sm:$0xff] }
  0x9a   :  { %v10422_v35 = vld [vmem:[#allocation14_spill] sm:$0xff]  ;;  %v10440_v34 = vld [vmem:[#allocation24_spill] sm:$0xff] }
  0x9b   :  { %6453 = vmatmul.mubr.msk.f32.gmra.mxu0 %vm405_vm2, %v1528_v9  ;;  %v235_v1 = vsel %vm142_vm3, %v10404_v32, %v234_v11  ;;  %v1532_v6 = vsel %vm1439_vm4, %v10405_v4, %v1531_v62  ;;  %v251_v19 = vsel %vm142_vm3, %v10420_v43, %v250_v31  ;;  %v1548_v53 = vsel %vm1439_vm4, %v10421_v0, %v1547_v30  ;;  %v10441_v43 = vld [vmem:[#allocation25_spill] sm:$0xff] }
  0x9c   :  { %6355 = vmatmul.mubr.msk.f32.gmra.mxu1 %vm405_vm2, %v231_v46  ;;  %6455 = vmatprep.mubr.msk.f32.mxu0 %vm405_vm2, %v7765_v44  ;;  %v10407_v44 = vrot.slane %v7248_v29, 5  ;;  %v254_v54 = vrot.slane %v10422_v35, 5  ;;  %v1551_v27 = vrot.slane %v10422_v35, 7  ;;  %v258_v11 = vrot.slane %v10425_v24, 5 }
  0x9d   :  { %6357 = vmatprep.mubr.msk.f32.mxu1 %vm405_vm2, %v10402_v16  ;;  %v1555_v62 = vrot.slane %v10425_v24, 7  ;;  %v262_v32 = vrot.slane %v10428_v61, 5 }
  0x9e   :  { %v239_v12 = vsel %vm142_vm3, %v10407_v44, %v238_v20  ;;  %v1552_v9 = vsel %vm1439_vm4, %v10424_v2, %v1551_v27  ;;  %v10433_v20 = vld [vmem:[#allocation21_spill] sm:$0xff] }
  0x9f   :  { %6456 = vmatmul.mubr.msk.f32.gmra.mxu0 %vm405_vm2, %v1532_v6  ;;  %v266_v23 = vrot.slane %v10433_v20, 5  ;;  %v1563_v44 = vrot.slane %v10433_v20, 7  ;;  %v8425_v20 = vld [vmem:[%s10250_s0 + $0x58] sm:$0xff] }
  0xa0   :  { %6358 = vmatmul.mubr.msk.f32.gmra.mxu1 %vm405_vm2, %v235_v1  ;;  %6458 = vmatprep.mubr.msk.f32.mxu0 %vm405_vm2, %v7788_v7  ;;  %v10411_v7 = vrot.slane %v7294_v49, 7  ;;  %v1559_v1 = vrot.slane %v10428_v61, 7  ;;  %10448 = vst [vmem:[#allocation5_spill] sm:$0xff] %v8425_v20 }
  0xa1   :  { %6360 = vmatprep.mubr.msk.f32.mxu1 %vm405_vm2, %v7782_v36  ;;  %v10410_v36 = vrot.slane %v7294_v49, 5 }
  0xa2   :  { %v1540_v58 = vsel %vm1439_vm4, %v10411_v7, %v1539_v37  ;;  %v1567_v37 = vrot.slane %v10436_v40, 7 }
  0xa3   :  { %6459 = vmatmul.mubr.msk.f32.gmra.mxu0 %vm405_vm2, %v1536_v22  ;;  %v243_v29 = vsel %vm142_vm3, %v10410_v36, %v242_v48  ;;  %v1564_v22 = vsel %vm1439_vm4, %v10435_v14, %v1563_v44  ;;  %v270_v48 = vrot.slane %v10436_v40, 5  ;;  %v8280_v36 = vld [vmem:[%s10250_s0] sm:$0xff] }
  0xa4   :  { %6361 = vmatmul.mubr.msk.f32.gmra.mxu1 %vm405_vm2, %v239_v12  ;;  %6461 = vmatprep.mubr.msk.f32.mxu0 %vm405_vm2, %v7807_v33  ;;  %v10414_v33 = vld [vmem:[#allocation10_spill] sm:$0xff] }
  0xa5   :  { %6363 = vmatprep.mubr.msk.f32.mxu1 %vm405_vm2, %v7800_v45  ;;  %v10413_v45 = vld [vmem:[#allocation27_spill] sm:$0xff]  ;;  %v10415_v3 = vrot.slane %v10414_v33, 5  ;;  %v10416_v28 = vrot.slane %v10414_v33, 7  ;;  %v8314_v33 = vld [vmem:[%s10250_s0 + $0x18] sm:$0xff] }
  0xa7   :  { %6462 = vmatmul.mubr.msk.f32.gmra.mxu0 %vm405_vm2, %v1540_v58  ;;  %v247_v49 = vsel %vm142_vm3, %v10415_v3, %v246_v52  ;;  %v1544_v8 = vsel %vm1439_vm4, %v10416_v28, %v1543_v26  ;;  %v10438_v58 = vrot.slane %v7534_v17, 7  ;;  %v10439_v52 = vmov 0.0  }
  0xa8   :  { %6364 = vmatmul.mubr.msk.f32.gmra.mxu1 %vm405_vm2, %v243_v29  ;;  %6464 = vmatprep.mubr.msk.f32.mxu0 %vm405_vm2, %v10413_v45  ;;  %v10437_v29 = vrot.slane %v7534_v17, 5  ;;  %v8302_v26 = vrot.slane %v10439_v52, 1  ;;  %v2740_v17 = vrot.slane %v8314_v33, 1 }
  0xa9   :  { %6366 = vmatprep.mubr.msk.f32.mxu1 %vm405_vm2, %v7825_v63  ;;  %v10418_v63 = vld [vmem:[#allocation28_spill] sm:$0xff]  ;;  %v1568_v56 = vsel %vm1439_vm4, %v10438_v58, %v1567_v37 }
  0xaa   :  { %v271_v7 = vsel %vm142_vm3, %v10437_v29, %v270_v48  ;;  %v8448_v48 = vld [vmem:[%s10250_s0 + $0x60] sm:$0xff] }
  0xab   :  { %6465 = vmatmul.mubr.msk.f32.gmra.mxu0 %vm405_vm2, %v1544_v8  ;;  %v8333_v8 = vld [vmem:[%s10250_s0 + $0x28] sm:$0xff]  ;;  %10451 = vst [vmem:[#allocation26_spill] sm:$0xff] %v8448_v48  ;;  %v2759_v37 = vrot.slane %v8448_v48, 1 }
  0xac   :  { %6367 = vmatmul.mubr.msk.f32.gmra.mxu1 %vm405_vm2, %v247_v49  ;;  %6467 = vmatprep.mubr.msk.f32.mxu0 %vm405_vm2, %v7849_v25  ;;  %v10423_v25 = vrot.slane %v7398_v60, 5  ;;  %v8327_v49 = vld [vmem:[%s10250_s0 + $0x20] sm:$0xff]  ;;  %v2744_v51 = vrot.slane %v8333_v8, 1 }
  0xad   :  { %6369 = vmatprep.mubr.msk.f32.mxu1 %vm405_vm2, %v10418_v63  ;;  %v2743_v28 = vrot.slane %v8327_v49, 1 }
  0xae   :  { %v255_v46 = vsel %vm142_vm3, %v10423_v25, %v254_v54  ;;  %v8361_v54 = vld [vmem:[%s10250_s0 + $0x30] sm:$0xff]  ;;  %v8367_v25 = vld [vmem:[%s10250_s0 + $0x38] sm:$0xff]  ;;  %v2746_v24 = vsel %vm2733_vm5, %v2744_v51, %v8302_v26 }
  0xaf   :  { %6468 = vmatmul.mubr.msk.f32.gmra.mxu0 %vm405_vm2, %v1548_v53  ;;  %v2745_v35 = vsel %vm2733_vm5, %v2743_v28, %v2744_v51  ;;  %v2747_v27 = vrot.slane %v8361_v54, 1  ;;  %v8483_v28 = vld [vmem:[%s10250_s0 + $0x78] sm:$0xff] }
  0xb0   :  { %6370 = vmatmul.mubr.msk.f32.gmra.mxu1 %vm405_vm2, %v251_v19  ;;  %6470 = vmatprep.mubr.msk.f32.mxu0 %vm405_vm2, %v7872_v41  ;;  %v10427_v41 = vrot.slane %v7432_v38, 7  ;;  %v2742_v19 = vsel %vm2733_vm5, %v2740_v17, %v8302_v26  ;;  %10456 = vst [vmem:[#allocation27_spill] sm:$0xff] %v8483_v28  ;;  %v2764_v51 = vrot.slane %v8483_v28, 1 }
  0xb1   :  { %6372 = vmatprep.mubr.msk.f32.mxu1 %vm405_vm2, %v7866_v18  ;;  %v10426_v18 = vrot.slane %v7432_v38, 5 }
  0xb2   :  { %v1556_v16 = vsel %vm1439_vm4, %v10427_v41, %v1555_v62 }
  0xb3   :  { %6471 = vmatmul.mubr.msk.f32.gmra.mxu0 %vm405_vm2, %v1552_v9  ;;  %v259_v60 = vsel %vm142_vm3, %v10426_v18, %v258_v11 }
  0xb4   :  { %6373 = vmatmul.mubr.msk.f32.gmra.mxu1 %vm405_vm2, %v255_v46  ;;  %6473 = vmatprep.mubr.msk.f32.mxu0 %vm405_vm2, %v7891_v57  ;;  %v10430_v57 = vld [vmem:[#allocation17_spill] sm:$0xff]  ;;  %v2748_v46 = vrot.slane %v8367_v25, 1 }
  0xb5   :  { %6375 = vmatprep.mubr.msk.f32.mxu1 %vm405_vm2, %v7884_v10  ;;  %v10429_v10 = vld [vmem:[#allocation29_spill] sm:$0xff]  ;;  %v10431_v4 = vrot.slane %v10430_v57, 5  ;;  %v10432_v6 = vrot.slane %v10430_v57, 7 }
  0xb6   :  { %v2749_v18 = vsel %vm2733_vm5, %v2747_v27, %v2748_v46 }
  0xb7   :  { %6474 = vmatmul.mubr.msk.f32.gmra.mxu0 %vm405_vm2, %v1556_v16  ;;  %v263_v38 = vsel %vm142_vm3, %v10431_v4, %v262_v32  ;;  %v1560_v47 = vsel %vm1439_vm4, %v10432_v6, %v1559_v1  ;;  %v8396_v16 = vld [vmem:[%s10250_s0 + $0x48] sm:$0xff]  ;;  %v8419_v6 = vld [vmem:[%s10250_s0 + $0x50] sm:$0xff] }
  0xb8   :  { %6376 = vmatmul.mubr.msk.f32.gmra.mxu1 %vm405_vm2, %v259_v60  ;;  %6476 = vmatprep.mubr.msk.f32.mxu0 %vm405_vm2, %v10429_v10  ;;  %v8390_v60 = vld [vmem:[%s10250_s0 + $0x40] sm:$0xff]  ;;  %10444 = vst [vmem:[#allocation20_spill] sm:$0xff] %v8396_v16  ;;  %v2752_v61 = vrot.slane %v8396_v16, 1  ;;  %v2750_v10 = vsel %vm2733_vm5, %v2748_v46, %v8302_v26  ;;  %10447 = vst [vmem:[#allocation3_spill] sm:$0xff] %v8419_v6 }
  0xb9   :  { %6378 = vmatprep.mubr.msk.f32.mxu1 %vm405_vm2, %v7909_v55  ;;  %v10434_v55 = vrot.slane %v7500_v50, 5  ;;  %v2751_v41 = vrot.slane %v8390_v60, 1  ;;  %v8506_v46 = vld [vmem:[%s10250_s0 + $0x80] sm:$0xff] }
  0xba   :  { %10459 = vst [vmem:[#allocation28_spill] sm:$0xff] %v8506_v46 }
  0xbb   :  { %6477 = vmatmul.mubr.msk.f32.gmra.mxu0 %vm405_vm2, %v1560_v47  ;;  %v267_v12 = vsel %vm142_vm3, %v10434_v55, %v266_v23  ;;  %v2755_v47 = vrot.slane %v8419_v6, 1  ;;  %v2756_v23 = vrot.slane %v8425_v20, 1 }
  0xbc   :  { %6379 = vmatmul.mubr.msk.f32.gmra.mxu1 %vm405_vm2, %v263_v38  ;;  %6479 = vmatprep.mubr.msk.f32.mxu0 %vm405_vm2, %v7932_v5  ;;  %v8286_v5 = vld [vmem:[%s10250_s0 + $0x8] sm:$0xff]  ;;  %v2753_v38 = vsel %vm2733_vm5, %v2751_v41, %v2752_v61 }
  0xbd   :  { %6381 = vmatprep.mubr.msk.f32.mxu1 %vm405_vm2, %v7926_v13  ;;  %v2734_v13 = vrot.slane %v8280_v36, 1  ;;  %v2735_v50 = vrot.slane %v8286_v5, 1  ;;  %v2757_v40 = vsel %vm2733_vm5, %v2755_v47, %v2756_v23  ;;  %v2758_v58 = vsel %vm2733_vm5, %v2756_v23, %v8302_v26 }
  0xbf   :  { %6480 = vmatmul.mubr.msk.f32.gmra.mxu0 %vm405_vm2, %v1564_v22  ;;  %v2736_v45 = vsel %vm2733_vm5, %v2734_v13, %v2735_v50  ;;  %v2738_v3 = vsel %vm2733_vm5, %v2735_v50, %v8302_v26  ;;  %v8454_v13 = vld [vmem:[%s10250_s0 + $0x68] sm:$0xff] }
  0xc0   :  { %6382 = vmatmul.mubr.msk.f32.gmra.mxu1 %vm405_vm2, %v267_v12  ;;  %6482 = vmatprep.mubr.msk.f32.mxu0 %vm405_vm2, %v7954_v21  ;;  %v2754_v12 = vsel %vm2733_vm5, %v2752_v61, %v8302_v26  ;;  %10452 = vst [vmem:[#allocation6_spill] sm:$0xff] %v8454_v13  ;;  %v2760_v50 = vrot.slane %v8454_v13, 1 }
  0xc1   :  { %6384 = vmatprep.mubr.msk.f32.mxu1 %vm405_vm2, %v7948_v15  ;;  %v8308_v15 = vld [vmem:[%s10250_s0 + $0x10] sm:$0xff] }
  0xc2   :  { %v2739_v21 = vrot.slane %v8308_v15, 1 }
  0xc3   :  { %6483 = vmatmul.mubr.msk.f32.gmra.mxu0 %vm405_vm2, %v1568_v56 }
  0xc4   :  { %6385 = vmatmul.mubr.msk.f32.gmra.mxu1 %vm405_vm2, %v271_v7  ;;  %6585 = vmatprep.mubr.msk.f32.mxu0 %vm405_vm2, %v2736_v45  ;;  %v2741_v31 = vsel %vm2733_vm5, %v2739_v21, %v2740_v17  ;;  %v2761_v21 = vsel %vm2733_vm5, %v2759_v37, %v2760_v50  ;;  %v8477_v17 = vld [vmem:[%s10250_s0 + $0x70] sm:$0xff] }
  0xc5   :  { %6487 = vmatprep.mubr.msk.f32.mxu1 %vm405_vm2, %v8280_v36  ;;  %10455 = vst [vmem:[#allocation11_spill] sm:$0xff] %v8477_v17 }
  0xc7   :  { %v8337_v30 = vpop.f32.mrf.mxu0  ;;  %6586 = vmatmul.mubr.msk.f32.vlgmr.msra.gmra.mxu0 %vm405_vm2, %v2738_v3  ;;  %v2763_v3 = vrot.slane %v8477_v17, 1 }
  0xc8   :  { %v8339_v63 = vpop.f32.mrf.mxu1  ;;  %6488 = vmatmul.mubr.msk.f32.vlgmr.msra.gmra.mxu1 %vm405_vm2, %v8286_v5  ;;  %6780 = vmatpush3.msk.msra.mxu0 %vm534_vm0, %v10441_v43  ;;  %v2762_v43 = vsel %vm2733_vm5, %v2760_v50, %v8302_v26  ;;  %v6902_v50 = vld [vmem:[%s10250_s0 + $0x98] sm:$0xff] }
  0xc9   :  { %6682 = vmatpush3.msk.msra.mxu1 %vm534_vm0, %v10440_v34  ;;  %v8350_v0 = vpop.f32.mrf.mxu0  ;;  %6490 = vmatprep.mubr.msk.f32.mxu1 %vm405_vm2, %v8308_v15  ;;  %v2765_v27 = vsel %vm2733_vm5, %v2763_v3, %v2764_v51 }
  0xca   :  { %v8352_v53 = vpop.f32.mrf.mxu1  ;;  %6588 = vmatprep.mubr.msk.f32.mxu0 %vm405_vm2, %v2741_v31 }
  0xcb   :  { %v8370_v2 = vpop.f32.mrf.mxu0  ;;  %6589 = vmatmul.mubr.msk.f32.gmra.mxu0 %vm405_vm2, %v2742_v19 }
  0xcc   :  { %v8372_v9 = vpop.f32.mrf.mxu1  ;;  %6491 = vmatmul.mubr.msk.f32.gmra.mxu1 %vm405_vm2, %v8314_v33  ;;  %6591 = vmatprep.mubr.msk.f32.mxu0 %vm405_vm2, %v2745_v35 }
  0xcd   :  { %10442 = vst [vmem:[#allocation16_spill] sm:$0xff] %v8372_v9  ;;  %6493 = vmatprep.mubr.msk.f32.mxu1 %vm405_vm2, %v8327_v49  ;;  %v8382_v11 = vpop.f32.mrf.mxu0  ;;  %v6918_v9 = vld [vmem:[%s10250_s0 + $0x130] sm:$0xff] }
  0xce   :  { %v8384_v62 = vpop.f32.mrf.mxu1 }
  0xcf   :  { %10443 = vst [vmem:[#allocation18_spill] sm:$0xff] %v8384_v62  ;;  %v8399_v32 = vpop.f32.mrf.mxu0  ;;  %6592 = vmatmul.mubr.msk.f32.gmra.mxu0 %vm405_vm2, %v2746_v24  ;;  %v2767_v24 = vrot.slane %v8506_v46, 1 }
  0xd0   :  { %v8401_v1 = vpop.f32.mrf.mxu1  ;;  %6494 = vmatmul.mubr.msk.f32.gmra.mxu1 %vm405_vm2, %v8333_v8  ;;  %6594 = vmatprep.mubr.msk.f32.mxu0 %vm405_vm2, %v2749_v18  ;;  %v8512_v18 = vld [vmem:[%s10250_s0 + $0x88] sm:$0xff] }
  0xd1   :  { %10445 = vst [vmem:[#allocation22_spill] sm:$0xff] %v8401_v1  ;;  %6496 = vmatprep.mubr.msk.f32.mxu1 %vm405_vm2, %v8361_v54  ;;  %v8411_v57 = vpop.f32.mrf.mxu0  ;;  %10460 = vst [vmem:[#allocation12_spill] sm:$0xff] %v8512_v18  ;;  %v2768_v41 = vrot.slane %v8512_v18, 1 }
  0xd2   :  { %v8413_v4 = vpop.f32.mrf.mxu1 }
  0xd3   :  { %10446 = vst [vmem:[#allocation2_spill] sm:$0xff] %v8413_v4  ;;  %v8428_v44 = vpop.f32.mrf.mxu0  ;;  %6595 = vmatmul.mubr.msk.f32.gmra.mxu0 %vm405_vm2, %v2750_v10 }
  0xd4   :  { %v8430_v55 = vpop.f32.mrf.mxu1  ;;  %6497 = vmatmul.mubr.msk.f32.gmra.mxu1 %vm405_vm2, %v8367_v25  ;;  %6597 = vmatprep.mubr.msk.f32.mxu0 %vm405_vm2, %v2753_v38  ;;  %v2766_v38 = vsel %vm2733_vm5, %v2764_v51, %v8302_v26  ;;  %v2770_v51 = vsel %vm2733_vm5, %v2768_v41, %v8302_v26 }
  0xd5   :  { %10449 = vst [vmem:[#allocation4_spill] sm:$0xff] %v8430_v55  ;;  %6499 = vmatprep.mubr.msk.f32.mxu1 %vm405_vm2, %v8390_v60  ;;  %v8440_v14 = vpop.f32.mrf.mxu0 }
  0xd6   :  { %v8442_v22 = vpop.f32.mrf.mxu1 }
  0xd7   :  { %10450 = vst [vmem:[#allocation7_spill] sm:$0xff] %v8442_v22  ;;  %v8457_v29 = vpop.f32.mrf.mxu0  ;;  %6598 = vmatmul.mubr.msk.f32.gmra.mxu0 %vm405_vm2, %v2754_v12  ;;  %v2769_v12 = vsel %vm2733_vm5, %v2767_v24, %v2768_v41 }
  0xd8   :  { %v8459_v7 = vpop.f32.mrf.mxu1  ;;  %6500 = vmatmul.mubr.msk.f32.gmra.mxu1 %vm405_vm2, %v8396_v16  ;;  %6600 = vmatprep.mubr.msk.f32.mxu0 %vm405_vm2, %v2757_v40  ;;  %v6901_v40 = vld [vmem:[%s10250_s0 + $0x90] sm:$0xff] }
  0xd9   :  { %10453 = vst [vmem:[#allocation8_spill] sm:$0xff] %v8459_v7  ;;  %6502 = vmatprep.mubr.msk.f32.mxu1 %vm405_vm2, %v8419_v6  ;;  %v8469_v56 = vpop.f32.mrf.mxu0  ;;  %v2771_v37 = vrot.slane %v6901_v40, 1 }
  0xda   :  { %v8471_v45 = vpop.f32.mrf.mxu1 }
  0xdb   :  { %10454 = vst [vmem:[#allocation9_spill] sm:$0xff] %v8471_v45  ;;  %v8486_v31 = vpop.f32.mrf.mxu0  ;;  %6601 = vmatmul.mubr.msk.f32.gmra.mxu0 %vm405_vm2, %v2758_v58  ;;  %v2772_v58 = vrot.slane %v6902_v50, 1 }
  0xdc   :  { %v8488_v34 = vpop.f32.mrf.mxu1  ;;  %6503 = vmatmul.mubr.msk.f32.gmra.mxu1 %vm405_vm2, %v8425_v20  ;;  %6603 = vmatprep.mubr.msk.f32.mxu0 %vm405_vm2, %v2761_v21 }
  0xdd   :  { %10457 = vst [vmem:[#allocation10_spill] sm:$0xff] %v8488_v34  ;;  %6505 = vmatprep.mubr.msk.f32.mxu1 %vm405_vm2, %v8448_v48  ;;  %v8498_v19 = vpop.f32.mrf.mxu0  ;;  %v2773_v24 = vsel %vm2733_vm5, %v2771_v37, %v2772_v58  ;;  %v2774_v41 = vsel %vm2733_vm5, %v2772_v58, %v8302_v26 }
  0xde   :  { %v8500_v35 = vpop.f32.mrf.mxu1 }
  0xdf   :  { %10458 = vst [vmem:[#allocation13_spill] sm:$0xff] %v8500_v35  ;;  %v8515_v61 = vpop.f32.mrf.mxu0  ;;  %6604 = vmatmul.mubr.msk.f32.gmra.mxu0 %vm405_vm2, %v2762_v43 }
  0xe0   :  { %v8517_v10 = vpop.f32.mrf.mxu1  ;;  %6506 = vmatmul.mubr.msk.f32.gmra.mxu1 %vm405_vm2, %v8454_v13  ;;  %6606 = vmatprep.mubr.msk.f32.mxu0 %vm405_vm2, %v2765_v27 }
  0xe1   :  { %10461 = vst [vmem:[#allocation14_spill] sm:$0xff] %v8517_v10  ;;  %6508 = vmatprep.mubr.msk.f32.mxu1 %vm405_vm2, %v8477_v17  ;;  %v8527_v47 = vpop.f32.mrf.mxu0 }
  0xe2   :  { %v8529_v23 = vpop.f32.mrf.mxu1 }
  0xe3   :  { %10462 = vst [vmem:[#allocation15_spill] sm:$0xff] %v8529_v23  ;;  %v8538_v21 = vpop.f32.mrf.mxu0  ;;  %6607 = vmatmul.mubr.msk.f32.gmra.mxu0 %vm405_vm2, %v2766_v38  ;;  %v6904_v38 = vld [vmem:[%s10250_s0 + $0xa8] sm:$0xff] }
  0xe4   :  { %v8540_v3 = vpop.f32.mrf.mxu1  ;;  %6509 = vmatmul.mubr.msk.f32.gmra.mxu1 %vm405_vm2, %v8483_v28  ;;  %6609 = vmatprep.mubr.msk.f32.mxu0 %vm405_vm2, %v2769_v12  ;;  %v2776_v10 = vrot.slane %v6904_v38, 1 }
  0xe5   :  { %10463 = vst [vmem:[#allocation19_spill] sm:$0xff] %v8540_v3  ;;  %6511 = vmatprep.mubr.msk.f32.mxu1 %vm405_vm2, %v8506_v46  ;;  %v8550_v43 = vpop.f32.mrf.mxu0  ;;  %v6903_v3 = vld [vmem:[%s10250_s0 + $0xa0] sm:$0xff] }
  0xe6   :  { %v8552_v27 = vpop.f32.mrf.mxu1  ;;  %v2775_v23 = vrot.slane %v6903_v3, 1 }
  0xe7   :  { %10464 = vst [vmem:[#allocation29_spill] sm:$0xff] %v8552_v27  ;;  %v8561_v12 = vpop.f32.mrf.mxu0  ;;  %6610 = vmatmul.mubr.msk.f32.gmra.mxu0 %vm405_vm2, %v2770_v51 }
  0xe8   :  { %v8563_v35 = vpop.f32.mrf.mxu1  ;;  %6512 = vmatmul.mubr.msk.f32.gmra.mxu1 %vm405_vm2, %v8512_v18  ;;  %6612 = vmatprep.mubr.msk.f32.mxu0 %vm405_vm2, %v2773_v24  ;;  %v2777_v34 = vsel %vm2733_vm5, %v2775_v23, %v2776_v10  ;;  %v2778_v23 = vsel %vm2733_vm5, %v2776_v10, %v8302_v26 }
  0xe9   :  { %10465 = vst [vmem:[#allocation17_spill] sm:$0xff] %v8563_v35  ;;  %6514 = vmatprep.mubr.msk.f32.mxu1 %vm405_vm2, %v6901_v40  ;;  %v8572_v37 = vpop.f32.mrf.mxu0  ;;  %v6905_v35 = vld [vmem:[%s10250_s0 + $0xb0] sm:$0xff]  ;;  %v6906_v40 = vld [vmem:[%s10250_s0 + $0xb8] sm:$0xff] }
  0xea   :  { %v8574_v27 = vpop.f32.mrf.mxu1  ;;  %v2779_v18 = vrot.slane %v6905_v35, 1  ;;  %v2780_v51 = vrot.slane %v6906_v40, 1 }
  0xeb   :  { %10466 = vst [vmem:[#allocation21_spill] sm:$0xff] %v8574_v27  ;;  %v8583_v24 = vpop.f32.mrf.mxu0  ;;  %6613 = vmatmul.mubr.msk.f32.gmra.mxu0 %vm405_vm2, %v2774_v41 }
  0xec   :  { %v8585_v46 = vpop.f32.mrf.mxu1  ;;  %6515 = vmatmul.mubr.msk.f32.gmra.mxu1 %vm405_vm2, %v6902_v50  ;;  %6615 = vmatprep.mubr.msk.f32.mxu0 %vm405_vm2, %v2777_v34  ;;  %v2781_v45 = vsel %vm2733_vm5, %v2779_v18, %v2780_v51  ;;  %v2782_v18 = vsel %vm2733_vm5, %v2780_v51, %v8302_v26 }
  0xed   :  { %10467 = vst [vmem:[#allocation23_spill] sm:$0xff] %v8585_v46  ;;  %6517 = vmatprep.mubr.msk.f32.mxu1 %vm405_vm2, %v6903_v3  ;;  %v8593_v58 = vpop.f32.mrf.mxu0  ;;  %v6907_v46 = vld [vmem:[%s10250_s0 + $0xc0] sm:$0xff]  ;;  %v6908_v3 = vld [vmem:[%s10250_s0 + $0xc8] sm:$0xff] }
  0xee   :  { %v8595_v27 = vpop.f32.mrf.mxu1  ;;  %v2783_v50 = vrot.slane %v6907_v46, 1  ;;  %v2784_v41 = vrot.slane %v6908_v3, 1 }
  0xef   :  { %10468 = vst [vmem:[#allocation24_spill] sm:$0xff] %v8595_v27  ;;  %v8604_v34 = vpop.f32.mrf.mxu0  ;;  %6616 = vmatmul.mubr.msk.f32.gmra.mxu0 %vm405_vm2, %v2778_v23 }
  0xf0   :  { %v8606_v28 = vpop.f32.mrf.mxu1  ;;  %6518 = vmatmul.mubr.msk.f32.gmra.mxu1 %vm405_vm2, %v6904_v38  ;;  %6618 = vmatprep.mubr.msk.f32.mxu0 %vm405_vm2, %v2781_v45  ;;  %v2785_v17 = vsel %vm2733_vm5, %v2783_v50, %v2784_v41  ;;  %v2786_v51 = vsel %vm2733_vm5, %v2784_v41, %v8302_v26 }
  0xf1   :  { %10469 = vst [vmem:[#allocation25_spill] sm:$0xff] %v8606_v28  ;;  %6520 = vmatprep.mubr.msk.f32.mxu1 %vm405_vm2, %v6905_v35  ;;  %v8614_v10 = vpop.f32.mrf.mxu0  ;;  %v6909_v28 = vld [vmem:[%s10250_s0 + $0xd0] sm:$0xff]  ;;  %v6910_v35 = vld [vmem:[%s10250_s0 + $0xd8] sm:$0xff] }
  0xf2   :  { %v8616_v27 = vpop.f32.mrf.mxu1  ;;  %v2787_v38 = vrot.slane %v6909_v28, 1  ;;  %v2788_v23 = vrot.slane %v6910_v35, 1 }
  0xf3   :  { %10470 = vst [vmem:[#allocation30_spill] sm:$0xff] %v8616_v27  ;;  %v8625_v45 = vpop.f32.mrf.mxu0  ;;  %6619 = vmatmul.mubr.msk.f32.gmra.mxu0 %vm405_vm2, %v2782_v18 }
  0xf4   :  { %v8627_v7 = vpop.f32.mrf.mxu1  ;;  %6521 = vmatmul.mubr.msk.f32.gmra.mxu1 %vm405_vm2, %v6906_v40  ;;  %6621 = vmatprep.mubr.msk.f32.mxu0 %vm405_vm2, %v2785_v17  ;;  %v2789_v22 = vsel %vm2733_vm5, %v2787_v38, %v2788_v23  ;;  %v2790_v41 = vsel %vm2733_vm5, %v2788_v23, %v8302_v26 }
  0xf5   :  { %10471 = vst [vmem:[#allocation31_spill] sm:$0xff] %v8627_v7  ;;  %6523 = vmatprep.mubr.msk.f32.mxu1 %vm405_vm2, %v6907_v46  ;;  %v8635_v50 = vpop.f32.mrf.mxu0  ;;  %v6911_v7 = vld [vmem:[%s10250_s0 + $0xe0] sm:$0xff]  ;;  %v6912_v46 = vld [vmem:[%s10250_s0 + $0xe8] sm:$0xff] }
  0xf6   :  { %v8637_v27 = vpop.f32.mrf.mxu1  ;;  %v2791_v40 = vrot.slane %v6911_v7, 1  ;;  %v2792_v18 = vrot.slane %v6912_v46, 1 }
  0xf7   :  { %10472 = vst [vmem:[#allocation32_spill] sm:$0xff] %v8637_v27  ;;  %v8646_v17 = vpop.f32.mrf.mxu0  ;;  %6622 = vmatmul.mubr.msk.f32.gmra.mxu0 %vm405_vm2, %v2786_v51 }
  0xf8   :  { %v8648_v55 = vpop.f32.mrf.mxu1  ;;  %6524 = vmatmul.mubr.msk.f32.gmra.mxu1 %vm405_vm2, %v6908_v3  ;;  %6624 = vmatprep.mubr.msk.f32.mxu0 %vm405_vm2, %v2789_v22  ;;  %v2793_v13 = vsel %vm2733_vm5, %v2791_v40, %v2792_v18  ;;  %v2794_v23 = vsel %vm2733_vm5, %v2792_v18, %v8302_v26 }
  0xf9   :  { %10473 = vst [vmem:[#allocation33_spill] sm:$0xff] %v8648_v55  ;;  %6526 = vmatprep.mubr.msk.f32.mxu1 %vm405_vm2, %v6909_v28  ;;  %v8656_v38 = vpop.f32.mrf.mxu0  ;;  %v6913_v55 = vld [vmem:[%s10250_s0 + $0xf0] sm:$0xff]  ;;  %v6914_v28 = vld [vmem:[%s10250_s0 + $0xf8] sm:$0xff] }
  0xfa   :  { %v8658_v27 = vpop.f32.mrf.mxu1  ;;  %v2795_v3 = vrot.slane %v6913_v55, 1  ;;  %v2796_v51 = vrot.slane %v6914_v28, 1 }
  0xfb   :  { %10474 = vst [vmem:[#allocation34_spill] sm:$0xff] %v8658_v27  ;;  %v8667_v22 = vpop.f32.mrf.mxu0  ;;  %6625 = vmatmul.mubr.msk.f32.gmra.mxu0 %vm405_vm2, %v2790_v41  ;;  %v2800_v41 = vrot.slane %v8053_v42, 1 }
  0xfc   :  { %v8669_v48 = vpop.f32.mrf.mxu1  ;;  %6527 = vmatmul.mubr.msk.f32.gmra.mxu1 %vm405_vm2, %v6910_v35  ;;  %6627 = vmatprep.mubr.msk.f32.mxu0 %vm405_vm2, %v2793_v13  ;;  %v2797_v4 = vsel %vm2733_vm5, %v2795_v3, %v2796_v51  ;;  %v2798_v13 = vsel %vm2733_vm5, %v2796_v51, %v8302_v26 }
  0xfd   :  { %10475 = vst [vmem:[#allocation35_spill] sm:$0xff] %v8669_v48  ;;  %6529 = vmatprep.mubr.msk.f32.mxu1 %vm405_vm2, %v6911_v7  ;;  %v8677_v40 = vpop.f32.mrf.mxu0  ;;  %v6915_v48 = vld [vmem:[%s10250_s0 + $0x100] sm:$0xff] }
  0xfe   :  { %v8679_v27 = vpop.f32.mrf.mxu1  ;;  %v2799_v35 = vrot.slane %v6915_v48, 1 }
  0xff   :  { %10476 = vst [vmem:[#allocation36_spill] sm:$0xff] %v8679_v27  ;;  %v8686_v20 = vpop.f32.mrf.mxu0  ;;  %6628 = vmatmul.mubr.msk.f32.gmra.mxu0 %vm405_vm2, %v2794_v23  ;;  %v2804_v23 = vrot.slane %v8072_v59, 1 }
 0x100   :  { %v8688_v7 = vpop.f32.mrf.mxu1  ;;  %6530 = vmatmul.mubr.msk.f32.gmra.mxu1 %vm405_vm2, %v6912_v46  ;;  %6630 = vmatprep.mubr.msk.f32.mxu0 %vm405_vm2, %v2797_v4  ;;  %v2801_v27 = vsel %vm2733_vm5, %v2799_v35, %v2800_v41  ;;  %v2802_v4 = vsel %vm2733_vm5, %v2800_v41, %v8302_v26 }
 0x101   :  { %10477 = vst [vmem:[#allocation37_spill] sm:$0xff] %v8688_v7  ;;  %6532 = vmatprep.mubr.msk.f32.mxu1 %vm405_vm2, %v6913_v55  ;;  %v8696_v18 = vpop.f32.mrf.mxu0  ;;  %v6916_v7 = vld [vmem:[%s10250_s0 + $0x110] sm:$0xff]  ;;  %v2806_v41 = vsel %vm2733_vm5, %v2804_v23, %v8302_v26 }
 0x102   :  { %v8698_v3 = vpop.f32.mrf.mxu1  ;;  %v2803_v46 = vrot.slane %v6916_v7, 1 }
 0x103   :  { %10478 = vst [vmem:[#allocation38_spill] sm:$0xff] %v8698_v3  ;;  %v8705_v6 = vpop.f32.mrf.mxu0  ;;  %6631 = vmatmul.mubr.msk.f32.gmra.mxu0 %vm405_vm2, %v2798_v13  ;;  %v2808_v13 = vrot.slane %v8091_v39, 1 }
 0x104   :  { %v8707_v55 = vpop.f32.mrf.mxu1  ;;  %6533 = vmatmul.mubr.msk.f32.gmra.mxu1 %vm405_vm2, %v6914_v28  ;;  %6633 = vmatprep.mubr.msk.f32.mxu0 %vm405_vm2, %v2801_v27  ;;  %v2805_v3 = vsel %vm2733_vm5, %v2803_v46, %v2804_v23 }
 0x105   :  { %10479 = vst [vmem:[#allocation39_spill] sm:$0xff] %v8707_v55  ;;  %6535 = vmatprep.mubr.msk.f32.mxu1 %vm405_vm2, %v6915_v48  ;;  %v8715_v51 = vpop.f32.mrf.mxu0  ;;  %v6917_v55 = vld [vmem:[%s10250_s0 + $0x120] sm:$0xff] }
 0x106   :  { %v8717_v35 = vpop.f32.mrf.mxu1  ;;  %v2807_v28 = vrot.slane %v6917_v55, 1 }
 0x107   :  { %10480 = vst [vmem:[#allocation40_spill] sm:$0xff] %v8717_v35  ;;  %v6391_v48 = vpop.f32.mrf.mxu0  ;;  %6634 = vmatmul.mubr.msk.f32.gmra.mxu0 %vm405_vm2, %v2802_v4 }
 0x108   :  { %v6293_v1 = vpop.f32.mrf.mxu1  ;;  %6536 = vmatmul.mubr.msk.f32.gmra.mxu1 %vm405_vm2, %v8053_v42  ;;  %6636 = vmatprep.mubr.msk.f32.mxu0 %vm405_vm2, %v2805_v3  ;;  %v2809_v62 = vsel %vm2733_vm5, %v2807_v28, %v2808_v13  ;;  %v2811_v42 = vrot.slane %v6918_v9, 1 }
 0x109   :  { %v1126_v27 = vadd.f32 %v6293_v1, %v8337_v30  ;;  %6538 = vmatprep.mubr.msk.f32.mxu1 %vm405_vm2, %v6916_v7  ;;  %v1768_v35 = vpop.f32.mrf.mxu0  ;;  %v6919_v30 = vld [vmem:[%s10250_s0 + $0x138] sm:$0xff] }
 0x10a   :  { %v1120_v46 = vpop.f32.mrf.mxu1  ;;  %v2812_v1 = vrot.slane %v6919_v30, 1 }
 0x10b   :  { %v8739_v7 = vadd.f32 %v6391_v48, %v1126_v27  ;;  %v1121_v3 = vadd.f32 %v1120_v46, %v8350_v0  ;;  %v6394_v23 = vpop.f32.mrf.mxu0  ;;  %6637 = vmatmul.mubr.msk.f32.gmra.mxu0 %vm405_vm2, %v2806_v41  ;;  %v2810_v48 = vsel %vm2733_vm5, %v2808_v13, %v8302_v26 }
 0x10c   :  { %v6296_v4 = vpop.f32.mrf.mxu1  ;;  %6539 = vmatmul.mubr.msk.f32.gmra.mxu1 %vm405_vm2, %v8072_v59  ;;  %6639 = vmatprep.mubr.msk.f32.mxu0 %vm405_vm2, %v2809_v62  ;;  %v2813_v46 = vsel %vm2733_vm5, %v2811_v42, %v2812_v1  ;;  %v6920_v59 = vld [vmem:[%s10250_s0 + $0x140] sm:$0xff] }
 0x10d   :  { %v8745_v28 = vadd.f32 %v1768_v35, %v1121_v3  ;;  %v1136_v16 = vadd.f32 %v6296_v4, %v8370_v2  ;;  %6541 = vmatprep.mubr.msk.f32.mxu1 %vm405_vm2, %v6917_v55  ;;  %v1778_v0 = vpop.f32.mrf.mxu0  ;;  %v2815_v41 = vrot.slane %v6920_v59, 1  ;;  %v6921_v2 = vld [vmem:[%s10250_s0 + $0x148] sm:$0xff] }
 0x10e   :  { %v1130_v27 = vpop.f32.mrf.mxu1  ;;  %v2816_v35 = vrot.slane %v6921_v2, 1 }
 0x10f   :  { %v8759_v55 = vadd.f32 %v6394_v23, %v1136_v16  ;;  %v1131_v62 = vadd.f32 %v1130_v27, %v8382_v11  ;;  %v6397_v13 = vpop.f32.mrf.mxu0  ;;  %6640 = vmatmul.mubr.msk.f32.gmra.mxu0 %vm405_vm2, %v2810_v48  ;;  %v2814_v16 = vsel %vm2733_vm5, %v2812_v1, %v8302_v26 }
 0x110   :  { %v6299_v3 = vpop.f32.mrf.mxu1  ;;  %6542 = vmatmul.mubr.msk.f32.gmra.mxu1 %vm405_vm2, %v8091_v39  ;;  %6642 = vmatprep.mubr.msk.f32.mxu0 %vm405_vm2, %v2813_v46  ;;  %v2817_v27 = vsel %vm2733_vm5, %v2815_v41, %v2816_v35  ;;  %v6922_v39 = vld [vmem:[%s10250_s0 + $0x150] sm:$0xff] }
 0x111   :  { %v8765_v42 = vadd.f32 %v1778_v0, %v1131_v62  ;;  %v1146_v4 = vadd.f32 %v6299_v3, %v8399_v32  ;;  %6544 = vmatprep.mubr.msk.f32.mxu1 %vm405_vm2, %v6918_v9  ;;  %v1788_v11 = vpop.f32.mrf.mxu0  ;;  %v2819_v48 = vrot.slane %v6922_v39, 1  ;;  %v6923_v32 = vld [vmem:[%s10250_s0 + $0x158] sm:$0xff] }
 0x112   :  { %v1140_v23 = vpop.f32.mrf.mxu1  ;;  %v2820_v0 = vrot.slane %v6923_v32, 1 }
 0x113   :  { %v8779_v9 = vadd.f32 %v6397_v13, %v1146_v4  ;;  %v1141_v46 = vadd.f32 %v1140_v23, %v8411_v57  ;;  %v6400_v1 = vpop.f32.mrf.mxu0  ;;  %6643 = vmatmul.mubr.msk.f32.gmra.mxu0 %vm405_vm2, %v2814_v16  ;;  %v2818_v13 = vsel %vm2733_vm5, %v2816_v35, %v8302_v26 }
 0x114   :  { %v6302_v62 = vpop.f32.mrf.mxu1  ;;  %6545 = vmatmul.mubr.msk.f32.gmra.mxu1 %vm405_vm2, %v6919_v30  ;;  %6645 = vmatprep.mubr.msk.f32.mxu0 %vm405_vm2, %v2817_v27  ;;  %v2821_v57 = vsel %vm2733_vm5, %v2819_v48, %v2820_v0  ;;  %v6924_v30 = vld [vmem:[%s10250_s0 + $0x160] sm:$0xff] }
 0x115   :  { %10481 = vst [vmem:[#allocation41_spill] sm:$0xff] %v8779_v9  ;;  %v8784_v41 = vadd.f32 %v1788_v11, %v1141_v46  ;;  %v1156_v3 = vadd.f32 %v6302_v62, %v8428_v44  ;;  %6547 = vmatprep.mubr.msk.f32.mxu1 %vm405_vm2, %v6920_v59  ;;  %v1798_v9 = vpop.f32.mrf.mxu0  ;;  %v2823_v16 = vrot.slane %v6924_v30, 1  ;;  %v6925_v44 = vld [vmem:[%s10250_s0 + $0x168] sm:$0xff]  ;;  %v2822_v62 = vsel %vm2733_vm5, %v2820_v0, %v8302_v26 }
 0x116   :  { %v1150_v4 = vpop.f32.mrf.mxu1  ;;  %v2824_v23 = vrot.slane %v6925_v44, 1 }
 0x117   :  { %v8798_v59 = vadd.f32 %v6400_v1, %v1156_v3  ;;  %v1151_v11 = vadd.f32 %v1150_v4, %v8440_v14  ;;  %v6403_v35 = vpop.f32.mrf.mxu0  ;;  %6646 = vmatmul.mubr.msk.f32.gmra.mxu0 %vm405_vm2, %v2818_v13 }
 0x118   :  { %v6305_v27 = vpop.f32.mrf.mxu1  ;;  %6548 = vmatmul.mubr.msk.f32.gmra.mxu1 %vm405_vm2, %v6921_v2  ;;  %6648 = vmatprep.mubr.msk.f32.mxu0 %vm405_vm2, %v2821_v57  ;;  %v2825_v14 = vsel %vm2733_vm5, %v2823_v16, %v2824_v23  ;;  %v6926_v2 = vld [vmem:[%s10250_s0 + $0x170] sm:$0xff] }
 0x119   :  { %v8803_v48 = vadd.f32 %v1798_v9, %v1151_v11  ;;  %v1166_v46 = vadd.f32 %v6305_v27, %v8457_v29  ;;  %6550 = vmatprep.mubr.msk.f32.mxu1 %vm405_vm2, %v6922_v39  ;;  %v1808_v3 = vpop.f32.mrf.mxu0  ;;  %v2827_v13 = vrot.slane %v6926_v2, 1  ;;  %v6927_v29 = vld [vmem:[%s10250_s0 + $0x178] sm:$0xff]  ;;  %v2826_v27 = vsel %vm2733_vm5, %v2824_v23, %v8302_v26 }
 0x11a   :  { %v1160_v1 = vpop.f32.mrf.mxu1  ;;  %v2828_v9 = vrot.slane %v6927_v29, 1 }
 0x11b   :  { %v8817_v39 = vadd.f32 %v6403_v35, %v1166_v46  ;;  %v1161_v4 = vadd.f32 %v1160_v1, %v8469_v56  ;;  %v6406_v0 = vpop.f32.mrf.mxu0  ;;  %6649 = vmatmul.mubr.msk.f32.gmra.mxu0 %vm405_vm2, %v2822_v62 }
 0x11c   :  { %v6308_v57 = vpop.f32.mrf.mxu1  ;;  %6551 = vmatmul.mubr.msk.f32.gmra.mxu1 %vm405_vm2, %v6923_v32  ;;  %6651 = vmatprep.mubr.msk.f32.mxu0 %vm405_vm2, %v2825_v14  ;;  %v2829_v56 = vsel %vm2733_vm5, %v2827_v13, %v2828_v9  ;;  %v6928_v32 = vld [vmem:[%s10250_s0 + $0x180] sm:$0xff] }
 0x11d   :  { %v8822_v16 = vadd.f32 %v1808_v3, %v1161_v4  ;;  %v1176_v11 = vadd.f32 %v6308_v57, %v8486_v31  ;;  %6553 = vmatprep.mubr.msk.f32.mxu1 %vm405_vm2, %v6924_v30  ;;  %v1818_v46 = vpop.f32.mrf.mxu0  ;;  %v2831_v62 = vrot.slane %v6928_v32, 1  ;;  %v6929_v31 = vld [vmem:[%s10250_s0 + $0x188] sm:$0xff]  ;;  %v2830_v57 = vsel %vm2733_vm5, %v2828_v9, %v8302_v26 }
 0x11e   :  { %v1170_v35 = vpop.f32.mrf.mxu1  ;;  %v2832_v1 = vrot.slane %v6929_v31, 1 }
 0x11f   :  { %v8836_v30 = vadd.f32 %v6406_v0, %v1176_v11  ;;  %v1171_v3 = vadd.f32 %v1170_v35, %v8498_v19  ;;  %v6409_v23 = vpop.f32.mrf.mxu0  ;;  %6652 = vmatmul.mubr.msk.f32.gmra.mxu0 %vm405_vm2, %v2826_v27 }
 0x120   :  { %v6311_v14 = vpop.f32.mrf.mxu1  ;;  %6554 = vmatmul.mubr.msk.f32.gmra.mxu1 %vm405_vm2, %v6925_v44  ;;  %6654 = vmatprep.mubr.msk.f32.mxu0 %vm405_vm2, %v2829_v56  ;;  %v2833_v19 = vsel %vm2733_vm5, %v2831_v62, %v2832_v1  ;;  %v6930_v44 = vld [vmem:[%s10250_s0 + $0x190] sm:$0xff] }
 0x121   :  { %v8841_v13 = vadd.f32 %v1818_v46, %v1171_v3  ;;  %v1186_v4 = vadd.f32 %v6311_v14, %v8515_v61  ;;  %6556 = vmatprep.mubr.msk.f32.mxu1 %vm405_vm2, %v6926_v2  ;;  %v1828_v11 = vpop.f32.mrf.mxu0  ;;  %v2835_v27 = vrot.slane %v6930_v44, 1  ;;  %v6931_v61 = vld [vmem:[%s10250_s0 + $0x198] sm:$0xff]  ;;  %v2834_v14 = vsel %vm2733_vm5, %v2832_v1, %v8302_v26 }
 0x122   :  { %v1180_v0 = vpop.f32.mrf.mxu1  ;;  %v2836_v35 = vrot.slane %v6931_v61, 1 }
 0x123   :  { %v8855_v2 = vadd.f32 %v6409_v23, %v1186_v4  ;;  %v1181_v46 = vadd.f32 %v1180_v0, %v8527_v47  ;;  %v6412_v9 = vpop.f32.mrf.mxu0  ;;  %6655 = vmatmul.mubr.msk.f32.gmra.mxu0 %vm405_vm2, %v2830_v57 }
 0x124   :  { %v6314_v56 = vpop.f32.mrf.mxu1  ;;  %6557 = vmatmul.mubr.msk.f32.gmra.mxu1 %vm405_vm2, %v6927_v29  ;;  %6657 = vmatprep.mubr.msk.f32.mxu0 %vm405_vm2, %v2833_v19  ;;  %v2837_v47 = vsel %vm2733_vm5, %v2835_v27, %v2836_v35  ;;  %v6932_v29 = vld [vmem:[%s10250_s0 + $0x1a0] sm:$0xff] }
 0x125   :  { %v8860_v62 = vadd.f32 %v1828_v11, %v1181_v46  ;;  %v1196_v3 = vadd.f32 %v6314_v56, %v8538_v21  ;;  %6559 = vmatprep.mubr.msk.f32.mxu1 %vm405_vm2, %v6928_v32  ;;  %v1838_v4 = vpop.f32.mrf.mxu0  ;;  %v2839_v57 = vrot.slane %v6932_v29, 1  ;;  %v6933_v21 = vld [vmem:[%s10250_s0 + $0x1a8] sm:$0xff]  ;;  %v2838_v56 = vsel %vm2733_vm5, %v2836_v35, %v8302_v26 }
 0x126   :  { %v1190_v23 = vpop.f32.mrf.mxu1  ;;  %v2840_v0 = vrot.slane %v6933_v21, 1 }
 0x127   :  { %v8874_v32 = vadd.f32 %v6412_v9, %v1196_v3  ;;  %v1191_v11 = vadd.f32 %v1190_v23, %v8550_v43  ;;  %v6415_v1 = vpop.f32.mrf.mxu0  ;;  %6658 = vmatmul.mubr.msk.f32.gmra.mxu0 %vm405_vm2, %v2834_v14 }
 0x128   :  { %v6317_v19 = vpop.f32.mrf.mxu1  ;;  %6560 = vmatmul.mubr.msk.f32.gmra.mxu1 %vm405_vm2, %v6929_v31  ;;  %6660 = vmatprep.mubr.msk.f32.mxu0 %vm405_vm2, %v2837_v47  ;;  %v2841_v43 = vsel %vm2733_vm5, %v2839_v57, %v2840_v0  ;;  %v6934_v31 = vld [vmem:[%s10250_s0 + $0x1b0] sm:$0xff] }
 0x129   :  { %v8879_v27 = vadd.f32 %v1838_v4, %v1191_v11  ;;  %v1206_v46 = vadd.f32 %v6317_v19, %v8561_v12  ;;  %6562 = vmatprep.mubr.msk.f32.mxu1 %vm405_vm2, %v6930_v44  ;;  %v1848_v3 = vpop.f32.mrf.mxu0  ;;  %v2843_v14 = vrot.slane %v6934_v31, 1  ;;  %v6935_v12 = vld [vmem:[%s10250_s0 + $0x1b8] sm:$0xff]  ;;  %v2842_v19 = vsel %vm2733_vm5, %v2840_v0, %v8302_v26 }
 0x12a   :  { %v1200_v9 = vpop.f32.mrf.mxu1  ;;  %v2844_v23 = vrot.slane %v6935_v12, 1 }
 0x12b   :  { %v8893_v44 = vadd.f32 %v6415_v1, %v1206_v46  ;;  %v1201_v4 = vadd.f32 %v1200_v9, %v8572_v37  ;;  %v6418_v35 = vpop.f32.mrf.mxu0  ;;  %6661 = vmatmul.mubr.msk.f32.gmra.mxu0 %vm405_vm2, %v2838_v56 }
 0x12c   :  { %v6320_v47 = vpop.f32.mrf.mxu1  ;;  %6563 = vmatmul.mubr.msk.f32.gmra.mxu1 %vm405_vm2, %v6931_v61  ;;  %6663 = vmatprep.mubr.msk.f32.mxu0 %vm405_vm2, %v2841_v43  ;;  %v2845_v37 = vsel %vm2733_vm5, %v2843_v14, %v2844_v23  ;;  %v6936_v61 = vld [vmem:[%s10250_s0 + $0x1c0] sm:$0xff] }
 0x12d   :  { %v8898_v57 = vadd.f32 %v1848_v3, %v1201_v4  ;;  %v1216_v11 = vadd.f32 %v6320_v47, %v8583_v24  ;;  %6565 = vmatprep.mubr.msk.f32.mxu1 %vm405_vm2, %v6932_v29  ;;  %v1858_v46 = vpop.f32.mrf.mxu0  ;;  %v2847_v56 = vrot.slane %v6936_v61, 1  ;;  %v6937_v24 = vld [vmem:[%s10250_s0 + $0x1c8] sm:$0xff]  ;;  %v2846_v47 = vsel %vm2733_vm5, %v2844_v23, %v8302_v26 }
 0x12e   :  { %v1210_v1 = vpop.f32.mrf.mxu1  ;;  %v2848_v9 = vrot.slane %v6937_v24, 1 }
 0x12f   :  { %v8912_v29 = vadd.f32 %v6418_v35, %v1216_v11  ;;  %v1211_v3 = vadd.f32 %v1210_v1, %v8593_v58  ;;  %v6421_v0 = vpop.f32.mrf.mxu0  ;;  %6664 = vmatmul.mubr.msk.f32.gmra.mxu0 %vm405_vm2, %v2842_v19 }
 0x130   :  { %v6323_v43 = vpop.f32.mrf.mxu1  ;;  %6566 = vmatmul.mubr.msk.f32.gmra.mxu1 %vm405_vm2, %v6933_v21  ;;  %6666 = vmatprep.mubr.msk.f32.mxu0 %vm405_vm2, %v2845_v37  ;;  %v2849_v58 = vsel %vm2733_vm5, %v2847_v56, %v2848_v9  ;;  %v6938_v21 = vld [vmem:[%s10250_s0 + $0x1d0] sm:$0xff] }
 0x131   :  { %v8917_v14 = vadd.f32 %v1858_v46, %v1211_v3  ;;  %v1226_v4 = vadd.f32 %v6323_v43, %v8604_v34  ;;  %6568 = vmatprep.mubr.msk.f32.mxu1 %vm405_vm2, %v6934_v31  ;;  %v1868_v11 = vpop.f32.mrf.mxu0  ;;  %v2851_v19 = vrot.slane %v6938_v21, 1  ;;  %v6939_v34 = vld [vmem:[%s10250_s0 + $0x1d8] sm:$0xff]  ;;  %v2850_v43 = vsel %vm2733_vm5, %v2848_v9, %v8302_v26 }
 0x132   :  { %v1220_v35 = vpop.f32.mrf.mxu1  ;;  %v2852_v1 = vrot.slane %v6939_v34, 1 }
 0x133   :  { %v8931_v31 = vadd.f32 %v6421_v0, %v1226_v4  ;;  %v1221_v46 = vadd.f32 %v1220_v35, %v8614_v10  ;;  %v6424_v23 = vpop.f32.mrf.mxu0  ;;  %6667 = vmatmul.mubr.msk.f32.gmra.mxu0 %vm405_vm2, %v2846_v47 }
 0x134   :  { %v6326_v37 = vpop.f32.mrf.mxu1  ;;  %6569 = vmatmul.mubr.msk.f32.gmra.mxu1 %vm405_vm2, %v6935_v12  ;;  %6669 = vmatprep.mubr.msk.f32.mxu0 %vm405_vm2, %v2849_v58  ;;  %v2853_v10 = vsel %vm2733_vm5, %v2851_v19, %v2852_v1  ;;  %v6940_v12 = vld [vmem:[%s10250_s0 + $0x1e0] sm:$0xff] }
 0x135   :  { %v8936_v56 = vadd.f32 %v1868_v11, %v1221_v46  ;;  %v1236_v3 = vadd.f32 %v6326_v37, %v8625_v45  ;;  %6571 = vmatprep.mubr.msk.f32.mxu1 %vm405_vm2, %v6936_v61  ;;  %v1878_v4 = vpop.f32.mrf.mxu0  ;;  %v2855_v47 = vrot.slane %v6940_v12, 1  ;;  %v6941_v45 = vld [vmem:[%s10250_s0 + $0x1e8] sm:$0xff]  ;;  %v2854_v37 = vsel %vm2733_vm5, %v2852_v1, %v8302_v26 }
 0x136   :  { %v1230_v0 = vpop.f32.mrf.mxu1  ;;  %v2856_v35 = vrot.slane %v6941_v45, 1 }
 0x137   :  { %v8950_v61 = vadd.f32 %v6424_v23, %v1236_v3  ;;  %v1231_v11 = vadd.f32 %v1230_v0, %v8635_v50  ;;  %v6427_v9 = vpop.f32.mrf.mxu0  ;;  %6670 = vmatmul.mubr.msk.f32.gmra.mxu0 %vm405_vm2, %v2850_v43 }
 0x138   :  { %v6329_v58 = vpop.f32.mrf.mxu1  ;;  %6572 = vmatmul.mubr.msk.f32.gmra.mxu1 %vm405_vm2, %v6937_v24  ;;  %6672 = vmatprep.mubr.msk.f32.mxu0 %vm405_vm2, %v2853_v10  ;;  %v2857_v50 = vsel %vm2733_vm5, %v2855_v47, %v2856_v35  ;;  %v6942_v24 = vld [vmem:[%s10250_s0 + $0x1f0] sm:$0xff]  ;;  %v2858_v47 = vsel %vm2733_vm5, %v2856_v35, %v8302_v26 }
 0x139   :  { %10482 = vst [vmem:[#allocation42_spill] sm:$0xff] %v8950_v61  ;;  %v8955_v19 = vadd.f32 %v1878_v4, %v1231_v11  ;;  %v1246_v46 = vadd.f32 %v6329_v58, %v8646_v17  ;;  %6574 = vmatprep.mubr.msk.f32.mxu1 %vm405_vm2, %v6938_v21  ;;  %v1888_v3 = vpop.f32.mrf.mxu0  ;;  %v2859_v43 = vrot.slane %v6942_v24, 1  ;;  %v6943_v17 = vld [vmem:[%s10250_s0 + $0x1f8] sm:$0xff]  ;;  %v3446_v11 = vrot.slane %v8280_v36, 2 }
 0x13a   :  { %v1240_v23 = vpop.f32.mrf.mxu1  ;;  %v2860_v0 = vrot.slane %v6943_v17, 1  ;;  %v3447_v58 = vrot.slane %v8286_v5, 2 }
 0x13b   :  { %10483 = vst [vmem:[#allocation43_spill] sm:$0xff] %v8955_v19  ;;  %v8969_v21 = vadd.f32 %v6427_v9, %v1246_v46  ;;  %v1241_v4 = vadd.f32 %v1240_v23, %v8656_v38  ;;  %v6430_v1 = vpop.f32.mrf.mxu0  ;;  %6673 = vmatmul.mubr.msk.f32.gmra.mxu0 %vm405_vm2, %v2854_v37  ;;  %v4158_v19 = vrot.slane %v8280_v36, 3  ;;  %v4159_v38 = vrot.slane %v8286_v5, 3 }
 0x13c   :  { %v6332_v10 = vpop.f32.mrf.mxu1  ;;  %6575 = vmatmul.mubr.msk.f32.gmra.mxu1 %vm405_vm2, %v6939_v34  ;;  %6675 = vmatprep.mubr.msk.f32.mxu0 %vm405_vm2, %v2857_v50  ;;  %v2861_v35 = vsel %vm2733_vm5, %v2859_v43, %v2860_v0  ;;  %v3448_v5 = vsel %vm3445_vm6, %v3446_v11, %v3447_v58  ;;  %v8998_v50 = vrot.slane %v10439_v52, 3 }
 0x13d   :  { %v8979_v61 = vadd.f32 %v1888_v3, %v1241_v4  ;;  %v1256_v9 = vadd.f32 %v6332_v10, %v8667_v22  ;;  %6577 = vmatprep.mubr.msk.f32.mxu1 %vm405_vm2, %v6940_v12  ;;  %v1898_v46 = vpop.f32.mrf.mxu0  ;;  %v2862_v22 = vsel %vm2733_vm5, %v2860_v0, %v8302_v26  ;;  %v8995_v12 = vrot.slane %v10439_v52, 2 }
 0x13e   :  { %v1250_v34 = vpop.f32.mrf.mxu1  ;;  %v3451_v0 = vrot.slane %v8308_v15, 2  ;;  %v3452_v10 = vrot.slane %v8314_v33, 2  ;;  %v4164_v52 = vrot.slane %v8314_v33, 3  ;;  %v3456_v33 = vrot.slane %v8333_v8, 2 }
 0x13f   :  { %v8986_v37 = vadd.f32 %v6430_v1, %v1256_v9  ;;  %v1251_v36 = vadd.f32 %v1250_v34, %v8677_v40  ;;  %v6433_v3 = vpop.f32.mrf.mxu0  ;;  %6676 = vmatmul.mubr.msk.f32.gmra.mxu0 %vm405_vm2, %v2858_v47  ;;  %v4163_v1 = vrot.slane %v8308_v15, 3  ;;  %v4162_v9 = vsel %vm4157_vm7, %v4159_v38, %v8998_v50 }
 0x140   :  { %v6335_v23 = vpop.f32.mrf.mxu1  ;;  %6578 = vmatmul.mubr.msk.f32.gmra.mxu1 %vm405_vm2, %v6941_v45  ;;  %6678 = vmatprep.mubr.msk.f32.mxu0 %vm405_vm2, %v2861_v35  ;;  %v4160_v45 = vsel %vm4157_vm7, %v4158_v19, %v4159_v38  ;;  %v3450_v19 = vsel %vm3445_vm6, %v3447_v58, %v8995_v12  ;;  %v3455_v15 = vrot.slane %v8327_v49, 2  ;;  %v3453_v38 = vsel %vm3445_vm6, %v3451_v0, %v3452_v10 }
 0x141   :  { %v9000_v43 = vadd.f32 %v1898_v46, %v1251_v36  ;;  %v1266_v40 = vadd.f32 %v6335_v23, %v8686_v20  ;;  %6580 = vmatprep.mubr.msk.f32.mxu1 %vm405_vm2, %v6942_v24  ;;  %v1908_v26 = vpop.f32.mrf.mxu0  ;;  %v4168_v46 = vrot.slane %v8333_v8, 3  ;;  %v4165_v36 = vsel %vm4157_vm7, %v4163_v1, %v4164_v52 }
 0x142   :  { %v1260_v4 = vpop.f32.mrf.mxu1  ;;  %v4166_v8 = vsel %vm4157_vm7, %v4164_v52, %v8998_v50  ;;  %v3459_v0 = vrot.slane %v8361_v54, 2  ;;  %v4171_v1 = vrot.slane %v8361_v54, 3  ;;  %v4172_v52 = vrot.slane %v8367_v25, 3 }
 0x143   :  { %v9010_v47 = vadd.f32 %v6433_v3, %v1266_v40  ;;  %v1261_v20 = vadd.f32 %v1260_v4, %v8696_v18  ;;  %v6436_v24 = vpop.f32.mrf.mxu0  ;;  %6679 = vmatmul.mubr.msk.f32.gmra.mxu0 %vm405_vm2, %v2862_v22  ;;  %v3463_v54 = vrot.slane %v8390_v60, 2 }
 0x144   :  { %v6338_v11 = vpop.f32.mrf.mxu1  ;;  %6581 = vmatmul.mubr.msk.f32.gmra.mxu1 %vm405_vm2, %v6943_v17  ;;  %6781 = vmatprep.mubr.msk.f32.mxu0 %vm405_vm2, %v4160_v45  ;;  %v4167_v17 = vrot.slane %v8327_v49, 3  ;;  %v3454_v49 = vsel %vm3445_vm6, %v3452_v10, %v8995_v12  ;;  %v3460_v10 = vrot.slane %v8367_v25, 2 }
 0x145   :  { %v9021_v34 = vadd.f32 %v1908_v26, %v1261_v20  ;;  %v1276_v18 = vadd.f32 %v6338_v11, %v8705_v6  ;;  %6683 = vmatprep.mubr.msk.f32.mxu1 %vm405_vm2, %v3448_v5  ;;  %v1918_v35 = vpop.f32.mrf.mxu0  ;;  %v3457_v5 = vsel %vm3445_vm6, %v3455_v15, %v3456_v33  ;;  %v10484_v15 = vld [vmem:[#allocation20_spill] sm:$0xff] }
 0x146   :  { %v1270_v58 = vpop.f32.mrf.mxu1  ;;  %v3464_v25 = vrot.slane %v10484_v15, 2 }
 0x147   :  { %v9030_v23 = vadd.f32 %v6436_v24, %v1276_v18  ;;  %v1271_v3 = vadd.f32 %v1270_v58, %v8715_v51  ;;  %v6439_v6 = vpop.f32.mrf.mxu0  ;;  %6782 = vmatmul.mubr.msk.f32.vlgmr.msra.gmra.mxu0 %vm405_vm2, %v4162_v9  ;;  %v4169_v51 = vsel %vm4157_vm7, %v4167_v17, %v4168_v46  ;;  %v4170_v9 = vsel %vm4157_vm7, %v4168_v46, %v8998_v50  ;;  %v10485_v17 = vld [vmem:[#allocation16_spill] sm:$0xff] }
 0x148   :  { %v6341_v22 = vpop.f32.mrf.mxu1  ;;  %6684 = vmatmul.mubr.msk.f32.vlgmr.msra.gmra.mxu1 %vm405_vm2, %v3450_v19  ;;  %6784 = vmatprep.mubr.msk.f32.mxu0 %vm405_vm2, %v4165_v36  ;;  %v3458_v19 = vsel %vm3445_vm6, %v3456_v33, %v8995_v12  ;;  %v4175_v58 = vrot.slane %v8390_v60, 3  ;;  %v3461_v46 = vsel %vm3445_vm6, %v3459_v0, %v3460_v10  ;;  %v4173_v36 = vsel %vm4157_vm7, %v4171_v1, %v4172_v52 }
 0x149   :  { %v9040_v40 = vadd.f32 %v1918_v35, %v1271_v3  ;;  %v1286_v45 = vadd.f32 %v6341_v22, %v8339_v63  ;;  %6686 = vmatprep.mubr.msk.f32.mxu1 %vm405_vm2, %v3453_v38  ;;  %v1928_v26 = vpop.f32.mrf.mxu0  ;;  %v4176_v35 = vrot.slane %v10484_v15, 3  ;;  %v10486_v22 = vld [vmem:[#allocation18_spill] sm:$0xff]  ;;  %v3462_v60 = vsel %vm3445_vm6, %v3460_v10, %v8995_v12  ;;  %v10489_v10 = vld [vmem:[#allocation5_spill] sm:$0xff] }
 0x14a   :  { %v1280_v4 = vpop.f32.mrf.mxu1  ;;  %v10490_v15 = vld [vmem:[#allocation2_spill] sm:$0xff] }
 0x14b   :  { %v9050_v20 = vadd.f32 %v6439_v6, %v1286_v45  ;;  %v1281_v63 = vadd.f32 %v1280_v4, %v8352_v53  ;;  %v6442_v24 = vpop.f32.mrf.mxu0  ;;  %6785 = vmatmul.mubr.msk.f32.gmra.mxu0 %vm405_vm2, %v4166_v8  ;;  %v3465_v45 = vsel %vm3445_vm6, %v3463_v54, %v3464_v25  ;;  %v10487_v4 = vld [vmem:[#allocation22_spill] sm:$0xff]  ;;  %v4177_v0 = vsel %vm4157_vm7, %v4175_v58, %v4176_v35 }
 0x14c   :  { %v6344_v11 = vpop.f32.mrf.mxu1  ;;  %6687 = vmatmul.mubr.msk.f32.gmra.mxu1 %vm405_vm2, %v3454_v49  ;;  %6787 = vmatprep.mubr.msk.f32.mxu0 %vm405_vm2, %v4169_v51  ;;  %v3466_v58 = vsel %vm3445_vm6, %v3464_v25, %v8995_v12 }
 0x14d   :  { %v9061_v18 = vadd.f32 %v1928_v26, %v1281_v63  ;;  %v1296_v53 = vadd.f32 %v6344_v11, %v10485_v17  ;;  %6689 = vmatprep.mubr.msk.f32.mxu1 %vm405_vm2, %v3457_v5  ;;  %v1938_v38 = vpop.f32.mrf.mxu0  ;;  %v4174_v5 = vsel %vm4157_vm7, %v4172_v52, %v8998_v50  ;;  %v10488_v11 = vld [vmem:[#allocation3_spill] sm:$0xff] }
 0x14e   :  { %v1290_v33 = vpop.f32.mrf.mxu1  ;;  %v4179_v52 = vrot.slane %v10488_v11, 3 }
 0x14f   :  { %v9070_v3 = vadd.f32 %v6442_v24, %v1296_v53  ;;  %v1291_v6 = vadd.f32 %v1290_v33, %v10486_v22  ;;  %v6445_v8 = vpop.f32.mrf.mxu0  ;;  %6788 = vmatmul.mubr.msk.f32.gmra.mxu0 %vm405_vm2, %v4170_v9  ;;  %v3467_v24 = vrot.slane %v10488_v11, 2  ;;  %v4180_v9 = vrot.slane %v10489_v10, 3  ;;  %v10492_v22 = vld [vmem:[#allocation6_spill] sm:$0xff] }
 0x150   :  { %v6347_v49 = vpop.f32.mrf.mxu1  ;;  %6690 = vmatmul.mubr.msk.f32.gmra.mxu1 %vm405_vm2, %v3458_v19  ;;  %6790 = vmatprep.mubr.msk.f32.mxu0 %vm405_vm2, %v4173_v36  ;;  %v3468_v19 = vrot.slane %v10489_v10, 2 }
 0x151   :  { %v9080_v51 = vadd.f32 %v1938_v38, %v1291_v6  ;;  %v1306_v26 = vadd.f32 %v6347_v49, %v10487_v4  ;;  %6692 = vmatprep.mubr.msk.f32.mxu1 %vm405_vm2, %v3461_v46  ;;  %v1948_v63 = vpop.f32.mrf.mxu0  ;;  %v4178_v38 = vsel %vm4157_vm7, %v4176_v35, %v8998_v50  ;;  %v10491_v46 = vld [vmem:[#allocation26_spill] sm:$0xff]  ;;  %v3472_v6 = vrot.slane %v10492_v22, 2 }
 0x152   :  { %v1300_v1 = vpop.f32.mrf.mxu1  ;;  %v3471_v36 = vrot.slane %v10491_v46, 2  ;;  %v3469_v35 = vsel %vm3445_vm6, %v3467_v24, %v3468_v19 }
 0x153   :  { %v9090_v54 = vadd.f32 %v6445_v8, %v1306_v26  ;;  %v1301_v17 = vadd.f32 %v1300_v1, %v10490_v15  ;;  %v6448_v33 = vpop.f32.mrf.mxu0  ;;  %6791 = vmatmul.mubr.msk.f32.gmra.mxu0 %vm405_vm2, %v4174_v5  ;;  %v10494_v8 = vld [vmem:[#allocation4_spill] sm:$0xff]  ;;  %v4184_v5 = vrot.slane %v10492_v22, 3  ;;  %v4181_v1 = vsel %vm4157_vm7, %v4179_v52, %v4180_v9  ;;  %v10499_v22 = vld [vmem:[#allocation11_spill] sm:$0xff] }
 0x154   :  { %v6350_v53 = vpop.f32.mrf.mxu1  ;;  %6693 = vmatmul.mubr.msk.f32.gmra.mxu1 %vm405_vm2, %v3462_v60  ;;  %6793 = vmatprep.mubr.msk.f32.mxu0 %vm405_vm2, %v4177_v0  ;;  %v4183_v60 = vrot.slane %v10491_v46, 3  ;;  %v4182_v0 = vsel %vm4157_vm7, %v4180_v9, %v8998_v50  ;;  %v3473_v24 = vsel %vm3445_vm6, %v3471_v36, %v3472_v6  ;;  %v10498_v52 = vld [vmem:[#allocation8_spill] sm:$0xff]  ;;  %v4187_v9 = vrot.slane %v10499_v22, 3 }
 0x155   :  { %v9101_v49 = vadd.f32 %v1948_v63, %v1301_v17  ;;  %v1316_v4 = vadd.f32 %v6350_v53, %v10494_v8  ;;  %6695 = vmatprep.mubr.msk.f32.mxu1 %vm405_vm2, %v3465_v45  ;;  %v1958_v26 = vpop.f32.mrf.mxu0  ;;  %v10496_v63 = vld [vmem:[#allocation7_spill] sm:$0xff]  ;;  %v3470_v45 = vsel %vm3445_vm6, %v3468_v19, %v8995_v12  ;;  %v3475_v8 = vrot.slane %v10499_v22, 2  ;;  %v10504_v22 = vld [vmem:[#allocation12_spill] sm:$0xff] }
 0x156   :  { %v1310_v25 = vpop.f32.mrf.mxu1  ;;  %v10500_v19 = vld [vmem:[#allocation27_spill] sm:$0xff] }
 0x157   :  { %10493 = vst [vmem:[#allocation20_spill] sm:$0xff] %v9101_v49  ;;  %v9110_v11 = vadd.f32 %v6448_v33, %v1316_v4  ;;  %v1311_v10 = vadd.f32 %v1310_v25, %v10496_v63  ;;  %v6451_v17 = vpop.f32.mrf.mxu0  ;;  %6794 = vmatmul.mubr.msk.f32.gmra.mxu0 %vm405_vm2, %v4178_v38  ;;  %v3476_v4 = vrot.slane %v10500_v19, 2  ;;  %v4188_v36 = vrot.slane %v10500_v19, 3 }
 0x158   :  { %v6353_v15 = vpop.f32.mrf.mxu1  ;;  %6696 = vmatmul.mubr.msk.f32.gmra.mxu1 %vm405_vm2, %v3466_v58  ;;  %6796 = vmatprep.mubr.msk.f32.mxu0 %vm405_vm2, %v4181_v1  ;;  %v4185_v58 = vsel %vm4157_vm7, %v4183_v60, %v4184_v5  ;;  %v3474_v60 = vsel %vm3445_vm6, %v3472_v6, %v8995_v12  ;;  %v4186_v1 = vsel %vm4157_vm7, %v4184_v5, %v8998_v50  ;;  %v3480_v19 = vrot.slane %v10504_v22, 2 }
 0x159   :  { %10495 = vst [vmem:[#allocation16_spill] sm:$0xff] %v9110_v11  ;;  %v9120_v53 = vadd.f32 %v1958_v26, %v1311_v10  ;;  %v1326_v33 = vadd.f32 %v6353_v15, %v10498_v52  ;;  %6698 = vmatprep.mubr.msk.f32.mxu1 %vm405_vm2, %v3469_v35  ;;  %v1968_v38 = vpop.f32.mrf.mxu0  ;;  %v10502_v26 = vld [vmem:[#allocation9_spill] sm:$0xff]  ;;  %v10503_v15 = vld [vmem:[#allocation28_spill] sm:$0xff]  ;;  %v3477_v5 = vsel %vm3445_vm6, %v3475_v8, %v3476_v4 }
 0x15a   :  { %v1320_v46 = vpop.f32.mrf.mxu1  ;;  %v3479_v52 = vrot.slane %v10503_v15, 2  ;;  %v10516_v11 = vld [vmem:[#allocation29_spill] sm:$0xff] }
 0x15b   :  { %10497 = vst [vmem:[#allocation18_spill] sm:$0xff] %v9120_v53  ;;  %v9130_v25 = vadd.f32 %v6451_v17, %v1326_v33  ;;  %v1321_v63 = vadd.f32 %v1320_v46, %v10502_v26  ;;  %v6454_v35 = vpop.f32.mrf.mxu0  ;;  %6797 = vmatmul.mubr.msk.f32.gmra.mxu0 %vm405_vm2, %v4182_v0  ;;  %v10506_v33 = vld [vmem:[#allocation10_spill] sm:$0xff]  ;;  %v4192_v0 = vrot.slane %v10504_v22, 3 }
 0x15c   :  { %v6356_v10 = vpop.f32.mrf.mxu1  ;;  %6699 = vmatmul.mubr.msk.f32.gmra.mxu1 %vm405_vm2, %v3470_v45  ;;  %6799 = vmatprep.mubr.msk.f32.mxu0 %vm405_vm2, %v4185_v58  ;;  %v4191_v45 = vrot.slane %v10503_v15, 3  ;;  %v4190_v58 = vsel %vm4157_vm7, %v4188_v36, %v8998_v50  ;;  %v3481_v8 = vsel %vm3445_vm6, %v3479_v52, %v3480_v19 }
 0x15d   :  { %10501 = vst [vmem:[#allocation22_spill] sm:$0xff] %v9130_v25  ;;  %v9141_v17 = vadd.f32 %v1968_v38, %v1321_v63  ;;  %v1336_v46 = vadd.f32 %v6356_v10, %v10506_v33  ;;  %6701 = vmatprep.mubr.msk.f32.mxu1 %vm405_vm2, %v3473_v24  ;;  %v1978_v26 = vpop.f32.mrf.mxu0  ;;  %v4189_v25 = vsel %vm4157_vm7, %v4187_v9, %v4188_v36  ;;  %v10508_v38 = vld [vmem:[#allocation13_spill] sm:$0xff]  ;;  %v10510_v9 = vld [vmem:[#allocation14_spill] sm:$0xff] }
 0x15e   :  { %v1330_v6 = vpop.f32.mrf.mxu1  ;;  %v3478_v24 = vsel %vm3445_vm6, %v3476_v4, %v8995_v12  ;;  %v6944_v4 = vld [vmem:[%s10250_s0 + $0x90] sm:$0xff]  ;;  %v6945_v36 = vld [vmem:[%s10250_s0 + $0x98] sm:$0xff] }
 0x15f   :  { %10505 = vst [vmem:[#allocation3_spill] sm:$0xff] %v9141_v17  ;;  %v9150_v53 = vadd.f32 %v6454_v35, %v1336_v46  ;;  %v1331_v63 = vadd.f32 %v1330_v6, %v10508_v38  ;;  %v6457_v10 = vpop.f32.mrf.mxu0  ;;  %6800 = vmatmul.mubr.msk.f32.gmra.mxu0 %vm405_vm2, %v4186_v1  ;;  %v3483_v33 = vrot.slane %v6944_v4, 2  ;;  %v3484_v52 = vrot.slane %v6945_v36, 2 }
 0x160   :  { %v6359_v17 = vpop.f32.mrf.mxu1  ;;  %6702 = vmatmul.mubr.msk.f32.gmra.mxu1 %vm405_vm2, %v3474_v60  ;;  %6802 = vmatprep.mubr.msk.f32.mxu0 %vm405_vm2, %v4189_v25  ;;  %v4193_v60 = vsel %vm4157_vm7, %v4191_v45, %v4192_v0  ;;  %v4195_v46 = vrot.slane %v6944_v4, 3  ;;  %v3482_v38 = vsel %vm3445_vm6, %v3480_v19, %v8995_v12 }
 0x161   :  { %10507 = vst [vmem:[#allocation5_spill] sm:$0xff] %v9150_v53  ;;  %v9160_v15 = vadd.f32 %v1978_v26, %v1331_v63  ;;  %v1346_v35 = vadd.f32 %v6359_v17, %v10510_v9  ;;  %6704 = vmatprep.mubr.msk.f32.mxu1 %vm405_vm2, %v3477_v5  ;;  %v1988_v1 = vpop.f32.mrf.mxu0  ;;  %v4196_v17 = vrot.slane %v6945_v36, 3  ;;  %v10512_v26 = vld [vmem:[#allocation15_spill] sm:$0xff]  ;;  %v4194_v63 = vsel %vm4157_vm7, %v4192_v0, %v8998_v50  ;;  %v6946_v9 = vld [vmem:[%s10250_s0 + $0xa0] sm:$0xff] }
 0x162   :  { %v1340_v22 = vpop.f32.mrf.mxu1  ;;  %v4199_v19 = vrot.slane %v6946_v9, 3 }
 0x163   :  { %10509 = vst [vmem:[#allocation2_spill] sm:$0xff] %v9160_v15  ;;  %v9172_v6 = vadd.f32 %v6457_v10, %v1346_v35  ;;  %v1341_v25 = vadd.f32 %v1340_v22, %v10512_v26  ;;  %v6460_v45 = vpop.f32.mrf.mxu0  ;;  %6803 = vmatmul.mubr.msk.f32.gmra.mxu0 %vm405_vm2, %v4190_v58  ;;  %v3487_v10 = vrot.slane %v6946_v9, 2  ;;  %v6947_v35 = vld [vmem:[%s10250_s0 + $0xa8] sm:$0xff]  ;;  %v4197_v15 = vsel %vm4157_vm7, %v4195_v46, %v4196_v17  ;;  %v10518_v46 = vld [vmem:[#allocation17_spill] sm:$0xff] }
 0x164   :  { %v6362_v5 = vpop.f32.mrf.mxu1  ;;  %6705 = vmatmul.mubr.msk.f32.gmra.mxu1 %vm405_vm2, %v3478_v24  ;;  %v3488_v22 = vrot.slane %v6947_v35, 2  ;;  %v10514_v24 = vld [vmem:[#allocation19_spill] sm:$0xff]  ;;  %6805 = vmatprep.mubr.msk.f32.mxu0 %vm405_vm2, %v4193_v60  ;;  %v4200_v0 = vrot.slane %v6947_v35, 3  ;;  %v4198_v60 = vsel %vm4157_vm7, %v4196_v17, %v8998_v50 }
 0x165   :  { %10511 = vst [vmem:[#allocation26_spill] sm:$0xff] %v9172_v6  ;;  %v9187_v4 = vadd.f32 %v1988_v1, %v1341_v25  ;;  %v1356_v58 = vadd.f32 %v6362_v5, %v10514_v24  ;;  %6707 = vmatprep.mubr.msk.f32.mxu1 %vm405_vm2, %v3481_v8  ;;  %v1998_v26 = vpop.f32.mrf.mxu0  ;;  %v3485_v6 = vsel %vm3445_vm6, %v3483_v33, %v3484_v52 }
 0x166   :  { %v1350_v36 = vpop.f32.mrf.mxu1  ;;  %v3486_v8 = vsel %vm3445_vm6, %v3484_v52, %v8995_v12  ;;  %v3489_v33 = vsel %vm3445_vm6, %v3487_v10, %v3488_v22  ;;  %v6948_v52 = vld [vmem:[%s10250_s0 + $0xb0] sm:$0xff] }
 0x167   :  { %10513 = vst [vmem:[#allocation6_spill] sm:$0xff] %v9187_v4  ;;  %v9194_v53 = vadd.f32 %v6460_v45, %v1356_v58  ;;  %v1351_v49 = vadd.f32 %v1350_v36, %v10516_v11  ;;  %v6463_v25 = vpop.f32.mrf.mxu0  ;;  %6806 = vmatmul.mubr.msk.f32.gmra.mxu0 %vm405_vm2, %v4194_v63  ;;  %v4201_v11 = vsel %vm4157_vm7, %v4199_v19, %v4200_v0  ;;  %v3491_v9 = vrot.slane %v6948_v52, 2 }
 0x168   :  { %v6365_v1 = vpop.f32.mrf.mxu1  ;;  %6708 = vmatmul.mubr.msk.f32.gmra.mxu1 %vm405_vm2, %v3482_v38  ;;  %6808 = vmatprep.mubr.msk.f32.mxu0 %vm405_vm2, %v4197_v15  ;;  %v4203_v10 = vrot.slane %v6948_v52, 3  ;;  %v3490_v36 = vsel %vm3445_vm6, %v3488_v22, %v8995_v12 }
 0x169   :  { %10515 = vst [vmem:[#allocation4_spill] sm:$0xff] %v9194_v53  ;;  %v9204_v5 = vadd.f32 %v1998_v26, %v1351_v49  ;;  %v1366_v45 = vadd.f32 %v6365_v1, %v10518_v46  ;;  %6710 = vmatprep.mubr.msk.f32.mxu1 %vm405_vm2, %v3485_v6  ;;  %v2008_v63 = vpop.f32.mrf.mxu0  ;;  %v6949_v49 = vld [vmem:[%s10250_s0 + $0xb8] sm:$0xff]  ;;  %v4202_v26 = vsel %vm4157_vm7, %v4200_v0, %v8998_v50  ;;  %v6950_v1 = vld [vmem:[%s10250_s0 + $0xc0] sm:$0xff]  ;;  %v6951_v46 = vld [vmem:[%s10250_s0 + $0xc8] sm:$0xff] }
 0x16a   :  { %v1360_v38 = vpop.f32.mrf.mxu1  ;;  %v3492_v17 = vrot.slane %v6949_v49, 2  ;;  %v4204_v35 = vrot.slane %v6949_v49, 3  ;;  %v10520_v6 = vld [vmem:[#allocation21_spill] sm:$0xff]  ;;  %v4207_v22 = vrot.slane %v6950_v1, 3  ;;  %v4208_v0 = vrot.slane %v6951_v46, 3  ;;  %v10524_v53 = vld [vmem:[#allocation24_spill] sm:$0xff] }
 0x16b   :  { %10517 = vst [vmem:[#allocation7_spill] sm:$0xff] %v9204_v5  ;;  %v9216_v24 = vadd.f32 %v6463_v25, %v1366_v45  ;;  %v1361_v15 = vadd.f32 %v1360_v38, %v10520_v6  ;;  %v6466_v19 = vpop.f32.mrf.mxu0  ;;  %6809 = vmatmul.mubr.msk.f32.gmra.mxu0 %vm405_vm2, %v4198_v60  ;;  %v3495_v25 = vrot.slane %v6950_v1, 2  ;;  %v3496_v45 = vrot.slane %v6951_v46, 2 }
 0x16c   :  { %v6368_v58 = vpop.f32.mrf.mxu1  ;;  %6711 = vmatmul.mubr.msk.f32.gmra.mxu1 %vm405_vm2, %v3486_v8  ;;  %v10522_v8 = vld [vmem:[#allocation23_spill] sm:$0xff]  ;;  %6811 = vmatprep.mubr.msk.f32.mxu0 %vm405_vm2, %v4201_v11  ;;  %v3493_v6 = vsel %vm3445_vm6, %v3491_v9, %v3492_v17  ;;  %v4206_v11 = vsel %vm4157_vm7, %v4204_v35, %v8998_v50 }
 0x16d   :  { %10519 = vst [vmem:[#allocation8_spill] sm:$0xff] %v9216_v24  ;;  %v9231_v38 = vadd.f32 %v2008_v63, %v1361_v15  ;;  %v1376_v60 = vadd.f32 %v6368_v58, %v10522_v8  ;;  %6713 = vmatprep.mubr.msk.f32.mxu1 %vm405_vm2, %v3489_v33  ;;  %v2018_v49 = vpop.f32.mrf.mxu0  ;;  %v4205_v24 = vsel %vm4157_vm7, %v4203_v10, %v4204_v35  ;;  %v10526_v10 = vld [vmem:[#allocation25_spill] sm:$0xff] }
 0x16e   :  { %v1370_v52 = vpop.f32.mrf.mxu1  ;;  %v3494_v33 = vsel %vm3445_vm6, %v3492_v17, %v8995_v12  ;;  %v3497_v9 = vsel %vm3445_vm6, %v3495_v25, %v3496_v45  ;;  %v6952_v17 = vld [vmem:[%s10250_s0 + $0xd0] sm:$0xff] }
 0x16f   :  { %10521 = vst [vmem:[#allocation11_spill] sm:$0xff] %v9231_v38  ;;  %v9238_v5 = vadd.f32 %v6466_v19, %v1376_v60  ;;  %v1371_v4 = vadd.f32 %v1370_v52, %v10524_v53  ;;  %v6469_v15 = vpop.f32.mrf.mxu0  ;;  %6812 = vmatmul.mubr.msk.f32.gmra.mxu0 %vm405_vm2, %v4202_v26  ;;  %v4209_v53 = vsel %vm4157_vm7, %v4207_v22, %v4208_v0  ;;  %v3499_v1 = vrot.slane %v6952_v17, 2  ;;  %v10528_v60 = vld [vmem:[#allocation30_spill] sm:$0xff] }
 0x170   :  { %v6371_v63 = vpop.f32.mrf.mxu1  ;;  %6714 = vmatmul.mubr.msk.f32.gmra.mxu1 %vm405_vm2, %v3490_v36  ;;  %6814 = vmatprep.mubr.msk.f32.mxu0 %vm405_vm2, %v4205_v24  ;;  %v4211_v25 = vrot.slane %v6952_v17, 3 }
 0x171   :  { %10523 = vst [vmem:[#allocation27_spill] sm:$0xff] %v9238_v5  ;;  %v9248_v58 = vadd.f32 %v2018_v49, %v1371_v4  ;;  %v1386_v19 = vadd.f32 %v6371_v63, %v10526_v10  ;;  %6716 = vmatprep.mubr.msk.f32.mxu1 %vm405_vm2, %v3493_v6  ;;  %v2028_v26 = vpop.f32.mrf.mxu0  ;;  %v6953_v4 = vld [vmem:[%s10250_s0 + $0xd8] sm:$0xff]  ;;  %v3498_v49 = vsel %vm3445_vm6, %v3496_v45, %v8995_v12  ;;  %v6954_v63 = vld [vmem:[%s10250_s0 + $0xe0] sm:$0xff]  ;;  %v6955_v10 = vld [vmem:[%s10250_s0 + $0xe8] sm:$0xff] }
 0x172   :  { %v1380_v36 = vpop.f32.mrf.mxu1  ;;  %v3500_v35 = vrot.slane %v6953_v4, 2  ;;  %v4212_v46 = vrot.slane %v6953_v4, 3  ;;  %v4210_v6 = vsel %vm4157_vm7, %v4208_v0, %v8998_v50  ;;  %v4215_v45 = vrot.slane %v6954_v63, 3  ;;  %v10532_v5 = vld [vmem:[#allocation32_spill] sm:$0xff] }
 0x173   :  { %10525 = vst [vmem:[#allocation9_spill] sm:$0xff] %v9248_v58  ;;  %v9260_v8 = vadd.f32 %v6469_v15, %v1386_v19  ;;  %v1381_v24 = vadd.f32 %v1380_v36, %v10528_v60  ;;  %v6472_v22 = vpop.f32.mrf.mxu0  ;;  %6815 = vmatmul.mubr.msk.f32.gmra.mxu0 %vm405_vm2, %v4206_v11  ;;  %v3503_v15 = vrot.slane %v6954_v63, 2  ;;  %v3504_v19 = vrot.slane %v6955_v10, 2 }
 0x174   :  { %v6374_v52 = vpop.f32.mrf.mxu1  ;;  %6717 = vmatmul.mubr.msk.f32.gmra.mxu1 %vm405_vm2, %v3494_v33  ;;  %v10530_v33 = vld [vmem:[#allocation31_spill] sm:$0xff]  ;;  %6817 = vmatprep.mubr.msk.f32.mxu0 %vm405_vm2, %v4209_v53  ;;  %v4216_v0 = vrot.slane %v6955_v10, 3  ;;  %v3501_v60 = vsel %vm3445_vm6, %v3499_v1, %v3500_v35  ;;  %v4214_v53 = vsel %vm4157_vm7, %v4212_v46, %v8998_v50 }
 0x175   :  { %10527 = vst [vmem:[#allocation28_spill] sm:$0xff] %v9260_v8  ;;  %v9275_v36 = vadd.f32 %v2028_v26, %v1381_v24  ;;  %v1396_v11 = vadd.f32 %v6374_v52, %v10530_v33  ;;  %6719 = vmatprep.mubr.msk.f32.mxu1 %vm405_vm2, %v3497_v9  ;;  %v2038_v4 = vpop.f32.mrf.mxu0  ;;  %v4213_v8 = vsel %vm4157_vm7, %v4211_v25, %v4212_v46  ;;  %v10534_v25 = vld [vmem:[#allocation33_spill] sm:$0xff] }
 0x176   :  { %v1390_v17 = vpop.f32.mrf.mxu1  ;;  %v3502_v9 = vsel %vm3445_vm6, %v3500_v35, %v8995_v12  ;;  %v3505_v1 = vsel %vm3445_vm6, %v3503_v15, %v3504_v19  ;;  %v6956_v35 = vld [vmem:[%s10250_s0 + $0xf0] sm:$0xff] }
 0x177   :  { %10529 = vst [vmem:[#allocation12_spill] sm:$0xff] %v9275_v36  ;;  %v9282_v58 = vadd.f32 %v6472_v22, %v1396_v11  ;;  %v1391_v38 = vadd.f32 %v1390_v17, %v10532_v5  ;;  %v6475_v24 = vpop.f32.mrf.mxu0  ;;  %6818 = vmatmul.mubr.msk.f32.gmra.mxu0 %vm405_vm2, %v4210_v6  ;;  %v4217_v5 = vsel %vm4157_vm7, %v4215_v45, %v4216_v0  ;;  %v3507_v63 = vrot.slane %v6956_v35, 2  ;;  %v10536_v11 = vld [vmem:[#allocation34_spill] sm:$0xff] }
 0x178   :  { %v6377_v26 = vpop.f32.mrf.mxu1  ;;  %6720 = vmatmul.mubr.msk.f32.gmra.mxu1 %vm405_vm2, %v3498_v49  ;;  %6820 = vmatprep.mubr.msk.f32.mxu0 %vm405_vm2, %v4213_v8  ;;  %v4219_v15 = vrot.slane %v6956_v35, 3 }
 0x179   :  { %10531 = vst [vmem:[#allocation10_spill] sm:$0xff] %v9282_v58  ;;  %v9292_v52 = vadd.f32 %v2038_v4, %v1391_v38  ;;  %v1406_v22 = vadd.f32 %v6377_v26, %v10534_v25  ;;  %6722 = vmatprep.mubr.msk.f32.mxu1 %vm405_vm2, %v3501_v60  ;;  %v2048_v6 = vpop.f32.mrf.mxu0  ;;  %v6957_v38 = vld [vmem:[%s10250_s0 + $0xf8] sm:$0xff]  ;;  %v3506_v4 = vsel %vm3445_vm6, %v3504_v19, %v8995_v12  ;;  %v6958_v26 = vld [vmem:[%s10250_s0 + $0x100] sm:$0xff]  ;;  %v6959_v25 = vld [vmem:[%s10250_s0 + $0x108] sm:$0xff] }
 0x17a   :  { %v1400_v49 = vpop.f32.mrf.mxu1  ;;  %v3508_v46 = vrot.slane %v6957_v38, 2  ;;  %v4220_v10 = vrot.slane %v6957_v38, 3  ;;  %v4218_v60 = vsel %vm4157_vm7, %v4216_v0, %v8998_v50  ;;  %v4223_v19 = vrot.slane %v6958_v26, 3  ;;  %v10540_v58 = vld [vmem:[#allocation36_spill] sm:$0xff] }
 0x17b   :  { %10533 = vst [vmem:[#allocation13_spill] sm:$0xff] %v9292_v52  ;;  %v9304_v33 = vadd.f32 %v6475_v24, %v1406_v22  ;;  %v1401_v8 = vadd.f32 %v1400_v49, %v10536_v11  ;;  %v6478_v45 = vpop.f32.mrf.mxu0  ;;  %6821 = vmatmul.mubr.msk.f32.gmra.mxu0 %vm405_vm2, %v4214_v53  ;;  %v3511_v24 = vrot.slane %v6958_v26, 2  ;;  %v3512_v22 = vrot.slane %v6959_v25, 2 }
 0x17c   :  { %v6380_v17 = vpop.f32.mrf.mxu1  ;;  %6723 = vmatmul.mubr.msk.f32.gmra.mxu1 %vm405_vm2, %v3502_v9  ;;  %v10538_v9 = vld [vmem:[#allocation35_spill] sm:$0xff]  ;;  %6823 = vmatprep.mubr.msk.f32.mxu0 %vm405_vm2, %v4217_v5  ;;  %v4224_v0 = vrot.slane %v6959_v25, 3  ;;  %v3509_v11 = vsel %vm3445_vm6, %v3507_v63, %v3508_v46  ;;  %v4222_v5 = vsel %vm4157_vm7, %v4220_v10, %v8998_v50 }
 0x17d   :  { %10535 = vst [vmem:[#allocation14_spill] sm:$0xff] %v9304_v33  ;;  %v9319_v49 = vadd.f32 %v2048_v6, %v1401_v8  ;;  %v1416_v53 = vadd.f32 %v6380_v17, %v10538_v9  ;;  %6725 = vmatprep.mubr.msk.f32.mxu1 %vm405_vm2, %v3505_v1  ;;  %v2058_v38 = vpop.f32.mrf.mxu0  ;;  %v4221_v33 = vsel %vm4157_vm7, %v4219_v15, %v4220_v10  ;;  %v10542_v15 = vld [vmem:[#allocation37_spill] sm:$0xff] }
 0x17e   :  { %v1410_v35 = vpop.f32.mrf.mxu1  ;;  %v3510_v1 = vsel %vm3445_vm6, %v3508_v46, %v8995_v12  ;;  %v3513_v63 = vsel %vm3445_vm6, %v3511_v24, %v3512_v22  ;;  %v6960_v46 = vld [vmem:[%s10250_s0 + $0x110] sm:$0xff] }
 0x17f   :  { %10537 = vst [vmem:[#allocation15_spill] sm:$0xff] %v9319_v49  ;;  %v9326_v52 = vadd.f32 %v6478_v45, %v1416_v53  ;;  %v1411_v36 = vadd.f32 %v1410_v35, %v10540_v58  ;;  %v6481_v8 = vpop.f32.mrf.mxu0  ;;  %6824 = vmatmul.mubr.msk.f32.gmra.mxu0 %vm405_vm2, %v4218_v60  ;;  %v4225_v58 = vsel %vm4157_vm7, %v4223_v19, %v4224_v0  ;;  %v3515_v26 = vrot.slane %v6960_v46, 2  ;;  %v10544_v53 = vld [vmem:[#allocation38_spill] sm:$0xff] }
 0x180   :  { %v6383_v6 = vpop.f32.mrf.mxu1  ;;  %6726 = vmatmul.mubr.msk.f32.gmra.mxu1 %vm405_vm2, %v3506_v4  ;;  %6826 = vmatprep.mubr.msk.f32.mxu0 %vm405_vm2, %v4221_v33  ;;  %v4227_v24 = vrot.slane %v6960_v46, 3 }
 0x181   :  { %10539 = vst [vmem:[#allocation19_spill] sm:$0xff] %v9326_v52  ;;  %v9336_v17 = vadd.f32 %v2058_v38, %v1411_v36  ;;  %v1426_v45 = vadd.f32 %v6383_v6, %v10542_v15  ;;  %6728 = vmatprep.mubr.msk.f32.mxu1 %vm405_vm2, %v3509_v11  ;;  %v2068_v60 = vpop.f32.mrf.mxu0  ;;  %v6961_v36 = vld [vmem:[%s10250_s0 + $0x118] sm:$0xff]  ;;  %v3514_v38 = vsel %vm3445_vm6, %v3512_v22, %v8995_v12  ;;  %v6962_v6 = vld [vmem:[%s10250_s0 + $0x120] sm:$0xff]  ;;  %v6963_v15 = vld [vmem:[%s10250_s0 + $0x128] sm:$0xff] }
 0x182   :  { %v1420_v4 = vpop.f32.mrf.mxu1  ;;  %v3516_v10 = vrot.slane %v6961_v36, 2  ;;  %v4228_v25 = vrot.slane %v6961_v36, 3  ;;  %v4226_v11 = vsel %vm4157_vm7, %v4224_v0, %v8998_v50  ;;  %v4231_v22 = vrot.slane %v6962_v6, 3  ;;  %v10546_v52 = vld [vmem:[#allocation40_spill] sm:$0xff] }
 0x183   :  { %10541 = vst [vmem:[#allocation29_spill] sm:$0xff] %v9336_v17  ;;  %v9348_v9 = vadd.f32 %v6481_v8, %v1426_v45  ;;  %v1421_v33 = vadd.f32 %v1420_v4, %v10544_v53  ;;  %v6484_v19 = vpop.f32.mrf.mxu0  ;;  %6827 = vmatmul.mubr.msk.f32.gmra.mxu0 %vm405_vm2, %v4222_v5  ;;  %v3519_v8 = vrot.slane %v6962_v6, 2  ;;  %v3520_v45 = vrot.slane %v6963_v15, 2 }
 0x184   :  { %v6386_v35 = vpop.f32.mrf.mxu1  ;;  %6729 = vmatmul.mubr.msk.f32.gmra.mxu1 %vm405_vm2, %v3510_v1  ;;  %v10545_v1 = vld [vmem:[#allocation39_spill] sm:$0xff]  ;;  %6829 = vmatprep.mubr.msk.f32.mxu0 %vm405_vm2, %v4225_v58  ;;  %v4232_v0 = vrot.slane %v6963_v15, 3  ;;  %v3517_v53 = vsel %vm3445_vm6, %v3515_v26, %v3516_v10  ;;  %v4230_v58 = vsel %vm4157_vm7, %v4228_v25, %v8998_v50 }
 0x185   :  { %10543 = vst [vmem:[#allocation17_spill] sm:$0xff] %v9348_v9  ;;  %v9363_v4 = vadd.f32 %v2068_v60, %v1421_v33  ;;  %v1436_v5 = vadd.f32 %v6386_v35, %v10545_v1  ;;  %6731 = vmatprep.mubr.msk.f32.mxu1 %vm405_vm2, %v3513_v63  ;;  %v2078_v36 = vpop.f32.mrf.mxu0  ;;  %v4229_v9 = vsel %vm4157_vm7, %v4227_v24, %v4228_v25 }
 0x186   :  { %v1430_v46 = vpop.f32.mrf.mxu1  ;;  %v3518_v63 = vsel %vm3445_vm6, %v3516_v10, %v8995_v12  ;;  %v3521_v26 = vsel %vm3445_vm6, %v3519_v8, %v3520_v45  ;;  %v6964_v10 = vld [vmem:[%s10250_s0 + $0x130] sm:$0xff] }
 0x187   :  { %v9370_v17 = vadd.f32 %v6484_v19, %v1436_v5  ;;  %v1431_v49 = vadd.f32 %v1430_v46, %v10546_v52  ;;  %v6587_v33 = vpop.f32.mrf.mxu0  ;;  %6830 = vmatmul.mubr.msk.f32.gmra.mxu0 %vm405_vm2, %v4226_v11  ;;  %v4233_v52 = vsel %vm4157_vm7, %v4231_v22, %v4232_v0  ;;  %v3523_v11 = vrot.slane %v6964_v10, 2  ;;  %v6966_v46 = vld [vmem:[%s10250_s0 + $0x140] sm:$0xff] }
 0x188   :  { %v6489_v60 = vpop.f32.mrf.mxu1  ;;  %6732 = vmatmul.mubr.msk.f32.gmra.mxu1 %vm405_vm2, %v3514_v38  ;;  %6832 = vmatprep.mubr.msk.f32.mxu0 %vm405_vm2, %v4229_v9  ;;  %v4235_v6 = vrot.slane %v6964_v10, 3  ;;  %v3522_v5 = vsel %vm3445_vm6, %v3520_v45, %v8995_v12  ;;  %v4234_v22 = vsel %vm4157_vm7, %v4232_v0, %v8998_v50  ;;  %v4239_v45 = vrot.slane %v6966_v46, 3 }
 0x189   :  { %v9380_v35 = vadd.f32 %v2078_v36, %v1431_v49  ;;  %v2670_v24 = vadd.f32 %v6489_v60, %v8739_v7  ;;  %6734 = vmatprep.mubr.msk.f32.mxu1 %vm405_vm2, %v3517_v53  ;;  %v3062_v38 = vpop.f32.mrf.mxu0  ;;  %v6965_v49 = vld [vmem:[%s10250_s0 + $0x138] sm:$0xff]  ;;  %v3527_v36 = vrot.slane %v6966_v46, 2 }
 0x18a   :  { %v2350_v19 = vpop.f32.mrf.mxu1  ;;  %v3524_v25 = vrot.slane %v6965_v49, 2  ;;  %v4236_v7 = vrot.slane %v6965_v49, 3 }
 0x18b   :  { %v9392_v8 = vadd.f32 %v6587_v33, %v2670_v24  ;;  %v2669_v9 = vadd.f32 %v2350_v19, %v8745_v28  ;;  %v6590_v1 = vpop.f32.mrf.mxu0  ;;  %6833 = vmatmul.mubr.msk.f32.gmra.mxu0 %vm405_vm2, %v4230_v58  ;;  %v6967_v28 = vld [vmem:[%s10250_s0 + $0x148] sm:$0xff] }
 0x18c   :  { %v6492_v15 = vpop.f32.mrf.mxu1  ;;  %6735 = vmatmul.mubr.msk.f32.gmra.mxu1 %vm405_vm2, %v3518_v63  ;;  %v3528_v53 = vrot.slane %v6967_v28, 2  ;;  %6835 = vmatprep.mubr.msk.f32.mxu0 %vm405_vm2, %v4233_v52  ;;  %v4240_v0 = vrot.slane %v6967_v28, 3  ;;  %v3525_v24 = vsel %vm3445_vm6, %v3523_v11, %v3524_v25  ;;  %v4237_v19 = vsel %vm4157_vm7, %v4235_v6, %v4236_v7  ;;  %v10547_v6 = vld [vmem:[#allocation41_spill] sm:$0xff] }
 0x18d   :  { %v9407_v60 = vadd.f32 %v3062_v38, %v2669_v9  ;;  %v2672_v33 = vadd.f32 %v6492_v15, %v8759_v55  ;;  %6737 = vmatprep.mubr.msk.f32.mxu1 %vm405_vm2, %v3521_v26  ;;  %v3072_v58 = vpop.f32.mrf.mxu0  ;;  %v3526_v55 = vsel %vm3445_vm6, %v3524_v25, %v8995_v12  ;;  %v4238_v26 = vsel %vm4157_vm7, %v4236_v7, %v8998_v50  ;;  %v6968_v25 = vld [vmem:[%s10250_s0 + $0x150] sm:$0xff]  ;;  %v6969_v7 = vld [vmem:[%s10250_s0 + $0x158] sm:$0xff] }
 0x18e   :  { %v2360_v63 = vpop.f32.mrf.mxu1  ;;  %v3529_v52 = vsel %vm3445_vm6, %v3527_v36, %v3528_v53  ;;  %v3532_v46 = vrot.slane %v6969_v7, 2  ;;  %v4243_v36 = vrot.slane %v6968_v25, 3  ;;  %v4244_v28 = vrot.slane %v6969_v7, 3 }
 0x18f   :  { %v9414_v10 = vadd.f32 %v6590_v1, %v2672_v33  ;;  %v2671_v49 = vadd.f32 %v2360_v63, %v8765_v42  ;;  %v6593_v9 = vpop.f32.mrf.mxu0  ;;  %6836 = vmatmul.mubr.msk.f32.gmra.mxu0 %vm405_vm2, %v4234_v22  ;;  %v4241_v42 = vsel %vm4157_vm7, %v4239_v45, %v4240_v0  ;;  %v3531_v22 = vrot.slane %v6968_v25, 2 }
 0x190   :  { %v6495_v38 = vpop.f32.mrf.mxu1  ;;  %6738 = vmatmul.mubr.msk.f32.gmra.mxu1 %vm405_vm2, %v3522_v5  ;;  %6838 = vmatprep.mubr.msk.f32.mxu0 %vm405_vm2, %v4237_v19  ;;  %v4242_v19 = vsel %vm4157_vm7, %v4240_v0, %v8998_v50  ;;  %v4245_v25 = vsel %vm4157_vm7, %v4243_v36, %v4244_v28 }
 0x191   :  { %v9424_v11 = vadd.f32 %v3072_v58, %v2671_v49  ;;  %v2674_v15 = vadd.f32 %v6495_v38, %v10547_v6  ;;  %6740 = vmatprep.mubr.msk.f32.mxu1 %vm405_vm2, %v3525_v24  ;;  %v3082_v5 = vpop.f32.mrf.mxu0  ;;  %v3530_v24 = vsel %vm3445_vm6, %v3528_v53, %v8995_v12  ;;  %v6970_v49 = vld [vmem:[%s10250_s0 + $0x160] sm:$0xff] }
 0x192   :  { %v2370_v1 = vpop.f32.mrf.mxu1  ;;  %v3535_v38 = vrot.slane %v6970_v49, 2  ;;  %v4247_v53 = vrot.slane %v6970_v49, 3 }
 0x193   :  { %v9436_v33 = vadd.f32 %v6593_v9, %v2674_v15  ;;  %v2673_v63 = vadd.f32 %v2370_v1, %v8784_v41  ;;  %v6596_v45 = vpop.f32.mrf.mxu0  ;;  %6839 = vmatmul.mubr.msk.f32.gmra.mxu0 %vm405_vm2, %v4238_v26  ;;  %v6971_v41 = vld [vmem:[%s10250_s0 + $0x168] sm:$0xff]  ;;  %v3533_v1 = vsel %vm3445_vm6, %v3531_v22, %v3532_v46 }
 0x194   :  { %v6498_v58 = vpop.f32.mrf.mxu1  ;;  %6741 = vmatmul.mubr.msk.f32.gmra.mxu1 %vm405_vm2, %v3526_v55  ;;  %v3536_v9 = vrot.slane %v6971_v41, 2  ;;  %6841 = vmatprep.mubr.msk.f32.mxu0 %vm405_vm2, %v4241_v42  ;;  %v4248_v0 = vrot.slane %v6971_v41, 3 }
 0x195   :  { %10548 = vst [vmem:[#allocation21_spill] sm:$0xff] %v9436_v33  ;;  %v9451_v6 = vadd.f32 %v3082_v5, %v2673_v63  ;;  %v2676_v55 = vadd.f32 %v6498_v58, %v8798_v59  ;;  %6743 = vmatprep.mubr.msk.f32.mxu1 %vm405_vm2, %v3529_v52  ;;  %v3092_v15 = vpop.f32.mrf.mxu0  ;;  %v3534_v59 = vsel %vm3445_vm6, %v3532_v46, %v8995_v12  ;;  %v6972_v46 = vld [vmem:[%s10250_s0 + $0x170] sm:$0xff] }
 0x196   :  { %v2380_v26 = vpop.f32.mrf.mxu1  ;;  %v4246_v52 = vsel %vm4157_vm7, %v4244_v28, %v8998_v50  ;;  %v3537_v42 = vsel %vm3445_vm6, %v3535_v38, %v3536_v9  ;;  %v6973_v28 = vld [vmem:[%s10250_s0 + $0x178] sm:$0xff] }
 0x197   :  { %v9458_v7 = vadd.f32 %v6596_v45, %v2676_v55  ;;  %v2675_v33 = vadd.f32 %v2380_v26, %v8803_v48  ;;  %v6599_v63 = vpop.f32.mrf.mxu0  ;;  %6842 = vmatmul.mubr.msk.f32.gmra.mxu0 %vm405_vm2, %v4242_v19  ;;  %v4249_v48 = vsel %vm4157_vm7, %v4247_v53, %v4248_v0  ;;  %v4251_v19 = vrot.slane %v6972_v46, 3 }
 0x198   :  { %v6501_v5 = vpop.f32.mrf.mxu1  ;;  %6744 = vmatmul.mubr.msk.f32.gmra.mxu1 %vm405_vm2, %v3530_v24  ;;  %6844 = vmatprep.mubr.msk.f32.mxu0 %vm405_vm2, %v4245_v25  ;;  %v3539_v24 = vrot.slane %v6972_v46, 2  ;;  %v3538_v53 = vsel %vm3445_vm6, %v3536_v9, %v8995_v12  ;;  %v4250_v26 = vsel %vm4157_vm7, %v4248_v0, %v8998_v50 }
 0x199   :  { %v9468_v22 = vadd.f32 %v3092_v15, %v2675_v33  ;;  %v2678_v36 = vadd.f32 %v6501_v5, %v8817_v39  ;;  %6746 = vmatprep.mubr.msk.f32.mxu1 %vm405_vm2, %v3533_v1  ;;  %v3102_v45 = vpop.f32.mrf.mxu0  ;;  %v3540_v33 = vrot.slane %v6973_v28, 2  ;;  %v4252_v39 = vrot.slane %v6973_v28, 3  ;;  %v6974_v15 = vld [vmem:[%s10250_s0 + $0x180] sm:$0xff] }
 0x19a   :  { %v2390_v58 = vpop.f32.mrf.mxu1  ;;  %v3543_v1 = vrot.slane %v6974_v15, 2  ;;  %v4255_v9 = vrot.slane %v6974_v15, 3 }
 0x19b   :  { %v9480_v49 = vadd.f32 %v6599_v63, %v2678_v36  ;;  %v2677_v38 = vadd.f32 %v2390_v58, %v8822_v16  ;;  %v6602_v55 = vpop.f32.mrf.mxu0  ;;  %6845 = vmatmul.mubr.msk.f32.gmra.mxu0 %vm405_vm2, %v4246_v52  ;;  %v6975_v16 = vld [vmem:[%s10250_s0 + $0x188] sm:$0xff]  ;;  %v3541_v36 = vsel %vm3445_vm6, %v3539_v24, %v3540_v33  ;;  %v4253_v58 = vsel %vm4157_vm7, %v4251_v19, %v4252_v39 }
 0x19c   :  { %v6504_v41 = vpop.f32.mrf.mxu1  ;;  %6747 = vmatmul.mubr.msk.f32.gmra.mxu1 %vm405_vm2, %v3534_v59  ;;  %v3544_v25 = vrot.slane %v6975_v16, 2  ;;  %6847 = vmatprep.mubr.msk.f32.mxu0 %vm405_vm2, %v4249_v48  ;;  %v4256_v0 = vrot.slane %v6975_v16, 3 }
 0x19d   :  { %v9495_v5 = vadd.f32 %v3102_v45, %v2677_v38  ;;  %v2680_v63 = vadd.f32 %v6504_v41, %v8836_v30  ;;  %6749 = vmatprep.mubr.msk.f32.mxu1 %vm405_vm2, %v3537_v42  ;;  %v3112_v52 = vpop.f32.mrf.mxu0  ;;  %v3542_v30 = vsel %vm3445_vm6, %v3540_v33, %v8995_v12  ;;  %v4254_v42 = vsel %vm4157_vm7, %v4252_v39, %v8998_v50  ;;  %v6976_v33 = vld [vmem:[%s10250_s0 + $0x190] sm:$0xff]  ;;  %v6977_v39 = vld [vmem:[%s10250_s0 + $0x198] sm:$0xff] }
 0x19e   :  { %v2400_v59 = vpop.f32.mrf.mxu1  ;;  %v3545_v48 = vsel %vm3445_vm6, %v3543_v1, %v3544_v25  ;;  %v4259_v15 = vrot.slane %v6976_v33, 3 }
 0x19f   :  { %v9502_v46 = vadd.f32 %v6602_v55, %v2680_v63  ;;  %v2679_v28 = vadd.f32 %v2400_v59, %v8841_v13  ;;  %v6605_v38 = vpop.f32.mrf.mxu0  ;;  %6848 = vmatmul.mubr.msk.f32.gmra.mxu0 %vm405_vm2, %v4250_v26  ;;  %v4257_v13 = vsel %vm4157_vm7, %v4255_v9, %v4256_v0  ;;  %v3548_v26 = vrot.slane %v6977_v39, 2 }
 0x1a0   :  { %v6507_v45 = vpop.f32.mrf.mxu1  ;;  %6750 = vmatmul.mubr.msk.f32.gmra.mxu1 %vm405_vm2, %v3538_v53  ;;  %6850 = vmatprep.mubr.msk.f32.mxu0 %vm405_vm2, %v4253_v58  ;;  %v3547_v53 = vrot.slane %v6976_v33, 2  ;;  %v3546_v59 = vsel %vm3445_vm6, %v3544_v25, %v8995_v12 }
 0x1a1   :  { %v9512_v24 = vadd.f32 %v3112_v52, %v2679_v28  ;;  %v2682_v19 = vadd.f32 %v6507_v45, %v8855_v2  ;;  %6752 = vmatprep.mubr.msk.f32.mxu1 %vm405_vm2, %v3541_v36  ;;  %v3122_v55 = vpop.f32.mrf.mxu0  ;;  %v4260_v2 = vrot.slane %v6977_v39, 3  ;;  %v4258_v52 = vsel %vm4157_vm7, %v4256_v0, %v8998_v50  ;;  %v6978_v36 = vld [vmem:[%s10250_s0 + $0x1a0] sm:$0xff] }
 0x1a2   :  { %v2410_v41 = vpop.f32.mrf.mxu1  ;;  %v3551_v58 = vrot.slane %v6978_v36, 2  ;;  %v4263_v25 = vrot.slane %v6978_v36, 3 }
 0x1a3   :  { %v9524_v1 = vadd.f32 %v6605_v38, %v2682_v19  ;;  %v2681_v16 = vadd.f32 %v2410_v41, %v8860_v62  ;;  %v6608_v9 = vpop.f32.mrf.mxu0  ;;  %6851 = vmatmul.mubr.msk.f32.gmra.mxu0 %vm405_vm2, %v4254_v42  ;;  %v6979_v62 = vld [vmem:[%s10250_s0 + $0x1a8] sm:$0xff]  ;;  %v3549_v19 = vsel %vm3445_vm6, %v3547_v53, %v3548_v26  ;;  %v4261_v41 = vsel %vm4157_vm7, %v4259_v15, %v4260_v2 }
 0x1a4   :  { %v6510_v63 = vpop.f32.mrf.mxu1  ;;  %6753 = vmatmul.mubr.msk.f32.gmra.mxu1 %vm405_vm2, %v3542_v30  ;;  %v3552_v28 = vrot.slane %v6979_v62, 2  ;;  %6853 = vmatprep.mubr.msk.f32.mxu0 %vm405_vm2, %v4257_v13  ;;  %v4264_v0 = vrot.slane %v6979_v62, 3 }
 0x1a5   :  { %v9539_v45 = vadd.f32 %v3122_v55, %v2681_v16  ;;  %v2684_v38 = vadd.f32 %v6510_v63, %v8874_v32  ;;  %6755 = vmatprep.mubr.msk.f32.mxu1 %vm405_vm2, %v3545_v48  ;;  %v3132_v42 = vpop.f32.mrf.mxu0  ;;  %v3550_v32 = vsel %vm3445_vm6, %v3548_v26, %v8995_v12  ;;  %v4262_v48 = vsel %vm4157_vm7, %v4260_v2, %v8998_v50  ;;  %v6980_v26 = vld [vmem:[%s10250_s0 + $0x1b0] sm:$0xff]  ;;  %v6981_v2 = vld [vmem:[%s10250_s0 + $0x1b8] sm:$0xff] }
 0x1a6   :  { %v2420_v30 = vpop.f32.mrf.mxu1  ;;  %v3553_v13 = vsel %vm3445_vm6, %v3551_v58, %v3552_v28  ;;  %v4267_v36 = vrot.slane %v6980_v26, 3 }
 0x1a7   :  { %v9546_v33 = vadd.f32 %v6608_v9, %v2684_v38  ;;  %v2683_v39 = vadd.f32 %v2420_v30, %v8879_v27  ;;  %v6611_v16 = vpop.f32.mrf.mxu0  ;;  %6854 = vmatmul.mubr.msk.f32.gmra.mxu0 %vm405_vm2, %v4258_v52  ;;  %v4265_v27 = vsel %vm4157_vm7, %v4263_v25, %v4264_v0  ;;  %v3556_v52 = vrot.slane %v6981_v2, 2 }
 0x1a8   :  { %v6513_v55 = vpop.f32.mrf.mxu1  ;;  %6756 = vmatmul.mubr.msk.f32.gmra.mxu1 %vm405_vm2, %v3546_v59  ;;  %6856 = vmatprep.mubr.msk.f32.mxu0 %vm405_vm2, %v4261_v41  ;;  %v3555_v59 = vrot.slane %v6980_v26, 2  ;;  %v3554_v30 = vsel %vm3445_vm6, %v3552_v28, %v8995_v12 }
 0x1a9   :  { %v9556_v53 = vadd.f32 %v3132_v42, %v2683_v39  ;;  %v2686_v15 = vadd.f32 %v6513_v55, %v8893_v44  ;;  %6758 = vmatprep.mubr.msk.f32.mxu1 %vm405_vm2, %v3549_v19  ;;  %v3142_v9 = vpop.f32.mrf.mxu0  ;;  %v4268_v44 = vrot.slane %v6981_v2, 3  ;;  %v4266_v42 = vsel %vm4157_vm7, %v4264_v0, %v8998_v50  ;;  %v6982_v19 = vld [vmem:[%s10250_s0 + $0x1c0] sm:$0xff] }
 0x1aa   :  { %v2430_v63 = vpop.f32.mrf.mxu1  ;;  %v3559_v41 = vrot.slane %v6982_v19, 2  ;;  %v4271_v28 = vrot.slane %v6982_v19, 3 }
 0x1ab   :  { %v9568_v58 = vadd.f32 %v6611_v16, %v2686_v15  ;;  %v2685_v62 = vadd.f32 %v2430_v63, %v8898_v57  ;;  %v6614_v25 = vpop.f32.mrf.mxu0  ;;  %6857 = vmatmul.mubr.msk.f32.gmra.mxu0 %vm405_vm2, %v4262_v48  ;;  %v6983_v57 = vld [vmem:[%s10250_s0 + $0x1c8] sm:$0xff]  ;;  %v3557_v15 = vsel %vm3445_vm6, %v3555_v59, %v3556_v52  ;;  %v4269_v63 = vsel %vm4157_vm7, %v4267_v36, %v4268_v44 }
 0x1ac   :  { %v6516_v38 = vpop.f32.mrf.mxu1  ;;  %6759 = vmatmul.mubr.msk.f32.gmra.mxu1 %vm405_vm2, %v3550_v32  ;;  %v3560_v39 = vrot.slane %v6983_v57, 2  ;;  %6859 = vmatprep.mubr.msk.f32.mxu0 %vm405_vm2, %v4265_v27  ;;  %v4272_v0 = vrot.slane %v6983_v57, 3 }
 0x1ad   :  { %v9583_v55 = vadd.f32 %v3142_v9, %v2685_v62  ;;  %v2688_v16 = vadd.f32 %v6516_v38, %v8912_v29  ;;  %6761 = vmatprep.mubr.msk.f32.mxu1 %vm405_vm2, %v3553_v13  ;;  %v3152_v48 = vpop.f32.mrf.mxu0  ;;  %v3558_v29 = vsel %vm3445_vm6, %v3556_v52, %v8995_v12  ;;  %v4270_v13 = vsel %vm4157_vm7, %v4268_v44, %v8998_v50  ;;  %v6984_v52 = vld [vmem:[%s10250_s0 + $0x1d0] sm:$0xff]  ;;  %v6985_v44 = vld [vmem:[%s10250_s0 + $0x1d8] sm:$0xff] }
 0x1ae   :  { %v2440_v32 = vpop.f32.mrf.mxu1  ;;  %v3561_v27 = vsel %vm3445_vm6, %v3559_v41, %v3560_v39  ;;  %v4275_v19 = vrot.slane %v6984_v52, 3 }
 0x1af   :  { %v9590_v26 = vadd.f32 %v6614_v25, %v2688_v16  ;;  %v2687_v2 = vadd.f32 %v2440_v32, %v8917_v14  ;;  %v6617_v62 = vpop.f32.mrf.mxu0  ;;  %6860 = vmatmul.mubr.msk.f32.gmra.mxu0 %vm405_vm2, %v4266_v42  ;;  %v4273_v14 = vsel %vm4157_vm7, %v4271_v28, %v4272_v0  ;;  %v3564_v42 = vrot.slane %v6985_v44, 2 }
 0x1b0   :  { %v6519_v9 = vpop.f32.mrf.mxu1  ;;  %6762 = vmatmul.mubr.msk.f32.gmra.mxu1 %vm405_vm2, %v3554_v30  ;;  %6862 = vmatprep.mubr.msk.f32.mxu0 %vm405_vm2, %v4269_v63  ;;  %v3563_v30 = vrot.slane %v6984_v52, 2  ;;  %v3562_v32 = vsel %vm3445_vm6, %v3560_v39, %v8995_v12 }
 0x1b1   :  { %v9600_v59 = vadd.f32 %v3152_v48, %v2687_v2  ;;  %v2690_v36 = vadd.f32 %v6519_v9, %v8931_v31  ;;  %6764 = vmatprep.mubr.msk.f32.mxu1 %vm405_vm2, %v3557_v15  ;;  %v3162_v25 = vpop.f32.mrf.mxu0  ;;  %v4276_v31 = vrot.slane %v6985_v44, 3  ;;  %v4274_v48 = vsel %vm4157_vm7, %v4272_v0, %v8998_v50  ;;  %v6986_v15 = vld [vmem:[%s10250_s0 + $0x1e0] sm:$0xff] }
 0x1b2   :  { %v2450_v38 = vpop.f32.mrf.mxu1  ;;  %v3567_v63 = vrot.slane %v6986_v15, 2  ;;  %v4279_v39 = vrot.slane %v6986_v15, 3 }
 0x1b3   :  { %10549 = vst [vmem:[#allocation23_spill] sm:$0xff] %v9600_v59  ;;  %v9612_v41 = vadd.f32 %v6617_v62, %v2690_v36  ;;  %v2689_v57 = vadd.f32 %v2450_v38, %v8936_v56  ;;  %v6620_v28 = vpop.f32.mrf.mxu0  ;;  %6863 = vmatmul.mubr.msk.f32.gmra.mxu0 %vm405_vm2, %v4270_v13  ;;  %v6987_v56 = vld [vmem:[%s10250_s0 + $0x1e8] sm:$0xff]  ;;  %v10551_v62 = vld [vmem:[#allocation42_spill] sm:$0xff]  ;;  %v3565_v38 = vsel %vm3445_vm6, %v3563_v30, %v3564_v42 }
 0x1b4   :  { %v6522_v16 = vpop.f32.mrf.mxu1  ;;  %6765 = vmatmul.mubr.msk.f32.gmra.mxu1 %vm405_vm2, %v3558_v29  ;;  %v3568_v2 = vrot.slane %v6987_v56, 2  ;;  %6865 = vmatprep.mubr.msk.f32.mxu0 %vm405_vm2, %v4273_v14  ;;  %v4280_v0 = vrot.slane %v6987_v56, 3  ;;  %v4277_v52 = vsel %vm4157_vm7, %v4275_v19, %v4276_v31  ;;  %v4278_v14 = vsel %vm4157_vm7, %v4276_v31, %v8998_v50 }
 0x1b5   :  { %10550 = vst [vmem:[#allocation24_spill] sm:$0xff] %v9612_v41  ;;  %v9627_v9 = vadd.f32 %v3162_v25, %v2689_v57  ;;  %v2692_v29 = vadd.f32 %v6522_v16, %v10551_v62  ;;  %6767 = vmatprep.mubr.msk.f32.mxu1 %vm405_vm2, %v3561_v27  ;;  %v3172_v36 = vpop.f32.mrf.mxu0  ;;  %v10552_v41 = vld [vmem:[#allocation43_spill] sm:$0xff]  ;;  %v3566_v27 = vsel %vm3445_vm6, %v3564_v42, %v8995_v12  ;;  %v6988_v42 = vld [vmem:[%s10250_s0 + $0x1f0] sm:$0xff] }
 0x1b6   :  { %v2460_v13 = vpop.f32.mrf.mxu1  ;;  %v3569_v30 = vsel %vm3445_vm6, %v3567_v63, %v3568_v2  ;;  %v4283_v15 = vrot.slane %v6988_v42, 3 }
 0x1b7   :  { %v9634_v44 = vadd.f32 %v6620_v28, %v2692_v29  ;;  %v2691_v59 = vadd.f32 %v2460_v13, %v10552_v41  ;;  %v6623_v57 = vpop.f32.mrf.mxu0  ;;  %6866 = vmatmul.mubr.msk.f32.gmra.mxu0 %vm405_vm2, %v4274_v48  ;;  %v4281_v41 = vsel %vm4157_vm7, %v4279_v39, %v4280_v0  ;;  %v3571_v48 = vrot.slane %v6988_v42, 2 }
 0x1b8   :  { %v6525_v25 = vpop.f32.mrf.mxu1  ;;  %6768 = vmatmul.mubr.msk.f32.gmra.mxu1 %vm405_vm2, %v3562_v32  ;;  %6868 = vmatprep.mubr.msk.f32.mxu0 %vm405_vm2, %v4277_v52  ;;  %v3570_v39 = vsel %vm3445_vm6, %v3568_v2, %v8995_v12 }
 0x1b9   :  { %v9644_v16 = vadd.f32 %v3172_v36, %v2691_v59  ;;  %v2694_v19 = vadd.f32 %v6525_v25, %v8969_v21  ;;  %6770 = vmatprep.mubr.msk.f32.mxu1 %vm405_vm2, %v3565_v38  ;;  %v3182_v32 = vpop.f32.mrf.mxu0  ;;  %v6989_v59 = vld [vmem:[%s10250_s0 + $0x1f8] sm:$0xff] }
 0x1ba   :  { %v2470_v28 = vpop.f32.mrf.mxu1  ;;  %v3572_v31 = vrot.slane %v6989_v59, 2  ;;  %v4284_v21 = vrot.slane %v6989_v59, 3 }
 0x1bb   :  { %v9656_v63 = vadd.f32 %v6623_v57, %v2694_v19  ;;  %v2693_v56 = vadd.f32 %v2470_v28, %v8979_v61  ;;  %v6626_v29 = vpop.f32.mrf.mxu0  ;;  %6869 = vmatmul.mubr.msk.f32.gmra.mxu0 %vm405_vm2, %v4278_v14  ;;  %v4282_v61 = vsel %vm4157_vm7, %v4280_v0, %v8998_v50 }
 0x1bc   :  { %v6528_v62 = vpop.f32.mrf.mxu1  ;;  %6771 = vmatmul.mubr.msk.f32.gmra.mxu1 %vm405_vm2, %v3566_v27  ;;  %6871 = vmatprep.mubr.msk.f32.mxu0 %vm405_vm2, %v4281_v41  ;;  %v3573_v25 = vsel %vm3445_vm6, %v3571_v48, %v3572_v31  ;;  %v4285_v57 = vsel %vm4157_vm7, %v4283_v15, %v4284_v21 }
 0x1bd   :  { %v9663_v13 = vadd.f32 %v3182_v32, %v2693_v56  ;;  %v2696_v36 = vadd.f32 %v6528_v62, %v8986_v37  ;;  %6773 = vmatprep.mubr.msk.f32.mxu1 %vm405_vm2, %v3569_v30  ;;  %v3192_v52 = vpop.f32.mrf.mxu0  ;;  %v3574_v37 = vsel %vm3445_vm6, %v3572_v31, %v8995_v12 }
 0x1be   :  { %v2480_v38 = vpop.f32.mrf.mxu1 }
 0x1bf   :  { %v9672_v27 = vadd.f32 %v6626_v29, %v2696_v36  ;;  %v2695_v2 = vadd.f32 %v2480_v38, %v9000_v43  ;;  %v6629_v19 = vpop.f32.mrf.mxu0  ;;  %6872 = vmatmul.mubr.msk.f32.gmra.mxu0 %vm405_vm2, %v4282_v61  ;;  %v4286_v43 = vsel %vm4157_vm7, %v4284_v21, %v8998_v50 }
 0x1c0   :  { %v6531_v14 = vpop.f32.mrf.mxu1  ;;  %6774 = vmatmul.mubr.msk.f32.gmra.mxu1 %vm405_vm2, %v3570_v39  ;;  %6874 = vmatprep.mubr.msk.f32.mxu0 %vm405_vm2, %v4285_v57 }
 0x1c1   :  { %v9679_v0 = vadd.f32 %v3192_v52, %v2695_v2  ;;  %v2698_v30 = vadd.f32 %v6531_v14, %v9010_v47  ;;  %6776 = vmatprep.mubr.msk.f32.mxu1 %vm405_vm2, %v3573_v25  ;;  %v3202_v28 = vpop.f32.mrf.mxu0 }
 0x1c2   :  { %v2490_v41 = vpop.f32.mrf.mxu1 }
 0x1c3   :  { %v9686_v32 = vadd.f32 %v6629_v19, %v2698_v30  ;;  %v2697_v42 = vadd.f32 %v2490_v41, %v9021_v34  ;;  %v6632_v59 = vpop.f32.mrf.mxu0  ;;  %6875 = vmatmul.mubr.msk.f32.gmra.mxu0 %vm405_vm2, %v4286_v43 }
 0x1c4   :  { %v6534_v48 = vpop.f32.mrf.mxu1  ;;  %6777 = vmatmul.mubr.msk.f32.gmra.mxu1 %vm405_vm2, %v3574_v37 }
 0x1c5   :  { %v9691_v12 = vadd.f32 %v3202_v28, %v2697_v42  ;;  %v2700_v47 = vadd.f32 %v6534_v48, %v9030_v23  ;;  %v3212_v15 = vpop.f32.mrf.mxu0  ;;  %v10553_v42 = vld [vmem:[#allocation20_spill] sm:$0xff] }
 0x1c6   :  { %v2500_v31 = vpop.f32.mrf.mxu1 }
 0x1c7   :  { %v9694_v56 = vadd.f32 %v6632_v59, %v2700_v47  ;;  %v2699_v50 = vadd.f32 %v2500_v31, %v9040_v40  ;;  %v6635_v62 = vpop.f32.mrf.mxu0  ;;  %v10554_v31 = vld [vmem:[#allocation16_spill] sm:$0xff] }
 0x1c8   :  { %v6537_v21 = vpop.f32.mrf.mxu1 }
 0x1c9   :  { %v9697_v29 = vadd.f32 %v3212_v15, %v2699_v50  ;;  %v2702_v34 = vadd.f32 %v6537_v21, %v9050_v20  ;;  %v3222_v36 = vpop.f32.mrf.mxu0 }
 0x1ca   :  { %v2510_v39 = vpop.f32.mrf.mxu1 }
 0x1cb   :  { %v9700_v61 = vadd.f32 %v6635_v62, %v2702_v34  ;;  %v2701_v38 = vadd.f32 %v2510_v39, %v9061_v18  ;;  %v6638_v23 = vpop.f32.mrf.mxu0  ;;  %v10555_v62 = vld [vmem:[#allocation18_spill] sm:$0xff] }
 0x1cc   :  { %v6540_v52 = vpop.f32.mrf.mxu1 }
 0x1cd   :  { %v9703_v25 = vadd.f32 %v3222_v36, %v2701_v38  ;;  %v2704_v57 = vadd.f32 %v6540_v52, %v9070_v3  ;;  %v3232_v40 = vpop.f32.mrf.mxu0  ;;  %v10556_v38 = vld [vmem:[#allocation22_spill] sm:$0xff] }
 0x1ce   :  { %v2520_v2 = vpop.f32.mrf.mxu1 }
 0x1cf   :  { %v9706_v14 = vadd.f32 %v6638_v23, %v2704_v57  ;;  %v2703_v19 = vadd.f32 %v2520_v2, %v9080_v51  ;;  %v6641_v20 = vpop.f32.mrf.mxu0 }
 0x1d0   :  { %v6543_v37 = vpop.f32.mrf.mxu1 }
 0x1d1   :  { %v9709_v30 = vadd.f32 %v3232_v40, %v2703_v19  ;;  %v2706_v43 = vadd.f32 %v6543_v37, %v9090_v54  ;;  %v3242_v18 = vpop.f32.mrf.mxu0  ;;  %v10557_v40 = vld [vmem:[#allocation3_spill] sm:$0xff] }
 0x1d2   :  { %v2530_v41 = vpop.f32.mrf.mxu1 }
 0x1d3   :  { %v9712_v28 = vadd.f32 %v6641_v20, %v2706_v43  ;;  %v2705_v48 = vadd.f32 %v2530_v41, %v10553_v42  ;;  %v6644_v3 = vpop.f32.mrf.mxu0  ;;  %v10558_v41 = vld [vmem:[#allocation5_spill] sm:$0xff] }
 0x1d4   :  { %v6546_v59 = vpop.f32.mrf.mxu1 }
 0x1d5   :  { %v9715_v47 = vadd.f32 %v3242_v18, %v2705_v48  ;;  %v2708_v15 = vadd.f32 %v6546_v59, %v10554_v31  ;;  %v3252_v51 = vpop.f32.mrf.mxu0 }
 0x1d6   :  { %v2540_v50 = vpop.f32.mrf.mxu1 }
 0x1d7   :  { %v9718_v21 = vadd.f32 %v6644_v3, %v2708_v15  ;;  %v2707_v34 = vadd.f32 %v2540_v50, %v10555_v62  ;;  %v6647_v54 = vpop.f32.mrf.mxu0  ;;  %v10559_v3 = vld [vmem:[#allocation2_spill] sm:$0xff] }
 0x1d8   :  { %v6549_v39 = vpop.f32.mrf.mxu1  ;;  %v10560_v62 = vld [vmem:[#allocation26_spill] sm:$0xff] }
 0x1d9   :  { %v9721_v36 = vadd.f32 %v3252_v51, %v2707_v34  ;;  %v2710_v52 = vadd.f32 %v6549_v39, %v10556_v38  ;;  %v3262_v57 = vpop.f32.mrf.mxu0 }
 0x1da   :  { %v2550_v23 = vpop.f32.mrf.mxu1 }
 0x1db   :  { %v9724_v2 = vadd.f32 %v6647_v54, %v2710_v52  ;;  %v2709_v19 = vadd.f32 %v2550_v23, %v10557_v40  ;;  %v6650_v20 = vpop.f32.mrf.mxu0  ;;  %v10562_v52 = vld [vmem:[#allocation6_spill] sm:$0xff] }
 0x1dc   :  { %v6552_v37 = vpop.f32.mrf.mxu1 }
 0x1dd   :  { %v9727_v43 = vadd.f32 %v3262_v57, %v2709_v19  ;;  %v2712_v18 = vadd.f32 %v6552_v37, %v10558_v41  ;;  %v3272_v48 = vpop.f32.mrf.mxu0  ;;  %v10564_v37 = vld [vmem:[#allocation4_spill] sm:$0xff] }
 0x1de   :  { %v2560_v42 = vpop.f32.mrf.mxu1 }
 0x1df   :  { %v9730_v59 = vadd.f32 %v6650_v20, %v2712_v18  ;;  %v2711_v31 = vadd.f32 %v2560_v42, %v10559_v3  ;;  %v6653_v50 = vpop.f32.mrf.mxu0 }
 0x1e0   :  { %v6555_v15 = vpop.f32.mrf.mxu1 }
 0x1e1   :  { %v9733_v51 = vadd.f32 %v3272_v48, %v2711_v31  ;;  %v2714_v34 = vadd.f32 %v6555_v15, %v10560_v62  ;;  %v3282_v54 = vpop.f32.mrf.mxu0  ;;  %v10566_v48 = vld [vmem:[#allocation7_spill] sm:$0xff] }
 0x1e2   :  { %v2570_v39 = vpop.f32.mrf.mxu1 }
 0x1e3   :  { %v9736_v38 = vadd.f32 %v6653_v50, %v2714_v34  ;;  %v2713_v23 = vadd.f32 %v2570_v39, %v10562_v52  ;;  %v6656_v40 = vpop.f32.mrf.mxu0  ;;  %v10568_v50 = vld [vmem:[#allocation8_spill] sm:$0xff] }
 0x1e4   :  { %v6558_v57 = vpop.f32.mrf.mxu1 }
 0x1e5   :  { %10561 = vst [vmem:[#allocation25_spill] sm:$0xff] %v9736_v38  ;;  %v9739_v19 = vadd.f32 %v3282_v54, %v2713_v23  ;;  %v2716_v20 = vadd.f32 %v6558_v57, %v10564_v37  ;;  %v3292_v18 = vpop.f32.mrf.mxu0  ;;  %v10570_v54 = vld [vmem:[#allocation11_spill] sm:$0xff] }
 0x1e6   :  { %v2580_v41 = vpop.f32.mrf.mxu1 }
 0x1e7   :  { %10563 = vst [vmem:[#allocation30_spill] sm:$0xff] %v9739_v19  ;;  %v9742_v42 = vadd.f32 %v6656_v40, %v2716_v20  ;;  %v2715_v3 = vadd.f32 %v2580_v41, %v10566_v48  ;;  %v6659_v15 = vpop.f32.mrf.mxu0  ;;  %v10572_v40 = vld [vmem:[#allocation27_spill] sm:$0xff] }
 0x1e8   :  { %v6561_v31 = vpop.f32.mrf.mxu1 }
 0x1e9   :  { %10565 = vst [vmem:[#allocation31_spill] sm:$0xff] %v9742_v42  ;;  %v9745_v62 = vadd.f32 %v3292_v18, %v2715_v3  ;;  %v2718_v34 = vadd.f32 %v6561_v31, %v10568_v50  ;;  %v3302_v39 = vpop.f32.mrf.mxu0  ;;  %v10574_v18 = vld [vmem:[#allocation9_spill] sm:$0xff] }
 0x1ea   :  { %v2590_v38 = vpop.f32.mrf.mxu1 }
 0x1eb   :  { %10567 = vst [vmem:[#allocation32_spill] sm:$0xff] %v9745_v62  ;;  %v9748_v52 = vadd.f32 %v6659_v15, %v2718_v34  ;;  %v2717_v23 = vadd.f32 %v2590_v38, %v10570_v54  ;;  %v6662_v57 = vpop.f32.mrf.mxu0  ;;  %v10576_v15 = vld [vmem:[#allocation28_spill] sm:$0xff] }
 0x1ec   :  { %v6564_v19 = vpop.f32.mrf.mxu1 }
 0x1ed   :  { %10569 = vst [vmem:[#allocation33_spill] sm:$0xff] %v9748_v52  ;;  %v9751_v37 = vadd.f32 %v3302_v39, %v2717_v23  ;;  %v2720_v20 = vadd.f32 %v6564_v19, %v10572_v40  ;;  %v3312_v41 = vpop.f32.mrf.mxu0  ;;  %v10578_v39 = vld [vmem:[#allocation12_spill] sm:$0xff] }
 0x1ee   :  { %v2600_v42 = vpop.f32.mrf.mxu1 }
 0x1ef   :  { %10571 = vst [vmem:[#allocation34_spill] sm:$0xff] %v9751_v37  ;;  %v9754_v48 = vadd.f32 %v6662_v57, %v2720_v20  ;;  %v2719_v3 = vadd.f32 %v2600_v42, %v10574_v18  ;;  %v6665_v31 = vpop.f32.mrf.mxu0  ;;  %v10580_v57 = vld [vmem:[#allocation10_spill] sm:$0xff] }
 0x1f0   :  { %v6567_v62 = vpop.f32.mrf.mxu1 }
 0x1f1   :  { %10573 = vst [vmem:[#allocation35_spill] sm:$0xff] %v9754_v48  ;;  %v9757_v50 = vadd.f32 %v3312_v41, %v2719_v3  ;;  %v2722_v34 = vadd.f32 %v6567_v62, %v10576_v15  ;;  %v3322_v38 = vpop.f32.mrf.mxu0  ;;  %v10582_v41 = vld [vmem:[#allocation13_spill] sm:$0xff] }
 0x1f2   :  { %v2610_v52 = vpop.f32.mrf.mxu1 }
 0x1f3   :  { %10575 = vst [vmem:[#allocation36_spill] sm:$0xff] %v9757_v50  ;;  %v9760_v54 = vadd.f32 %v6665_v31, %v2722_v34  ;;  %v2721_v23 = vadd.f32 %v2610_v52, %v10578_v39  ;;  %v6668_v19 = vpop.f32.mrf.mxu0  ;;  %v10584_v31 = vld [vmem:[#allocation14_spill] sm:$0xff] }
 0x1f4   :  { %v6570_v37 = vpop.f32.mrf.mxu1 }
 0x1f5   :  { %10577 = vst [vmem:[#allocation37_spill] sm:$0xff] %v9760_v54  ;;  %v9763_v40 = vadd.f32 %v3322_v38, %v2721_v23  ;;  %v2724_v20 = vadd.f32 %v6570_v37, %v10580_v57  ;;  %v3332_v42 = vpop.f32.mrf.mxu0  ;;  %v10586_v38 = vld [vmem:[#allocation15_spill] sm:$0xff] }
 0x1f6   :  { %v2620_v48 = vpop.f32.mrf.mxu1 }
 0x1f7   :  { %10579 = vst [vmem:[#allocation38_spill] sm:$0xff] %v9763_v40  ;;  %v9766_v18 = vadd.f32 %v6668_v19, %v2724_v20  ;;  %v2723_v3 = vadd.f32 %v2620_v48, %v10582_v41  ;;  %v6671_v62 = vpop.f32.mrf.mxu0  ;;  %v10587_v19 = vld [vmem:[#allocation19_spill] sm:$0xff] }
 0x1f8   :  { %v6573_v50 = vpop.f32.mrf.mxu1 }
 0x1f9   :  { %10581 = vst [vmem:[#allocation39_spill] sm:$0xff] %v9766_v18  ;;  %v9769_v15 = vadd.f32 %v3332_v42, %v2723_v3  ;;  %v2726_v34 = vadd.f32 %v6573_v50, %v10584_v31  ;;  %v3342_v52 = vpop.f32.mrf.mxu0  ;;  %v10588_v42 = vld [vmem:[#allocation29_spill] sm:$0xff] }
 0x1fa   :  { %v2630_v54 = vpop.f32.mrf.mxu1 }
 0x1fb   :  { %10583 = vst [vmem:[#allocation40_spill] sm:$0xff] %v9769_v15  ;;  %v9772_v39 = vadd.f32 %v6671_v62, %v2726_v34  ;;  %v2725_v23 = vadd.f32 %v2630_v54, %v10586_v38  ;;  %v6674_v37 = vpop.f32.mrf.mxu0  ;;  %v10589_v62 = vld [vmem:[#allocation17_spill] sm:$0xff] }
 0x1fc   :  { %v6576_v40 = vpop.f32.mrf.mxu1 }
 0x1fd   :  { %10585 = vst [vmem:[#allocation41_spill] sm:$0xff] %v9772_v39  ;;  %v9775_v57 = vadd.f32 %v3342_v52, %v2725_v23  ;;  %v2728_v20 = vadd.f32 %v6576_v40, %v10587_v19  ;;  %v3352_v48 = vpop.f32.mrf.mxu0 }
 0x1fe   :  { %v2640_v18 = vpop.f32.mrf.mxu1 }
 0x1ff   :  { %v9778_v41 = vadd.f32 %v6674_v37, %v2728_v20  ;;  %v2727_v3 = vadd.f32 %v2640_v18, %v10588_v42  ;;  %v6677_v50 = vpop.f32.mrf.mxu0 }
 0x200   :  { %v6579_v15 = vpop.f32.mrf.mxu1 }
 0x201   :  { %v9781_v31 = vadd.f32 %v3352_v48, %v2727_v3  ;;  %v2730_v34 = vadd.f32 %v6579_v15, %v10589_v62  ;;  %v3362_v54 = vpop.f32.mrf.mxu0 }
 0x202   :  { %v2650_v39 = vpop.f32.mrf.mxu1 }
 0x203   :  { %v9784_v38 = vadd.f32 %v6677_v50, %v2730_v34  ;;  %v2729_v52 = vadd.f32 %v2650_v39, %v9363_v4  ;;  %v6680_v40 = vpop.f32.mrf.mxu0 }
 0x204   :  { %v6582_v23 = vpop.f32.mrf.mxu1 }
 0x205   :  { %v9787_v19 = vadd.f32 %v3362_v54, %v2729_v52  ;;  %v2732_v37 = vadd.f32 %v6582_v23, %v9370_v17  ;;  %v3372_v18 = vpop.f32.mrf.mxu0 }
 0x206   :  { %v2660_v20 = vpop.f32.mrf.mxu1 }
 0x207   :  { %v9790_v42 = vadd.f32 %v6680_v40, %v2732_v37  ;;  %v2731_v48 = vadd.f32 %v2660_v20, %v9380_v35  ;;  %v6783_v15 = vpop.f32.mrf.mxu0 }
 0x208   :  { %v6685_v3 = vpop.f32.mrf.mxu1 }
 0x209   :  { %10590 = vst [vmem:[#allocation42_spill] sm:$0xff] %v9790_v42  ;;  %v9793_v62 = vadd.f32 %v3372_v18, %v2731_v48  ;;  %v4094_v50 = vadd.f32 %v6685_v3, %v9392_v8  ;;  %v4486_v39 = vpop.f32.mrf.mxu0 }
 0x20a   :  { %v3774_v4 = vpop.f32.mrf.mxu1 }
 0x20b   :  { %10591 = vst [vmem:[#allocation43_spill] sm:$0xff] %v9793_v62  ;;  %v4806_v34 = vadd.f32 %v6783_v15, %v4094_v50  ;;  %v4093_v54 = vadd.f32 %v3774_v4, %v9407_v60  ;;  %v6786_v17 = vpop.f32.mrf.mxu0 }
 0x20c   :  { %v6688_v52 = vpop.f32.mrf.mxu1 }
 0x20d   :  { %4871 = vst.msk [vmem:[%s10251_s2 + $0x8] sm:$0xff] %vm4869_vm8, %v4806_v34  ;;  %v5070_v35 = vmul.f32 %v4806_v34, %v4806_v34  ;;  %v4805_v23 = vadd.f32 %v4486_v39, %v4093_v54  ;;  %v4096_v40 = vadd.f32 %v6688_v52, %v9414_v10  ;;  %v4496_v20 = vpop.f32.mrf.mxu0  ;;  %v4935_v8 = vsel %vm4869_vm8, %v4806_v34, 0.0  ;;  %v10592_v34 = vld [vmem:[#allocation21_spill] sm:$0xff] }
 0x20e   :  { %v3784_v37 = vpop.f32.mrf.mxu1 }
 0x20f   :  { %4870 = vst.msk [vmem:[%s10251_s2] sm:$0xff] %vm4869_vm8, %v4805_v23  ;;  %v4934_v60 = vsel %vm4869_vm8, %v4805_v23, 0.0  ;;  %v5069_v18 = vmul.f32 %v4805_v23, %v4805_v23  ;;  %v4808_v48 = vadd.f32 %v6786_v17, %v4096_v40  ;;  %v4095_v15 = vadd.f32 %v3784_v37, %v9424_v11  ;;  %v6789_v4 = vpop.f32.mrf.mxu0 }
 0x210   :  { %v4936_v3 = vadd.f32 %v4935_v8, %v4934_v60  ;;  %v6691_v50 = vpop.f32.mrf.mxu1  ;;  %v5134_v10 = vsel %vm4869_vm8, %v5070_v35, 0.0 }
 0x211   :  { %v5133_v39 = vsel %vm4869_vm8, %v5069_v18, 0.0  ;;  %4873 = vst.msk [vmem:[%s10251_s2 + $0x18] sm:$0xff] %vm4869_vm8, %v4808_v48  ;;  %v4098_v54 = vadd.f32 %v6691_v50, %v10592_v34  ;;  %v4807_v62 = vadd.f32 %v4496_v20, %v4095_v15  ;;  %v4506_v17 = vpop.f32.mrf.mxu0  ;;  %v5072_v40 = vmul.f32 %v4808_v48, %v4808_v48 }
 0x212   :  { %v5135_v52 = vadd.f32 %v5134_v10, %v5133_v39  ;;  %v3794_v23 = vpop.f32.mrf.mxu1  ;;  %v4939_v15 = vsel %vm4869_vm8, %v4808_v48, 0.0 }
 0x213   :  { %v4810_v8 = vadd.f32 %v6789_v4, %v4098_v54  ;;  %v4097_v11 = vadd.f32 %v3794_v23, %v9451_v6  ;;  %4872 = vst.msk [vmem:[%s10251_s2 + $0x10] sm:$0xff] %vm4869_vm8, %v4807_v62  ;;  %v4937_v35 = vsel %vm4869_vm8, %v4807_v62, 0.0  ;;  %v5071_v37 = vmul.f32 %v4807_v62, %v4807_v62  ;;  %v6792_v18 = vpop.f32.mrf.mxu0 }
 0x214   :  { %v6694_v60 = vpop.f32.mrf.mxu1  ;;  %v4938_v42 = vadd.f32 %v4937_v35, %v4936_v3  ;;  %v5138_v39 = vsel %vm4869_vm8, %v5072_v40, 0.0 }
 0x215   :  { %4875 = vst.msk [vmem:[%s10251_s2 + $0x28] sm:$0xff] %vm4869_vm8, %v4810_v8  ;;  %v4809_v20 = vadd.f32 %v4506_v17, %v4097_v11  ;;  %v5136_v6 = vsel %vm4869_vm8, %v5071_v37, 0.0  ;;  %v4100_v50 = vadd.f32 %v6694_v60, %v9458_v7  ;;  %v4516_v10 = vpop.f32.mrf.mxu0  ;;  %v5074_v54 = vmul.f32 %v4810_v8, %v4810_v8 }
 0x216   :  { %v3804_v4 = vpop.f32.mrf.mxu1  ;;  %v5137_v62 = vadd.f32 %v5136_v6, %v5135_v52  ;;  %v4940_v3 = vadd.f32 %v4939_v15, %v4938_v42  ;;  %v4943_v52 = vsel %vm4869_vm8, %v4810_v8, 0.0 }
 0x217   :  { %4874 = vst.msk [vmem:[%s10251_s2 + $0x20] sm:$0xff] %vm4869_vm8, %v4809_v20  ;;  %v4941_v34 = vsel %vm4869_vm8, %v4809_v20, 0.0  ;;  %v5073_v23 = vmul.f32 %v4809_v20, %v4809_v20  ;;  %v4812_v48 = vadd.f32 %v6792_v18, %v4100_v50  ;;  %v4099_v17 = vadd.f32 %v3804_v4, %v9468_v22  ;;  %v6795_v7 = vpop.f32.mrf.mxu0 }
 0x218   :  { %v6697_v11 = vpop.f32.mrf.mxu1  ;;  %v4942_v35 = vadd.f32 %v4941_v34, %v4940_v3  ;;  %v5139_v37 = vadd.f32 %v5138_v39, %v5137_v62 }
 0x219   :  { %v4102_v40 = vadd.f32 %v6697_v11, %v9480_v49  ;;  %v5140_v60 = vsel %vm4869_vm8, %v5073_v23, 0.0  ;;  %4877 = vst.msk [vmem:[%s10251_s2 + $0x38] sm:$0xff] %vm4869_vm8, %v4812_v48  ;;  %v5076_v42 = vmul.f32 %v4812_v48, %v4812_v48  ;;  %v4811_v20 = vadd.f32 %v4516_v10, %v4099_v17  ;;  %v4526_v15 = vpop.f32.mrf.mxu0 }
 0x21a   :  { %v3814_v18 = vpop.f32.mrf.mxu1  ;;  %v5141_v22 = vadd.f32 %v5140_v60, %v5139_v37  ;;  %v4944_v6 = vadd.f32 %v4943_v52, %v4942_v35  ;;  %v5142_v49 = vsel %vm4869_vm8, %v5074_v54, 0.0 }
 0x21b   :  { %v4814_v50 = vadd.f32 %v6795_v7, %v4102_v40  ;;  %v4101_v4 = vadd.f32 %v3814_v18, %v9495_v5  ;;  %4876 = vst.msk [vmem:[%s10251_s2 + $0x30] sm:$0xff] %vm4869_vm8, %v4811_v20  ;;  %v4945_v8 = vsel %vm4869_vm8, %v4811_v20, 0.0  ;;  %v5075_v39 = vmul.f32 %v4811_v20, %v4811_v20  ;;  %v6798_v3 = vpop.f32.mrf.mxu0 }
 0x21c   :  { %v6700_v62 = vpop.f32.mrf.mxu1  ;;  %v4946_v10 = vadd.f32 %v4945_v8, %v4944_v6  ;;  %v5143_v34 = vadd.f32 %v5142_v49, %v5141_v22  ;;  %v4947_v5 = vsel %vm4869_vm8, %v4812_v48, 0.0  ;;  %v5146_v35 = vsel %vm4869_vm8, %v5076_v42, 0.0 }
 0x21d   :  { %4879 = vst.msk [vmem:[%s10251_s2 + $0x48] sm:$0xff] %vm4869_vm8, %v4814_v50  ;;  %v5144_v54 = vsel %vm4869_vm8, %v5075_v39, 0.0  ;;  %v4813_v23 = vadd.f32 %v4526_v15, %v4101_v4  ;;  %v4104_v17 = vadd.f32 %v6700_v62, %v9502_v46  ;;  %v4536_v7 = vpop.f32.mrf.mxu0  ;;  %v5078_v60 = vmul.f32 %v4814_v50, %v4814_v50 }
 0x21e   :  { %v3824_v11 = vpop.f32.mrf.mxu1  ;;  %v5145_v37 = vadd.f32 %v5144_v54, %v5143_v34  ;;  %v4948_v40 = vadd.f32 %v4947_v5, %v4946_v10  ;;  %v4951_v49 = vsel %vm4869_vm8, %v4814_v50, 0.0 }
 0x21f   :  { %v4103_v52 = vadd.f32 %v3824_v11, %v9512_v24  ;;  %4878 = vst.msk [vmem:[%s10251_s2 + $0x40] sm:$0xff] %vm4869_vm8, %v4813_v23  ;;  %v4949_v48 = vsel %vm4869_vm8, %v4813_v23, 0.0  ;;  %v5077_v20 = vmul.f32 %v4813_v23, %v4813_v23  ;;  %v4816_v18 = vadd.f32 %v6798_v3, %v4104_v17  ;;  %v6801_v46 = vpop.f32.mrf.mxu0 }
 0x220   :  { %v6703_v15 = vpop.f32.mrf.mxu1  ;;  %v4950_v22 = vadd.f32 %v4949_v48, %v4948_v40  ;;  %v5147_v6 = vadd.f32 %v5146_v35, %v5145_v37  ;;  %v5150_v50 = vsel %vm4869_vm8, %v5078_v60, 0.0 }
 0x221   :  { %v4815_v4 = vadd.f32 %v4536_v7, %v4103_v52  ;;  %v4106_v42 = vadd.f32 %v6703_v15, %v9524_v1  ;;  %v5148_v24 = vsel %vm4869_vm8, %v5077_v20, 0.0  ;;  %4881 = vst.msk [vmem:[%s10251_s2 + $0x58] sm:$0xff] %vm4869_vm8, %v4816_v18  ;;  %v4546_v39 = vpop.f32.mrf.mxu0  ;;  %v5080_v34 = vmul.f32 %v4816_v18, %v4816_v18 }
 0x222   :  { %v3834_v8 = vpop.f32.mrf.mxu1  ;;  %v5149_v62 = vadd.f32 %v5148_v24, %v5147_v6  ;;  %v4952_v3 = vadd.f32 %v4951_v49, %v4950_v22  ;;  %v4955_v40 = vsel %vm4869_vm8, %v4816_v18, 0.0 }
 0x223   :  { %4880 = vst.msk [vmem:[%s10251_s2 + $0x50] sm:$0xff] %vm4869_vm8, %v4815_v4  ;;  %v4953_v1 = vsel %vm4869_vm8, %v4815_v4, 0.0  ;;  %v5079_v10 = vmul.f32 %v4815_v4, %v4815_v4  ;;  %v4818_v5 = vadd.f32 %v6801_v46, %v4106_v42  ;;  %v4105_v54 = vadd.f32 %v3834_v8, %v9539_v45  ;;  %v6804_v17 = vpop.f32.mrf.mxu0 }
 0x224   :  { %v6706_v23 = vpop.f32.mrf.mxu1  ;;  %v4954_v11 = vadd.f32 %v4953_v1, %v4952_v3  ;;  %v5151_v7 = vadd.f32 %v5150_v50, %v5149_v62  ;;  %v5154_v6 = vsel %vm4869_vm8, %v5080_v34, 0.0 }
 0x225   :  { %v5152_v35 = vsel %vm4869_vm8, %v5079_v10, 0.0  ;;  %v4108_v37 = vadd.f32 %v6706_v23, %v9546_v33  ;;  %4883 = vst.msk [vmem:[%s10251_s2 + $0x68] sm:$0xff] %vm4869_vm8, %v4818_v5  ;;  %v5082_v52 = vmul.f32 %v4818_v5, %v4818_v5  ;;  %v4817_v60 = vadd.f32 %v4546_v39, %v4105_v54  ;;  %v4556_v20 = vpop.f32.mrf.mxu0 }
 0x226   :  { %v3844_v48 = vpop.f32.mrf.mxu1  ;;  %v5153_v45 = vadd.f32 %v5152_v35, %v5151_v7  ;;  %v4956_v15 = vadd.f32 %v4955_v40, %v4954_v11 }
 0x227   :  { %v4820_v46 = vadd.f32 %v6804_v17, %v4108_v37  ;;  %v4107_v22 = vadd.f32 %v3844_v48, %v9556_v53  ;;  %4882 = vst.msk [vmem:[%s10251_s2 + $0x60] sm:$0xff] %vm4869_vm8, %v4817_v60  ;;  %v4957_v33 = vsel %vm4869_vm8, %v4817_v60, 0.0  ;;  %v5081_v18 = vmul.f32 %v4817_v60, %v4817_v60  ;;  %v6807_v42 = vpop.f32.mrf.mxu0 }
 0x228   :  { %v6709_v4 = vpop.f32.mrf.mxu1  ;;  %v4958_v49 = vadd.f32 %v4957_v33, %v4956_v15  ;;  %v5155_v24 = vadd.f32 %v5154_v6, %v5153_v45  ;;  %v4959_v53 = vsel %vm4869_vm8, %v4818_v5, 0.0  ;;  %v5158_v10 = vsel %vm4869_vm8, %v5082_v52, 0.0 }
 0x229   :  { %4885 = vst.msk [vmem:[%s10251_s2 + $0x78] sm:$0xff] %vm4869_vm8, %v4820_v46  ;;  %v5156_v8 = vsel %vm4869_vm8, %v5081_v18, 0.0  ;;  %v4819_v39 = vadd.f32 %v4556_v20, %v4107_v22  ;;  %v4110_v62 = vadd.f32 %v6709_v4, %v9568_v58  ;;  %v4566_v1 = vpop.f32.mrf.mxu0  ;;  %v5084_v23 = vmul.f32 %v4820_v46, %v4820_v46  ;;  %v10593_v18 = vld [vmem:[#allocation23_spill] sm:$0xff] }
 0x22a   :  { %v3854_v3 = vpop.f32.mrf.mxu1  ;;  %v5157_v50 = vadd.f32 %v5156_v8, %v5155_v24  ;;  %v4960_v34 = vadd.f32 %v4959_v53, %v4958_v49  ;;  %v4963_v60 = vsel %vm4869_vm8, %v4820_v46, 0.0 }
 0x22b   :  { %v4109_v54 = vadd.f32 %v3854_v3, %v9583_v55  ;;  %4884 = vst.msk [vmem:[%s10251_s2 + $0x70] sm:$0xff] %vm4869_vm8, %v4819_v39  ;;  %v4961_v5 = vsel %vm4869_vm8, %v4819_v39, 0.0  ;;  %v5083_v17 = vmul.f32 %v4819_v39, %v4819_v39  ;;  %v4822_v11 = vadd.f32 %v6807_v42, %v4110_v62  ;;  %v6810_v58 = vpop.f32.mrf.mxu0  ;;  %v10594_v39 = vld [vmem:[#allocation24_spill] sm:$0xff] }
 0x22c   :  { %v6712_v7 = vpop.f32.mrf.mxu1  ;;  %v4962_v35 = vadd.f32 %v4961_v5, %v4960_v34  ;;  %v5159_v37 = vadd.f32 %v5158_v10, %v5157_v50  ;;  %v5162_v46 = vsel %vm4869_vm8, %v5084_v23, 0.0 }
 0x22d   :  { %v4821_v40 = vadd.f32 %v4566_v1, %v4109_v54  ;;  %v4112_v52 = vadd.f32 %v6712_v7, %v9590_v26  ;;  %v5160_v55 = vsel %vm4869_vm8, %v5083_v17, 0.0  ;;  %4887 = vst.msk [vmem:[%s10251_s2 + $0x88] sm:$0xff] %vm4869_vm8, %v4822_v11  ;;  %v4576_v20 = vpop.f32.mrf.mxu0  ;;  %v5086_v6 = vmul.f32 %v4822_v11, %v4822_v11 }
 0x22e   :  { %v3864_v48 = vpop.f32.mrf.mxu1  ;;  %v5161_v45 = vadd.f32 %v5160_v55, %v5159_v37  ;;  %v4964_v15 = vadd.f32 %v4963_v60, %v4962_v35  ;;  %v4967_v3 = vsel %vm4869_vm8, %v4822_v11, 0.0 }
 0x22f   :  { %4886 = vst.msk [vmem:[%s10251_s2 + $0x80] sm:$0xff] %vm4869_vm8, %v4821_v40  ;;  %v4965_v26 = vsel %vm4869_vm8, %v4821_v40, 0.0  ;;  %v5085_v22 = vmul.f32 %v4821_v40, %v4821_v40  ;;  %v4824_v33 = vadd.f32 %v6810_v58, %v4112_v52  ;;  %v4111_v4 = vadd.f32 %v3864_v48, %v10593_v18  ;;  %v6813_v49 = vpop.f32.mrf.mxu0 }
 0x230   :  { %v6715_v42 = vpop.f32.mrf.mxu1  ;;  %v4966_v24 = vadd.f32 %v4965_v26, %v4964_v15  ;;  %v5163_v53 = vadd.f32 %v5162_v46, %v5161_v45  ;;  %v5166_v7 = vsel %vm4869_vm8, %v5086_v6, 0.0 }
 0x231   :  { %v5164_v8 = vsel %vm4869_vm8, %v5085_v22, 0.0  ;;  %v4114_v62 = vadd.f32 %v6715_v42, %v10594_v39  ;;  %4889 = vst.msk [vmem:[%s10251_s2 + $0x98] sm:$0xff] %vm4869_vm8, %v4824_v33  ;;  %v5088_v1 = vmul.f32 %v4824_v33, %v4824_v33  ;;  %v4823_v10 = vadd.f32 %v4576_v20, %v4111_v4  ;;  %v4586_v34 = vpop.f32.mrf.mxu0 }
 0x232   :  { %v3874_v50 = vpop.f32.mrf.mxu1  ;;  %v5165_v54 = vadd.f32 %v5164_v8, %v5163_v53  ;;  %v4968_v23 = vadd.f32 %v4967_v3, %v4966_v24 }
 0x233   :  { %v4826_v5 = vadd.f32 %v6813_v49, %v4114_v62  ;;  %v4113_v17 = vadd.f32 %v3874_v50, %v9627_v9  ;;  %4888 = vst.msk [vmem:[%s10251_s2 + $0x90] sm:$0xff] %vm4869_vm8, %v4823_v10  ;;  %v4969_v11 = vsel %vm4869_vm8, %v4823_v10, 0.0  ;;  %v5087_v58 = vmul.f32 %v4823_v10, %v4823_v10  ;;  %v6816_v37 = vpop.f32.mrf.mxu0 }
 0x234   :  { %v6718_v35 = vpop.f32.mrf.mxu1  ;;  %v4970_v40 = vadd.f32 %v4969_v11, %v4968_v23  ;;  %v5167_v52 = vadd.f32 %v5166_v7, %v5165_v54  ;;  %v4971_v9 = vsel %vm4869_vm8, %v4824_v33, 0.0  ;;  %v5170_v15 = vsel %vm4869_vm8, %v5088_v1, 0.0 }
 0x235   :  { %4891 = vst.msk [vmem:[%s10251_s2 + $0xa8] sm:$0xff] %vm4869_vm8, %v4826_v5  ;;  %v5168_v60 = vsel %vm4869_vm8, %v5087_v58, 0.0  ;;  %v4825_v55 = vadd.f32 %v4586_v34, %v4113_v17  ;;  %v4116_v48 = vadd.f32 %v6718_v35, %v9634_v44  ;;  %v4596_v45 = vpop.f32.mrf.mxu0  ;;  %v5090_v6 = vmul.f32 %v4826_v5, %v4826_v5 }
 0x236   :  { %v3884_v20 = vpop.f32.mrf.mxu1  ;;  %v5169_v26 = vadd.f32 %v5168_v60, %v5167_v52  ;;  %v4972_v22 = vadd.f32 %v4971_v9, %v4970_v40  ;;  %v4975_v39 = vsel %vm4869_vm8, %v4826_v5, 0.0 }
 0x237   :  { %v4115_v46 = vadd.f32 %v3884_v20, %v9644_v16  ;;  %4890 = vst.msk [vmem:[%s10251_s2 + $0xa0] sm:$0xff] %vm4869_vm8, %v4825_v55  ;;  %v4973_v33 = vsel %vm4869_vm8, %v4825_v55, 0.0  ;;  %v5089_v18 = vmul.f32 %v4825_v55, %v4825_v55  ;;  %v4828_v4 = vadd.f32 %v6816_v37, %v4116_v48  ;;  %v6819_v44 = vpop.f32.mrf.mxu0 }
 0x238   :  { %v6721_v42 = vpop.f32.mrf.mxu1  ;;  %v4974_v49 = vadd.f32 %v4973_v33, %v4972_v22  ;;  %v5171_v24 = vadd.f32 %v5170_v15, %v5169_v26  ;;  %v5174_v34 = vsel %vm4869_vm8, %v5090_v6, 0.0 }
 0x239   :  { %v4827_v53 = vadd.f32 %v4596_v45, %v4115_v46  ;;  %v4118_v8 = vadd.f32 %v6721_v42, %v9656_v63  ;;  %v5172_v16 = vsel %vm4869_vm8, %v5089_v18, 0.0  ;;  %4893 = vst.msk [vmem:[%s10251_s2 + $0xb8] sm:$0xff] %vm4869_vm8, %v4828_v4  ;;  %v4606_v3 = vpop.f32.mrf.mxu0  ;;  %v5092_v54 = vmul.f32 %v4828_v4, %v4828_v4 }
 0x23a   :  { %v3894_v62 = vpop.f32.mrf.mxu1  ;;  %v5173_v1 = vadd.f32 %v5172_v16, %v5171_v24  ;;  %v4976_v10 = vadd.f32 %v4975_v39, %v4974_v49  ;;  %v4979_v40 = vsel %vm4869_vm8, %v4828_v4, 0.0 }
 0x23b   :  { %4892 = vst.msk [vmem:[%s10251_s2 + $0xb0] sm:$0xff] %vm4869_vm8, %v4827_v53  ;;  %v4977_v63 = vsel %vm4869_vm8, %v4827_v53, 0.0  ;;  %v5091_v50 = vmul.f32 %v4827_v53, %v4827_v53  ;;  %v4830_v23 = vadd.f32 %v6819_v44, %v4118_v8  ;;  %v4117_v5 = vadd.f32 %v3894_v62, %v9663_v13  ;;  %v6822_v7 = vpop.f32.mrf.mxu0 }
 0x23c   :  { %v6724_v17 = vpop.f32.mrf.mxu1  ;;  %v4978_v11 = vadd.f32 %v4977_v63, %v4976_v10  ;;  %v5175_v58 = vadd.f32 %v5174_v34, %v5173_v1  ;;  %v5178_v15 = vsel %vm4869_vm8, %v5092_v54, 0.0 }
 0x23d   :  { %v5176_v35 = vsel %vm4869_vm8, %v5091_v50, 0.0  ;;  %v4120_v37 = vadd.f32 %v6724_v17, %v9672_v27  ;;  %4895 = vst.msk [vmem:[%s10251_s2 + $0xc8] sm:$0xff] %vm4869_vm8, %v4830_v23  ;;  %v5094_v52 = vmul.f32 %v4830_v23, %v4830_v23  ;;  %v4829_v9 = vadd.f32 %v4606_v3, %v4117_v5  ;;  %v4616_v55 = vpop.f32.mrf.mxu0 }
 0x23e   :  { %v3904_v60 = vpop.f32.mrf.mxu1  ;;  %v5177_v13 = vadd.f32 %v5176_v35, %v5175_v58  ;;  %v4980_v48 = vadd.f32 %v4979_v40, %v4978_v11 }
 0x23f   :  { %v4832_v20 = vadd.f32 %v6822_v7, %v4120_v37  ;;  %v4119_v45 = vadd.f32 %v3904_v60, %v9679_v0  ;;  %4894 = vst.msk [vmem:[%s10251_s2 + $0xc0] sm:$0xff] %vm4869_vm8, %v4829_v9  ;;  %v4981_v27 = vsel %vm4869_vm8, %v4829_v9, 0.0  ;;  %v5093_v26 = vmul.f32 %v4829_v9, %v4829_v9  ;;  %v6825_v46 = vpop.f32.mrf.mxu0 }
 0x240   :  { %v6727_v22 = vpop.f32.mrf.mxu1  ;;  %v4982_v6 = vadd.f32 %v4981_v27, %v4980_v48  ;;  %v5179_v33 = vadd.f32 %v5178_v15, %v5177_v13  ;;  %v4983_v0 = vsel %vm4869_vm8, %v4830_v23, 0.0  ;;  %v5182_v24 = vsel %vm4869_vm8, %v5094_v52, 0.0 }
 0x241   :  { %4897 = vst.msk [vmem:[%s10251_s2 + $0xd8] sm:$0xff] %vm4869_vm8, %v4832_v20  ;;  %v5180_v18 = vsel %vm4869_vm8, %v5093_v26, 0.0  ;;  %v4831_v4 = vadd.f32 %v4616_v55, %v4119_v45  ;;  %v4122_v42 = vadd.f32 %v6727_v22, %v9686_v32  ;;  %v4626_v49 = vpop.f32.mrf.mxu0  ;;  %v5096_v16 = vmul.f32 %v4832_v20, %v4832_v20 }
 0x242   :  { %v3914_v44 = vpop.f32.mrf.mxu1  ;;  %v5181_v53 = vadd.f32 %v5180_v18, %v5179_v33  ;;  %v4984_v8 = vadd.f32 %v4983_v0, %v4982_v6  ;;  %v4987_v23 = vsel %vm4869_vm8, %v4832_v20, 0.0 }
 0x243   :  { %v4121_v39 = vadd.f32 %v3914_v44, %v9691_v12  ;;  %4896 = vst.msk [vmem:[%s10251_s2 + $0xd0] sm:$0xff] %vm4869_vm8, %v4831_v4  ;;  %v4985_v62 = vsel %vm4869_vm8, %v4831_v4, 0.0  ;;  %v5095_v3 = vmul.f32 %v4831_v4, %v4831_v4  ;;  %v4834_v1 = vadd.f32 %v6825_v46, %v4122_v42  ;;  %v6828_v32 = vpop.f32.mrf.mxu0 }
 0x244   :  { %v6730_v10 = vpop.f32.mrf.mxu1  ;;  %v4986_v63 = vadd.f32 %v4985_v62, %v4984_v8  ;;  %v5183_v50 = vadd.f32 %v5182_v24, %v5181_v53  ;;  %v5186_v35 = vsel %vm4869_vm8, %v5096_v16, 0.0 }
 0x245   :  { %v4833_v34 = vadd.f32 %v4626_v49, %v4121_v39  ;;  %v4124_v54 = vadd.f32 %v6730_v10, %v9694_v56  ;;  %v5184_v12 = vsel %vm4869_vm8, %v5095_v3, 0.0  ;;  %4899 = vst.msk [vmem:[%s10251_s2 + $0xe8] sm:$0xff] %vm4869_vm8, %v4834_v1  ;;  %v4636_v17 = vpop.f32.mrf.mxu0  ;;  %v5098_v37 = vmul.f32 %v4834_v1, %v4834_v1 }
 0x246   :  { %v3924_v5 = vpop.f32.mrf.mxu1  ;;  %v5185_v7 = vadd.f32 %v5184_v12, %v5183_v50  ;;  %v4988_v11 = vadd.f32 %v4987_v23, %v4986_v63  ;;  %v4991_v45 = vsel %vm4869_vm8, %v4834_v1, 0.0 }
 0x247   :  { %4898 = vst.msk [vmem:[%s10251_s2 + $0xe0] sm:$0xff] %vm4869_vm8, %v4833_v34  ;;  %v4989_v56 = vsel %vm4869_vm8, %v4833_v34, 0.0  ;;  %v5097_v58 = vmul.f32 %v4833_v34, %v4833_v34  ;;  %v4836_v40 = vadd.f32 %v6828_v32, %v4124_v54  ;;  %v4123_v52 = vadd.f32 %v3924_v5, %v9697_v29  ;;  %v6831_v60 = vpop.f32.mrf.mxu0 }
 0x248   :  { %v6733_v9 = vpop.f32.mrf.mxu1  ;;  %v4990_v55 = vadd.f32 %v4989_v56, %v4988_v11  ;;  %v5187_v13 = vadd.f32 %v5186_v35, %v5185_v7  ;;  %v5190_v0 = vsel %vm4869_vm8, %v5098_v37, 0.0 }
 0x249   :  { %v5188_v48 = vsel %vm4869_vm8, %v5097_v58, 0.0  ;;  %v4126_v20 = vadd.f32 %v6733_v9, %v9700_v61  ;;  %4901 = vst.msk [vmem:[%s10251_s2 + $0xf8] sm:$0xff] %vm4869_vm8, %v4836_v40  ;;  %v5100_v15 = vmul.f32 %v4836_v40, %v4836_v40  ;;  %v4835_v27 = vadd.f32 %v4636_v17, %v4123_v52  ;;  %v4646_v22 = vpop.f32.mrf.mxu0 }
 0x24a   :  { %v3934_v26 = vpop.f32.mrf.mxu1  ;;  %v5189_v29 = vadd.f32 %v5188_v48, %v5187_v13  ;;  %v4992_v46 = vadd.f32 %v4991_v45, %v4990_v55 }
 0x24b   :  { %v4838_v6 = vadd.f32 %v6831_v60, %v4126_v20  ;;  %v4125_v33 = vadd.f32 %v3934_v26, %v9703_v25  ;;  %4900 = vst.msk [vmem:[%s10251_s2 + $0xf0] sm:$0xff] %vm4869_vm8, %v4835_v27  ;;  %v4993_v61 = vsel %vm4869_vm8, %v4835_v27, 0.0  ;;  %v5099_v18 = vmul.f32 %v4835_v27, %v4835_v27  ;;  %v6834_v42 = vpop.f32.mrf.mxu0 }
 0x24c   :  { %v6736_v4 = vpop.f32.mrf.mxu1  ;;  %v4994_v44 = vadd.f32 %v4993_v61, %v4992_v46  ;;  %v5191_v49 = vadd.f32 %v5190_v0, %v5189_v29  ;;  %v4995_v25 = vsel %vm4869_vm8, %v4836_v40, 0.0  ;;  %v5194_v62 = vsel %vm4869_vm8, %v5100_v15, 0.0 }
 0x24d   :  { %4903 = vst.msk [vmem:[%s10251_s2 + $0x108] sm:$0xff] %vm4869_vm8, %v4838_v6  ;;  %v5192_v24 = vsel %vm4869_vm8, %v5099_v18, 0.0  ;;  %v4837_v53 = vadd.f32 %v4646_v22, %v4125_v33  ;;  %v4128_v8 = vadd.f32 %v6736_v4, %v9706_v14  ;;  %v4656_v16 = vpop.f32.mrf.mxu0  ;;  %v5102_v32 = vmul.f32 %v4838_v6, %v4838_v6 }
 0x24e   :  { %v3944_v39 = vpop.f32.mrf.mxu1  ;;  %v5193_v3 = vadd.f32 %v5192_v24, %v5191_v49  ;;  %v4996_v1 = vadd.f32 %v4995_v25, %v4994_v44  ;;  %v4999_v7 = vsel %vm4869_vm8, %v4838_v6, 0.0 }
 0x24f   :  { %v4127_v10 = vadd.f32 %v3944_v39, %v9709_v30  ;;  %4902 = vst.msk [vmem:[%s10251_s2 + $0x100] sm:$0xff] %vm4869_vm8, %v4837_v53  ;;  %v4997_v63 = vsel %vm4869_vm8, %v4837_v53, 0.0  ;;  %v5101_v50 = vmul.f32 %v4837_v53, %v4837_v53  ;;  %v4840_v34 = vadd.f32 %v6834_v42, %v4128_v8  ;;  %v6837_v14 = vpop.f32.mrf.mxu0 }
 0x250   :  { %v6739_v54 = vpop.f32.mrf.mxu1  ;;  %v4998_v23 = vadd.f32 %v4997_v63, %v4996_v1  ;;  %v5195_v12 = vadd.f32 %v5194_v62, %v5193_v3  ;;  %v5198_v40 = vsel %vm4869_vm8, %v5102_v32, 0.0 }
 0x251   :  { %v4839_v5 = vadd.f32 %v4656_v16, %v4127_v10  ;;  %v4130_v17 = vadd.f32 %v6739_v54, %v9712_v28  ;;  %v5196_v30 = vsel %vm4869_vm8, %v5101_v50, 0.0  ;;  %4905 = vst.msk [vmem:[%s10251_s2 + $0x118] sm:$0xff] %vm4869_vm8, %v4840_v34  ;;  %v4666_v56 = vpop.f32.mrf.mxu0  ;;  %v5104_v52 = vmul.f32 %v4840_v34, %v4840_v34 }
 0x252   :  { %v3954_v11 = vpop.f32.mrf.mxu1  ;;  %v5197_v58 = vadd.f32 %v5196_v30, %v5195_v12  ;;  %v5000_v35 = vadd.f32 %v4999_v7, %v4998_v23  ;;  %v5003_v27 = vsel %vm4869_vm8, %v4840_v34, 0.0 }
 0x253   :  { %4904 = vst.msk [vmem:[%s10251_s2 + $0x110] sm:$0xff] %vm4869_vm8, %v4839_v5  ;;  %v5001_v28 = vsel %vm4869_vm8, %v4839_v5, 0.0  ;;  %v5103_v37 = vmul.f32 %v4839_v5, %v4839_v5  ;;  %v4842_v9 = vadd.f32 %v6837_v14, %v4130_v17  ;;  %v4129_v60 = vadd.f32 %v3954_v11, %v9715_v47  ;;  %v6840_v13 = vpop.f32.mrf.mxu0 }
 0x254   :  { %v6742_v55 = vpop.f32.mrf.mxu1  ;;  %v5002_v48 = vadd.f32 %v5001_v28, %v5000_v35  ;;  %v5199_v20 = vadd.f32 %v5198_v40, %v5197_v58  ;;  %v5202_v61 = vsel %vm4869_vm8, %v5104_v52, 0.0 }
 0x255   :  { %v5200_v45 = vsel %vm4869_vm8, %v5103_v37, 0.0  ;;  %v4132_v15 = vadd.f32 %v6742_v55, %v9718_v21  ;;  %4907 = vst.msk [vmem:[%s10251_s2 + $0x128] sm:$0xff] %vm4869_vm8, %v4842_v9  ;;  %v5106_v26 = vmul.f32 %v4842_v9, %v4842_v9  ;;  %v4841_v22 = vadd.f32 %v4666_v56, %v4129_v60  ;;  %v4676_v46 = vpop.f32.mrf.mxu0 }
 0x256   :  { %v3964_v29 = vpop.f32.mrf.mxu1  ;;  %v5201_v47 = vadd.f32 %v5200_v45, %v5199_v20  ;;  %v5004_v6 = vadd.f32 %v5003_v27, %v5002_v48 }
 0x257   :  { %v4844_v33 = vadd.f32 %v6840_v13, %v4132_v15  ;;  %v4131_v0 = vadd.f32 %v3964_v29, %v9721_v36  ;;  %4906 = vst.msk [vmem:[%s10251_s2 + $0x120] sm:$0xff] %vm4869_vm8, %v4841_v22  ;;  %v5005_v21 = vsel %vm4869_vm8, %v4841_v22, 0.0  ;;  %v5105_v18 = vmul.f32 %v4841_v22, %v4841_v22  ;;  %v6843_v42 = vpop.f32.mrf.mxu0  ;;  %v10595_v13 = vld [vmem:[#allocation25_spill] sm:$0xff] }
 0x258   :  { %v6745_v4 = vpop.f32.mrf.mxu1  ;;  %v5006_v44 = vadd.f32 %v5005_v21, %v5004_v6  ;;  %v5203_v49 = vadd.f32 %v5202_v61, %v5201_v47  ;;  %v5007_v36 = vsel %vm4869_vm8, %v4842_v9, 0.0  ;;  %v5206_v16 = vsel %vm4869_vm8, %v5106_v26, 0.0 }
 0x259   :  { %4909 = vst.msk [vmem:[%s10251_s2 + $0x138] sm:$0xff] %vm4869_vm8, %v4844_v33  ;;  %v5204_v25 = vsel %vm4869_vm8, %v5105_v18, 0.0  ;;  %v4843_v24 = vadd.f32 %v4676_v46, %v4131_v0  ;;  %v4134_v53 = vadd.f32 %v6745_v4, %v9724_v2  ;;  %v4686_v39 = vpop.f32.mrf.mxu0  ;;  %v5108_v10 = vmul.f32 %v4844_v33, %v4844_v33  ;;  %v10596_v46 = vld [vmem:[#allocation30_spill] sm:$0xff] }
 0x25a   :  { %v3974_v8 = vpop.f32.mrf.mxu1  ;;  %v5205_v62 = vadd.f32 %v5204_v25, %v5203_v49  ;;  %v5008_v3 = vadd.f32 %v5007_v36, %v5006_v44  ;;  %v5011_v5 = vsel %vm4869_vm8, %v4844_v33, 0.0  ;;  %v10597_v36 = vld [vmem:[#allocation31_spill] sm:$0xff] }
 0x25b   :  { %v4133_v1 = vadd.f32 %v3974_v8, %v9727_v43  ;;  %4908 = vst.msk [vmem:[%s10251_s2 + $0x130] sm:$0xff] %vm4869_vm8, %v4843_v24  ;;  %v5009_v32 = vsel %vm4869_vm8, %v4843_v24, 0.0  ;;  %v5107_v63 = vmul.f32 %v4843_v24, %v4843_v24  ;;  %v4846_v50 = vadd.f32 %v6843_v42, %v4134_v53  ;;  %v6846_v2 = vpop.f32.mrf.mxu0 }
 0x25c   :  { %v6748_v34 = vpop.f32.mrf.mxu1  ;;  %v5010_v54 = vadd.f32 %v5009_v32, %v5008_v3  ;;  %v5207_v14 = vadd.f32 %v5206_v16, %v5205_v62  ;;  %v5210_v58 = vsel %vm4869_vm8, %v5108_v10, 0.0  ;;  %v10598_v62 = vld [vmem:[#allocation32_spill] sm:$0xff] }
 0x25d   :  { %v4845_v23 = vadd.f32 %v4686_v39, %v4133_v1  ;;  %v4136_v12 = vadd.f32 %v6748_v34, %v9730_v59  ;;  %v5208_v43 = vsel %vm4869_vm8, %v5107_v63, 0.0  ;;  %4911 = vst.msk [vmem:[%s10251_s2 + $0x148] sm:$0xff] %vm4869_vm8, %v4846_v50  ;;  %v4696_v7 = vpop.f32.mrf.mxu0  ;;  %v5110_v35 = vmul.f32 %v4846_v50, %v4846_v50 }
 0x25e   :  { %v3984_v17 = vpop.f32.mrf.mxu1  ;;  %v5209_v30 = vadd.f32 %v5208_v43, %v5207_v14  ;;  %v5012_v11 = vadd.f32 %v5011_v5, %v5010_v54  ;;  %v5015_v20 = vsel %vm4869_vm8, %v4846_v50, 0.0 }
 0x25f   :  { %4910 = vst.msk [vmem:[%s10251_s2 + $0x140] sm:$0xff] %vm4869_vm8, %v4845_v23  ;;  %v5013_v59 = vsel %vm4869_vm8, %v4845_v23, 0.0  ;;  %v5109_v56 = vmul.f32 %v4845_v23, %v4845_v23  ;;  %v4848_v28 = vadd.f32 %v6846_v2, %v4136_v12  ;;  %v4135_v37 = vadd.f32 %v3984_v17, %v9733_v51  ;;  %v6849_v52 = vpop.f32.mrf.mxu0  ;;  %v10599_v23 = vld [vmem:[#allocation33_spill] sm:$0xff] }
 0x260   :  { %v6751_v40 = vpop.f32.mrf.mxu1  ;;  %v5014_v9 = vadd.f32 %v5013_v59, %v5012_v11  ;;  %v5211_v60 = vadd.f32 %v5210_v58, %v5209_v30  ;;  %v5214_v6 = vsel %vm4869_vm8, %v5110_v35, 0.0 }
 0x261   :  { %v5212_v55 = vsel %vm4869_vm8, %v5109_v56, 0.0  ;;  %v4138_v48 = vadd.f32 %v6751_v40, %v10595_v13  ;;  %4913 = vst.msk [vmem:[%s10251_s2 + $0x158] sm:$0xff] %vm4869_vm8, %v4848_v28  ;;  %v5112_v45 = vmul.f32 %v4848_v28, %v4848_v28  ;;  %v4847_v15 = vadd.f32 %v4696_v7, %v4135_v37  ;;  %v4706_v26 = vpop.f32.mrf.mxu0  ;;  %v10600_v37 = vld [vmem:[#allocation34_spill] sm:$0xff] }
 0x262   :  { %v3994_v27 = vpop.f32.mrf.mxu1  ;;  %v5213_v51 = vadd.f32 %v5212_v55, %v5211_v60  ;;  %v5016_v22 = vadd.f32 %v5015_v20, %v5014_v9  ;;  %v5019_v42 = vsel %vm4869_vm8, %v4848_v28, 0.0 }
 0x263   :  { %v4850_v29 = vadd.f32 %v6849_v52, %v4138_v48  ;;  %v4137_v47 = vadd.f32 %v3994_v27, %v10596_v46  ;;  %4912 = vst.msk [vmem:[%s10251_s2 + $0x150] sm:$0xff] %vm4869_vm8, %v4847_v15  ;;  %v5017_v33 = vsel %vm4869_vm8, %v4847_v15, 0.0  ;;  %v5111_v0 = vmul.f32 %v4847_v15, %v4847_v15  ;;  %v6852_v21 = vpop.f32.mrf.mxu0  ;;  %v10601_v48 = vld [vmem:[#allocation35_spill] sm:$0xff] }
 0x264   :  { %v6754_v61 = vpop.f32.mrf.mxu1  ;;  %v5018_v18 = vadd.f32 %v5017_v33, %v5016_v22  ;;  %v5215_v4 = vadd.f32 %v5214_v6, %v5213_v51  ;;  %v5218_v8 = vsel %vm4869_vm8, %v5112_v45, 0.0 }
 0x265   :  { %4915 = vst.msk [vmem:[%s10251_s2 + $0x168] sm:$0xff] %vm4869_vm8, %v4850_v29  ;;  %v5216_v44 = vsel %vm4869_vm8, %v5111_v0, 0.0  ;;  %v4849_v49 = vadd.f32 %v4706_v26, %v4137_v47  ;;  %v4140_v25 = vadd.f32 %v6754_v61, %v10597_v36  ;;  %v4716_v53 = vpop.f32.mrf.mxu0  ;;  %v5114_v1 = vmul.f32 %v4850_v29, %v4850_v29  ;;  %v10602_v47 = vld [vmem:[#allocation36_spill] sm:$0xff] }
 0x266   :  { %v4004_v24 = vpop.f32.mrf.mxu1  ;;  %v5217_v39 = vadd.f32 %v5216_v44, %v5215_v4  ;;  %v5020_v16 = vadd.f32 %v5019_v42, %v5018_v18  ;;  %v5023_v5 = vsel %vm4869_vm8, %v4850_v29, 0.0 }
 0x267   :  { %v4139_v3 = vadd.f32 %v4004_v24, %v10598_v62  ;;  %4914 = vst.msk [vmem:[%s10251_s2 + $0x160] sm:$0xff] %vm4869_vm8, %v4849_v49  ;;  %v5021_v10 = vsel %vm4869_vm8, %v4849_v49, 0.0  ;;  %v5113_v32 = vmul.f32 %v4849_v49, %v4849_v49  ;;  %v4852_v63 = vadd.f32 %v6852_v21, %v4140_v25  ;;  %v6855_v34 = vpop.f32.mrf.mxu0  ;;  %v10603_v25 = vld [vmem:[#allocation37_spill] sm:$0xff] }
 0x268   :  { %v6757_v50 = vpop.f32.mrf.mxu1  ;;  %v5022_v2 = vadd.f32 %v5021_v10, %v5020_v16  ;;  %v5219_v54 = vadd.f32 %v5218_v8, %v5217_v39  ;;  %v5222_v58 = vsel %vm4869_vm8, %v5114_v1, 0.0 }
 0x269   :  { %v4851_v14 = vadd.f32 %v4716_v53, %v4139_v3  ;;  %v4142_v12 = vadd.f32 %v6757_v50, %v10599_v23  ;;  %v5220_v43 = vsel %vm4869_vm8, %v5113_v32, 0.0  ;;  %4917 = vst.msk [vmem:[%s10251_s2 + $0x178] sm:$0xff] %vm4869_vm8, %v4852_v63  ;;  %v4726_v7 = vpop.f32.mrf.mxu0  ;;  %v5116_v35 = vmul.f32 %v4852_v63, %v4852_v63  ;;  %v10604_v3 = vld [vmem:[#allocation38_spill] sm:$0xff] }
 0x26a   :  { %v4014_v17 = vpop.f32.mrf.mxu1  ;;  %v5221_v30 = vadd.f32 %v5220_v43, %v5219_v54  ;;  %v5024_v11 = vadd.f32 %v5023_v5, %v5022_v2  ;;  %v5027_v45 = vsel %vm4869_vm8, %v4852_v63, 0.0 }
 0x26b   :  { %4916 = vst.msk [vmem:[%s10251_s2 + $0x170] sm:$0xff] %vm4869_vm8, %v4851_v14  ;;  %v5025_v59 = vsel %vm4869_vm8, %v4851_v14, 0.0  ;;  %v5115_v56 = vmul.f32 %v4851_v14, %v4851_v14  ;;  %v4854_v28 = vadd.f32 %v6855_v34, %v4142_v12  ;;  %v4141_v40 = vadd.f32 %v4014_v17, %v10600_v37  ;;  %v6858_v9 = vpop.f32.mrf.mxu0  ;;  %v10605_v12 = vld [vmem:[#allocation39_spill] sm:$0xff] }
 0x26c   :  { %v6760_v52 = vpop.f32.mrf.mxu1  ;;  %v5026_v60 = vadd.f32 %v5025_v59, %v5024_v11  ;;  %v5223_v55 = vadd.f32 %v5222_v58, %v5221_v30  ;;  %v5226_v33 = vsel %vm4869_vm8, %v5116_v35, 0.0 }
 0x26d   :  { %v5224_v13 = vsel %vm4869_vm8, %v5115_v56, 0.0  ;;  %v4144_v20 = vadd.f32 %v6760_v52, %v10601_v48  ;;  %4919 = vst.msk [vmem:[%s10251_s2 + $0x188] sm:$0xff] %vm4869_vm8, %v4854_v28  ;;  %v5118_v15 = vmul.f32 %v4854_v28, %v4854_v28  ;;  %v4853_v27 = vadd.f32 %v4726_v7, %v4141_v40  ;;  %v4736_v51 = vpop.f32.mrf.mxu0  ;;  %v10606_v40 = vld [vmem:[#allocation40_spill] sm:$0xff] }
 0x26e   :  { %v4024_v26 = vpop.f32.mrf.mxu1  ;;  %v5225_v22 = vadd.f32 %v5224_v13, %v5223_v55  ;;  %v5028_v29 = vadd.f32 %v5027_v45, %v5026_v60  ;;  %v5031_v44 = vsel %vm4869_vm8, %v4854_v28, 0.0 }
 0x26f   :  { %v4856_v46 = vadd.f32 %v6858_v9, %v4144_v20  ;;  %v4143_v6 = vadd.f32 %v4024_v26, %v10602_v47  ;;  %4918 = vst.msk [vmem:[%s10251_s2 + $0x180] sm:$0xff] %vm4869_vm8, %v4853_v27  ;;  %v5029_v0 = vsel %vm4869_vm8, %v4853_v27, 0.0  ;;  %v5117_v61 = vmul.f32 %v4853_v27, %v4853_v27  ;;  %v6861_v18 = vpop.f32.mrf.mxu0  ;;  %v10607_v20 = vld [vmem:[#allocation41_spill] sm:$0xff] }
 0x270   :  { %v6763_v21 = vpop.f32.mrf.mxu1  ;;  %v5030_v4 = vadd.f32 %v5029_v0, %v5028_v29  ;;  %v5227_v42 = vadd.f32 %v5226_v33, %v5225_v22  ;;  %v5230_v39 = vsel %vm4869_vm8, %v5118_v15, 0.0 }
 0x271   :  { %4921 = vst.msk [vmem:[%s10251_s2 + $0x198] sm:$0xff] %vm4869_vm8, %v4856_v46  ;;  %v5228_v49 = vsel %vm4869_vm8, %v5117_v61, 0.0  ;;  %v4855_v36 = vadd.f32 %v4736_v51, %v4143_v6  ;;  %v4146_v24 = vadd.f32 %v6763_v21, %v10603_v25  ;;  %v4746_v8 = vpop.f32.mrf.mxu0  ;;  %v5120_v10 = vmul.f32 %v4856_v46, %v4856_v46 }
 0x272   :  { %v4034_v53 = vpop.f32.mrf.mxu1  ;;  %v5229_v16 = vadd.f32 %v5228_v49, %v5227_v42  ;;  %v5032_v62 = vadd.f32 %v5031_v44, %v5030_v4  ;;  %v5035_v43 = vsel %vm4869_vm8, %v4856_v46, 0.0 }
 0x273   :  { %v4145_v1 = vadd.f32 %v4034_v53, %v10604_v3  ;;  %4920 = vst.msk [vmem:[%s10251_s2 + $0x190] sm:$0xff] %vm4869_vm8, %v4855_v36  ;;  %v5033_v32 = vsel %vm4869_vm8, %v4855_v36, 0.0  ;;  %v5119_v63 = vmul.f32 %v4855_v36, %v4855_v36  ;;  %v4858_v50 = vadd.f32 %v6861_v18, %v4146_v24  ;;  %v6864_v2 = vpop.f32.mrf.mxu0 }
 0x274   :  { %v6766_v34 = vpop.f32.mrf.mxu1  ;;  %v5034_v54 = vadd.f32 %v5033_v32, %v5032_v62  ;;  %v5231_v14 = vadd.f32 %v5230_v39, %v5229_v16  ;;  %v5234_v35 = vsel %vm4869_vm8, %v5120_v10, 0.0 }
 0x275   :  { %v4857_v23 = vadd.f32 %v4746_v8, %v4145_v1  ;;  %v4148_v5 = vadd.f32 %v6766_v34, %v10605_v12  ;;  %v5232_v17 = vsel %vm4869_vm8, %v5119_v63, 0.0  ;;  %4923 = vst.msk [vmem:[%s10251_s2 + $0x1a8] sm:$0xff] %vm4869_vm8, %v4858_v50  ;;  %v4756_v30 = vpop.f32.mrf.mxu0  ;;  %v5122_v28 = vmul.f32 %v4858_v50, %v4858_v50 }
 0x276   :  { %v4044_v7 = vpop.f32.mrf.mxu1  ;;  %v5233_v11 = vadd.f32 %v5232_v17, %v5231_v14  ;;  %v5036_v59 = vadd.f32 %v5035_v43, %v5034_v54  ;;  %v5039_v15 = vsel %vm4869_vm8, %v4858_v50, 0.0 }
 0x277   :  { %4922 = vst.msk [vmem:[%s10251_s2 + $0x1a0] sm:$0xff] %vm4869_vm8, %v4857_v23  ;;  %v5037_v56 = vsel %vm4869_vm8, %v4857_v23, 0.0  ;;  %v5121_v58 = vmul.f32 %v4857_v23, %v4857_v23  ;;  %v4860_v37 = vadd.f32 %v6864_v2, %v4148_v5  ;;  %v4147_v52 = vadd.f32 %v4044_v7, %v10606_v40  ;;  %v6867_v60 = vpop.f32.mrf.mxu0 }
 0x278   :  { %v6769_v9 = vpop.f32.mrf.mxu1  ;;  %v5038_v55 = vadd.f32 %v5037_v56, %v5036_v59  ;;  %v5235_v13 = vadd.f32 %v5234_v35, %v5233_v11  ;;  %v5238_v33 = vsel %vm4869_vm8, %v5122_v28, 0.0  ;;  %v10608_v28 = vld [vmem:[#allocation42_spill] sm:$0xff] }
 0x279   :  { %v5236_v48 = vsel %vm4869_vm8, %v5121_v58, 0.0  ;;  %v4150_v45 = vadd.f32 %v6769_v9, %v10607_v20  ;;  %4925 = vst.msk [vmem:[%s10251_s2 + $0x1b8] sm:$0xff] %vm4869_vm8, %v4860_v37  ;;  %v5124_v27 = vmul.f32 %v4860_v37, %v4860_v37  ;;  %v4859_v26 = vadd.f32 %v4756_v30, %v4147_v52  ;;  %v4766_v22 = vpop.f32.mrf.mxu0 }
 0x27a   :  { %v4054_v51 = vpop.f32.mrf.mxu1  ;;  %v5237_v29 = vadd.f32 %v5236_v48, %v5235_v13  ;;  %v5040_v46 = vadd.f32 %v5039_v15, %v5038_v55  ;;  %v10609_v48 = vld [vmem:[#allocation43_spill] sm:$0xff] }
 0x27b   :  { %v4862_v47 = vadd.f32 %v6867_v60, %v4150_v45  ;;  %v4149_v6 = vadd.f32 %v4054_v51, %v9775_v57  ;;  %4924 = vst.msk [vmem:[%s10251_s2 + $0x1b0] sm:$0xff] %vm4869_vm8, %v4859_v26  ;;  %v5041_v0 = vsel %vm4869_vm8, %v4859_v26, 0.0  ;;  %v5123_v61 = vmul.f32 %v4859_v26, %v4859_v26  ;;  %v6870_v18 = vpop.f32.mrf.mxu0 }
 0x27c   :  { %v6772_v21 = vpop.f32.mrf.mxu1  ;;  %v5042_v4 = vadd.f32 %v5041_v0, %v5040_v46  ;;  %v5239_v42 = vadd.f32 %v5238_v33, %v5237_v29  ;;  %v5043_v57 = vsel %vm4869_vm8, %v4860_v37, 0.0  ;;  %v5242_v53 = vsel %vm4869_vm8, %v5124_v27, 0.0 }
 0x27d   :  { %4927 = vst.msk [vmem:[%s10251_s2 + $0x1c8] sm:$0xff] %vm4869_vm8, %v4862_v47  ;;  %v5240_v44 = vsel %vm4869_vm8, %v5123_v61, 0.0  ;;  %v4861_v49 = vadd.f32 %v4766_v22, %v4149_v6  ;;  %v4152_v36 = vadd.f32 %v6772_v21, %v9778_v41  ;;  %v4776_v24 = vpop.f32.mrf.mxu0  ;;  %v5126_v62 = vmul.f32 %v4862_v47, %v4862_v47 }
 0x27e   :  { %v4064_v25 = vpop.f32.mrf.mxu1  ;;  %v5241_v8 = vadd.f32 %v5240_v44, %v5239_v42  ;;  %v5044_v39 = vadd.f32 %v5043_v57, %v5042_v4  ;;  %v5047_v54 = vsel %vm4869_vm8, %v4862_v47, 0.0 }
 0x27f   :  { %v4151_v16 = vadd.f32 %v4064_v25, %v9781_v31  ;;  %4926 = vst.msk [vmem:[%s10251_s2 + $0x1c0] sm:$0xff] %vm4869_vm8, %v4861_v49  ;;  %v5045_v3 = vsel %vm4869_vm8, %v4861_v49, 0.0  ;;  %v5125_v1 = vmul.f32 %v4861_v49, %v4861_v49  ;;  %v4864_v10 = vadd.f32 %v6870_v18, %v4152_v36  ;;  %v6873_v41 = vpop.f32.mrf.mxu0 }
 0x280   :  { %v6775_v32 = vpop.f32.mrf.mxu1  ;;  %v5046_v63 = vadd.f32 %v5045_v3, %v5044_v39  ;;  %v5243_v50 = vadd.f32 %v5242_v53, %v5241_v8  ;;  %v5246_v17 = vsel %vm4869_vm8, %v5126_v62, 0.0 }
 0x281   :  { %v4863_v34 = vadd.f32 %v4776_v24, %v4151_v16  ;;  %v4154_v2 = vadd.f32 %v6775_v32, %v9784_v38  ;;  %v5244_v31 = vsel %vm4869_vm8, %v5125_v1, 0.0  ;;  %4929 = vst.msk [vmem:[%s10251_s2 + $0x1d8] sm:$0xff] %vm4869_vm8, %v4864_v10  ;;  %v4786_v23 = vpop.f32.mrf.mxu0  ;;  %v5128_v7 = vmul.f32 %v4864_v10, %v4864_v10 }
 0x282   :  { %v4074_v14 = vpop.f32.mrf.mxu1  ;;  %v5245_v12 = vadd.f32 %v5244_v31, %v5243_v50  ;;  %v5048_v5 = vadd.f32 %v5047_v54, %v5046_v63  ;;  %v5051_v52 = vsel %vm4869_vm8, %v4864_v10, 0.0 }
 0x283   :  { %4928 = vst.msk [vmem:[%s10251_s2 + $0x1d0] sm:$0xff] %vm4869_vm8, %v4863_v34  ;;  %v5049_v38 = vsel %vm4869_vm8, %v4863_v34, 0.0  ;;  %v5127_v43 = vmul.f32 %v4863_v34, %v4863_v34  ;;  %v4866_v30 = vadd.f32 %v6873_v41, %v4154_v2  ;;  %v4153_v11 = vadd.f32 %v4074_v14, %v9787_v19  ;;  %v6876_v40 = vpop.f32.mrf.mxu0 }
 0x284   :  { %v6778_v59 = vpop.f32.mrf.mxu1  ;;  %v5050_v56 = vadd.f32 %v5049_v38, %v5048_v5  ;;  %v5247_v58 = vadd.f32 %v5246_v17, %v5245_v12  ;;  %v5250_v45 = vsel %vm4869_vm8, %v5128_v7, 0.0 }
 0x285   :  { %v5248_v35 = vsel %vm4869_vm8, %v5127_v43, 0.0  ;;  %v4156_v37 = vadd.f32 %v6778_v59, %v10608_v28  ;;  %4931 = vst.msk [vmem:[%s10251_s2 + $0x1e8] sm:$0xff] %vm4869_vm8, %v4866_v30  ;;  %v4865_v9 = vadd.f32 %v4786_v23, %v4153_v11  ;;  %v5130_v15 = vmul.f32 %v4866_v30, %v4866_v30  ;;  %v4796_v29 = vpop.f32.mrf.mxu0 }
 0x286   :  { %v4084_v60 = vpop.f32.mrf.mxu1  ;;  %v5249_v55 = vadd.f32 %v5248_v35, %v5247_v58  ;;  %v5052_v13 = vadd.f32 %v5051_v52, %v5050_v56  ;;  %v5055_v46 = vsel %vm4869_vm8, %v4866_v30, 0.0 }
 0x287   :  { %v4868_v19 = vadd.f32 %v6876_v40, %v4156_v37  ;;  %v4155_v20 = vadd.f32 %v4084_v60, %v10609_v48  ;;  %4930 = vst.msk [vmem:[%s10251_s2 + $0x1e0] sm:$0xff] %vm4869_vm8, %v4865_v9  ;;  %v5053_v27 = vsel %vm4869_vm8, %v4865_v9, 0.0  ;;  %v5129_v26 = vmul.f32 %v4865_v9, %v4865_v9 }
 0x288   :  { %v5054_v51 = vadd.f32 %v5053_v27, %v5052_v13  ;;  %v5251_v22 = vadd.f32 %v5250_v45, %v5249_v55  ;;  %v5254_v61 = vsel %vm4869_vm8, %v5130_v15, 0.0 }
 0x289   :  { %4933 = vst.msk [vmem:[%s10251_s2 + $0x1f8] sm:$0xff] %vm4869_vm8, %v4868_v19  ;;  %v5252_v47 = vsel %vm4869_vm8, %v5129_v26, 0.0  ;;  %v4867_v6 = vadd.f32 %v4796_v29, %v4155_v20  ;;  %v5132_v21 = vmul.f32 %v4868_v19, %v4868_v19  ;;  %v5059_v44 = vsel %vm4869_vm8, %v4868_v19, 0.0 }
 0x28a   :  { %v5253_v33 = vadd.f32 %v5252_v47, %v5251_v22  ;;  %v5056_v0 = vadd.f32 %v5055_v46, %v5054_v51 }
 0x28b   :  { %4932 = vst.msk [vmem:[%s10251_s2 + $0x1f0] sm:$0xff] %vm4869_vm8, %v4867_v6  ;;  %v5057_v18 = vsel %vm4869_vm8, %v4867_v6, 0.0  ;;  %v5131_v4 = vmul.f32 %v4867_v6, %v4867_v6  ;;  %v5258_v24 = vsel %vm4869_vm8, %v5132_v21, 0.0 }
 0x28c   :  { %v5058_v42 = vadd.f32 %v5057_v18, %v5056_v0  ;;  %v5255_v57 = vadd.f32 %v5254_v61, %v5253_v33 }
 0x28d   :  { %v5256_v49 = vsel %vm4869_vm8, %v5131_v4, 0.0 }
 0x28e   :  { %v5060_v36 = vadd.f32 %v5059_v44, %v5058_v42  ;;  %v5257_v25 = vadd.f32 %v5256_v49, %v5255_v57 }
 0x290   :  { %v5061_v53 = vrot.slane %v5060_v36, 4  ;;  %v5259_v8 = vadd.f32 %v5258_v24, %v5257_v25 }
 0x292   :  { %v5062_v39 = vadd.f32 %v5061_v53, %v5060_v36  ;;  %v5260_v16 = vrot.slane %v5259_v8, 4 }
 0x294   :  { %v5063_v62 = vrot.slane %v5062_v39, 2  ;;  %v5261_v3 = vadd.f32 %v5260_v16, %v5259_v8 }
 0x296   :  { %v5064_v1 = vadd.f32 %v5063_v62, %v5062_v39  ;;  %v5262_v10 = vrot.slane %v5261_v3, 2 }
 0x298   :  { %v5065_v32 = vrot.slane %v5064_v1, 1  ;;  %v5263_v41 = vadd.f32 %v5262_v10, %v5261_v3 }
 0x29a   :  { %v5066_v63 = vadd.f32 %v5065_v32, %v5064_v1  ;;  %v5264_v50 = vrot.slane %v5263_v41, 1 }
 0x29c   :  { %5068 = vst.msk [vmem:[%s10252_s3] sm:$0x1] %vm5067_vm9, %v5066_v63  ;;  %v5265_v34 = vadd.f32 %v5264_v50, %v5263_v41 }
 0x29e   :  { %5266 = vst.msk [vmem:[%s10252_s3 + $0x1] sm:$0x1] %vm5067_vm9, %v5265_v34 }

</bundles_post_ra>
